<compile_context>
chip_gen: v7x
topology: tpu7x:2x2x1
jax: 0.10.0
libtpu: 0.0.40
codegen_flags: <defaults>
</compile_context>

<pallas_src>
import functools

import jax
import jax.numpy as jnp
from jax.experimental import pallas as pl
from jax.experimental.pallas import tpu as pltpu

cfg = {
    'VGG11': [64, 'M', 128, 'M', 256, 256, 'M', 512, 512, 'M', 512, 512, 'M'],
    'VGG13': [64, 64, 'M', 128, 128, 'M', 256, 256, 'M', 512, 512, 'M', 512, 512, 'M'],
    'VGG16': [64, 64, 'M', 128, 128, 'M', 256, 256, 256, 'M', 512, 512, 512, 'M',
              512, 512, 512, 'M'],
    'VGG19': [64, 64, 'M', 128, 128, 'M', 256, 256, 256, 256, 'M', 512, 512, 512, 512,
              'M', 512, 512, 512, 512, 'M'],
}

BN_EPS = 1e-5
LANE = 128        # channel padding granularity (TPU lane width)
MAX_TCO = 256     # output-channel tile (matches the 256-wide v6e/v7x MXU)


def _round_up(x, m):
    return ((x + m - 1) // m) * m


# ---------------------------------------------------------------------------
# Conv3x3 (padding=1) + folded BatchNorm (eval) + ReLU  -- implicit GEMM
# ---------------------------------------------------------------------------
def _conv_bn_relu_kernel(x_ref, w_ref, scale_ref, shift_ref, mask_ref, o_ref,
                         acc_ref, *, H, W):
    # x_ref    : (1, (H+3)*(W+2), Cin)  flattened zero-padded input canvas (bf16)
    # w_ref    : (9, Cin, Tco)          conv taps, (dy, dx) major          (bf16)
    # scale/shift_ref : (1, Tco)        folded BN + conv bias              (f32)
    # mask_ref : (H*(W+2), 1)           1.0 on valid columns, 0.0 on wraps (f32)
    # o_ref    : (1, (H+3)*(W+2), Tco)  output canvas                      (bf16)
    # acc_ref  : (H*(W+2), Tco)         f32 accumulator scratch (VMEM)
    Wp = W + 2
    M = H * Wp
    # Canvas layout: 1 top pad row, 2 left pad cols.  For output pixel
    # (y, x) -> acc index m = y*Wp + x, tap (dy, dx) reads flat index
    # m + 1 + dy*Wp + dx  (right-edge taps wrap into the next row's zero pad).
    for k in range(9):
        dy, dx = divmod(k, 3)
        start = 1 + dy * Wp + dx
        xs = x_ref[0, pl.ds(start, M), :]                     # shifted window
        d = jnp.dot(xs, w_ref[k], preferred_element_type=jnp.float32)
        if k == 0:
            acc_ref[...] = d
        else:
            acc_ref[...] += d
    y = acc_ref[...] * scale_ref[...] + shift_ref[...]        # f32 epilogue
    y = jnp.maximum(y, 0.0) * mask_ref[...]                   # ReLU + zero wraps
    yb = y.astype(o_ref.dtype)

    L = o_ref.shape[1]
    Tco = o_ref.shape[2]
    head = Wp + 2                                             # top pad row + 2 left pads
    tail = L - head - M
    o_ref[0, pl.ds(0, head), :] = jnp.zeros((head, Tco), o_ref.dtype)
    o_ref[0, pl.ds(head, M), :] = yb
    o_ref[0, pl.ds(head + M, tail), :] = jnp.zeros((tail, Tco), o_ref.dtype)


def conv3x3_bn_relu(canvas, w, scale, shift, H, W):
    # canvas: (N, H+3, W+2, Cin) bf16   w: (9, Cin, Cout) bf16
    # scale/shift: (1, Cout) f32        returns (N, H+3, W+2, Cout) bf16
    N, Hc, Wp, Cin = canvas.shape
    assert Hc == H + 3 and Wp == W + 2
    assert w.shape[0] == 9 and w.shape[1] == Cin
    Cout = w.shape[2]
    assert Cout % LANE == 0
    assert scale.shape == (1, Cout) and shift.shape == (1, Cout)
    Tco = min(MAX_TCO, Cout)
    n_co = Cout // Tco
    L = Hc * Wp
    M = H * Wp

    xf = canvas.reshape(N, L, Cin)                            # free reshape
    mask = (jnp.arange(M) % Wp < W).astype(jnp.float32).reshape(M, 1)

    kernel = functools.partial(_conv_bn_relu_kernel, H=H, W=W)
    out = pl.pallas_call(
        kernel,
        out_shape=jax.ShapeDtypeStruct((N, L, Cout), jnp.bfloat16),
        grid=(n_co, N),
        in_specs=[
            pl.BlockSpec((1, L, Cin), lambda co, n: (n, 0, 0)),
            pl.BlockSpec((9, Cin, Tco), lambda co, n: (0, 0, co)),
            pl.BlockSpec((1, Tco), lambda co, n: (0, co)),
            pl.BlockSpec((1, Tco), lambda co, n: (0, co)),
            pl.BlockSpec((M, 1), lambda co, n: (0, 0)),
        ],
        out_specs=pl.BlockSpec((1, L, Tco), lambda co, n: (n, 0, co)),
        scratch_shapes=[pltpu.VMEM((M, Tco), jnp.float32)],
        compiler_params=pltpu.CompilerParams(
            dimension_semantics=("parallel", "parallel")),
    )(xf, w, scale, shift, mask)
    return out.reshape(N, Hc, Wp, Cout)


# ---------------------------------------------------------------------------
# MaxPool2d(kernel_size=2, stride=2) -- no strided indexing
# ---------------------------------------------------------------------------
def _maxpool_kernel(x_ref, o_ref, *, H, W, C):
    # x_ref: (1, H+3, (W+2)//2, 2*C)  canvas viewed as column pairs (bf16)
    #        (with a left pad of 2, pair j>=1 holds pixel columns 2j-2, 2j-1)
    # o_ref: (1, H//2+3, W//2+2, C)   pooled canvas (bf16)
    Ho, Wo = H // 2, W // 2
    v = x_ref[0, pl.ds(1, H), pl.ds(1, Wo), :]                # (H, Wo, 2C)
    v = v.reshape(Ho, 2, Wo, 2 * C)                           # row pairs (leading dims)
    vm = jnp.maximum(v[:, 0], v[:, 1])                        # vertical max   (Ho, Wo, 2C)
    p = jnp.maximum(vm[:, :, :C], vm[:, :, C:])               # horizontal max (Ho, Wo, C)
    o_ref[...] = jnp.zeros_like(o_ref)                        # zero pad borders
    o_ref[0, 1:1 + Ho, 2:2 + Wo, :] = p.astype(o_ref.dtype)


def maxpool2x2(canvas, H, W):
    assert H % 2 == 0 and W % 2 == 0, "maxpool2x2 requires even spatial dims"
    N, Hc, Wp, C = canvas.shape
    assert Hc == H + 3 and Wp == W + 2
    Ho, Wo = H // 2, W // 2
    Wq = Wp // 2
    xp = canvas.reshape(N, Hc, Wq, 2 * C)                     # free HBM reshape
    kernel = functools.partial(_maxpool_kernel, H=H, W=W, C=C)
    return pl.pallas_call(
        kernel,
        out_shape=jax.ShapeDtypeStruct((N, Ho + 3, Wo + 2, C), jnp.bfloat16),
        grid=(N,),
        in_specs=[pl.BlockSpec((1, Hc, Wq, 2 * C), lambda n: (n, 0, 0, 0))],
        out_specs=pl.BlockSpec((1, Ho + 3, Wo + 2, C), lambda n: (n, 0, 0, 0)),
        compiler_params=pltpu.CompilerParams(dimension_semantics=("parallel",)),
    )(xp)


# ---------------------------------------------------------------------------
# AvgPool2d(kernel_size=width) + flatten + Linear(512, nclass), fused
# ---------------------------------------------------------------------------
def _avgpool_linear_kernel(x_ref, w_ref, b_ref, o_ref, *, Hf, Wf):
    v = x_ref[0, pl.ds(1, Hf), pl.ds(2, Wf), :].astype(jnp.float32)  # (Hf, Wf, C)
    s = jnp.sum(v, axis=0)                                           # (Wf, C)
    s = jnp.sum(s, axis=0, keepdims=True) * (1.0 / (Hf * Wf))        # (1, C)
    y = jnp.dot(s, w_ref[...], preferred_element_type=jnp.float32) + b_ref[...]
    o_ref[0] = y


def avgpool_linear(canvas, w, b, Hf, Wf):
    N, Hc, Wp, C = canvas.shape
    assert Hc == Hf + 3 and Wp == Wf + 2
    assert w.shape[0] == C
    ncp = w.shape[1]
    kernel = functools.partial(_avgpool_linear_kernel, Hf=Hf, Wf=Wf)
    out = pl.pallas_call(
        kernel,
        out_shape=jax.ShapeDtypeStruct((N, 1, ncp), jnp.float32),
        grid=(N,),
        in_specs=[
            pl.BlockSpec((1, Hc, Wp, C), lambda n: (n, 0, 0, 0)),
            pl.BlockSpec((C, ncp), lambda n: (0, 0)),
            pl.BlockSpec((1, ncp), lambda n: (0, 0)),
        ],
        out_specs=pl.BlockSpec((1, 1, ncp), lambda n: (n, 0, 0)),
        compiler_params=pltpu.CompilerParams(dimension_semantics=("parallel",)),
    )(canvas, w, b)
    return out.reshape(N, ncp)


# ---------------------------------------------------------------------------
# Parameter construction (deterministic, synthetic) and forward pass
# ---------------------------------------------------------------------------
def init_params(key, vgg_name, nclass, img_width=32):
    layers = []
    in_c = LANE                          # image channels (3) zero-padded to 128
    width = img_width
    for v in cfg[vgg_name]:
        if v == 'M':
            layers.append(('pool',))
            width //= 2
        else:
            cout = _round_up(v, LANE)    # lane-dense channels
            key, kw, kb, kg, kbe = jax.random.split(key, 5)
            fan_in = 9 * in_c
            w = jax.random.normal(kw, (9, in_c, cout), jnp.float32) * jnp.sqrt(2.0 / fan_in)
            conv_bias = 0.01 * jax.random.normal(kb, (cout,), jnp.float32)
            gamma = 1.0 + 0.1 * jax.random.normal(kg, (cout,), jnp.float32)
            beta = 0.1 * jax.random.normal(kbe, (cout,), jnp.float32)
            running_mean = jnp.zeros((cout,), jnp.float32)
            running_var = jnp.ones((cout,), jnp.float32)
            # fold conv bias + eval-mode BatchNorm into per-channel scale/shift
            scale = gamma / jnp.sqrt(running_var + BN_EPS)
            shift = beta + scale * (conv_bias - running_mean)
            # padded (dummy) output channels must stay exactly zero through ReLU
            live = jnp.arange(cout) < v
            scale = jnp.where(live, scale, 0.0)
            shift = jnp.where(live, shift, 0.0)
            layers.append(('conv', w.astype(jnp.bfloat16),
                           scale.reshape(1, cout), shift.reshape(1, cout)))
            in_c = cout
    ncp = _round_up(nclass, LANE)
    key, kw, kb = jax.random.split(key, 3)
    wc = jax.random.normal(kw, (in_c, ncp), jnp.float32) * jnp.sqrt(1.0 / in_c)
    bc = 0.01 * jax.random.normal(kb, (1, ncp), jnp.float32)
    return layers, (wc, bc)


def vgg_plain_forward(x_nchw, layers, classifier, nclass):
    N, Cimg, H, W = x_nchw.shape
    x = jnp.transpose(x_nchw, (0, 2, 3, 1))                   # NCHW -> NHWC
    x = jnp.pad(x, ((0, 0), (0, 0), (0, 0), (0, LANE - Cimg)))  # channels 3 -> 128
    # initial padded canvas (N, H+3, W+2, 128): 1 top pad row, 2 left pad cols,
    # 2 spare zero rows at the bottom
    canvas = jnp.pad(x, ((0, 0), (1, 2), (2, 0), (0, 0))).astype(jnp.bfloat16)
    for layer in layers:
        if layer[0] == 'pool':
            canvas = maxpool2x2(canvas, H, W)
            H //= 2
            W //= 2
        else:
            _, w, scale, shift = layer
            canvas = conv3x3_bn_relu(canvas, w, scale, shift, H, W)
    wc, bc = classifier
    logits = avgpool_linear(canvas, wc, bc, H, W)             # (N, nclass_padded)
    return logits[:, :nclass]


if __name__ == "__main__":
    key = jax.random.PRNGKey(0)
    key, kx, kp = jax.random.split(key, 3)

    # img_width must be 32 so the five 2x2 max-pools of VGG reach 1x1 spatial.
    N, NCLASS, IMG_W = 2, 10, 32
    x = jax.random.normal(kx, (N, 3, IMG_W, IMG_W), jnp.float32)

    layers, classifier = init_params(kp, 'VGG11', NCLASS, IMG_W)
    out = vgg_plain_forward(x, layers, classifier, NCLASS)
    out = jax.block_until_ready(out)
    assert out.shape == (N, NCLASS), out.shape
    assert bool(jnp.all(jnp.isfinite(out)))
    print("KERNEL_OK")
</pallas_src>

<mosaic_0001>
module attributes {stable_mosaic.version = 11 : i64} {
  func.func @_conv_bn_relu_kernel(%arg0: i32, %arg1: i32, %arg2: memref<1x1190x128xbf16, #tpu.memory_space<vmem>>, %arg3: memref<9x128x128xbf16, #tpu.memory_space<vmem>>, %arg4: memref<1x128xf32, #tpu.memory_space<vmem>>, %arg5: memref<1x128xf32, #tpu.memory_space<vmem>>, %arg6: memref<1088x1xf32, #tpu.memory_space<vmem>>, %arg7: memref<1x1190x128xbf16, #tpu.memory_space<vmem>>, %arg8: memref<1088x128xf32, #tpu.memory_space<vmem>>) attributes {dimension_semantics = [#tpu.dimension_semantics<parallel>, #tpu.dimension_semantics<parallel>], iteration_bounds = array<i64: 1, 2>, scalar_prefetch = 0 : i64, scratch_operands = 1 : i64, tpu.core_type = #tpu.core_type<tc>, window_params = [{transform_indices = @transform_0, window_bounds = array<i64: 1, 1190, 128>}, {transform_indices = @transform_1, window_bounds = array<i64: 9, 128, 128>}, {transform_indices = @transform_2, window_bounds = array<i64: 1, 128>}, {transform_indices = @transform_3, window_bounds = array<i64: 1, 128>}, {pipeline_mode = #tpu.pipeline_mode<synchronous>, transform_indices = @transform_4, window_bounds = array<i64: 1088, 1>}, {transform_indices = @transform_5, window_bounds = array<i64: 1, 1190, 128>}]} {
    %c0 = arith.constant 0 : index
    %c1 = arith.constant 1 : index
    %c0_0 = arith.constant 0 : index
    %0 = vector.load %arg2[%c0, %c1, %c0_0] : memref<1x1190x128xbf16, #tpu.memory_space<vmem>>, vector<1x1088x128xbf16>
    %1 = vector.shape_cast %0 : vector<1x1088x128xbf16> to vector<1088x128xbf16>
    %c0_1 = arith.constant 0 : index
    %c0_2 = arith.constant 0 : index
    %c0_3 = arith.constant 0 : index
    %2 = vector.load %arg3[%c0_1, %c0_2, %c0_3] : memref<9x128x128xbf16, #tpu.memory_space<vmem>>, vector<1x128x128xbf16>
    %3 = vector.shape_cast %2 : vector<1x128x128xbf16> to vector<128x128xbf16>
    %cst = arith.constant dense<0.000000e+00> : vector<1088x128xf32>
    %4 = tpu.matmul %1, %3, %cst {dimension_numbers = #tpu.dot_dimension_numbers<[1], [0], [0], [1], [0, 0, 1, 1], [], []>} : vector<1088x128xbf16>, vector<128x128xbf16>, vector<1088x128xf32> -> vector<1088x128xf32>
    %c0_4 = arith.constant 0 : index
    %c0_5 = arith.constant 0 : index
    %5 = vector.load %arg8[%c0_4, %c0_5] : memref<1088x128xf32, #tpu.memory_space<vmem>>, vector<1088x128xf32>
    tpu.vector_store %arg8[%c0_4, %c0_5], %4 {strides = array<i32>} : memref<1088x128xf32, #tpu.memory_space<vmem>>, vector<1088x128xf32>,
    %c0_6 = arith.constant 0 : index
    %c2 = arith.constant 2 : index
    %c0_7 = arith.constant 0 : index
    %6 = vector.load %arg2[%c0_6, %c2, %c0_7] : memref<1x1190x128xbf16, #tpu.memory_space<vmem>>, vector<1x1088x128xbf16>
    %7 = vector.shape_cast %6 : vector<1x1088x128xbf16> to vector<1088x128xbf16>
    %c1_8 = arith.constant 1 : index
    %c0_9 = arith.constant 0 : index
    %c0_10 = arith.constant 0 : index
    %8 = vector.load %arg3[%c1_8, %c0_9, %c0_10] : memref<9x128x128xbf16, #tpu.memory_space<vmem>>, vector<1x128x128xbf16>
    %9 = vector.shape_cast %8 : vector<1x128x128xbf16> to vector<128x128xbf16>
    %cst_11 = arith.constant dense<0.000000e+00> : vector<1088x128xf32>
    %10 = tpu.matmul %7, %9, %cst_11 {dimension_numbers = #tpu.dot_dimension_numbers<[1], [0], [0], [1], [0, 0, 1, 1], [], []>} : vector<1088x128xbf16>, vector<128x128xbf16>, vector<1088x128xf32> -> vector<1088x128xf32>
    %c0_12 = arith.constant 0 : index
    %c0_13 = arith.constant 0 : index
    %11 = vector.load %arg8[%c0_12, %c0_13] : memref<1088x128xf32, #tpu.memory_space<vmem>>, vector<1088x128xf32>
    %12 = arith.addf %11, %10 : vector<1088x128xf32>
    %c0_14 = arith.constant 0 : index
    %c0_15 = arith.constant 0 : index
    %13 = vector.load %arg8[%c0_14, %c0_15] : memref<1088x128xf32, #tpu.memory_space<vmem>>, vector<1088x128xf32>
    tpu.vector_store %arg8[%c0_14, %c0_15], %12 {strides = array<i32>} : memref<1088x128xf32, #tpu.memory_space<vmem>>, vector<1088x128xf32>,
    %c0_16 = arith.constant 0 : index
    %c3 = arith.constant 3 : index
    %c0_17 = arith.constant 0 : index
    %14 = vector.load %arg2[%c0_16, %c3, %c0_17] : memref<1x1190x128xbf16, #tpu.memory_space<vmem>>, vector<1x1088x128xbf16>
    %15 = vector.shape_cast %14 : vector<1x1088x128xbf16> to vector<1088x128xbf16>
    %c2_18 = arith.constant 2 : index
    %c0_19 = arith.constant 0 : index
    %c0_20 = arith.constant 0 : index
    %16 = vector.load %arg3[%c2_18, %c0_19, %c0_20] : memref<9x128x128xbf16, #tpu.memory_space<vmem>>, vector<1x128x128xbf16>
    %17 = vector.shape_cast %16 : vector<1x128x128xbf16> to vector<128x128xbf16>
    %cst_21 = arith.constant dense<0.000000e+00> : vector<1088x128xf32>
    %18 = tpu.matmul %15, %17, %cst_21 {dimension_numbers = #tpu.dot_dimension_numbers<[1], [0], [0], [1], [0, 0, 1, 1], [], []>} : vector<1088x128xbf16>, vector<128x128xbf16>, vector<1088x128xf32> -> vector<1088x128xf32>
    %c0_22 = arith.constant 0 : index
    %c0_23 = arith.constant 0 : index
    %19 = vector.load %arg8[%c0_22, %c0_23] : memref<1088x128xf32, #tpu.memory_space<vmem>>, vector<1088x128xf32>
    %20 = arith.addf %19, %18 : vector<1088x128xf32>
    %c0_24 = arith.constant 0 : index
    %c0_25 = arith.constant 0 : index
    %21 = vector.load %arg8[%c0_24, %c0_25] : memref<1088x128xf32, #tpu.memory_space<vmem>>, vector<1088x128xf32>
    tpu.vector_store %arg8[%c0_24, %c0_25], %20 {strides = array<i32>} : memref<1088x128xf32, #tpu.memory_space<vmem>>, vector<1088x128xf32>,
    %c0_26 = arith.constant 0 : index
    %c35 = arith.constant 35 : index
    %c0_27 = arith.constant 0 : index
    %22 = vector.load %arg2[%c0_26, %c35, %c0_27] : memref<1x1190x128xbf16, #tpu.memory_space<vmem>>, vector<1x1088x128xbf16>
    %23 = vector.shape_cast %22 : vector<1x1088x128xbf16> to vector<1088x128xbf16>
    %c3_28 = arith.constant 3 : index
    %c0_29 = arith.constant 0 : index
    %c0_30 = arith.constant 0 : index
    %24 = vector.load %arg3[%c3_28, %c0_29, %c0_30] : memref<9x128x128xbf16, #tpu.memory_space<vmem>>, vector<1x128x128xbf16>
    %25 = vector.shape_cast %24 : vector<1x128x128xbf16> to vector<128x128xbf16>
    %cst_31 = arith.constant dense<0.000000e+00> : vector<1088x128xf32>
    %26 = tpu.matmul %23, %25, %cst_31 {dimension_numbers = #tpu.dot_dimension_numbers<[1], [0], [0], [1], [0, 0, 1, 1], [], []>} : vector<1088x128xbf16>, vector<128x128xbf16>, vector<1088x128xf32> -> vector<1088x128xf32>
    %c0_32 = arith.constant 0 : index
    %c0_33 = arith.constant 0 : index
    %27 = vector.load %arg8[%c0_32, %c0_33] : memref<1088x128xf32, #tpu.memory_space<vmem>>, vector<1088x128xf32>
    %28 = arith.addf %27, %26 : vector<1088x128xf32>
    %c0_34 = arith.constant 0 : index
    %c0_35 = arith.constant 0 : index
    %29 = vector.load %arg8[%c0_34, %c0_35] : memref<1088x128xf32, #tpu.memory_space<vmem>>, vector<1088x128xf32>
    tpu.vector_store %arg8[%c0_34, %c0_35], %28 {strides = array<i32>} : memref<1088x128xf32, #tpu.memory_space<vmem>>, vector<1088x128xf32>,
    %c0_36 = arith.constant 0 : index
    %c36 = arith.constant 36 : index
    %c0_37 = arith.constant 0 : index
    %30 = vector.load %arg2[%c0_36, %c36, %c0_37] : memref<1x1190x128xbf16, #tpu.memory_space<vmem>>, vector<1x1088x128xbf16>
    %31 = vector.shape_cast %30 : vector<1x1088x128xbf16> to vector<1088x128xbf16>
    %c4 = arith.constant 4 : index
    %c0_38 = arith.constant 0 : index
    %c0_39 = arith.constant 0 : index
    %32 = vector.load %arg3[%c4, %c0_38, %c0_39] : memref<9x128x128xbf16, #tpu.memory_space<vmem>>, vector<1x128x128xbf16>
    %33 = vector.shape_cast %32 : vector<1x128x128xbf16> to vector<128x128xbf16>
    %cst_40 = arith.constant dense<0.000000e+00> : vector<1088x128xf32>
    %34 = tpu.matmul %31, %33, %cst_40 {dimension_numbers = #tpu.dot_dimension_numbers<[1], [0], [0], [1], [0, 0, 1, 1], [], []>} : vector<1088x128xbf16>, vector<128x128xbf16>, vector<1088x128xf32> -> vector<1088x128xf32>
    %c0_41 = arith.constant 0 : index
    %c0_42 = arith.constant 0 : index
    %35 = vector.load %arg8[%c0_41, %c0_42] : memref<1088x128xf32, #tpu.memory_space<vmem>>, vector<1088x128xf32>
    %36 = arith.addf %35, %34 : vector<1088x128xf32>
    %c0_43 = arith.constant 0 : index
    %c0_44 = arith.constant 0 : index
    %37 = vector.load %arg8[%c0_43, %c0_44] : memref<1088x128xf32, #tpu.memory_space<vmem>>, vector<1088x128xf32>
    tpu.vector_store %arg8[%c0_43, %c0_44], %36 {strides = array<i32>} : memref<1088x128xf32, #tpu.memory_space<vmem>>, vector<1088x128xf32>,
    %c0_45 = arith.constant 0 : index
    %c37 = arith.constant 37 : index
    %c0_46 = arith.constant 0 : index
    %38 = vector.load %arg2[%c0_45, %c37, %c0_46] : memref<1x1190x128xbf16, #tpu.memory_space<vmem>>, vector<1x1088x128xbf16>
    %39 = vector.shape_cast %38 : vector<1x1088x128xbf16> to vector<1088x128xbf16>
    %c5 = arith.constant 5 : index
    %c0_47 = arith.constant 0 : index
    %c0_48 = arith.constant 0 : index
    %40 = vector.load %arg3[%c5, %c0_47, %c0_48] : memref<9x128x128xbf16, #tpu.memory_space<vmem>>, vector<1x128x128xbf16>
    %41 = vector.shape_cast %40 : vector<1x128x128xbf16> to vector<128x128xbf16>
    %cst_49 = arith.constant dense<0.000000e+00> : vector<1088x128xf32>
    %42 = tpu.matmul %39, %41, %cst_49 {dimension_numbers = #tpu.dot_dimension_numbers<[1], [0], [0], [1], [0, 0, 1, 1], [], []>} : vector<1088x128xbf16>, vector<128x128xbf16>, vector<1088x128xf32> -> vector<1088x128xf32>
    %c0_50 = arith.constant 0 : index
    %c0_51 = arith.constant 0 : index
    %43 = vector.load %arg8[%c0_50, %c0_51] : memref<1088x128xf32, #tpu.memory_space<vmem>>, vector<1088x128xf32>
    %44 = arith.addf %43, %42 : vector<1088x128xf32>
    %c0_52 = arith.constant 0 : index
    %c0_53 = arith.constant 0 : index
    %45 = vector.load %arg8[%c0_52, %c0_53] : memref<1088x128xf32, #tpu.memory_space<vmem>>, vector<1088x128xf32>
    tpu.vector_store %arg8[%c0_52, %c0_53], %44 {strides = array<i32>} : memref<1088x128xf32, #tpu.memory_space<vmem>>, vector<1088x128xf32>,
    %c0_54 = arith.constant 0 : index
    %c69 = arith.constant 69 : index
    %c0_55 = arith.constant 0 : index
    %46 = vector.load %arg2[%c0_54, %c69, %c0_55] : memref<1x1190x128xbf16, #tpu.memory_space<vmem>>, vector<1x1088x128xbf16>
    %47 = vector.shape_cast %46 : vector<1x1088x128xbf16> to vector<1088x128xbf16>
    %c6 = arith.constant 6 : index
    %c0_56 = arith.constant 0 : index
    %c0_57 = arith.constant 0 : index
    %48 = vector.load %arg3[%c6, %c0_56, %c0_57] : memref<9x128x128xbf16, #tpu.memory_space<vmem>>, vector<1x128x128xbf16>
    %49 = vector.shape_cast %48 : vector<1x128x128xbf16> to vector<128x128xbf16>
    %cst_58 = arith.constant dense<0.000000e+00> : vector<1088x128xf32>
    %50 = tpu.matmul %47, %49, %cst_58 {dimension_numbers = #tpu.dot_dimension_numbers<[1], [0], [0], [1], [0, 0, 1, 1], [], []>} : vector<1088x128xbf16>, vector<128x128xbf16>, vector<1088x128xf32> -> vector<1088x128xf32>
    %c0_59 = arith.constant 0 : index
    %c0_60 = arith.constant 0 : index
    %51 = vector.load %arg8[%c0_59, %c0_60] : memref<1088x128xf32, #tpu.memory_space<vmem>>, vector<1088x128xf32>
    %52 = arith.addf %51, %50 : vector<1088x128xf32>
    %c0_61 = arith.constant 0 : index
    %c0_62 = arith.constant 0 : index
    %53 = vector.load %arg8[%c0_61, %c0_62] : memref<1088x128xf32, #tpu.memory_space<vmem>>, vector<1088x128xf32>
    tpu.vector_store %arg8[%c0_61, %c0_62], %52 {strides = array<i32>} : memref<1088x128xf32, #tpu.memory_space<vmem>>, vector<1088x128xf32>,
    %c0_63 = arith.constant 0 : index
    %c70 = arith.constant 70 : index
    %c0_64 = arith.constant 0 : index
    %54 = vector.load %arg2[%c0_63, %c70, %c0_64] : memref<1x1190x128xbf16, #tpu.memory_space<vmem>>, vector<1x1088x128xbf16>
    %55 = vector.shape_cast %54 : vector<1x1088x128xbf16> to vector<1088x128xbf16>
    %c7 = arith.constant 7 : index
    %c0_65 = arith.constant 0 : index
    %c0_66 = arith.constant 0 : index
    %56 = vector.load %arg3[%c7, %c0_65, %c0_66] : memref<9x128x128xbf16, #tpu.memory_space<vmem>>, vector<1x128x128xbf16>
    %57 = vector.shape_cast %56 : vector<1x128x128xbf16> to vector<128x128xbf16>
    %cst_67 = arith.constant dense<0.000000e+00> : vector<1088x128xf32>
    %58 = tpu.matmul %55, %57, %cst_67 {dimension_numbers = #tpu.dot_dimension_numbers<[1], [0], [0], [1], [0, 0, 1, 1], [], []>} : vector<1088x128xbf16>, vector<128x128xbf16>, vector<1088x128xf32> -> vector<1088x128xf32>
    %c0_68 = arith.constant 0 : index
    %c0_69 = arith.constant 0 : index
    %59 = vector.load %arg8[%c0_68, %c0_69] : memref<1088x128xf32, #tpu.memory_space<vmem>>, vector<1088x128xf32>
    %60 = arith.addf %59, %58 : vector<1088x128xf32>
    %c0_70 = arith.constant 0 : index
    %c0_71 = arith.constant 0 : index
    %61 = vector.load %arg8[%c0_70, %c0_71] : memref<1088x128xf32, #tpu.memory_space<vmem>>, vector<1088x128xf32>
    tpu.vector_store %arg8[%c0_70, %c0_71], %60 {strides = array<i32>} : memref<1088x128xf32, #tpu.memory_space<vmem>>, vector<1088x128xf32>,
    %c0_72 = arith.constant 0 : index
    %c71 = arith.constant 71 : index
    %c0_73 = arith.constant 0 : index
    %62 = vector.load %arg2[%c0_72, %c71, %c0_73] : memref<1x1190x128xbf16, #tpu.memory_space<vmem>>, vector<1x1088x128xbf16>
    %63 = vector.shape_cast %62 : vector<1x1088x128xbf16> to vector<1088x128xbf16>
    %c8 = arith.constant 8 : index
    %c0_74 = arith.constant 0 : index
    %c0_75 = arith.constant 0 : index
    %64 = vector.load %arg3[%c8, %c0_74, %c0_75] : memref<9x128x128xbf16, #tpu.memory_space<vmem>>, vector<1x128x128xbf16>
    %65 = vector.shape_cast %64 : vector<1x128x128xbf16> to vector<128x128xbf16>
    %cst_76 = arith.constant dense<0.000000e+00> : vector<1088x128xf32>
    %66 = tpu.matmul %63, %65, %cst_76 {dimension_numbers = #tpu.dot_dimension_numbers<[1], [0], [0], [1], [0, 0, 1, 1], [], []>} : vector<1088x128xbf16>, vector<128x128xbf16>, vector<1088x128xf32> -> vector<1088x128xf32>
    %c0_77 = arith.constant 0 : index
    %c0_78 = arith.constant 0 : index
    %67 = vector.load %arg8[%c0_77, %c0_78] : memref<1088x128xf32, #tpu.memory_space<vmem>>, vector<1088x128xf32>
    %68 = arith.addf %67, %66 : vector<1088x128xf32>
    %c0_79 = arith.constant 0 : index
    %c0_80 = arith.constant 0 : index
    %69 = vector.load %arg8[%c0_79, %c0_80] : memref<1088x128xf32, #tpu.memory_space<vmem>>, vector<1088x128xf32>
    tpu.vector_store %arg8[%c0_79, %c0_80], %68 {strides = array<i32>} : memref<1088x128xf32, #tpu.memory_space<vmem>>, vector<1088x128xf32>,
    %c0_81 = arith.constant 0 : index
    %c0_82 = arith.constant 0 : index
    %70 = vector.load %arg8[%c0_81, %c0_82] : memref<1088x128xf32, #tpu.memory_space<vmem>>, vector<1088x128xf32>
    %c0_83 = arith.constant 0 : index
    %c0_84 = arith.constant 0 : index
    %71 = vector.load %arg4[%c0_83, %c0_84] : memref<1x128xf32, #tpu.memory_space<vmem>>, vector<1x128xf32>
    %72 = vector.broadcast %71 : vector<1x128xf32> to vector<1088x128xf32>
    %73 = arith.mulf %70, %72 : vector<1088x128xf32>
    %c0_85 = arith.constant 0 : index
    %c0_86 = arith.constant 0 : index
    %74 = vector.load %arg5[%c0_85, %c0_86] : memref<1x128xf32, #tpu.memory_space<vmem>>, vector<1x128xf32>
    %75 = vector.broadcast %74 : vector<1x128xf32> to vector<1088x128xf32>
    %76 = arith.addf %73, %75 : vector<1088x128xf32>
    %cst_87 = arith.constant 0.000000e+00 : f32
    %77 = vector.broadcast %cst_87 : f32 to vector<1088x128xf32>
    %78 = arith.maximumf %76, %77 : vector<1088x128xf32>
    %c0_88 = arith.constant 0 : index
    %c0_89 = arith.constant 0 : index
    %79 = vector.load %arg6[%c0_88, %c0_89] : memref<1088x1xf32, #tpu.memory_space<vmem>>, vector<1088x1xf32>
    %80 = vector.broadcast %79 : vector<1088x1xf32> to vector<1088x128xf32>
    %81 = arith.mulf %78, %80 : vector<1088x128xf32>
    %82 = arith.truncf %81 : vector<1088x128xf32> to vector<1088x128xbf16>
    %cst_90 = arith.constant 0.000000e+00 : bf16
    %83 = vector.broadcast %cst_90 : bf16 to vector<36x128xbf16>
    %c0_91 = arith.constant 0 : index
    %c0_92 = arith.constant 0 : index
    %c0_93 = arith.constant 0 : index
    %84 = vector.load %arg7[%c0_91, %c0_92, %c0_93] : memref<1x1190x128xbf16, #tpu.memory_space<vmem>>, vector<1x36x128xbf16>
    %85 = vector.shape_cast %84 : vector<1x36x128xbf16> to vector<36x128xbf16>
    %86 = vector.shape_cast %83 : vector<36x128xbf16> to vector<1x36x128xbf16>
    tpu.vector_store %arg7[%c0_91, %c0_92, %c0_93], %86 {strides = array<i32>} : memref<1x1190x128xbf16, #tpu.memory_space<vmem>>, vector<1x36x128xbf16>,
    %c0_94 = arith.constant 0 : index
    %c36_95 = arith.constant 36 : index
    %c0_96 = arith.constant 0 : index
    %87 = vector.load %arg7[%c0_94, %c36_95, %c0_96] : memref<1x1190x128xbf16, #tpu.memory_space<vmem>>, vector<1x1088x128xbf16>
    %88 = vector.shape_cast %87 : vector<1x1088x128xbf16> to vector<1088x128xbf16>
    %89 = vector.shape_cast %82 : vector<1088x128xbf16> to vector<1x1088x128xbf16>
    tpu.vector_store %arg7[%c0_94, %c36_95, %c0_96], %89 {strides = array<i32>} : memref<1x1190x128xbf16, #tpu.memory_space<vmem>>, vector<1x1088x128xbf16>,
    %cst_97 = arith.constant 0.000000e+00 : bf16
    %90 = vector.broadcast %cst_97 : bf16 to vector<66x128xbf16>
    %c0_98 = arith.constant 0 : index
    %c1124 = arith.constant 1124 : index
    %c0_99 = arith.constant 0 : index
    %91 = vector.load %arg7[%c0_98, %c1124, %c0_99] : memref<1x1190x128xbf16, #tpu.memory_space<vmem>>, vector<1x66x128xbf16>
    %92 = vector.shape_cast %91 : vector<1x66x128xbf16> to vector<66x128xbf16>
    %93 = vector.shape_cast %90 : vector<66x128xbf16> to vector<1x66x128xbf16>
    tpu.vector_store %arg7[%c0_98, %c1124, %c0_99], %93 {strides = array<i32>} : memref<1x1190x128xbf16, #tpu.memory_space<vmem>>, vector<1x66x128xbf16>,
    return
  }
  func.func @transform_0(%arg0: i32, %arg1: i32) -> (i32, i32, i32) {
    %c0_i32 = arith.constant 0 : i32
    %c0_i32_0 = arith.constant 0 : i32
    %c0_i32_1 = arith.constant 0 : i32
    return %arg1, %c0_i32, %c0_i32_0 : i32, i32, i32
  }
  func.func @transform_1(%arg0: i32, %arg1: i32) -> (i32, i32, i32) {
    %c0_i32 = arith.constant 0 : i32
    %c0_i32_0 = arith.constant 0 : i32
    %c0_i32_1 = arith.constant 0 : i32
    return %c0_i32, %c0_i32_0, %arg0 : i32, i32, i32
  }
  func.func @transform_2(%arg0: i32, %arg1: i32) -> (i32, i32) {
    %c0_i32 = arith.constant 0 : i32
    %c0_i32_0 = arith.constant 0 : i32
    return %c0_i32, %arg0 : i32, i32
  }
  func.func @transform_3(%arg0: i32, %arg1: i32) -> (i32, i32) {
    %c0_i32 = arith.constant 0 : i32
    %c0_i32_0 = arith.constant 0 : i32
    return %c0_i32, %arg0 : i32, i32
  }
  func.func @transform_4(%arg0: i32, %arg1: i32) -> (i32, i32) {
    %c0_i32 = arith.constant 0 : i32
    %c0_i32_0 = arith.constant 0 : i32
    %c0_i32_1 = arith.constant 0 : i32
    return %c0_i32, %c0_i32_0 : i32, i32
  }
  func.func @transform_5(%arg0: i32, %arg1: i32) -> (i32, i32, i32) {
    %c0_i32 = arith.constant 0 : i32
    %c0_i32_0 = arith.constant 0 : i32
    return %arg1, %c0_i32, %arg0 : i32, i32, i32
  }
}

</mosaic_0001>

<bundles_post_ra>
// kernel: tpu_custom_call.1
= control target key start
LH: loop header
LB: loop body
LE: loop exit
PB: predicated region body
PF: predicated region fallthrough
CT: control target
= control target key end

     0   :  { %s26256_s18 = smov 0   ;;  %s26258_s19 = smov 0   ;;  %s30296_s0 = inlined_call_operand.vmem [shape: bf16[2,1190,128], index: 0, kind: input, shape index: {}]   ;;  %s30297_s1 = inlined_call_operand.vmem [shape: bf16[9,128,128], index: 1, kind: input, shape index: {}]   ;;  %s30298_s2 = inlined_call_operand.vmem [shape: f32[1,128], index: 2, kind: input, shape index: {}]   ;;  %s30299_s3 = inlined_call_operand.vmem [shape: f32[1,128], index: 3, kind: input, shape index: {}]   ;;  %s30300_s4 = inlined_call_operand.vmem [shape: f32[1088,1], index: 4, kind: input, shape index: {}]   ;;  %s30301_s5 = inlined_call_operand.vmem [shape: bf16[2,1190,128], index: 5, kind: output, shape index: {}]  }
   0x1   :  { %s26260_s20 = smov 0  }
   0x2 LB: > { %s24_s21 = sadd.s32 1, %s26219_s19  ;;  %p21206_p0 = scmp.ge.s32.totalorder %s26223_s20, 1  ;;  %s26223_s20 = sphi %s26260_s20, %s15_s20   ;;  %s26219_s19 = sphi %s26258_s19, %s30517_s19   ;;  %s26215_s18 = sphi %s26256_s18, %s30516_s18  }
   0x3   : > { %p25_p1 = scmp.ge.s32.totalorder %s24_s21, 2  ;;  %p226_p2 = scmp.lt.s32.totalorder %s26223_s20, 3 }
   0x5   : > { %s30519_s21 = smov (%p25_p1, %s24_s21), 0  ;;  %p227_p3 = pnand %p21206_p0, %p226_p2 }
   0x7   : > { %230 = sbr.rel (%p227_p3) target bundleno = 1532 (0x5fc), region = 40 }
   0xe   : > { %v25490_v0 = vld [vmem:[%s30297_s1] sm:$0xff]   ;;  %v25492_v2 = vld [vmem:[%s30297_s1 + $0x8] sm:$0xff]   ;;  %p267_p4 = scmp.lt.s32.totalorder %s26215_s18, 1  ;;  %v25494_v4 = vld [vmem:[%s30297_s1 + $0x10] sm:$0xff]   ;;  %vm8835_vm0 = vcmask 1045504   ;;  %vm2662_vm3 = vcmask 1046528  }
   0xf   : > { %v25491_v1 = vld [vmem:[%s30297_s1 + $0x100] sm:$0xff]   ;;  %22990 = vmatprep.subr.bf16.mxu1 %v25490_v0  ;;  %v25493_v3 = vld [vmem:[%s30297_s1 + $0x108] sm:$0xff]   ;;  %v25495_v5 = vld [vmem:[%s30297_s1 + $0x110] sm:$0xff]   ;;  %vm787_vm1 = vsmask.f32 7424  ;;  %vm15008_vm5 = vcmask 1044480  }
  0x10   : > { %23598 = vmatprep.subr.bf16.mxu0 %v25491_v1  ;;  %22991 = vmatpush3.bf16.msra.mxu1 %v25490_v0  ;;  %s30521_s18 = smov (!%p267_p4, %s26215_s18), 1  ;;  %v25496_v6 = vld [vmem:[%s30297_s1 + $0x18] sm:$0xff]   ;;  %v25498_v8 = vld [vmem:[%s30297_s1 + $0x20] sm:$0xff]   ;;  %v25500_v10 = vld [vmem:[%s30297_s1 + $0x28] sm:$0xff]   ;;  %vm10571_vm2 = vsmask.f32 5376 }
  0x11   : > { %23599 = vmatpush3.bf16.msra.mxu0 %v25491_v1  ;;  %22992 = vmatprep.subr.bf16.mxu1 %v25492_v2  ;;  %v25497_v7 = vld [vmem:[%s30297_s1 + $0x118] sm:$0xff]   ;;  %s25462_s13 = smul.u32 596, %s30521_s18  ;;  %v25499_v9 = vld [vmem:[%s30297_s1 + $0x120] sm:$0xff]   ;;  %v25501_v11 = vld [vmem:[%s30297_s1 + $0x128] sm:$0xff]   ;;  %vm4398_vm4 = vsmask.f32 6400 }
  0x12   : > { %23600 = vmatprep.subr.bf16.mxu0 %v25493_v3  ;;  %v25502_v14 = vld [vmem:[%s30297_s1 + $0x30] sm:$0xff]   ;;  %v25504_v25 = vld [vmem:[%s30297_s1 + $0x38] sm:$0xff]   ;;  %v25511_v36 = vld [vmem:[%s30297_s1 + $0x40] sm:$0xff]   ;;  %vm16744_vm6 = vsmask.f32 4352  ;;  %vm20389_vm7 = vcmask 1041408  }
  0x13   : > { %s26315_s26 = scalar_lea.vmem %s30296_s0, %s25462_s13  ;;  %v25503_v15 = vld [vmem:[%s30297_s1 + $0x130] sm:$0xff]   ;;  %v25505_v33 = vld [vmem:[%s30297_s1 + $0x138] sm:$0xff]   ;;  %v25513_v43 = vld [vmem:[%s30297_s1 + $0x140] sm:$0xff]   ;;  %s27220_s24 = scalar_lea.vmem %s30301_s5, %s25462_s13  ;;  %vm20390_vm8 = vcmask 1045508  }
  0x14   : > { %22993 = vmatpush3.bf16.msra.mxu1 %v25492_v2  ;;  %v25506_v12 = vld [vmem:[%s26315_s26] sm:$0xff]   ;;  %v25507_v13 = vld [vmem:[%s26315_s26 + $0x8] sm:$0xff]   ;;  %v25509_v19 = vld [vmem:[%s26315_s26 + $0x18] sm:$0xff]  }
  0x15   : > { %23601 = vmatpush3.bf16.msra.mxu0 %v25493_v3  ;;  %22994 = vmatprep.subr.bf16.mxu1 %v25494_v4  ;;  %v789_v16 = vshrl.u32 %v25506_v12, 16  ;;  %v791_v17 = vshll.u32 %v25506_v12, 16  ;;  %v796_v18 = vshll.u32 %v25507_v13, 16  ;;  %v25508_v20 = vld [vmem:[%s26315_s26 + $0x10] sm:$0xfc]   ;;  %v8837_v23 = vrot.slane %v25509_v19, 2  ;;  %vm28716_vm9 = vmor %vm20389_vm7, %vm20390_vm8 }
  0x16   : > { %23602 = vmatprep.subr.bf16.mxu0 %v25495_v5  ;;  %v25510_v24 = vld [vmem:[%s26315_s26 + $0x10] sm:$0xff]   ;;  %v8836_v26 = vrot.slane %v25508_v20, 2  ;;  %v800_v27 = vshrl.u32 %v25507_v13, 16  ;;  %v25512_v30 = vld [vmem:[%s26315_s26 + $0x20] sm:$0xff]   ;;  %v25514_v32 = vld [vmem:[%s26315_s26 + $0x18] sm:$0xff]  }
  0x17   : > { %v793_v21 = vrot.slane %v791_v17, 1  ;;  %v798_v22 = vrot.slane %v796_v18, 1  ;;  %v804_v29 = vshll.u32 %v25510_v24, 16  ;;  %v808_v35 = vshrl.u32 %v25510_v24, 16  ;;  %v25515_v38 = vld [vmem:[%s26315_s26 + $0x28] sm:$0xff]   ;;  %v25516_v41 = vld [vmem:[%s26315_s26 + $0x20] sm:$0xff]  }
  0x18   : > { %22995 = vmatpush3.bf16.msra.mxu1 %v25494_v4  ;;  %v8838_v31 = vsel %vm8835_vm0, %v8836_v26, %v8837_v23  ;;  %v812_v37 = vshll.u32 %v25514_v32, 16  ;;  %v8839_v42 = vrot.slane %v25512_v30, 2  ;;  %v8841_v46 = vrot.slane %v25515_v38, 2  ;;  %v25518_v48 = vld [vmem:[%s26315_s26 + $0x28] sm:$0xff]   ;;  %v25517_v51 = vld [vmem:[%s26315_s26 + $0x30] sm:$0xff]   ;;  %v25519_v56 = vld [vmem:[%s26315_s26 + $0x38] sm:$0xff]  }
  0x19   : > { %23603 = vmatpush3.bf16.msra.mxu0 %v25495_v5  ;;  %22996 = vmatprep.subr.bf16.mxu1 %v25496_v6  ;;  %v794_v28 = vor.u32 %v793_v21, %v789_v16  ;;  %v802_v39 = vor.u32 %v800_v27, %v798_v22  ;;  %v806_v40 = vrot.slane %v804_v29, 1  ;;  %v820_v47 = vshll.u32 %v25516_v41, 16  ;;  %v25520_v59 = vld [vmem:[%s26315_s26 + $0x30] sm:$0xff]   ;;  %v25522_v60 = vld [vmem:[%s30297_s1 + $0x148] sm:$0xff]   ;;  %v25523_v1 = vld [vmem:[%s26315_s26 + $0x38] sm:$0xff]  }
  0x1a   : > { %23604 = vmatprep.subr.bf16.mxu0 %v25497_v7  ;;  %23614 = vmatprep.mubr.bf16.mxu0 %v8838_v31  ;;  %v814_v45 = vrot.slane %v812_v37, 1  ;;  %v816_v50 = vshrl.u32 %v25514_v32, 16  ;;  %v8840_v52 = vsel %vm8835_vm0, %v8837_v23, %v8839_v42  ;;  %v824_v53 = vshrl.u32 %v25516_v41, 16  ;;  %v25524_v12 = vld [vmem:[%s26315_s26 + $0x48] sm:$0xff]   ;;  %v25532_v23 = vld [vmem:[%s30297_s1 + $0x150] sm:$0xff]   ;;  %v25528_v32 = vld [vmem:[%s26315_s26 + $0x58] sm:$0xff]  }
  0x1b   : > { %v799_v34 = vsel %vm787_vm1, %v794_v28, %v798_v22  ;;  %v810_v44 = vor.u32 %v808_v35, %v806_v40  ;;  %v807_v49 = vsel %vm787_vm1, %v802_v39, %v806_v40  ;;  %v828_v54 = vshll.u32 %v25518_v48, 16  ;;  %v25527_v17 = vld [vmem:[%s26315_s26 + $0x48] sm:$0xff]   ;;  %v25526_v26 = vld [vmem:[%s26315_s26 + $0x50] sm:$0xff]   ;;  %v25533_v39 = vld [vmem:[%s26315_s26 + $0x58] sm:$0xff]  }
  0x1c   : > { %22997 = vmatpush3.bf16.msra.mxu1 %v25496_v6  ;;  %23006 = vmatprep.mubr.bf16.mxu1 %v799_v34  ;;  %v8842_v57 = vsel %vm8835_vm0, %v8839_v42, %v8841_v46  ;;  %v822_v58 = vrot.slane %v820_v47, 1  ;;  %v818_v61 = vor.u32 %v816_v50, %v814_v45  ;;  %v8843_v62 = vrot.slane %v25517_v51, 2  ;;  %v25521_v6 = vld [vmem:[%s26315_s26 + $0x40] sm:$0xff]   ;;  %v25531_v20 = vld [vmem:[%s30297_s1 + $0x48] sm:$0xff]   ;;  %v25529_v34 = vld [vmem:[%s26315_s26 + $0x50] sm:$0xff]  }
  0x1d   : > { %23605 = vmatpush3.bf16.msra.mxu0 %v25497_v7  ;;  %22998 = vmatprep.subr.bf16.mxu1 %v25498_v8  ;;  %v815_v55 = vsel %vm787_vm1, %v810_v44, %v814_v45  ;;  %v830_v0 = vrot.slane %v828_v54, 1  ;;  %v8845_v2 = vrot.slane %v25519_v56, 2  ;;  %v836_v3 = vshll.u32 %v25520_v59, 16  ;;  %v25530_v42 = vld [vmem:[%s26315_s26 + $0x60] sm:$0xff]   ;;  %v25541_v45 = vld [vmem:[%s30297_s1 + $0x158] sm:$0xff]   ;;  %v25534_v51 = vld [vmem:[%s26315_s26 + $0x68] sm:$0xff]  }
  0x1e   : > { %23606 = vmatprep.subr.bf16.mxu0 %v25499_v9  ;;  %v826_v63 = vor.u32 %v824_v53, %v822_v58  ;;  %v823_v4 = vsel %vm787_vm1, %v818_v61, %v822_v58  ;;  %v832_v5 = vshrl.u32 %v25518_v48, 16  ;;  %v8844_v7 = vsel %vm8835_vm0, %v8841_v46, %v8843_v62  ;;  %v25535_v53 = vld [vmem:[%s26315_s26 + $0x60] sm:$0xff]   ;;  %v25537_v58 = vld [vmem:[%s26315_s26 + $0x68] sm:$0xff]  }
  0x1f   : > { %v838_v13 = vrot.slane %v836_v3, 1  ;;  %v8847_v16 = vrot.slane %v25521_v6, 2  ;;  %v8849_v21 = vrot.slane %v25524_v12, 2  ;;  %v860_v30 = vshll.u32 %v25527_v17, 16  ;;  %v25550_v6 = vld [vmem:[%s30297_s1 + $0x50] sm:$0xff]  }
  0x20   : > { %22999 = vmatpush3.bf16.msra.mxu1 %v25498_v8  ;;  %v831_v8 = vsel %vm787_vm1, %v826_v63, %v830_v0  ;;  %v8853_v40 = vrot.slane %v25528_v32, 2  ;;  %v868_v41 = vshll.u32 %v25529_v34, 16  ;;  %v864_v44 = vshrl.u32 %v25527_v17, 16  ;;  %v25536_v63 = vld [vmem:[%s26315_s26 + $0x70] sm:$0xff]  }
  0x21   : > { %23607 = vmatpush3.bf16.msra.mxu0 %v25499_v9  ;;  %23000 = vmatprep.subr.bf16.mxu1 %v25500_v10  ;;  %v840_v9 = vshrl.u32 %v25520_v59, 16  ;;  %v8848_v27 = vsel %vm8835_vm0, %v8845_v2, %v8847_v16  ;;  %v8850_v31 = vsel %vm8835_vm0, %v8847_v16, %v8849_v21  ;;  %v862_v38 = vrot.slane %v860_v30, 1  ;;  %v25546_v30 = vld [vmem:[%s26315_s26 + $0x88] sm:$0xff]  }
  0x22   : > { %23608 = vmatprep.subr.bf16.mxu0 %v25501_v11  ;;  %v872_v48 = vshrl.u32 %v25529_v34, 16  ;;  %v8857_v59 = vrot.slane %v25534_v51, 2  ;;  %v892_v3 = vshll.u32 %v25537_v58, 16  ;;  %v25552_v51 = vld [vmem:[%s26315_s26 + $0x98] sm:$0xff]  }
  0x23   : > { %v842_v18 = vor.u32 %v840_v9, %v838_v13  ;;  %v866_v54 = vor.u32 %v864_v44, %v862_v38  ;;  %v25547_v44 = vld [vmem:[%s26315_s26 + $0x98] sm:$0xff]  }
  0x24   : > { %23001 = vmatpush3.bf16.msra.mxu1 %v25500_v10  ;;  %v844_v10 = vshll.u32 %v25523_v1, 16 }
  0x25   : > { %23609 = vmatpush3.bf16.msra.mxu0 %v25501_v11  ;;  %23002 = vmatprep.subr.bf16.mxu1 %v25502_v14  ;;  %v8846_v11 = vsel %vm8835_vm0, %v8843_v62, %v8845_v2  ;;  %v880_v62 = vshrl.u32 %v25533_v39, 16  ;;  %v888_v2 = vshrl.u32 %v25535_v53, 16 }
  0x26   : > { %23610 = vmatprep.subr.bf16.mxu0 %v25503_v15  ;;  %v846_v19 = vrot.slane %v844_v10, 1  ;;  %v8859_v10 = vrot.slane %v25536_v63, 2 }
  0x28   : > { %23003 = vmatpush3.bf16.msra.mxu1 %v25502_v14  ;;  %v25525_v14 = vld [vmem:[%s26315_s26 + $0x40] sm:$0xff]   ;;  %v847_v28 = vsel %vm787_vm1, %v842_v18, %v846_v19  ;;  %v896_v18 = vshrl.u32 %v25537_v58, 16  ;;  %v25570_v58 = vld [vmem:[%s30297_s1 + $0x170] sm:$0xff]  }
  0x29   : > { %23611 = vmatpush3.bf16.msra.mxu0 %v25503_v15  ;;  %23004 = vmatprep.subr.bf16.mxu1 %v25504_v25  ;;  %v834_v15 = vor.u32 %v832_v5, %v830_v0  ;;  %v852_v22 = vshll.u32 %v25525_v14, 16  ;;  %v856_v29 = vshrl.u32 %v25525_v14, 16  ;;  %v25542_v14 = vld [vmem:[%s26315_s26 + $0x78] sm:$0xff]  }
  0x2a   : > { %23612 = vmatprep.subr.bf16.mxu0 %v25505_v33 }
  0x2b   : > { %v839_v24 = vsel %vm787_vm1, %v834_v15, %v838_v13  ;;  %v894_v13 = vrot.slane %v892_v3, 1 }
  0x2c   : > { %23005 = vmatpush3.bf16.msra.mxu1 %v25504_v25  ;;  %v848_v25 = vshrl.u32 %v25523_v1, 16 }
  0x2d   : > { %23613 = vmatpush3.bf16.msra.mxu0 %v25505_v33  ;;  %23142 = vmatprep.subr.bf16.mxu1 %v25511_v36  ;;  %v854_v33 = vrot.slane %v852_v22, 1 }
  0x2e   : > { %23750 = vmatprep.subr.bf16.mxu0 %v25513_v43  ;;  %v850_v35 = vor.u32 %v848_v25, %v846_v19  ;;  %v25540_v19 = vld [vmem:[%s26315_s26 + $0x80] sm:$0xff]   ;;  %v25543_v25 = vld [vmem:[%s26315_s26 + $0x88] sm:$0xff]  }
  0x2f   : > { %23007 = vmatmul.mubr.bf16.vlgmr.msra.gmra.mrb[0].mxu1 %v807_v49  ;;  %v858_v37 = vor.u32 %v856_v29, %v854_v33  ;;  %v876_v49 = vshll.u32 %v25533_v39, 16  ;;  %v8863_v29 = vrot.slane %v25540_v19, 2  ;;  %v8865_v34 = vrot.slane %v25543_v25, 2  ;;  %v25561_v25 = vld [vmem:[%s26315_s26 + $0xb8] sm:$0xff]  }
  0x30   : > { %23615 = vmatmul.mubr.bf16.vlgmr.msra.gmra.mrb[0].mxu0 %v8840_v52  ;;  %23143 = vmatpush3.bf16.msra.mxu1 %v25511_v36  ;;  %v8851_v36 = vrot.slane %v25526_v26, 2  ;;  %v870_v52 = vrot.slane %v868_v41, 1 }
  0x31   : > { %23751 = vmatpush3.bf16.msra.mxu0 %v25513_v43  ;;  %23010 = vmatprep.mubr.bf16.mxu1 %v815_v55  ;;  %v855_v43 = vsel %vm787_vm1, %v850_v35, %v854_v33  ;;  %v863_v47 = vsel %vm787_vm1, %v858_v37, %v862_v38  ;;  %v8855_v55 = vrot.slane %v25530_v42, 2  ;;  %v25560_v33 = vld [vmem:[%s30297_s1 + $0x168] sm:$0xff]   ;;  %v912_v37 = vshrl.u32 %v25542_v14, 16  ;;  %v25545_v38 = vld [vmem:[%s26315_s26 + $0x90] sm:$0xff]  }
  0x32   : > { %23618 = vmatprep.mubr.bf16.mxu0 %v8842_v57  ;;  %23752 = vmatprep.subr.bf16.mxu0 %v25522_v60  ;;  %v8852_v46 = vsel %vm8835_vm0, %v8849_v21, %v8851_v36  ;;  %v8854_v50 = vsel %vm8835_vm0, %v8851_v36, %v8853_v40  ;;  %v874_v56 = vor.u32 %v872_v48, %v870_v52  ;;  %v878_v57 = vrot.slane %v876_v49, 1 }
  0x33   : > { %23144 = vmatprep.subr.bf16.mxu1 %v25531_v20  ;;  %v871_v61 = vsel %vm787_vm1, %v866_v54, %v870_v52  ;;  %v8856_v0 = vsel %vm8835_vm0, %v8853_v40, %v8855_v55  ;;  %v8858_v5 = vsel %vm8835_vm0, %v8855_v55, %v8857_v59  ;;  %v924_v42 = vshll.u32 %v25546_v30, 16  ;;  %v25549_v54 = vld [vmem:[%s26315_s26 + $0xa0] sm:$0xff]  }
  0x34   : > { %23145 = vmatpush3.bf16.msra.mxu1 %v25531_v20  ;;  %v879_v1 = vsel %vm787_vm1, %v874_v56, %v878_v57  ;;  %v882_v9 = vor.u32 %v880_v62, %v878_v57  ;;  %v8860_v20 = vsel %vm8835_vm0, %v8857_v59, %v8859_v10  ;;  %v8867_v48 = vrot.slane %v25545_v38, 2  ;;  %v25569_v57 = vld [vmem:[%s30297_s1 + $0x58] sm:$0xff]  }
  0x35   : > { %23753 = vmatpush3.bf16.msra.mxu0 %v25522_v60  ;;  %v884_v60 = vshll.u32 %v25535_v53, 16  ;;  %23146 = vmatprep.subr.bf16.mxu1 %v25550_v6  ;;  %v8869_v52 = vrot.slane %v25547_v44, 2  ;;  %v928_v56 = vshrl.u32 %v25546_v30, 16  ;;  %v940_v62 = vshll.u32 %v25552_v51, 16 }
  0x36   : > { %23754 = vmatprep.subr.bf16.mxu0 %v25532_v23  ;;  %v8868_v59 = vsel %vm8835_vm0, %v8865_v34, %v8867_v48 }
  0x37   : > { %23011 = vmatmul.mubr.bf16.gmra.mrb[4].mxu1 %v823_v4  ;;  %v25538_v4 = vld [vmem:[%s26315_s26 + $0x78] sm:$0xff]   ;;  %v8870_v63 = vsel %vm8835_vm0, %v8867_v48, %v8869_v52  ;;  %v976_v48 = vshrl.u32 %v25561_v25, 16 }
  0x38   : > { %23619 = vmatmul.mubr.bf16.gmra.mrb[4].mxu0 %v8844_v7  ;;  %23014 = vmatprep.mubr.bf16.mxu1 %v831_v8  ;;  %v886_v7 = vrot.slane %v884_v60, 1  ;;  %v25539_v8 = vld [vmem:[%s26315_s26 + $0x70] sm:$0xff]   ;;  %v8861_v15 = vrot.slane %v25538_v4, 2  ;;  %v8871_v4 = vrot.slane %v25549_v54, 2  ;;  %v25592_v54 = vld [vmem:[%s30297_s1 + $0x60] sm:$0xff]  }
  0x39   : > { %23622 = vmatprep.mubr.bf16.mxu0 %v8846_v11  ;;  %23755 = vmatpush3.bf16.msra.mxu0 %v25532_v23  ;;  %v25551_v11 = vld [vmem:[%s30297_s1 + $0x160] sm:$0xff]   ;;  %v900_v16 = vshll.u32 %v25539_v8, 16  ;;  %v904_v22 = vshrl.u32 %v25539_v8, 16  ;;  %v908_v23 = vshll.u32 %v25542_v14, 16 }
  0x3a   : > { %23756 = vmatprep.subr.bf16.mxu0 %v25541_v45  ;;  %v890_v12 = vor.u32 %v888_v2, %v886_v7  ;;  %23147 = vmatpush3.bf16.msra.mxu1 %v25550_v6  ;;  %v887_v17 = vsel %vm787_vm1, %v882_v9, %v886_v7  ;;  %v8864_v39 = vsel %vm8835_vm0, %v8861_v15, %v8863_v29  ;;  %v25554_v2 = vld [vmem:[%s26315_s26 + $0xa0] sm:$0xff]   ;;  %v942_v6 = vrot.slane %v940_v62, 1  ;;  %v25556_v7 = vld [vmem:[%s26315_s26 + $0xa8] sm:$0xff]   ;;  %v25571_v62 = vld [vmem:[%s26315_s26 + $0xd8] sm:$0xff]  }
  0x3b   : > { %v902_v26 = vrot.slane %v900_v16, 1  ;;  %v910_v32 = vrot.slane %v908_v23, 1  ;;  %23148 = vmatprep.subr.bf16.mxu1 %v25569_v57  ;;  %v948_v9 = vshll.u32 %v25554_v2, 16  ;;  %v956_v16 = vshll.u32 %v25556_v7, 16 }
  0x3c   : > { %v895_v21 = vsel %vm787_vm1, %v890_v12, %v894_v13  ;;  %v25555_v12 = vld [vmem:[%s26315_s26 + $0xb0] sm:$0xff]  }
  0x3d   : > { %23757 = vmatpush3.bf16.msra.mxu0 %v25541_v45  ;;  %v950_v19 = vrot.slane %v948_v9, 1  ;;  %v1004_v9 = vshll.u32 %v25571_v62, 16 }
  0x3e   : > { %23758 = vmatprep.subr.bf16.mxu0 %v25551_v11  ;;  %23149 = vmatpush3.bf16.msra.mxu1 %v25569_v57 }
  0x3f   : > { %23015 = vmatmul.mubr.bf16.gmra.mrb[8].mxu1 %v839_v24  ;;  %v8862_v24 = vsel %vm8835_vm0, %v8859_v10, %v8861_v15  ;;  %v952_v15 = vshrl.u32 %v25554_v2, 16  ;;  %23150 = vmatprep.subr.bf16.mxu1 %v25592_v54 }
  0x40   : > { %23623 = vmatmul.mubr.bf16.gmra.mrb[8].mxu0 %v8848_v27  ;;  %23018 = vmatprep.mubr.bf16.mxu1 %v847_v28  ;;  %v25544_v27 = vld [vmem:[%s26315_s26 + $0x80] sm:$0xff]   ;;  %v898_v28 = vor.u32 %v896_v18, %v894_v13  ;;  %v8872_v13 = vsel %vm8835_vm0, %v8869_v52, %v8871_v4  ;;  %v25557_v18 = vld [vmem:[%s26315_s26 + $0xb8] sm:$0xff]  }
  0x41   : > { %23626 = vmatprep.mubr.bf16.mxu0 %v8850_v31  ;;  %23759 = vmatpush3.bf16.msra.mxu0 %v25551_v11  ;;  %v906_v31 = vor.u32 %v904_v22, %v902_v26  ;;  %v916_v35 = vshll.u32 %v25544_v27, 16  ;;  %v920_v41 = vshrl.u32 %v25544_v27, 16  ;;  %v944_v11 = vshrl.u32 %v25552_v51, 16  ;;  %v25581_v27 = vld [vmem:[%s30297_s1 + $0x178] sm:$0xff]  }
  0x42   : > { %23760 = vmatprep.subr.bf16.mxu0 %v25560_v33  ;;  %v903_v36 = vsel %vm787_vm1, %v898_v28, %v902_v26  ;;  %v8875_v22 = vrot.slane %v25555_v12, 2  ;;  %v954_v23 = vor.u32 %v952_v15, %v950_v19  ;;  %v8877_v26 = vrot.slane %v25557_v18, 2  ;;  %23151 = vmatpush3.bf16.msra.mxu1 %v25592_v54  ;;  %v25575_v18 = vld [vmem:[%s26315_s26 + $0xe8] sm:$0xff]  }
  0x43   : > { %v911_v40 = vsel %vm787_vm1, %v906_v31, %v910_v32  ;;  %v918_v45 = vrot.slane %v916_v35, 1  ;;  %v960_v28 = vshrl.u32 %v25556_v7, 16  ;;  %v972_v35 = vshll.u32 %v25561_v25, 16 }
  0x45   : > { %23761 = vmatpush3.bf16.msra.mxu0 %v25560_v33  ;;  %v922_v49 = vor.u32 %v920_v41, %v918_v45  ;;  %v25559_v33 = vld [vmem:[%s26315_s26 + $0xc0] sm:$0xff]   ;;  %v25565_v41 = vld [vmem:[%s26315_s26 + $0xc8] sm:$0xff]   ;;  %v974_v44 = vrot.slane %v972_v35, 1 }
  0x46   : > { %23762 = vmatprep.subr.bf16.mxu0 %v25570_v58 }
  0x47   : > { %23019 = vmatmul.mubr.bf16.gmra.mrb[12].mxu1 %v855_v43  ;;  %v8866_v43 = vsel %vm8835_vm0, %v8863_v29, %v8865_v34 }
  0x48   : > { %23627 = vmatmul.mubr.bf16.gmra.mrb[12].mxu0 %v8852_v46  ;;  %23022 = vmatprep.mubr.bf16.mxu1 %v863_v47  ;;  %v25548_v46 = vld [vmem:[%s26315_s26 + $0x90] sm:$0xff]   ;;  %v914_v47 = vor.u32 %v912_v37, %v910_v32  ;;  %v25562_v37 = vld [vmem:[%s26315_s26 + $0xc8] sm:$0xff]  }
  0x49   : > { %23630 = vmatprep.mubr.bf16.mxu0 %v8854_v50  ;;  %v926_v50 = vrot.slane %v924_v42, 1  ;;  %v932_v53 = vshll.u32 %v25548_v46, 16  ;;  %23763 = vmatpush3.bf16.msra.mxu0 %v25570_v58  ;;  %v8879_v42 = vrot.slane %v25559_v33, 2  ;;  %v25567_v58 = vld [vmem:[%s26315_s26 + $0xd0] sm:$0xff]  }
  0x4a   : > { %v919_v55 = vsel %vm787_vm1, %v914_v47, %v918_v45  ;;  %23764 = vmatprep.subr.bf16.mxu0 %v25581_v27  ;;  %v8881_v45 = vrot.slane %v25562_v37, 2  ;;  %v996_v2 = vshll.u32 %v25567_v58, 16 }
  0x4b   : > { %v927_v60 = vsel %vm787_vm1, %v922_v49, %v926_v50  ;;  %v930_v3 = vor.u32 %v928_v56, %v926_v50  ;;  %v25564_v49 = vld [vmem:[%s26315_s26 + $0xd0] sm:$0xff]   ;;  %v988_v50 = vshll.u32 %v25565_v41, 16  ;;  %v8880_v51 = vsel %vm8835_vm0, %v8877_v26, %v8879_v42  ;;  %v25566_v56 = vld [vmem:[%s26315_s26 + $0xd8] sm:$0xff]  }
  0x4c   : > { %v998_v12 = vrot.slane %v996_v2, 1 }
  0x4d   : > { %23765 = vmatpush3.bf16.msra.mxu0 %v25581_v27  ;;  %v1020_v27 = vshll.u32 %v25575_v18, 16 }
  0x4f   : > { %23023 = vmatmul.mubr.bf16.gmra.mrb[16].mxu1 %v871_v61  ;;  %v936_v61 = vshrl.u32 %v25548_v46, 16  ;;  %v1022_v35 = vrot.slane %v1020_v27, 1 }
  0x50   : > { %23631 = vmatmul.mubr.bf16.gmra.mrb[16].mxu0 %v8856_v0  ;;  %23026 = vmatprep.mubr.bf16.mxu1 %v879_v1  ;;  %v25553_v0 = vld [vmem:[%s26315_s26 + $0xa8] sm:$0xff]   ;;  %v934_v1 = vrot.slane %v932_v53, 1 }
  0x51   : > { %23634 = vmatprep.mubr.bf16.mxu0 %v8858_v5  ;;  %v8873_v8 = vrot.slane %v25553_v0, 2  ;;  %v8885_v0 = vrot.slane %v25566_v56, 2 }
  0x52   : > { %v938_v5 = vor.u32 %v936_v61, %v934_v1  ;;  %v935_v10 = vsel %vm787_vm1, %v930_v3, %v934_v1  ;;  %v990_v61 = vrot.slane %v988_v50, 1  ;;  %v26474_v1 = vld [vmem:[%s30297_s1 + $0x180] sm:$0xff]  }
  0x53   : > { %v8876_v31 = vsel %vm8835_vm0, %v8873_v8, %v8875_v22  ;;  %23902 = vmatprep.subr.bf16.mxu0 %v26474_v1 }
  0x54   : > { %v943_v14 = vsel %vm787_vm1, %v938_v5, %v942_v6  ;;  %v25568_v5 = vld [vmem:[%s26315_s26 + $0xe0] sm:$0xff]  }
  0x55   : > { %v8887_v15 = vrot.slane %v25568_v5, 2  ;;  %v25585_v5 = vld [vmem:[%s26315_s26 + $0x118] sm:$0xff]  }
  0x57   : > { %23027 = vmatmul.mubr.bf16.gmra.mrb[20].mxu1 %v887_v17  ;;  %v8874_v17 = vsel %vm8835_vm0, %v8871_v4, %v8873_v8  ;;  %v992_v4 = vshrl.u32 %v25565_v41, 16  ;;  %v1000_v8 = vshrl.u32 %v25567_v58, 16 }
  0x58   : > { %23635 = vmatmul.mubr.bf16.gmra.mrb[20].mxu0 %v8860_v20  ;;  %23030 = vmatprep.mubr.bf16.mxu1 %v895_v21  ;;  %v25558_v20 = vld [vmem:[%s26315_s26 + $0xb0] sm:$0xff]   ;;  %v946_v21 = vor.u32 %v944_v11, %v942_v6  ;;  %v25572_v11 = vld [vmem:[%s26315_s26 + $0xe8] sm:$0xff]  }
  0x59   : > { %23638 = vmatprep.mubr.bf16.mxu0 %v8862_v24  ;;  %v958_v24 = vrot.slane %v956_v16, 1  ;;  %v964_v29 = vshll.u32 %v25558_v20, 16  ;;  %v968_v34 = vshrl.u32 %v25558_v20, 16  ;;  %v1002_v16 = vor.u32 %v1000_v8, %v998_v12 }
  0x5a   : > { %v951_v30 = vsel %vm787_vm1, %v946_v21, %v950_v19  ;;  %v8889_v19 = vrot.slane %v25572_v11, 2  ;;  %v25588_v11 = vld [vmem:[%s26315_s26 + $0x118] sm:$0xff]  }
  0x5b   : > { %v959_v32 = vsel %vm787_vm1, %v954_v23, %v958_v24  ;;  %v966_v38 = vrot.slane %v964_v29, 1  ;;  %v25574_v23 = vld [vmem:[%s26315_s26 + $0xf0] sm:$0xff]   ;;  %v25576_v29 = vld [vmem:[%s26315_s26 + $0xf8] sm:$0xff]  }
  0x5c   : > { %v8891_v33 = vrot.slane %v25574_v23, 2  ;;  %v8893_v37 = vrot.slane %v25576_v29, 2 }
  0x5e   : > { %v8892_v41 = vsel %vm8835_vm0, %v8889_v19, %v8891_v33 }
  0x5f   : > { %23031 = vmatmul.mubr.bf16.gmra.mrb[24].mxu1 %v903_v36  ;;  %v8878_v36 = vsel %vm8835_vm0, %v8875_v22, %v8877_v26  ;;  %v1008_v22 = vshrl.u32 %v25571_v62, 16 }
  0x60   : > { %23639 = vmatmul.mubr.bf16.gmra.mrb[24].mxu0 %v8864_v39  ;;  %23034 = vmatprep.mubr.bf16.mxu1 %v911_v40  ;;  %v25563_v39 = vld [vmem:[%s26315_s26 + $0xc0] sm:$0xff]   ;;  %v962_v40 = vor.u32 %v960_v28, %v958_v24  ;;  %v8888_v24 = vsel %vm8835_vm0, %v8885_v0, %v8887_v15  ;;  %v8890_v28 = vsel %vm8835_vm0, %v8887_v15, %v8889_v19 }
  0x61   : > { %23642 = vmatprep.mubr.bf16.mxu0 %v8866_v43  ;;  %v970_v43 = vor.u32 %v968_v34, %v966_v38  ;;  %v980_v46 = vshll.u32 %v25563_v39, 16  ;;  %v984_v53 = vshrl.u32 %v25563_v39, 16 }
  0x62   : > { %v967_v47 = vsel %vm787_vm1, %v962_v40, %v966_v38  ;;  %v1024_v40 = vshrl.u32 %v25575_v18, 16 }
  0x63   : > { %v975_v52 = vsel %vm787_vm1, %v970_v43, %v974_v44  ;;  %v982_v57 = vrot.slane %v980_v46, 1  ;;  %v25578_v43 = vld [vmem:[%s26315_s26 + $0x100] sm:$0xff]   ;;  %v8894_v46 = vsel %vm8835_vm0, %v8891_v33, %v8893_v37  ;;  %v25596_v33 = vld [vmem:[%s26315_s26 + $0x28] sm:$0xff]  }
  0x64   : > { %v1026_v50 = vor.u32 %v1024_v40, %v1022_v35 }
  0x67   : > { %23035 = vmatmul.mubr.bf16.gmra.mrb[28].mxu1 %v919_v55  ;;  %v8882_v55 = vsel %vm8835_vm0, %v8879_v42, %v8881_v45 }
  0x68   : > { %23643 = vmatmul.mubr.bf16.gmra.mrb[28].mxu0 %v8868_v59  ;;  %23038 = vmatprep.mubr.bf16.mxu1 %v927_v60  ;;  %v978_v59 = vor.u32 %v976_v48, %v974_v44  ;;  %v8883_v60 = vrot.slane %v25564_v49, 2  ;;  %v25582_v49 = vld [vmem:[%s26315_s26 + $0x100] sm:$0xff]  }
  0x69   : > { %23646 = vmatprep.mubr.bf16.mxu0 %v8870_v63  ;;  %v986_v63 = vor.u32 %v984_v53, %v982_v57  ;;  %v1044_v58 = vshll.u32 %v25582_v49, 16 }
  0x6a   : > { %v983_v3 = vsel %vm787_vm1, %v978_v59, %v982_v57  ;;  %v8884_v6 = vsel %vm8835_vm0, %v8881_v45, %v8883_v60  ;;  %v25583_v59 = vld [vmem:[%s26315_s26 + $0x110] sm:$0xff]  }
  0x6b   : > { %v991_v7 = vsel %vm787_vm1, %v986_v63, %v990_v61  ;;  %v25590_v63 = vld [vmem:[%s26315_s26 + $0x18] sm:$0xff]  }
  0x6c   : > { %v10584_v15 = vshll.u32 %v25590_v63, 16 }
  0x6e   : > { %v10586_v29 = vrot.slane %v10584_v15, 3 }
  0x6f   : > { %23039 = vmatmul.mubr.bf16.gmra.mrb[32].mxu1 %v935_v10  ;;  %v8886_v10 = vsel %vm8835_vm0, %v8883_v60, %v8885_v0  ;;  %v1048_v60 = vshrl.u32 %v25582_v49, 16 }
  0x70   : > { %23647 = vmatmul.mubr.bf16.gmra.mrb[32].mxu0 %v8872_v13  ;;  %23042 = vmatprep.mubr.bf16.mxu1 %v943_v14  ;;  %v25573_v13 = vld [vmem:[%s26315_s26 + $0xe0] sm:$0xff]   ;;  %v994_v14 = vor.u32 %v992_v4, %v990_v61 }
  0x71   : > { %23650 = vmatprep.mubr.bf16.mxu0 %v8874_v17  ;;  %v1006_v17 = vrot.slane %v1004_v9, 1  ;;  %v1012_v20 = vshll.u32 %v25573_v13, 16  ;;  %v1016_v26 = vshrl.u32 %v25573_v13, 16  ;;  %v8899_v9 = vrot.slane %v25583_v59, 2 }
  0x72   : > { %v999_v21 = vsel %vm787_vm1, %v994_v14, %v998_v12  ;;  %v10581_v12 = vshrl.u32 %v25590_v63, 16 }
  0x73   : > { %v1007_v25 = vsel %vm787_vm1, %v1002_v16, %v1006_v17  ;;  %v8901_v16 = vrot.slane %v25585_v5, 2 }
  0x77   : > { %23043 = vmatmul.mubr.bf16.gmra.mrb[36].mxu1 %v951_v30  ;;  %v1014_v30 = vrot.slane %v1012_v20, 1  ;;  %v26515_v20 = vld [vmem:[%s26315_s26 + $0x120] sm:$0xff]  }
  0x78   : > { %23651 = vmatmul.mubr.bf16.gmra.mrb[36].mxu0 %v8876_v31  ;;  %23046 = vmatprep.mubr.bf16.mxu1 %v959_v32  ;;  %v25577_v31 = vld [vmem:[%s26315_s26 + $0xf0] sm:$0xff]   ;;  %v1010_v32 = vor.u32 %v1008_v22, %v1006_v17 }
  0x79   : > { %23654 = vmatprep.mubr.bf16.mxu0 %v8878_v36  ;;  %v1018_v34 = vor.u32 %v1016_v26, %v1014_v30  ;;  %v25579_v36 = vld [vmem:[%s26315_s26 + $0xf8] sm:$0xff]   ;;  %v1028_v38 = vshll.u32 %v25577_v31, 16  ;;  %v1032_v44 = vshrl.u32 %v25577_v31, 16  ;;  %v8902_v31 = vsel %vm8835_vm0, %v8899_v9, %v8901_v16 }
  0x7a   : > { %v1015_v39 = vsel %vm787_vm1, %v1010_v32, %v1014_v30  ;;  %v1036_v45 = vshll.u32 %v25579_v36, 16  ;;  %v1040_v57 = vshrl.u32 %v25579_v36, 16  ;;  %v25591_v30 = vld [vmem:[%s26315_s26 + $0x120] sm:$0xff]  }
  0x7b   : > { %v1023_v42 = vsel %vm787_vm1, %v1018_v34, %v1022_v35  ;;  %v1030_v48 = vrot.slane %v1028_v38, 1  ;;  %v30302_v38 = vrot.slane %v26515_v20, 2 }
  0x7c   : > { %v1038_v54 = vrot.slane %v1036_v45, 1  ;;  %v10599_v45 = vshrl.u32 %v25596_v33, 16 }
  0x7d   : > { %v1034_v53 = vor.u32 %v1032_v44, %v1030_v48  ;;  %v1031_v61 = vsel %vm787_vm1, %v1026_v50, %v1030_v48  ;;  %v1080_v50 = vshrl.u32 %v25591_v30, 16 }
  0x7e   : > { %v1042_v8 = vor.u32 %v1040_v57, %v1038_v54  ;;  %v25600_v57 = vld [vmem:[%s26315_s26 + $0x38] sm:$0xff]  }
  0x7f   : > { %23047 = vmatmul.mubr.bf16.gmra.mrb[40].mxu1 %v967_v47  ;;  %v25580_v47 = vld [vmem:[%s26315_s26 + $0x108] sm:$0xff]   ;;  %v1039_v2 = vsel %vm787_vm1, %v1034_v53, %v1038_v54  ;;  %v25598_v53 = vld [vmem:[%s26315_s26 + $0x30] sm:$0xff]   ;;  %v8904_v54 = vsel %vm8835_vm0, %v8901_v16, %v30302_v38 }
  0x80   : > { %23655 = vmatmul.mubr.bf16.gmra.mrb[40].mxu0 %v8880_v51  ;;  %23050 = vmatprep.mubr.bf16.mxu1 %v975_v52  ;;  %v25584_v51 = vld [vmem:[%s26315_s26 + $0x108] sm:$0xff]   ;;  %v8895_v52 = vrot.slane %v25578_v43, 2  ;;  %v8897_v56 = vrot.slane %v25580_v47, 2  ;;  %v1072_v47 = vshrl.u32 %v25588_v11, 16  ;;  %v10608_v5 = vshrl.u32 %v25598_v53, 16 }
  0x81   : > { %23658 = vmatprep.mubr.bf16.mxu0 %v8882_v55  ;;  %v25611_v55 = vld [vmem:[%s30297_s1 + $0x68] sm:$0xff]   ;;  %v1052_v62 = vshll.u32 %v25584_v51, 16  ;;  %v1056_v18 = vshrl.u32 %v25584_v51, 16 }
  0x82   : > { %23152 = vmatprep.subr.bf16.mxu1 %v25611_v55  ;;  %v8896_v0 = vsel %vm8835_vm0, %v8893_v37, %v8895_v52  ;;  %v8898_v4 = vsel %vm8835_vm0, %v8895_v52, %v8897_v56  ;;  %v8900_v23 = vsel %vm8835_vm0, %v8897_v56, %v8899_v9  ;;  %v25597_v56 = vld [vmem:[%s26315_s26 + $0x130] sm:$0xff]   ;;  %v10620_v9 = vshll.u32 %v25600_v57, 16 }
  0x83   : > { %23153 = vmatpush3.bf16.msra.mxu1 %v25611_v55  ;;  %v10610_v16 = vrot.slane %v10608_v5, 2 }
  0x87   : > { %23051 = vmatmul.mubr.bf16.gmra.mrb[44].mxu1 %v983_v3  ;;  %v25589_v3 = vld [vmem:[%s26315_s26 + $0x10] sm:$0xfc]  }
  0x88   : > { %23659 = vmatmul.mubr.bf16.gmra.mrb[44].mxu0 %v8884_v6  ;;  %23054 = vmatprep.mubr.bf16.mxu1 %v991_v7  ;;  %v1046_v6 = vrot.slane %v1044_v58, 1  ;;  %v25586_v7 = vld [vmem:[%s26315_s26 + $0x110] sm:$0xff]   ;;  %v10573_v14 = vshrl.u32 %v25589_v3, 16  ;;  %v10576_v17 = vshll.u32 %v25589_v3, 16 }
  0x89   : > { %23662 = vmatprep.mubr.bf16.mxu0 %v8886_v10  ;;  %v1054_v10 = vrot.slane %v1052_v62, 1  ;;  %v1060_v19 = vshll.u32 %v25586_v7, 16  ;;  %v26536_v62 = vld [vmem:[%s26315_s26 + $0x138] sm:$0xff]  }
  0x8a   : > { %v1050_v13 = vor.u32 %v1048_v60, %v1046_v6  ;;  %v1047_v22 = vsel %vm787_vm1, %v1042_v8, %v1046_v6  ;;  %v10575_v27 = vrot.slane %v10573_v14, 2  ;;  %v10578_v32 = vrot.slane %v10576_v17, 3  ;;  %v25601_v14 = vld [vmem:[%s26315_s26 + $0x140] sm:$0xff]  }
  0x8b   : > { %v1062_v34 = vrot.slane %v1060_v19, 1  ;;  %v1058_v37 = vor.u32 %v1056_v18, %v1054_v10  ;;  %v10601_v60 = vrot.slane %v10599_v45, 2  ;;  %v1092_v6 = vshll.u32 %v25597_v56, 16  ;;  %v25602_v17 = vld [vmem:[%s26315_s26 + $0x40] sm:$0xff]  }
  0x8c   : > { %v1055_v26 = vsel %vm787_vm1, %v1050_v13, %v1054_v10  ;;  %v10579_v43 = vor.u32 %v10578_v32, %v10575_v27  ;;  %v10617_v8 = vshrl.u32 %v25600_v57, 16  ;;  %v1100_v13 = vshll.u32 %v26536_v62, 16  ;;  %v25612_v27 = vld [vmem:[%s30297_s1 + $0x188] sm:$0xff]  }
  0x8d   : > { %v1063_v51 = vsel %vm787_vm1, %v1058_v37, %v1062_v34  ;;  %v26553_v32 = vld [vmem:[%s26315_s26 + $0x148] sm:$0xff]  }
  0x8e   : > { %v1116_v45 = vshll.u32 %v26553_v32, 16 }
  0x8f   : > { %23055 = vmatmul.mubr.bf16.gmra.mrb[48].mxu1 %v999_v21  ;;  %v25593_v21 = vld [vmem:[%s26315_s26 + $0x20] sm:$0xff]  }
  0x90   : > { %23663 = vmatmul.mubr.bf16.gmra.mrb[48].mxu0 %v8888_v24  ;;  %23058 = vmatprep.mubr.bf16.mxu1 %v1007_v25  ;;  %v1064_v24 = vshrl.u32 %v25586_v7, 16  ;;  %v1068_v25 = vshll.u32 %v25588_v11, 16  ;;  %v10590_v35 = vshrl.u32 %v25593_v21, 16  ;;  %v10593_v36 = vshll.u32 %v25593_v21, 16 }
  0x91   : > { %23666 = vmatprep.mubr.bf16.mxu0 %v8890_v28  ;;  %v10583_v28 = vrot.slane %v10581_v12, 2  ;;  %v10611_v7 = vshll.u32 %v25598_v53, 16  ;;  %v1096_v12 = vshrl.u32 %v25597_v56, 16  ;;  %v25608_v53 = vld [vmem:[%s26315_s26 + $0x58] sm:$0xff]  }
  0x92   : > { %v1066_v40 = vor.u32 %v1064_v24, %v1062_v34  ;;  %v10592_v48 = vrot.slane %v10590_v35, 2  ;;  %v10595_v49 = vrot.slane %v10593_v36, 3  ;;  %v1094_v24 = vrot.slane %v1092_v6, 1 }
  0x93   : > { %v10587_v44 = vor.u32 %v10586_v29, %v10583_v28  ;;  %v10613_v21 = vrot.slane %v10611_v7, 3  ;;  %v1102_v34 = vrot.slane %v1100_v13, 1  ;;  %v1108_v35 = vshll.u32 %v25601_v14, 16  ;;  %v25610_v7 = vld [vmem:[%s26315_s26 + $0x60] sm:$0xff]  }
  0x94   : > { %v1098_v29 = vor.u32 %v1096_v12, %v1094_v24  ;;  %v1120_v6 = vshrl.u32 %v26553_v32, 16 }
  0x95   : > { %v10588_v58 = vsel %vm10571_vm2, %v10579_v43, %v10587_v44 }
  0x97   : > { %23059 = vmatmul.mubr.bf16.gmra.mrb[52].mxu1 %v1015_v39  ;;  %v25595_v39 = vld [vmem:[%s26315_s26 + $0x128] sm:$0xff]  }
  0x98   : > { %23667 = vmatmul.mubr.bf16.gmra.mrb[52].mxu0 %v8892_v41  ;;  %23062 = vmatprep.mubr.bf16.mxu1 %v1023_v42  ;;  %v1070_v41 = vrot.slane %v1068_v25, 1  ;;  %v1076_v42 = vshll.u32 %v25591_v30, 16  ;;  %v1084_v52 = vshll.u32 %v25595_v39, 16  ;;  %v1088_v11 = vshrl.u32 %v25595_v39, 16 }
  0x99   : > { %23670 = vmatprep.mubr.bf16.mxu0 %v8894_v46  ;;  %v10602_v46 = vshll.u32 %v25596_v33, 16  ;;  %v10619_v25 = vrot.slane %v10617_v8, 2  ;;  %v10626_v30 = vshrl.u32 %v25602_v17, 16  ;;  %v10614_v33 = vor.u32 %v10613_v21, %v10610_v16 }
  0x9a   : > { %v1071_v55 = vsel %vm787_vm1, %v1066_v40, %v1070_v41  ;;  %v1078_v59 = vrot.slane %v1076_v42, 1  ;;  %v1074_v63 = vor.u32 %v1072_v47, %v1070_v41  ;;  %v25630_v40 = vld [vmem:[%s30297_s1 + $0x190] sm:$0xff]   ;;  %v1104_v42 = vshrl.u32 %v26536_v62, 16 }
  0x9b   : > { %v1103_v47 = vsel %vm787_vm1, %v1098_v29, %v1102_v34  ;;  %v10665_v21 = vshll.u32 %v25610_v7, 16 }
  0x9c   : > { %v1082_v3 = vor.u32 %v1080_v50, %v1078_v59  ;;  %v1079_v15 = vsel %vm787_vm1, %v1074_v63, %v1078_v59  ;;  %v1110_v50 = vrot.slane %v1108_v35, 1  ;;  %v10653_v63 = vshrl.u32 %v25608_v53, 16 }
  0x9e   : > { %v10655_v13 = vrot.slane %v10653_v63, 2 }
  0x9f   : > { %23063 = vmatmul.mubr.bf16.gmra.mrb[56].mxu1 %v1031_v61  ;;  %v10604_v61 = vrot.slane %v10602_v46, 3 }
  0xa0   : > { %23671 = vmatmul.mubr.bf16.gmra.mrb[56].mxu0 %v8896_v0  ;;  %23066 = vmatprep.mubr.bf16.mxu1 %v1039_v2  ;;  %v25629_v0 = vld [vmem:[%s30297_s1 + $0x70] sm:$0xff]   ;;  %v10596_v2 = vor.u32 %v10595_v49, %v10592_v48 }
  0xa1   : > { %23674 = vmatprep.mubr.bf16.mxu0 %v8898_v4  ;;  %v1086_v4 = vrot.slane %v1084_v52, 1  ;;  %23154 = vmatprep.subr.bf16.mxu1 %v25629_v0  ;;  %v10605_v10 = vor.u32 %v10604_v61, %v10601_v60  ;;  %v25606_v48 = vld [vmem:[%s26315_s26 + $0x50] sm:$0xff]   ;;  %v25607_v61 = vld [vmem:[%s26315_s26 + $0x158] sm:$0xff]  }
  0xa2   : > { %23155 = vmatpush3.bf16.msra.mxu1 %v25629_v0  ;;  %v10597_v18 = vsel %vm10571_vm2, %v10587_v44, %v10596_v2  ;;  %v1112_v44 = vshrl.u32 %v25601_v14, 16  ;;  %v10644_v59 = vshrl.u32 %v25606_v48, 16  ;;  %v10647_v60 = vshll.u32 %v25606_v48, 16 }
  0xa3   : > { %v1087_v19 = vsel %vm787_vm1, %v1082_v3, %v1086_v4  ;;  %v1090_v28 = vor.u32 %v1088_v11, %v1086_v4  ;;  %v10615_v46 = vsel %vm10571_vm2, %v10605_v10, %v10614_v33  ;;  %v10656_v0 = vshll.u32 %v25608_v53, 16 }
  0xa4   : > { %v1114_v57 = vor.u32 %v1112_v44, %v1110_v50  ;;  %v10646_v8 = vrot.slane %v10644_v59, 2  ;;  %v1132_v11 = vshll.u32 %v25607_v61, 16 }
  0xa5   : > { %v1095_v41 = vsel %vm787_vm1, %v1090_v28, %v1094_v24  ;;  %v10658_v14 = vrot.slane %v10656_v0, 3  ;;  %v25648_v28 = vld [vmem:[%s30297_s1 + $0x198] sm:$0xff]  }
  0xa7   : > { %23067 = vmatmul.mubr.bf16.gmra.mrb[60].mxu1 %v1047_v22  ;;  %v25604_v22 = vld [vmem:[%s26315_s26 + $0x48] sm:$0xff]   ;;  %v10659_v29 = vor.u32 %v10658_v14, %v10655_v13 }
  0xa8   : > { %23675 = vmatmul.mubr.bf16.gmra.mrb[60].mxu0 %v8900_v23  ;;  %23070 = vmatprep.mubr.bf16.mxu1 %v1055_v26  ;;  %v10606_v23 = vsel %vm10571_vm2, %v10596_v2, %v10605_v10  ;;  %v10622_v26 = vrot.slane %v10620_v9, 3  ;;  %v10635_v36 = vshrl.u32 %v25604_v22, 16  ;;  %v10638_v39 = vshll.u32 %v25604_v22, 16  ;;  %v26578_v22 = vld [vmem:[%s26315_s26 + $0x168] sm:$0xff]  }
  0xa9   : > { %23678 = vmatprep.mubr.bf16.mxu0 %v8902_v31  ;;  %v10629_v31 = vshll.u32 %v25602_v17, 16  ;;  %v10649_v9 = vrot.slane %v10647_v60, 3  ;;  %v25609_v17 = vld [vmem:[%s26315_s26 + $0x160] sm:$0xff]   ;;  %v25621_v13 = vld [vmem:[%s26315_s26 + $0x188] sm:$0xff]  }
  0xaa   : > { %v10623_v37 = vor.u32 %v10622_v26, %v10619_v25  ;;  %v10640_v52 = vrot.slane %v10638_v39, 3  ;;  %v1134_v26 = vrot.slane %v1132_v11, 1  ;;  %v1140_v32 = vshll.u32 %v25609_v17, 16  ;;  %v25616_v39 = vld [vmem:[%s26315_s26 + $0x70] sm:$0xff]  }
  0xab   : > { %v10631_v43 = vrot.slane %v10629_v31, 3  ;;  %v10650_v24 = vor.u32 %v10649_v9, %v10646_v8  ;;  %v25622_v8 = vld [vmem:[%s26315_s26 + $0x88] sm:$0xff]   ;;  %v25619_v9 = vld [vmem:[%s26315_s26 + $0x180] sm:$0xff]  }
  0xac   : > { %v10624_v49 = vsel %vm10571_vm2, %v10614_v33, %v10623_v37  ;;  %v25615_v33 = vld [vmem:[%s26315_s26 + $0x170] sm:$0xff]  }
  0xaf   : > { %23071 = vmatmul.mubr.bf16.gmra.mrb[64].mxu1 %v1063_v51  ;;  %v10637_v51 = vrot.slane %v10635_v36, 2  ;;  %v10667_v36 = vrot.slane %v10665_v21, 3 }
  0xb0   : > { %23679 = vmatmul.mubr.bf16.gmra.mrb[64].mxu0 %v8904_v54  ;;  %23074 = vmatprep.mubr.bf16.mxu1 %v1071_v55  ;;  %v25605_v54 = vld [vmem:[%s26315_s26 + $0x150] sm:$0xff]   ;;  %v1106_v55 = vor.u32 %v1104_v42, %v1102_v34  ;;  %v1144_v42 = vshrl.u32 %v25609_v17, 16 }
  0xb1   : > { %23766 = vmatprep.mubr.bf16.mxu0 %v10588_v58  ;;  %v1118_v58 = vrot.slane %v1116_v45, 1  ;;  %v10641_v62 = vor.u32 %v10640_v52, %v10637_v51  ;;  %v1124_v2 = vshll.u32 %v25605_v54, 16  ;;  %v1128_v10 = vshrl.u32 %v25605_v54, 16  ;;  %v25617_v52 = vld [vmem:[%s26315_s26 + $0x178] sm:$0xff]  }
  0xb2   : > { %v1111_v3 = vsel %vm787_vm1, %v1106_v55, %v1110_v50  ;;  %v10680_v51 = vshrl.u32 %v25616_v39, 16  ;;  %v10683_v54 = vshll.u32 %v25616_v39, 16  ;;  %v1164_v63 = vshll.u32 %v25617_v52, 16 }
  0xb3   : > { %v1119_v5 = vsel %vm787_vm1, %v1114_v57, %v1118_v58  ;;  %v1126_v16 = vrot.slane %v1124_v2, 1  ;;  %v1168_v21 = vshrl.u32 %v25617_v52, 16 }
  0xb4   : > { %v10682_v2 = vrot.slane %v10680_v51, 2 }
  0xb5   : > { %v1130_v25 = vor.u32 %v1128_v10, %v1126_v16 }
  0xb7   : > { %23075 = vmatmul.mubr.bf16.gmra.mrb[68].mxu1 %v1079_v15  ;;  %v25614_v15 = vld [vmem:[%s26315_s26 + $0x68] sm:$0xff]  }
  0xb8   : > { %23767 = vmatmul.mubr.bf16.vlgmr.msra.gmra.mrb[0].mxu0 %v10597_v18  ;;  %23078 = vmatprep.mubr.bf16.mxu1 %v1087_v19  ;;  %v1122_v18 = vor.u32 %v1120_v6, %v1118_v58  ;;  %v10662_v19 = vshrl.u32 %v25610_v7, 16  ;;  %v10674_v31 = vshll.u32 %v25614_v15, 16  ;;  %v1152_v58 = vshrl.u32 %v26578_v22, 16 }
  0xb9   : > { %23903 = vmatpush3.bf16.msra.mxu0 %v26474_v1  ;;  %23770 = vmatprep.mubr.bf16.mxu0 %v10606_v23  ;;  %v10628_v1 = vrot.slane %v10626_v30, 2  ;;  %v25647_v23 = vld [vmem:[%s30297_s1 + $0x78] sm:$0xff]   ;;  %v10671_v30 = vshrl.u32 %v25614_v15, 16 }
  0xba   : > { %23904 = vmatprep.subr.bf16.mxu0 %v25612_v27  ;;  %23156 = vmatprep.subr.bf16.mxu1 %v25647_v23  ;;  %v1127_v34 = vsel %vm787_vm1, %v1122_v18, %v1126_v16  ;;  %v10664_v35 = vrot.slane %v10662_v19, 2  ;;  %v10676_v45 = vrot.slane %v10674_v31, 3  ;;  %v10707_v18 = vshrl.u32 %v25622_v8, 16 }
  0xbb   : > { %v10632_v56 = vor.u32 %v10631_v43, %v10628_v1  ;;  %23157 = vmatpush3.bf16.msra.mxu1 %v25647_v23  ;;  %v25618_v1 = vld [vmem:[%s26315_s26 + $0x78] sm:$0xff]   ;;  %v10660_v43 = vsel %vm10571_vm2, %v10650_v24, %v10659_v29  ;;  %v10673_v44 = vrot.slane %v10671_v30, 2  ;;  %v10710_v19 = vshll.u32 %v25622_v8, 16  ;;  %v25623_v23 = vld [vmem:[%s26315_s26 + $0x190] sm:$0xff]   ;;  %v25671_v8 = vld [vmem:[%s30297_s1 + $0x1a0] sm:$0xff]  }
  0xbc   : > { %v10689_v55 = vshrl.u32 %v25618_v1, 16  ;;  %v10692_v57 = vshll.u32 %v25618_v1, 16  ;;  %v1176_v31 = vshrl.u32 %v25619_v9, 16  ;;  %v1192_v52 = vshrl.u32 %v25623_v23, 16 }
  0xbd   : > { %23905 = vmatpush3.bf16.msra.mxu0 %v25612_v27  ;;  %v10633_v4 = vsel %vm10571_vm2, %v10623_v37, %v10632_v56  ;;  %v10642_v12 = vsel %vm10571_vm2, %v10632_v56, %v10641_v62  ;;  %v1136_v27 = vshrl.u32 %v25607_v61, 16  ;;  %v1148_v37 = vshll.u32 %v26578_v22, 16 }
  0xbe   : > { %23906 = vmatprep.subr.bf16.mxu0 %v25630_v40  ;;  %v10677_v56 = vor.u32 %v10676_v45, %v10673_v44  ;;  %v10694_v7 = vrot.slane %v10692_v57, 3  ;;  %v1172_v22 = vshll.u32 %v25619_v9, 16  ;;  %v25625_v44 = vld [vmem:[%s26315_s26 + $0x198] sm:$0xff]  }
  0xbf   : > { %23079 = vmatmul.mubr.bf16.gmra.mrb[72].mxu1 %v1095_v41  ;;  %v1135_v41 = vsel %vm787_vm1, %v1130_v25, %v1134_v26  ;;  %v1138_v48 = vor.u32 %v1136_v27, %v1134_v26  ;;  %v1150_v50 = vrot.slane %v1148_v37, 1  ;;  %v1180_v26 = vshll.u32 %v25621_v13, 16  ;;  %v25624_v27 = vld [vmem:[%s26315_s26 + $0x90] sm:$0xff]  }
  0xc0   : > { %23771 = vmatmul.mubr.bf16.gmra.mrb[4].mxu0 %v10615_v46  ;;  %23082 = vmatprep.mubr.bf16.mxu1 %v1103_v47  ;;  %v1142_v46 = vrot.slane %v1140_v32, 1  ;;  %v1156_v47 = vshll.u32 %v25615_v33, 16  ;;  %v1196_v57 = vshll.u32 %v25625_v44, 16 }
  0xc1   : > { %23774 = vmatprep.mubr.bf16.mxu0 %v10624_v49  ;;  %23907 = vmatpush3.bf16.msra.mxu0 %v25630_v40  ;;  %v10651_v40 = vsel %vm10571_vm2, %v10641_v62, %v10650_v24  ;;  %v10668_v49 = vor.u32 %v10667_v36, %v10664_v35  ;;  %v1160_v62 = vshrl.u32 %v25615_v33, 16  ;;  %v1154_v10 = vor.u32 %v1152_v58, %v1150_v50  ;;  %v25626_v35 = vld [vmem:[%s26315_s26 + $0x98] sm:$0xff]   ;;  %v25627_v58 = vld [vmem:[%s26315_s26 + $0x1a0] sm:$0xff]  }
  0xc2   : > { %23908 = vmatprep.subr.bf16.mxu0 %v25648_v28  ;;  %v1146_v53 = vor.u32 %v1144_v42, %v1142_v46  ;;  %v1158_v59 = vrot.slane %v1156_v47, 1  ;;  %v1143_v60 = vsel %vm787_vm1, %v1138_v48, %v1142_v46  ;;  %v10709_v33 = vrot.slane %v10707_v18, 2  ;;  %v25634_v18 = vld [vmem:[%s26315_s26 + $0xb0] sm:$0xff]  }
  0xc3   : > { %v10669_v61 = vsel %vm10571_vm2, %v10659_v29, %v10668_v49  ;;  %v10678_v6 = vsel %vm10571_vm2, %v10668_v49, %v10677_v56  ;;  %v1174_v36 = vrot.slane %v1172_v22, 1  ;;  %v1182_v39 = vrot.slane %v1180_v26, 1 }
  0xc4   : > { %v1151_v0 = vsel %vm787_vm1, %v1146_v53, %v1150_v50  ;;  %v1162_v11 = vor.u32 %v1160_v62, %v1158_v59  ;;  %v1159_v24 = vsel %vm787_vm1, %v1154_v10, %v1158_v59  ;;  %v10725_v46 = vshrl.u32 %v25626_v35, 16  ;;  %v25628_v53 = vld [vmem:[%s26315_s26 + $0xa0] sm:$0xff]   ;;  %v25632_v62 = vld [vmem:[%s26315_s26 + $0xa8] sm:$0xff]  }
  0xc5   : > { %23909 = vmatpush3.bf16.msra.mxu0 %v25648_v28  ;;  %v1178_v1 = vor.u32 %v1176_v31, %v1174_v36  ;;  %v10728_v47 = vshll.u32 %v25626_v35, 16  ;;  %v1184_v48 = vshrl.u32 %v25621_v13, 16  ;;  %v10743_v10 = vshrl.u32 %v25632_v62, 16 }
  0xc6   : > { %v1204_v13 = vshll.u32 %v25627_v58, 16  ;;  %23910 = vmatprep.subr.bf16.mxu0 %v25671_v8  ;;  %v10755_v31 = vshll.u32 %v25634_v18, 16 }
  0xc7   : > { %23083 = vmatmul.mubr.bf16.gmra.mrb[76].mxu1 %v1111_v3  ;;  %v10685_v3 = vrot.slane %v10683_v54, 3 }
  0xc8   : > { %23775 = vmatmul.mubr.bf16.gmra.mrb[8].mxu0 %v10633_v4  ;;  %23086 = vmatprep.mubr.bf16.mxu1 %v1119_v5  ;;  %v10691_v4 = vrot.slane %v10689_v55, 2  ;;  %v25620_v5 = vld [vmem:[%s26315_s26 + $0x80] sm:$0xff]   ;;  %v1183_v55 = vsel %vm787_vm1, %v1178_v1, %v1182_v39 }
  0xc9   : > { %23778 = vmatprep.mubr.bf16.mxu0 %v10642_v12  ;;  %v1166_v12 = vrot.slane %v1164_v63, 1  ;;  %v10686_v14 = vor.u32 %v10685_v3, %v10682_v2  ;;  %v10698_v15 = vshrl.u32 %v25620_v5, 16  ;;  %v10701_v16 = vshll.u32 %v25620_v5, 16  ;;  %v26622_v63 = vld [vmem:[%s30297_s1 + $0x80] sm:$0xff]   ;;  %23911 = vmatpush3.bf16.msra.mxu0 %v25671_v8 }
  0xca   : > { %v10695_v17 = vor.u32 %v10694_v7, %v10691_v4  ;;  %v10734_v2 = vshrl.u32 %v25628_v53, 16  ;;  %v10737_v3 = vshll.u32 %v25628_v53, 16  ;;  %v26625_v4 = vld [vmem:[%s26315_s26 + $0x1a8] sm:$0xff]   ;;  %v1198_v7 = vrot.slane %v1196_v57, 1  ;;  %23294 = vmatprep.subr.bf16.mxu1 %v26622_v63  ;;  %v25638_v1 = vld [vmem:[%s26315_s26 + $0xc0] sm:$0xff]  }
  0xcb   : > { %v1167_v25 = vsel %vm787_vm1, %v1162_v11, %v1166_v12  ;;  %v10687_v28 = vsel %vm10571_vm2, %v10677_v56, %v10686_v14  ;;  %v10700_v29 = vrot.slane %v10698_v15, 2  ;;  %v10703_v30 = vrot.slane %v10701_v16, 3 }
  0xcc   : > { %v10696_v32 = vsel %vm10571_vm2, %v10686_v14, %v10695_v17  ;;  %v1170_v37 = vor.u32 %v1168_v21, %v1166_v12  ;;  %v10746_v11 = vshll.u32 %v25632_v62, 16  ;;  %v1200_v12 = vshrl.u32 %v25625_v44, 16 }
  0xcd   : > { %v10704_v42 = vor.u32 %v10703_v30, %v10700_v29  ;;  %v10736_v15 = vrot.slane %v10734_v2, 2  ;;  %v10739_v16 = vrot.slane %v10737_v3, 3  ;;  %v1212_v22 = vshll.u32 %v26625_v4, 16 }
  0xce   : > { %v1175_v49 = vsel %vm787_vm1, %v1170_v37, %v1174_v36  ;;  %v10748_v26 = vrot.slane %v10746_v11, 3  ;;  %v1202_v29 = vor.u32 %v1200_v12, %v1198_v7  ;;  %v10752_v30 = vshrl.u32 %v25634_v18, 16  ;;  %v25635_v36 = vld [vmem:[%s26315_s26 + $0x1b8] sm:$0xff]  }
  0xcf   : > { %23087 = vmatmul.mubr.bf16.gmra.mrb[80].mxu1 %v1127_v34  ;;  %v10712_v34 = vrot.slane %v10710_v19, 3  ;;  %v10705_v54 = vsel %vm10571_vm2, %v10695_v17, %v10704_v42  ;;  %v1208_v17 = vshrl.u32 %v25627_v58, 16  ;;  %v1232_v62 = vshrl.u32 %v25635_v36, 16 }
  0xd0   : > { %23779 = vmatmul.mubr.bf16.gmra.mrb[12].mxu0 %v10651_v40  ;;  %23090 = vmatprep.mubr.bf16.mxu1 %v1135_v41  ;;  %v1188_v40 = vshll.u32 %v25623_v23, 16  ;;  %v10716_v41 = vshrl.u32 %v25624_v27, 16  ;;  %v25633_v23 = vld [vmem:[%s26315_s26 + $0x1b0] sm:$0xff]   ;;  %v10754_v44 = vrot.slane %v10752_v30, 2 }
  0xd1   : > { %23782 = vmatprep.mubr.bf16.mxu0 %v10660_v43  ;;  %v10719_v43 = vshll.u32 %v25624_v27, 16  ;;  %v10713_v45 = vor.u32 %v10712_v34, %v10709_v33  ;;  %v25636_v27 = vld [vmem:[%s26315_s26 + $0xb8] sm:$0xff]   ;;  %v1214_v34 = vrot.slane %v1212_v22, 1  ;;  %v1220_v35 = vshll.u32 %v25633_v23, 16  ;;  %v25689_v22 = vld [vmem:[%s30297_s1 + $0x1a8] sm:$0xff]  }
  0xd2   : > { %v1190_v50 = vrot.slane %v1188_v40, 1  ;;  %v10718_v51 = vrot.slane %v10716_v41, 2  ;;  %v10764_v40 = vshll.u32 %v25636_v27, 16  ;;  %v1216_v41 = vshrl.u32 %v26625_v4, 16  ;;  %23912 = vmatprep.subr.bf16.mxu0 %v25689_v22 }
  0xd3   : > { %v10721_v56 = vrot.slane %v10719_v43, 3  ;;  %v10714_v59 = vsel %vm10571_vm2, %v10704_v42, %v10713_v45  ;;  %v1224_v42 = vshrl.u32 %v25633_v23, 16  ;;  %23913 = vmatpush3.bf16.msra.mxu0 %v25689_v22 }
  0xd4   : > { %v10766_v53 = vrot.slane %v10764_v40, 3  ;;  %v1218_v57 = vor.u32 %v1216_v41, %v1214_v34 }
  0xd5   : > { %v10722_v5 = vor.u32 %v10721_v56, %v10718_v51  ;;  %v1222_v51 = vrot.slane %v1220_v35, 1  ;;  %v26649_v56 = vld [vmem:[%s26315_s26 + $0x1c8] sm:$0xff]  }
  0xd6   : > { %v1248_v35 = vshrl.u32 %v26649_v56, 16 }
  0xd7   : > { %23091 = vmatmul.mubr.bf16.gmra.mrb[84].mxu1 %v1143_v60  ;;  %v10727_v60 = vrot.slane %v10725_v46, 2  ;;  %v10723_v19 = vsel %vm10571_vm2, %v10713_v45, %v10722_v5  ;;  %v10757_v45 = vrot.slane %v10755_v31, 3  ;;  %v1223_v8 = vsel %vm787_vm1, %v1218_v57, %v1222_v51 }
  0xd8   : > { %23783 = vmatmul.mubr.bf16.gmra.mrb[16].mxu0 %v10669_v61  ;;  %23094 = vmatprep.mubr.bf16.mxu1 %v1151_v0  ;;  %v10730_v61 = vrot.slane %v10728_v47, 3  ;;  %v1186_v0 = vor.u32 %v1184_v48, %v1182_v39  ;;  %v10761_v39 = vshrl.u32 %v25636_v27, 16  ;;  %v1228_v48 = vshll.u32 %v25635_v36, 16  ;;  %v25646_v36 = vld [vmem:[%s26315_s26 + $0xe0] sm:$0xff]  }
  0xd9   : > { %23786 = vmatprep.mubr.bf16.mxu0 %v10678_v6  ;;  %v1194_v6 = vor.u32 %v1192_v52, %v1190_v50  ;;  %v10758_v58 = vor.u32 %v10757_v45, %v10754_v44  ;;  %v25645_v44 = vld [vmem:[%s26315_s26 + $0x1e0] sm:$0xff]   ;;  %v25650_v45 = vld [vmem:[%s26315_s26 + $0xe8] sm:$0xff]  }
  0xda   : > { %v10731_v9 = vor.u32 %v10730_v61, %v10727_v60  ;;  %v1191_v14 = vsel %vm787_vm1, %v1186_v0, %v1190_v50  ;;  %v10763_v52 = vrot.slane %v10761_v39, 2  ;;  %v10773_v60 = vshll.u32 %v25638_v1, 16 }
  0xdb   : > { %v1199_v21 = vsel %vm787_vm1, %v1194_v6, %v1198_v7  ;;  %v1230_v61 = vrot.slane %v1228_v48, 1  ;;  %v1244_v7 = vshll.u32 %v26649_v56, 16  ;;  %v1268_v56 = vshll.u32 %v25645_v44, 16 }
  0xdc   : > { %v10767_v3 = vor.u32 %v10766_v53, %v10763_v52  ;;  %v10815_v57 = vshrl.u32 %v25650_v45, 16 }
  0xdd   : > { %v1234_v23 = vor.u32 %v1232_v62, %v1230_v61 }
  0xdf   : > { %23095 = vmatmul.mubr.bf16.gmra.mrb[88].mxu1 %v1159_v24  ;;  %v10732_v24 = vsel %vm10571_vm2, %v10722_v5, %v10731_v9 }
  0xe0   : > { %23787 = vmatmul.mubr.bf16.gmra.mrb[20].mxu0 %v10687_v28  ;;  %23098 = vmatprep.mubr.bf16.mxu1 %v1167_v25  ;;  %v10745_v25 = vrot.slane %v10743_v10, 2  ;;  %v1206_v28 = vrot.slane %v1204_v13, 1  ;;  %v25642_v10 = vld [vmem:[%s26315_s26 + $0xd0] sm:$0xff]  }
  0xe1   : > { %23790 = vmatprep.mubr.bf16.mxu0 %v10696_v32  ;;  %v10740_v32 = vor.u32 %v10739_v16, %v10736_v15  ;;  %v25644_v15 = vld [vmem:[%s26315_s26 + $0xd8] sm:$0xff]   ;;  %v10768_v16 = vsel %vm10571_vm2, %v10758_v58, %v10767_v3  ;;  %v10791_v27 = vshll.u32 %v25642_v10, 16 }
  0xe2   : > { %v1210_v33 = vor.u32 %v1208_v17, %v1206_v28  ;;  %v10749_v37 = vor.u32 %v10748_v26, %v10745_v25  ;;  %v1207_v43 = vsel %vm787_vm1, %v1202_v29, %v1206_v28  ;;  %v10788_v26 = vshrl.u32 %v25642_v10, 16  ;;  %v25651_v10 = vld [vmem:[%s26315_s26 + $0x1f0] sm:$0xff]  }
  0xe3   : > { %v10741_v46 = vsel %vm10571_vm2, %v10731_v9, %v10740_v32  ;;  %v10775_v9 = vrot.slane %v10773_v60, 3  ;;  %v10797_v28 = vshrl.u32 %v25644_v15, 16  ;;  %v10800_v29 = vshll.u32 %v25644_v15, 16 }
  0xe4   : > { %v1215_v47 = vsel %vm787_vm1, %v1210_v33, %v1214_v34  ;;  %v10750_v50 = vsel %vm10571_vm2, %v10740_v32, %v10749_v37  ;;  %v10759_v11 = vsel %vm10571_vm2, %v10749_v37, %v10758_v58  ;;  %v10790_v39 = vrot.slane %v10788_v26, 2 }
  0xe5   : > { %v10793_v40 = vrot.slane %v10791_v27, 3  ;;  %v10818_v58 = vshll.u32 %v25650_v45, 16 }
  0xe7   : > { %23099 = vmatmul.mubr.bf16.gmra.mrb[92].mxu1 %v1175_v49  ;;  %v25637_v49 = vld [vmem:[%s26315_s26 + $0x1c0] sm:$0xff]  }
  0xe8   : > { %23791 = vmatmul.mubr.bf16.gmra.mrb[24].mxu0 %v10705_v54  ;;  %23102 = vmatprep.mubr.bf16.mxu1 %v1183_v55  ;;  %v25640_v54 = vld [vmem:[%s26315_s26 + $0xc8] sm:$0xff]   ;;  %v10770_v55 = vshrl.u32 %v25638_v1, 16  ;;  %v1236_v0 = vshll.u32 %v25637_v49, 16  ;;  %v1240_v2 = vshrl.u32 %v25637_v49, 16  ;;  %v10799_v1 = vrot.slane %v10797_v28, 2 }
  0xe9   : > { %23794 = vmatprep.mubr.bf16.mxu0 %v10714_v59  ;;  %v1226_v59 = vor.u32 %v1224_v42, %v1222_v51  ;;  %v10779_v4 = vshrl.u32 %v25640_v54, 16  ;;  %v10782_v5 = vshll.u32 %v25640_v54, 16  ;;  %v10806_v49 = vshrl.u32 %v25646_v36, 16 }
  0xea   : > { %v10772_v6 = vrot.slane %v10770_v55, 2  ;;  %v1238_v13 = vrot.slane %v1236_v0, 1  ;;  %v10794_v51 = vor.u32 %v10793_v40, %v10790_v39  ;;  %v10809_v54 = vshll.u32 %v25646_v36, 16  ;;  %v25652_v0 = vld [vmem:[%s26315_s26 + $0xf0] sm:$0xff]  }
  0xeb   : > { %v1231_v12 = vsel %vm787_vm1, %v1226_v59, %v1230_v61  ;;  %v10781_v17 = vrot.slane %v10779_v4, 2  ;;  %v10784_v18 = vrot.slane %v10782_v5, 3  ;;  %v10808_v60 = vrot.slane %v10806_v49, 2  ;;  %v25654_v5 = vld [vmem:[%s26315_s26 + $0xf8] sm:$0xff]  }
  0xec   : > { %v1242_v25 = vor.u32 %v1240_v2, %v1238_v13  ;;  %v1239_v33 = vsel %vm787_vm1, %v1234_v23, %v1238_v13  ;;  %v1272_v61 = vshrl.u32 %v25645_v44, 16  ;;  %v10811_v4 = vrot.slane %v10809_v54, 3  ;;  %v25657_v44 = vld [vmem:[%s26315_s26 + $0x208] sm:$0xff]  }
  0xed   : > { %v10785_v30 = vor.u32 %v10784_v18, %v10781_v17  ;;  %v10824_v15 = vshrl.u32 %v25652_v0, 16  ;;  %v10827_v17 = vshll.u32 %v25652_v0, 16  ;;  %v10833_v18 = vshrl.u32 %v25654_v5, 16 }
  0xee   : > { %v1284_v23 = vshll.u32 %v25651_v10, 16 }
  0xef   : > { %23103 = vmatmul.mubr.bf16.gmra.mrb[96].mxu1 %v1191_v14  ;;  %v25641_v14 = vld [vmem:[%s26315_s26 + $0x1d0] sm:$0xff]   ;;  %v10795_v2 = vsel %vm10571_vm2, %v10785_v30, %v10794_v51  ;;  %v10826_v28 = vrot.slane %v10824_v15, 2  ;;  %v25664_v15 = vld [vmem:[%s26315_s26 + $0x120] sm:$0xff]  }
  0xf0   : > { %23795 = vmatmul.mubr.bf16.gmra.mrb[28].mxu0 %v10723_v19  ;;  %23106 = vmatprep.mubr.bf16.mxu1 %v1199_v21  ;;  %v1246_v19 = vrot.slane %v1244_v7, 1  ;;  %v26660_v21 = vld [vmem:[%s26315_s26 + $0x1d8] sm:$0xff]   ;;  %v1252_v31 = vshll.u32 %v25641_v14, 16  ;;  %v1256_v41 = vshrl.u32 %v25641_v14, 16  ;;  %v1270_v7 = vrot.slane %v1268_v56, 1 }
  0xf1   : > { %23798 = vmatprep.mubr.bf16.mxu0 %v10732_v24  ;;  %v10776_v24 = vor.u32 %v10775_v9, %v10772_v6  ;;  %v1260_v32 = vshll.u32 %v26660_v21, 16  ;;  %v1264_v53 = vshrl.u32 %v26660_v21, 16  ;;  %v10820_v9 = vrot.slane %v10818_v58, 3 }
  0xf2   : > { %v1247_v34 = vsel %vm787_vm1, %v1242_v25, %v1246_v19  ;;  %v1250_v48 = vor.u32 %v1248_v35, %v1246_v19  ;;  %v1274_v13 = vor.u32 %v1272_v61, %v1270_v7  ;;  %v10836_v21 = vshll.u32 %v25654_v5, 16  ;;  %v25656_v25 = vld [vmem:[%s26315_s26 + $0x100] sm:$0xff]  }
  0xf3   : > { %v10777_v37 = vsel %vm10571_vm2, %v10767_v3, %v10776_v24  ;;  %v10786_v42 = vsel %vm10571_vm2, %v10776_v24, %v10785_v30  ;;  %v1286_v39 = vrot.slane %v1284_v23, 1  ;;  %v1308_v56 = vshll.u32 %v25657_v44, 16  ;;  %v25667_v23 = vld [vmem:[%s26315_s26 + $0x128] sm:$0xff]  }
  0xf4   : > { %v10838_v36 = vrot.slane %v10836_v21, 3 }
  0xf7   : > { %23107 = vmatmul.mubr.bf16.gmra.mrb[100].mxu1 %v1207_v43  ;;  %v10802_v43 = vrot.slane %v10800_v29, 3  ;;  %v25707_v29 = vld [vmem:[%s30297_s1 + $0x1b0] sm:$0xff]  }
  0xf8   : > { %23799 = vmatmul.mubr.bf16.gmra.mrb[32].mxu0 %v10741_v46  ;;  %23110 = vmatprep.mubr.bf16.mxu1 %v1215_v47  ;;  %v1254_v46 = vrot.slane %v1252_v31, 1  ;;  %v1262_v47 = vrot.slane %v1260_v32, 1  ;;  %v10829_v31 = vrot.slane %v10827_v17, 3  ;;  %v1288_v32 = vshrl.u32 %v25651_v10, 16 }
  0xf9   : > { %23802 = vmatprep.mubr.bf16.mxu0 %v10750_v50  ;;  %v25649_v50 = vld [vmem:[%s26315_s26 + $0x1e8] sm:$0xff]   ;;  %v10803_v55 = vor.u32 %v10802_v43, %v10799_v1  ;;  %23914 = vmatprep.subr.bf16.mxu0 %v25707_v29  ;;  %v10842_v1 = vshrl.u32 %v25656_v25, 16  ;;  %v10845_v43 = vshll.u32 %v25656_v25, 16 }
  0xfa   : > { %v1258_v52 = vor.u32 %v1256_v41, %v1254_v46  ;;  %v1255_v59 = vsel %vm787_vm1, %v1250_v48, %v1254_v46  ;;  %v1276_v62 = vshll.u32 %v25649_v50, 16  ;;  %v1280_v22 = vshrl.u32 %v25649_v50, 16  ;;  %23915 = vmatpush3.bf16.msra.mxu0 %v25707_v29 }
  0xfb   : > { %v10804_v6 = vsel %vm10571_vm2, %v10794_v51, %v10803_v55  ;;  %v10830_v45 = vor.u32 %v10829_v31, %v10826_v28  ;;  %v1290_v46 = vor.u32 %v1288_v32, %v1286_v39  ;;  %v25659_v51 = vld [vmem:[%s26315_s26 + $0x210] sm:$0xff]  }
  0xfc   : > { %v1263_v3 = vsel %vm787_vm1, %v1258_v52, %v1262_v47  ;;  %v1278_v14 = vrot.slane %v1276_v62, 1 }
  0xfe   : > { %v1279_v27 = vsel %vm787_vm1, %v1274_v13, %v1278_v14  ;;  %v1282_v41 = vor.u32 %v1280_v22, %v1278_v14 }
  0xff   : > { %23111 = vmatmul.mubr.bf16.gmra.mrb[104].mxu1 %v1223_v8  ;;  %v10817_v8 = vrot.slane %v10815_v57, 2 }
 0x100   : > { %23803 = vmatmul.mubr.bf16.gmra.mrb[36].mxu0 %v10759_v11  ;;  %23114 = vmatprep.mubr.bf16.mxu1 %v1231_v12  ;;  %v26684_v11 = vld [vmem:[%s26315_s26 + $0x1f8] sm:$0xff]   ;;  %v1266_v12 = vor.u32 %v1264_v53, %v1262_v47  ;;  %v25660_v53 = vld [vmem:[%s26315_s26 + $0x110] sm:$0xff]   ;;  %v1287_v54 = vsel %vm787_vm1, %v1282_v41, %v1286_v39 }
 0x101   : > { %23806 = vmatprep.mubr.bf16.mxu0 %v10768_v16  ;;  %v10812_v16 = vor.u32 %v10811_v4, %v10808_v60  ;;  %v10821_v19 = vor.u32 %v10820_v9, %v10817_v8  ;;  %v1292_v24 = vshll.u32 %v26684_v11, 16  ;;  %v25662_v60 = vld [vmem:[%s26315_s26 + $0x118] sm:$0xff]   ;;  %v1316_v4 = vshll.u32 %v25659_v51, 16 }
 0x102   : > { %v1271_v26 = vsel %vm787_vm1, %v1266_v12, %v1270_v7  ;;  %v10860_v5 = vshrl.u32 %v25660_v53, 16  ;;  %v1312_v7 = vshrl.u32 %v25657_v44, 16  ;;  %v10863_v8 = vshll.u32 %v25660_v53, 16  ;;  %v25673_v53 = vld [vmem:[%s26315_s26 + $0x138] sm:$0xff]  }
 0x103   : > { %v10813_v30 = vsel %vm10571_vm2, %v10803_v55, %v10812_v16  ;;  %v10822_v35 = vsel %vm10571_vm2, %v10812_v16, %v10821_v19  ;;  %v1294_v40 = vrot.slane %v1292_v24, 1  ;;  %v10844_v55 = vrot.slane %v10842_v1, 2 }
 0x104   : > { %v10831_v57 = vsel %vm10571_vm2, %v10821_v19, %v10830_v45  ;;  %v10869_v12 = vshrl.u32 %v25662_v60, 16  ;;  %v10872_v14 = vshll.u32 %v25662_v60, 16  ;;  %v1318_v16 = vrot.slane %v1316_v4, 1  ;;  %v25672_v4 = vld [vmem:[%s26315_s26 + $0x18] sm:$0xff]  }
 0x105   : > { %v1295_v58 = vsel %vm787_vm1, %v1290_v46, %v1294_v40  ;;  %v10862_v17 = vrot.slane %v10860_v5, 2  ;;  %v10865_v22 = vrot.slane %v10863_v8, 3  ;;  %v10890_v1 = vshll.u32 %v25667_v23, 16 }
 0x106   : > { %v10874_v29 = vrot.slane %v10872_v14, 3 }
 0x107   : > { %23115 = vmatmul.mubr.bf16.gmra.mrb[108].mxu1 %v1239_v33  ;;  %v10835_v33 = vrot.slane %v10833_v18, 2  ;;  %v1320_v18 = vshrl.u32 %v25659_v51, 16 }
 0x108   : > { %23807 = vmatmul.mubr.bf16.gmra.mrb[40].mxu0 %v10777_v37  ;;  %23118 = vmatprep.mubr.bf16.mxu1 %v1247_v34  ;;  %v25655_v34 = vld [vmem:[%s26315_s26 + $0x200] sm:$0xff]   ;;  %v25658_v37 = vld [vmem:[%s26315_s26 + $0x108] sm:$0xff]  }
 0x109   : > { %23810 = vmatprep.mubr.bf16.mxu0 %v10786_v42  ;;  %v1296_v42 = vshrl.u32 %v26684_v11, 16  ;;  %v10839_v47 = vor.u32 %v10838_v36, %v10835_v33  ;;  %v1300_v48 = vshll.u32 %v25655_v34, 16  ;;  %v10851_v49 = vshrl.u32 %v25658_v37, 16 }
 0x10a   : > { %v10854_v50 = vshll.u32 %v25658_v37, 16  ;;  %v1304_v52 = vshrl.u32 %v25655_v34, 16  ;;  %v1310_v11 = vrot.slane %v1308_v56, 1  ;;  %v1322_v32 = vor.u32 %v1320_v18, %v1318_v16 }
 0x10b   : > { %v10840_v61 = vsel %vm10571_vm2, %v10830_v45, %v10839_v47  ;;  %v1302_v62 = vrot.slane %v1300_v48, 1  ;;  %v10853_v0 = vrot.slane %v10851_v49, 2  ;;  %v10881_v33 = vshll.u32 %v25664_v15, 16  ;;  %v25725_v48 = vld [vmem:[%s30297_s1 + $0x1b8] sm:$0xff]  }
 0x10c   : > { %v1314_v31 = vor.u32 %v1312_v7, %v1310_v11  ;;  %v10887_v34 = vshrl.u32 %v25667_v23, 16  ;;  %23916 = vmatprep.subr.bf16.mxu0 %v25725_v48  ;;  %v25674_v23 = vld [vmem:[%s26315_s26 + $0x20] sm:$0xff]  }
 0x10d   : > { %v1306_v10 = vor.u32 %v1304_v52, %v1302_v62  ;;  %v10883_v45 = vrot.slane %v10881_v33, 3  ;;  %v10892_v52 = vrot.slane %v10890_v1, 3  ;;  %23917 = vmatpush3.bf16.msra.mxu0 %v25725_v48  ;;  %v25706_v1 = vld [vmem:[%s30297_s1 + $0x90] sm:$0xff]   ;;  %v25683_v48 = vld [vmem:[%s26315_s26 + $0x160] sm:$0xff]  }
 0x10e   : > { %v1319_v44 = vsel %vm787_vm1, %v1314_v31, %v1318_v16  ;;  %v10889_v46 = vrot.slane %v10887_v34, 2  ;;  %v25681_v31 = vld [vmem:[%s26315_s26 + $0x158] sm:$0xff]  }
 0x10f   : > { %23119 = vmatmul.mubr.bf16.gmra.mrb[112].mxu1 %v1255_v59  ;;  %v10847_v59 = vrot.slane %v10845_v43, 3  ;;  %v1311_v25 = vsel %vm787_vm1, %v1306_v10, %v1310_v11  ;;  %v25665_v43 = vld [vmem:[%s26315_s26] sm:$0xfe]   ;;  %v25677_v10 = vld [vmem:[%s26315_s26 + $0x148] sm:$0xff]  }
 0x110   : > { %23811 = vmatmul.mubr.bf16.gmra.mrb[44].mxu0 %v10795_v2  ;;  %23122 = vmatprep.mubr.bf16.mxu1 %v1263_v3  ;;  %v10856_v2 = vrot.slane %v10854_v50, 3  ;;  %v26707_v3 = vld [vmem:[%s26315_s26 + $0x218] sm:$0xff]   ;;  %v2663_v56 = vrot.slane %v25665_v43, 1  ;;  %v10923_v18 = vshrl.u32 %v25677_v10, 16 }
 0x111   : > { %23814 = vmatprep.mubr.bf16.mxu0 %v10804_v6  ;;  %v1298_v6 = vor.u32 %v1296_v42, %v1294_v40  ;;  %v10848_v9 = vor.u32 %v10847_v59, %v10844_v55  ;;  %v1324_v19 = vshll.u32 %v26707_v3, 16  ;;  %v1328_v37 = vshrl.u32 %v26707_v3, 16  ;;  %v25666_v42 = vld [vmem:[%s26315_s26 + $0x8] sm:$0xff]  }
 0x112   : > { %v10857_v13 = vor.u32 %v10856_v2, %v10853_v0  ;;  %v10908_v0 = vshll.u32 %v25673_v53, 16  ;;  %v25668_v2 = vld [vmem:[%s26315_s26 + $0x10] sm:$0xff]  }
 0x113   : > { %v1303_v21 = vsel %vm787_vm1, %v1298_v6, %v1302_v62  ;;  %v10849_v24 = vsel %vm10571_vm2, %v10839_v47, %v10848_v9  ;;  %v1326_v36 = vrot.slane %v1324_v19, 1  ;;  %v25670_v47 = vld [vmem:[%s26315_s26 + $0x130] sm:$0xff]   ;;  %v10905_v62 = vshrl.u32 %v25673_v53, 16  ;;  %v25685_v53 = vld [vmem:[%s26315_s26 + $0x168] sm:$0xff]  }
 0x114   : > { %v10858_v28 = vsel %vm10571_vm2, %v10848_v9, %v10857_v13  ;;  %v10896_v59 = vshrl.u32 %v25670_v47, 16  ;;  %v10899_v60 = vshll.u32 %v25670_v47, 16  ;;  %v25675_v9 = vld [vmem:[%s26315_s26 + $0x140] sm:$0xff]   ;;  %v2666_v14 = vrot.slane %v25668_v2, 1 }
 0x115   : > { %v1327_v50 = vsel %vm787_vm1, %v1322_v32, %v1326_v36  ;;  %v10914_v16 = vshrl.u32 %v25675_v9, 16  ;;  %v2668_v19 = vrot.slane %v25672_v4, 1  ;;  %v10962_v4 = vshll.u32 %v25685_v53, 16 }
 0x116   : > { %v10898_v7 = vrot.slane %v10896_v59, 2  ;;  %v10901_v8 = vrot.slane %v10899_v60, 3  ;;  %v10950_v59 = vshrl.u32 %v25683_v48, 16  ;;  %v25748_v60 = vld [vmem:[%s30297_s1 + $0x1c0] sm:$0xff]  }
 0x117   : > { %23123 = vmatmul.mubr.bf16.gmra.mrb[116].mxu1 %v1271_v26  ;;  %v10871_v26 = vrot.slane %v10869_v12, 2  ;;  %v10907_v12 = vrot.slane %v10905_v62, 2  ;;  %v2669_v32 = vsel %vm2662_vm3, %v2666_v14, %v2668_v19  ;;  %v10953_v62 = vshll.u32 %v25683_v48, 16  ;;  %24054 = vmatprep.subr.bf16.mxu0 %v25748_v60 }
 0x118   : > { %23815 = vmatmul.mubr.bf16.gmra.mrb[48].mxu0 %v10813_v30  ;;  %23126 = vmatprep.mubr.bf16.mxu1 %v1279_v27  ;;  %v25663_v27 = vld [vmem:[%s26315_s26 + $0x220] ss:$0 sps:$4 sm:$0x11]   ;;  %v10878_v30 = vshrl.u32 %v25664_v15, 16  ;;  %v10902_v15 = vor.u32 %v10901_v8, %v10898_v7  ;;  %v10952_v8 = vrot.slane %v10950_v59, 2 }
 0x119   : > { %23818 = vmatprep.mubr.bf16.mxu0 %v10822_v35  ;;  %v10866_v35 = vor.u32 %v10865_v22, %v10862_v17  ;;  %v1332_v39 = vshll.u32 %v25663_v27, 16  ;;  %v10875_v40 = vor.u32 %v10874_v29, %v10871_v26  ;;  %v10917_v17 = vshll.u32 %v25675_v9, 16  ;;  %v25679_v26 = vld [vmem:[%s26315_s26 + $0x150] sm:$0xff]   ;;  %v25684_v9 = vld [vmem:[%s26315_s26 + $0x48] sm:$0xff]   ;;  %v25701_v59 = vld [vmem:[%s26315_s26 + $0x1a0] sm:$0xff]  }
 0x11a   : > { %v10880_v41 = vrot.slane %v10878_v30, 2  ;;  %v10926_v22 = vshll.u32 %v25677_v10, 16  ;;  %v10925_v30 = vrot.slane %v10923_v18, 2 }
 0x11b   : > { %v10867_v49 = vsel %vm10571_vm2, %v10857_v13, %v10866_v35  ;;  %v10876_v51 = vsel %vm10571_vm2, %v10866_v35, %v10875_v40  ;;  %v1334_v55 = vrot.slane %v1332_v39, 1  ;;  %v10910_v13 = vrot.slane %v10908_v0, 3  ;;  %v25688_v35 = vld [vmem:[%s30297_s1 + $0x88] sm:$0xff]  }
 0x11c   : > { %v10919_v29 = vrot.slane %v10917_v17, 3  ;;  %v10928_v34 = vrot.slane %v10926_v22, 3  ;;  %v10932_v39 = vshrl.u32 %v25679_v26, 16  ;;  %v10959_v0 = vshrl.u32 %v25685_v53, 16 }
 0x11d   : > { %v2680_v22 = vrot.slane %v25684_v9, 1  ;;  %v11025_v9 = vshll.u32 %v25701_v59, 16 }
 0x11e   : > { %v10929_v43 = vor.u32 %v10928_v34, %v10925_v30 }
 0x11f   : > { %23127 = vmatmul.mubr.bf16.gmra.mrb[120].mxu1 %v1287_v54  ;;  %v1330_v54 = vor.u32 %v1328_v37, %v1326_v36  ;;  %v2670_v36 = vrot.slane %v25674_v23, 1 }
 0x120   : > { %23819 = vmatmul.mubr.bf16.gmra.mrb[52].mxu0 %v10831_v57  ;;  %23130 = vmatprep.mubr.bf16.mxu1 %v1295_v58  ;;  %v2664_v57 = vrot.slane %v25666_v42, 1  ;;  %v10884_v58 = vor.u32 %v10883_v45, %v10880_v41  ;;  %v10941_v42 = vshrl.u32 %v25681_v31, 16  ;;  %v25678_v45 = vld [vmem:[%s26315_s26 + $0x30] sm:$0xff]  }
 0x121   : > { %23822 = vmatprep.mubr.bf16.mxu0 %v10840_v61  ;;  %v10893_v61 = vor.u32 %v10892_v52, %v10889_v46  ;;  %v1335_v3 = vsel %vm787_vm1, %v1330_v54, %v1334_v55  ;;  %v26757_v46 = vld [vmem:[%s26315_s26 + $0x38] sm:$0xff]   ;;  %v2671_v47 = vsel %vm2662_vm3, %v2668_v19, %v2670_v36 }
 0x122   : > { %v10885_v5 = vsel %vm10571_vm2, %v10875_v40, %v10884_v58  ;;  %v2665_v6 = vsel %vm2662_vm3, %v2663_v56, %v2664_v57  ;;  %v10935_v40 = vshll.u32 %v25679_v26, 16  ;;  %v10943_v52 = vrot.slane %v10941_v42, 2  ;;  %v25724_v56 = vld [vmem:[%s30297_s1 + $0x98] sm:$0xff]   ;;  %v25686_v26 = vld [vmem:[%s26315_s26 + $0x50] sm:$0xff]  }
 0x123   : > { %v10894_v11 = vsel %vm10571_vm2, %v10884_v58, %v10893_v61  ;;  %v10903_v27 = vsel %vm10571_vm2, %v10893_v61, %v10902_v15  ;;  %v2676_v58 = vrot.slane %v26757_v46, 1  ;;  %v25692_v46 = vld [vmem:[%s26315_s26 + $0x60] sm:$0xff]  }
 0x124   : > { %v2686_v60 = vrot.slane %v25692_v46, 1 }
 0x127   : > { %23131 = vmatmul.mubr.bf16.gmra.mrb[124].mxu1 %v1303_v21  ;;  %v10911_v21 = vor.u32 %v10910_v13, %v10907_v12  ;;  %v10955_v12 = vrot.slane %v10953_v62, 3  ;;  %v25691_v13 = vld [vmem:[%s26315_s26 + $0x178] sm:$0xff]  }
 0x128   : > { %23823 = vmatmul.mubr.bf16.gmra.mrb[56].mxu0 %v10849_v24  ;;  %23134 = vmatprep.mubr.bf16.mxu1 %v1311_v25  ;;  %v26739_v24 = vld [vmem:[%s26315_s26 + $0x28] sm:$0xff]   ;;  %v2667_v25 = vsel %vm2662_vm3, %v2664_v57, %v2666_v14  ;;  %v2674_v57 = vrot.slane %v25678_v45, 1  ;;  %v10977_v23 = vshrl.u32 %v25691_v13, 16 }
 0x129   : > { %23826 = vmatprep.mubr.bf16.mxu0 %v10858_v28  ;;  %v10916_v28 = vrot.slane %v10914_v16, 2  ;;  %v10912_v33 = vsel %vm10571_vm2, %v10902_v15, %v10911_v21  ;;  %v2672_v37 = vrot.slane %v26739_v24, 1  ;;  %v10961_v15 = vrot.slane %v10959_v0, 2 }
 0x12a   : > { %v10964_v16 = vrot.slane %v10962_v4, 3  ;;  %v10980_v24 = vshll.u32 %v25691_v13, 16 }
 0x12b   : > { %v10920_v41 = vor.u32 %v10919_v29, %v10916_v28  ;;  %v2675_v7 = vsel %vm2662_vm3, %v2672_v37, %v2674_v57  ;;  %v25695_v29 = vld [vmem:[%s26315_s26 + $0x188] sm:$0xff]  }
 0x12c   : > { %v10998_v42 = vshll.u32 %v25695_v29, 16 }
 0x12d   : > { %v10930_v54 = vsel %vm10571_vm2, %v10920_v41, %v10929_v43 }
 0x12f   : > { %23135 = vmatmul.mubr.bf16.gmra.mrb[128].mxu1 %v1319_v44  ;;  %v10944_v44 = vshll.u32 %v25681_v31, 16 }
 0x130   : > { %23827 = vmatmul.mubr.bf16.gmra.mrb[60].mxu0 %v10867_v49  ;;  %23138 = vmatprep.mubr.bf16.mxu1 %v1327_v50  ;;  %v10921_v49 = vsel %vm10571_vm2, %v10911_v21, %v10920_v41  ;;  %v10934_v50 = vrot.slane %v10932_v39, 2  ;;  %v10956_v21 = vor.u32 %v10955_v12, %v10952_v8  ;;  %v10995_v41 = vshrl.u32 %v25695_v29, 16  ;;  %v25702_v29 = vld [vmem:[%s26315_s26 + $0x88] sm:$0xff]  }
 0x131   : > { %23830 = vmatprep.mubr.bf16.mxu0 %v10876_v51  ;;  %v10937_v51 = vrot.slane %v10935_v40, 3  ;;  %v10946_v55 = vrot.slane %v10944_v44, 3  ;;  %v11022_v8 = vshrl.u32 %v25701_v59, 16 }
 0x133   : > { %v10938_v61 = vor.u32 %v10937_v51, %v10934_v50  ;;  %v10947_v2 = vor.u32 %v10946_v55, %v10943_v52  ;;  %v10997_v50 = vrot.slane %v10995_v41, 2  ;;  %v11000_v51 = vrot.slane %v10998_v42, 3 }
 0x135   : > { %v10939_v10 = vsel %vm10571_vm2, %v10929_v43, %v10938_v61  ;;  %v10948_v14 = vsel %vm10571_vm2, %v10938_v61, %v10947_v2  ;;  %v11001_v0 = vor.u32 %v11000_v51, %v10997_v50  ;;  %v25713_v51 = vld [vmem:[%s26315_s26 + $0x1c8] sm:$0xff]  }
 0x136   : > { %v11070_v59 = vshll.u32 %v25713_v51, 16 }
 0x137   : > { %23139 = vmatmul.mubr.bf16.gmra.mrb[132].mxu1 %v1335_v3  ;;  %v25682_v3 = vld [vmem:[%s26315_s26 + $0x40] sm:$0xff]  }
 0x138   : > { %23831 = vmatmul.mubr.bf16.gmra.mrb[64].mxu0 %v10885_v5  ;;  %23158 = vmatprep.mubr.bf16.mxu1 %v2665_v6  ;;  %v25746_v5 = vld [vmem:[%s30297_s1 + $0xa0] sm:$0xff]   ;;  %v25687_v6 = vld [vmem:[%s26315_s26 + $0x170] sm:$0xff]   ;;  %v2678_v18 = vrot.slane %v25682_v3, 1 }
 0x139   : > { %23834 = vmatprep.mubr.bf16.mxu0 %v10894_v11  ;;  %v2677_v11 = vsel %vm2662_vm3, %v2674_v57, %v2676_v58  ;;  %v10968_v17 = vshrl.u32 %v25687_v6, 16  ;;  %v10971_v19 = vshll.u32 %v25687_v6, 16  ;;  %v25699_v57 = vld [vmem:[%s26315_s26 + $0x198] sm:$0xff]  }
 0x13a   : > { %v2679_v30 = vsel %vm2662_vm3, %v2676_v58, %v2678_v18  ;;  %v2681_v34 = vsel %vm2662_vm3, %v2678_v18, %v2680_v22  ;;  %v11013_v4 = vshrl.u32 %v25699_v57, 16 }
 0x13b   : > { %v10970_v28 = vrot.slane %v10968_v17, 2  ;;  %v10973_v31 = vrot.slane %v10971_v19, 3 }
 0x13d   : > { %v10974_v43 = vor.u32 %v10973_v31, %v10970_v28  ;;  %v11027_v28 = vrot.slane %v11025_v9, 3  ;;  %v25717_v9 = vld [vmem:[%s26315_s26 + $0x1d8] sm:$0xff]  }
 0x13f   : > { %23159 = vmatmul.mubr.bf16.vlgmr.msra.gmra.mrb[0].mxu1 %v2667_v25  ;;  %v10965_v25 = vor.u32 %v10964_v16, %v10961_v15  ;;  %v11015_v15 = vrot.slane %v11013_v4, 2  ;;  %v25715_v4 = vld [vmem:[%s26315_s26 + $0x1d0] sm:$0xff]  }
 0x140   : > { %23835 = vmatmul.mubr.bf16.gmra.mrb[68].mxu0 %v10903_v27  ;;  %23295 = vmatpush3.bf16.msra.mxu1 %v26622_v63  ;;  %v2673_v63 = vsel %vm2662_vm3, %v2670_v36, %v2672_v37  ;;  %v25693_v27 = vld [vmem:[%s26315_s26 + $0x180] sm:$0xff]   ;;  %v10982_v36 = vrot.slane %v10980_v24, 3 }
 0x141   : > { %23162 = vmatprep.mubr.bf16.mxu1 %v2669_v32  ;;  %23838 = vmatprep.mubr.bf16.mxu0 %v10912_v33  ;;  %v25690_v32 = vld [vmem:[%s26315_s26 + $0x58] sm:$0xff]   ;;  %v10957_v33 = vsel %vm10571_vm2, %v10947_v2, %v10956_v21  ;;  %v10966_v37 = vsel %vm10571_vm2, %v10956_v21, %v10965_v25  ;;  %v10986_v39 = vshrl.u32 %v25693_v27, 16  ;;  %v10989_v40 = vshll.u32 %v25693_v27, 16  ;;  %v25696_v2 = vld [vmem:[%s26315_s26 + $0x70] sm:$0xff]   ;;  %v25765_v21 = vld [vmem:[%s30297_s1 + $0xa8] sm:$0xff]  }
 0x142   : > { %23296 = vmatprep.subr.bf16.mxu1 %v25688_v35  ;;  %v2684_v44 = vrot.slane %v25690_v32, 1  ;;  %v10975_v53 = vsel %vm10571_vm2, %v10965_v25, %v10974_v43  ;;  %v2690_v19 = vrot.slane %v25696_v2, 1  ;;  %v25700_v25 = vld [vmem:[%s26315_s26 + $0x80] sm:$0xff]   ;;  %v25705_v27 = vld [vmem:[%s26315_s26 + $0x1b0] sm:$0xff]   ;;  %v25709_v32 = vld [vmem:[%s26315_s26 + $0x1b8] sm:$0xff]  }
 0x143   : > { %v10991_v48 = vrot.slane %v10989_v40, 3  ;;  %v11049_v40 = vshrl.u32 %v25709_v32, 16  ;;  %v11052_v41 = vshll.u32 %v25709_v32, 16  ;;  %v2694_v42 = vrot.slane %v25700_v25, 1  ;;  %v25710_v2 = vld [vmem:[%s26315_s26 + $0xa0] sm:$0xff]  }
 0x144   : > { %23297 = vmatpush3.bf16.msra.mxu1 %v25688_v35  ;;  %v10979_v35 = vrot.slane %v10977_v23, 2 }
 0x145   : > { %23298 = vmatprep.subr.bf16.mxu1 %v25706_v1  ;;  %v11054_v50 = vrot.slane %v11052_v41, 3 }
 0x146   : > { %v10983_v45 = vor.u32 %v10982_v36, %v10979_v35 }
 0x147   : > { %23163 = vmatmul.mubr.bf16.gmra.mrb[4].mxu1 %v2671_v47  ;;  %v25697_v47 = vld [vmem:[%s26315_s26 + $0x190] sm:$0xff]  }
 0x148   : > { %23839 = vmatmul.mubr.bf16.gmra.mrb[72].mxu0 %v10921_v49  ;;  %23166 = vmatprep.mubr.bf16.mxu1 %v2673_v63  ;;  %v10988_v63 = vrot.slane %v10986_v39, 2  ;;  %v25694_v49 = vld [vmem:[%s26315_s26 + $0x68] sm:$0xff]   ;;  %v10984_v55 = vsel %vm10571_vm2, %v10974_v43, %v10983_v45  ;;  %v11007_v58 = vshll.u32 %v25697_v47, 16  ;;  %v11043_v39 = vshll.u32 %v25705_v27, 16 }
 0x149   : > { %23842 = vmatprep.mubr.bf16.mxu0 %v10930_v54  ;;  %23299 = vmatpush3.bf16.msra.mxu1 %v25706_v1  ;;  %v2682_v1 = vrot.slane %v25686_v26, 1  ;;  %v2688_v62 = vrot.slane %v25694_v49, 1  ;;  %v11024_v26 = vrot.slane %v11022_v8, 2  ;;  %v2696_v43 = vrot.slane %v25702_v29, 1 }
 0x14a   : > { %23300 = vmatprep.subr.bf16.mxu1 %v25724_v56  ;;  %v10992_v61 = vor.u32 %v10991_v48, %v10988_v63  ;;  %v11009_v6 = vrot.slane %v11007_v58, 3  ;;  %v11045_v63 = vrot.slane %v11043_v39, 3  ;;  %v25708_v48 = vld [vmem:[%s26315_s26 + $0x98] sm:$0xff]   ;;  %v11051_v49 = vrot.slane %v11049_v40, 2  ;;  %v25783_v40 = vld [vmem:[%s30297_s1 + $0xb0] sm:$0xff]  }
 0x14b   : > { %v2683_v52 = vsel %vm2662_vm3, %v2680_v22, %v2682_v1  ;;  %v2685_v54 = vsel %vm2662_vm3, %v2682_v1, %v2684_v44  ;;  %v2689_v13 = vsel %vm2662_vm3, %v2686_v60, %v2688_v62  ;;  %v11028_v1 = vor.u32 %v11027_v28, %v11024_v26 }
 0x14c   : > { %v10993_v12 = vsel %vm10571_vm2, %v10983_v45, %v10992_v61  ;;  %v25704_v45 = vld [vmem:[%s26315_s26 + $0x90] sm:$0xff]   ;;  %v11067_v58 = vshrl.u32 %v25713_v51, 16  ;;  %v11072_v8 = vrot.slane %v11070_v59, 3 }
 0x14d   : > { %23301 = vmatpush3.bf16.msra.mxu1 %v25724_v56  ;;  %v11004_v56 = vshrl.u32 %v25697_v47, 16  ;;  %v25711_v47 = vld [vmem:[%s26315_s26 + $0x1c0] sm:$0xff]  }
 0x14e   : > { %23302 = vmatprep.subr.bf16.mxu1 %v25746_v5 }
 0x14f   : > { %23167 = vmatmul.mubr.bf16.gmra.mrb[8].mxu1 %v2675_v7  ;;  %v11006_v3 = vrot.slane %v11004_v56, 2  ;;  %v25698_v7 = vld [vmem:[%s26315_s26 + $0x78] sm:$0xff]   ;;  %v11058_v56 = vshrl.u32 %v25711_v47, 16 }
 0x150   : > { %23843 = vmatmul.mubr.bf16.gmra.mrb[76].mxu0 %v10939_v10  ;;  %23170 = vmatprep.mubr.bf16.mxu1 %v2677_v11  ;;  %v25703_v10 = vld [vmem:[%s26315_s26 + $0x1a8] sm:$0xff]   ;;  %v2687_v11 = vsel %vm2662_vm3, %v2684_v44, %v2686_v60  ;;  %v2692_v23 = vrot.slane %v25698_v7, 1  ;;  %v2698_v60 = vrot.slane %v25704_v45, 1  ;;  %v11069_v7 = vrot.slane %v11067_v58, 2 }
 0x151   : > { %23846 = vmatprep.mubr.bf16.mxu0 %v10948_v14  ;;  %23303 = vmatpush3.bf16.msra.mxu1 %v25746_v5  ;;  %v11016_v5 = vshll.u32 %v25699_v57, 16  ;;  %v11002_v14 = vsel %vm10571_vm2, %v10992_v61, %v11001_v0  ;;  %v11031_v17 = vshrl.u32 %v25703_v10, 16  ;;  %v11034_v18 = vshll.u32 %v25703_v10, 16 }
 0x152   : > { %v11010_v22 = vor.u32 %v11009_v6, %v11006_v3  ;;  %23304 = vmatprep.subr.bf16.mxu1 %v25765_v21  ;;  %v2693_v35 = vsel %vm2662_vm3, %v2690_v19, %v2692_v23  ;;  %v11061_v57 = vshll.u32 %v25711_v47, 16  ;;  %v11060_v3 = vrot.slane %v11058_v56, 2  ;;  %v25712_v6 = vld [vmem:[%s26315_s26 + $0xa8] sm:$0xff]  }
 0x153   : > { %v11018_v16 = vrot.slane %v11016_v5, 3  ;;  %v11036_v31 = vrot.slane %v11034_v18, 3  ;;  %v2699_v10 = vsel %vm2662_vm3, %v2696_v43, %v2698_v60  ;;  %v2702_v18 = vrot.slane %v25710_v2, 1 }
 0x154   : > { %v11063_v5 = vrot.slane %v11061_v57, 3 }
 0x155   : > { %v11019_v24 = vor.u32 %v11018_v16, %v11015_v15  ;;  %23305 = vmatpush3.bf16.msra.mxu1 %v25765_v21  ;;  %v11079_v15 = vshll.u32 %v25715_v4, 16  ;;  %v11085_v16 = vshrl.u32 %v25717_v9, 16  ;;  %v2704_v21 = vrot.slane %v25712_v6, 1 }
 0x156   : > { %23306 = vmatprep.subr.bf16.mxu1 %v25783_v40 }
 0x157   : > { %23171 = vmatmul.mubr.bf16.gmra.mrb[12].mxu1 %v2679_v30  ;;  %v11033_v30 = vrot.slane %v11031_v17, 2  ;;  %v11020_v36 = vsel %vm10571_vm2, %v11010_v22, %v11019_v24  ;;  %v25719_v17 = vld [vmem:[%s26315_s26 + $0x1e0] sm:$0xff]   ;;  %v11081_v26 = vrot.slane %v11079_v15, 3  ;;  %v11087_v28 = vrot.slane %v11085_v16, 2 }
 0x158   : > { %23847 = vmatmul.mubr.bf16.gmra.mrb[80].mxu0 %v10957_v33  ;;  %23174 = vmatprep.mubr.bf16.mxu1 %v2681_v34  ;;  %v2691_v33 = vsel %vm2662_vm3, %v2688_v62, %v2690_v19  ;;  %v11011_v34 = vsel %vm10571_vm2, %v11001_v0, %v11010_v22  ;;  %v2700_v62 = vrot.slane %v25708_v48, 1  ;;  %v11055_v0 = vor.u32 %v11054_v50, %v11051_v49  ;;  %v25727_v50 = vld [vmem:[%s26315_s26 + $0x1f8] sm:$0xff]  }
 0x159   : > { %23850 = vmatprep.mubr.bf16.mxu0 %v10966_v37  ;;  %v11040_v37 = vshrl.u32 %v25705_v27, 16  ;;  %v11037_v44 = vor.u32 %v11036_v31, %v11033_v30  ;;  %v11064_v19 = vor.u32 %v11063_v5, %v11060_v3  ;;  %v11073_v22 = vor.u32 %v11072_v8, %v11069_v7  ;;  %v25716_v27 = vld [vmem:[%s26315_s26 + $0xb8] sm:$0xff]   ;;  %23307 = vmatpush3.bf16.msra.mxu1 %v25783_v40  ;;  %v25731_v8 = vld [vmem:[%s26315_s26 + $0x208] sm:$0xff]  }
 0x15a   : > { %v11094_v29 = vshrl.u32 %v25719_v17, 16  ;;  %v2703_v30 = vsel %vm2662_vm3, %v2700_v62, %v2702_v18  ;;  %v2705_v32 = vsel %vm2662_vm3, %v2702_v18, %v2704_v21  ;;  %v11121_v57 = vshrl.u32 %v25727_v50, 16  ;;  %v25726_v5 = vld [vmem:[%s26315_s26 + $0xd8] sm:$0xff]  }
 0x15b   : > { %v11042_v46 = vrot.slane %v11040_v37, 2  ;;  %v11065_v31 = vsel %vm10571_vm2, %v11055_v0, %v11064_v19  ;;  %v25723_v37 = vld [vmem:[%s26315_s26 + $0x1f0] sm:$0xff]   ;;  %v11124_v58 = vshll.u32 %v25727_v50, 16  ;;  %v11139_v15 = vshrl.u32 %v25731_v8, 16 }
 0x15c   : > { %v11112_v48 = vshrl.u32 %v25723_v37, 16  ;;  %v11115_v49 = vshll.u32 %v25723_v37, 16  ;;  %v11123_v6 = vrot.slane %v11121_v57, 2  ;;  %v11142_v16 = vshll.u32 %v25731_v8, 16  ;;  %v25737_v37 = vld [vmem:[%s26315_s26 + $0x220] sm:$0xff]  }
 0x15d   : > { %v11046_v61 = vor.u32 %v11045_v63, %v11042_v46  ;;  %v25720_v63 = vld [vmem:[%s26315_s26 + $0xc8] sm:$0xff]   ;;  %v11126_v7 = vrot.slane %v11124_v58, 3 }
 0x15e   : > { %v11114_v2 = vrot.slane %v11112_v48, 2  ;;  %v11117_v3 = vrot.slane %v11115_v49, 3  ;;  %v11169_v48 = vshll.u32 %v25737_v37, 16  ;;  %v25739_v49 = vld [vmem:[%s26315_s26 + $0x228] sm:$0xff]  }
 0x15f   : > { %23175 = vmatmul.mubr.bf16.gmra.mrb[16].mxu1 %v2683_v52  ;;  %v2695_v52 = vsel %vm2662_vm3, %v2692_v23, %v2694_v42  ;;  %v25714_v23 = vld [vmem:[%s26315_s26 + $0xb0] sm:$0xff]   ;;  %v11178_v57 = vshll.u32 %v25739_v49, 16 }
 0x160   : > { %23851 = vmatmul.mubr.bf16.gmra.mrb[84].mxu0 %v10975_v53  ;;  %23178 = vmatprep.mubr.bf16.mxu1 %v2685_v54  ;;  %v11029_v53 = vsel %vm10571_vm2, %v11019_v24, %v11028_v1  ;;  %v2697_v54 = vsel %vm2662_vm3, %v2694_v42, %v2696_v43  ;;  %v11088_v24 = vshll.u32 %v25717_v9, 16  ;;  %v2706_v39 = vrot.slane %v25714_v23, 1  ;;  %v25718_v43 = vld [vmem:[%s26315_s26 + $0xc0] sm:$0xff]  }
 0x161   : > { %23854 = vmatprep.mubr.bf16.mxu0 %v10984_v55  ;;  %v11038_v55 = vsel %vm10571_vm2, %v11028_v1, %v11037_v44  ;;  %v2708_v42 = vrot.slane %v25716_v27, 1  ;;  %v2710_v59 = vrot.slane %v25718_v43, 1  ;;  %v11118_v18 = vor.u32 %v11117_v3, %v11114_v2  ;;  %v25736_v3 = vld [vmem:[%s26315_s26 + $0x100] sm:$0xff]  }
 0x162   : > { %v2707_v51 = vsel %vm2662_vm3, %v2704_v21, %v2706_v39  ;;  %v11127_v21 = vor.u32 %v11126_v7, %v11123_v6  ;;  %v11141_v27 = vrot.slane %v11139_v15, 2  ;;  %v25738_v6 = vld [vmem:[%s26315_s26 + $0x108] sm:$0xff]   ;;  %v11180_v8 = vrot.slane %v11178_v57, 3 }
 0x163   : > { %v2711_v9 = vsel %vm2662_vm3, %v2708_v42, %v2710_v59  ;;  %v25754_v57 = vld [vmem:[%s26315_s26 + $0x48] sm:$0xff]  }
 0x167   : > { %23179 = vmatmul.mubr.bf16.gmra.mrb[20].mxu1 %v2687_v11  ;;  %v11047_v11 = vsel %vm10571_vm2, %v11037_v44, %v11046_v61  ;;  %v11096_v44 = vrot.slane %v11094_v29, 2  ;;  %v25735_v29 = vld [vmem:[%s26315_s26 + $0x218] sm:$0xff]  }
 0x168   : > { %23855 = vmatmul.mubr.bf16.gmra.mrb[88].mxu0 %v10993_v12  ;;  %23182 = vmatprep.mubr.bf16.mxu1 %v2689_v13  ;;  %v2701_v12 = vsel %vm2662_vm3, %v2698_v60, %v2700_v62  ;;  %v11056_v13 = vsel %vm10571_vm2, %v11046_v61, %v11055_v0  ;;  %v2712_v61 = vrot.slane %v25720_v63, 1  ;;  %v25722_v0 = vld [vmem:[%s26315_s26 + $0xd0] sm:$0xff]   ;;  %v11166_v63 = vshrl.u32 %v25737_v37, 16 }
 0x169   : > { %23858 = vmatprep.mubr.bf16.mxu0 %v11002_v14  ;;  %v11076_v14 = vshrl.u32 %v25715_v4, 16  ;;  %v25729_v4 = vld [vmem:[%s26315_s26 + $0x200] sm:$0xff]  }
 0x16b   : > { %v11078_v25 = vrot.slane %v11076_v14, 2  ;;  %v11133_v14 = vshll.u32 %v25729_v4, 16 }
 0x16d   : > { %v11082_v41 = vor.u32 %v11081_v26, %v11078_v25  ;;  %v11135_v25 = vrot.slane %v11133_v14, 3  ;;  %v25730_v26 = vld [vmem:[%s26315_s26 + $0xe8] sm:$0xff]  }
 0x16f   : > { %23183 = vmatmul.mubr.bf16.gmra.mrb[24].mxu1 %v2691_v33  ;;  %v11074_v33 = vsel %vm10571_vm2, %v11064_v19, %v11073_v22  ;;  %v2716_v19 = vrot.slane %v25726_v5, 1 }
 0x170   : > { %23859 = vmatmul.mubr.bf16.gmra.mrb[92].mxu0 %v11011_v34  ;;  %23186 = vmatprep.mubr.bf16.mxu1 %v2693_v35  ;;  %v11090_v34 = vrot.slane %v11088_v24, 3  ;;  %v25721_v35 = vld [vmem:[%s26315_s26 + $0x1e8] sm:$0xff]   ;;  %v25733_v24 = vld [vmem:[%s26315_s26 + $0x210] sm:$0xff]  }
 0x171   : > { %23862 = vmatprep.mubr.bf16.mxu0 %v11020_v36  ;;  %v11097_v36 = vshll.u32 %v25719_v17, 16  ;;  %v11103_v45 = vshrl.u32 %v25721_v35, 16  ;;  %v11106_v46 = vshll.u32 %v25721_v35, 16  ;;  %v2714_v17 = vrot.slane %v25722_v0, 1 }
 0x172   : > { %v11091_v1 = vor.u32 %v11090_v34, %v11087_v28  ;;  %v11144_v28 = vrot.slane %v11142_v16, 3  ;;  %v11148_v34 = vshrl.u32 %v25733_v24, 16  ;;  %v11151_v35 = vshll.u32 %v25733_v24, 16 }
 0x173   : > { %v11099_v47 = vrot.slane %v11097_v36, 3  ;;  %v11108_v56 = vrot.slane %v11106_v46, 3  ;;  %v11157_v36 = vshrl.u32 %v25735_v29, 16  ;;  %v25734_v46 = vld [vmem:[%s26315_s26 + $0xf8] sm:$0xff]   ;;  %v11171_v0 = vrot.slane %v11169_v48, 3 }
 0x174   : > { %v11150_v43 = vrot.slane %v11148_v34, 2 }
 0x175   : > { %v11100_v60 = vor.u32 %v11099_v47, %v11096_v44  ;;  %v11153_v44 = vrot.slane %v11151_v35, 3  ;;  %v11159_v47 = vrot.slane %v11157_v36, 2 }
 0x177   : > { %23187 = vmatmul.mubr.bf16.gmra.mrb[28].mxu1 %v2695_v52  ;;  %v11083_v52 = vsel %vm10571_vm2, %v11073_v22, %v11082_v41  ;;  %v25728_v22 = vld [vmem:[%s26315_s26 + $0xe0] sm:$0xff]  }
 0x178   : > { %23863 = vmatmul.mubr.bf16.gmra.mrb[96].mxu0 %v11029_v53  ;;  %23190 = vmatprep.mubr.bf16.mxu1 %v2697_v54  ;;  %v2709_v53 = vsel %vm2662_vm3, %v2706_v39, %v2708_v42  ;;  %v11092_v54 = vsel %vm10571_vm2, %v11082_v41, %v11091_v1  ;;  %v2718_v39 = vrot.slane %v25728_v22, 1  ;;  %v2720_v41 = vrot.slane %v25730_v26, 1 }
 0x179   : > { %23866 = vmatprep.mubr.bf16.mxu0 %v11038_v55  ;;  %v11105_v55 = vrot.slane %v11103_v45, 2  ;;  %v11145_v42 = vor.u32 %v11144_v28, %v11141_v27  ;;  %v11160_v45 = vshll.u32 %v25735_v29, 16  ;;  %v25747_v27 = vld [vmem:[%s26315_s26 + $0x30] sm:$0xff]   ;;  %v25742_v29 = vld [vmem:[%s26315_s26 + $0x118] sm:$0xff]  }
 0x17a   : > { %v2719_v50 = vsel %vm2662_vm3, %v2716_v19, %v2718_v39 }
 0x17b   : > { %v11109_v62 = vor.u32 %v11108_v56, %v11105_v55  ;;  %v25744_v55 = vld [vmem:[%s26315_s26 + $0x28] sm:$0xff]   ;;  %v11175_v56 = vshrl.u32 %v25739_v49, 16 }
 0x17c   : > { %v12799_v5 = vshrl.u32 %v25744_v55, 16  ;;  %v25749_v49 = vld [vmem:[%s26315_s26 + $0x128] sm:$0xff]  }
 0x17d   : > { %v11177_v7 = vrot.slane %v11175_v56, 2 }
 0x17e   : > { %v12801_v26 = vrot.slane %v12799_v5, 2 }
 0x17f   : > { %23191 = vmatmul.mubr.bf16.gmra.mrb[32].mxu1 %v2699_v10  ;;  %v11101_v10 = vsel %vm10571_vm2, %v11091_v1, %v11100_v60  ;;  %v25732_v1 = vld [vmem:[%s26315_s26 + $0xf0] sm:$0xff]   ;;  %v11181_v22 = vor.u32 %v11180_v8, %v11177_v7  ;;  %v26907_v7 = vld [vmem:[%s26315_s26 + $0x138] sm:$0xff]  }
 0x180   : > { %23867 = vmatmul.mubr.bf16.gmra.mrb[100].mxu0 %v11047_v11  ;;  %23194 = vmatprep.mubr.bf16.mxu1 %v2701_v12  ;;  %v2713_v11 = vsel %vm2662_vm3, %v2710_v59, %v2712_v61  ;;  %v11110_v12 = vsel %vm10571_vm2, %v11100_v60, %v11109_v62  ;;  %v2722_v58 = vrot.slane %v25732_v1, 1  ;;  %v25801_v59 = vld [vmem:[%s30297_s1 + $0xb8] sm:$0xff]   ;;  %v11154_v60 = vor.u32 %v11153_v44, %v11150_v43  ;;  %v25756_v8 = vld [vmem:[%s26315_s26 + $0x50] sm:$0xff]  }
 0x181   : > { %23870 = vmatprep.mubr.bf16.mxu0 %v11056_v13  ;;  %v11130_v13 = vshrl.u32 %v25729_v4, 16  ;;  %v25741_v4 = vld [vmem:[%s26315_s26 + $0x230] ss:$0 sps:$4 sm:$0x77]   ;;  %23308 = vmatprep.subr.bf16.mxu1 %v25801_v59  ;;  %v2732_v43 = vrot.slane %v25742_v29, 1 }
 0x182   : > { %23309 = vmatpush3.bf16.msra.mxu1 %v25801_v59  ;;  %v11184_v14 = vshrl.u32 %v25741_v4, 16  ;;  %v11187_v15 = vshll.u32 %v25741_v4, 16  ;;  %v12838_v4 = vshll.u32 %v25754_v57, 16 }
 0x183   : > { %v11132_v23 = vrot.slane %v11130_v13, 2 }
 0x184   : > { %v11186_v24 = vrot.slane %v11184_v14, 2  ;;  %v11189_v28 = vrot.slane %v11187_v15, 3  ;;  %v12840_v14 = vrot.slane %v12838_v4, 3  ;;  %v25758_v15 = vld [vmem:[%s26315_s26 + $0x58] sm:$0xff]  }
 0x185   : > { %v11136_v40 = vor.u32 %v11135_v25, %v11132_v23  ;;  %v25740_v23 = vld [vmem:[%s26315_s26 + $0x110] sm:$0xff]  }
 0x186   : > { %v11190_v1 = vor.u32 %v11189_v28, %v11186_v24  ;;  %v25760_v28 = vld [vmem:[%s26315_s26 + $0x60] sm:$0xff]  }
 0x187   : > { %23195 = vmatmul.mubr.bf16.gmra.mrb[36].mxu1 %v2703_v30  ;;  %v2715_v30 = vsel %vm2662_vm3, %v2712_v61, %v2714_v17  ;;  %v2724_v61 = vrot.slane %v25734_v46, 1  ;;  %v25745_v46 = vld [vmem:[%s26315_s26 + $0x120] sm:$0xff]  }
 0x188   : > { %23871 = vmatmul.mubr.bf16.gmra.mrb[104].mxu0 %v11065_v31  ;;  %23198 = vmatprep.mubr.bf16.mxu1 %v2705_v32  ;;  %v11119_v31 = vsel %vm10571_vm2, %v11109_v62, %v11118_v18  ;;  %v2717_v32 = vsel %vm2662_vm3, %v2714_v17, %v2716_v19  ;;  %v11168_v62 = vrot.slane %v11166_v63, 2  ;;  %v12802_v17 = vshll.u32 %v25744_v55, 16 }
 0x189   : > { %23874 = vmatprep.mubr.bf16.mxu0 %v11074_v33  ;;  %v11128_v33 = vsel %vm10571_vm2, %v11118_v18, %v11127_v21  ;;  %v2726_v18 = vrot.slane %v25736_v3, 1  ;;  %v12835_v3 = vshrl.u32 %v25754_v57, 16 }
 0x18a   : > { %v11172_v19 = vor.u32 %v11171_v0, %v11168_v62  ;;  %v2736_v62 = vrot.slane %v25749_v49, 1  ;;  %v25825_v49 = vld [vmem:[%s30297_s1 + $0x1e0] sm:$0xff]  }
 0x18c   : > { %v11182_v36 = vsel %vm10571_vm2, %v11172_v19, %v11181_v22 }
 0x18f   : > { %23199 = vmatmul.mubr.bf16.gmra.mrb[40].mxu1 %v2707_v51  ;;  %v11137_v51 = vsel %vm10571_vm2, %v11127_v21, %v11136_v40  ;;  %v2728_v21 = vrot.slane %v25738_v6, 1 }
 0x190   : > { %23875 = vmatmul.mubr.bf16.gmra.mrb[108].mxu0 %v11083_v52  ;;  %23202 = vmatprep.mubr.bf16.mxu1 %v2709_v53  ;;  %v2721_v52 = vsel %vm2662_vm3, %v2718_v39, %v2720_v41  ;;  %v11146_v53 = vsel %vm10571_vm2, %v11136_v40, %v11145_v42  ;;  %v12808_v39 = vshrl.u32 %v25747_v27, 16  ;;  %v12811_v40 = vshll.u32 %v25747_v27, 16  ;;  %v25784_v27 = vld [vmem:[%s30297_s1 + $0x1d0] sm:$0xff]  }
 0x191   : > { %23878 = vmatprep.mubr.bf16.mxu0 %v11092_v54  ;;  %v11162_v54 = vrot.slane %v11160_v45, 3  ;;  %v2729_v35 = vsel %vm2662_vm3, %v2726_v18, %v2728_v21 }
 0x192   : > { %v12813_v48 = vrot.slane %v12811_v40, 3  ;;  %v25762_v40 = vld [vmem:[%s26315_s26 + $0x68] sm:$0xff]  }
 0x193   : > { %v11163_v2 = vor.u32 %v11162_v54, %v11159_v47  ;;  %v12810_v47 = vrot.slane %v12808_v39, 2 }
 0x195   : > { %v11164_v13 = vsel %vm10571_vm2, %v11154_v60, %v11163_v2  ;;  %v11173_v34 = vsel %vm10571_vm2, %v11163_v2, %v11172_v19  ;;  %v25751_v2 = vld [vmem:[%s26315_s26 + $0x130] sm:$0xff]   ;;  %v12847_v19 = vshll.u32 %v25756_v8, 16 }
 0x197   : > { %23203 = vmatmul.mubr.bf16.gmra.mrb[44].mxu1 %v2711_v9  ;;  %v25743_v9 = vld [vmem:[%s26315_s26 + $0x20] sm:$0xfc]  }
 0x198   : > { %23879 = vmatmul.mubr.bf16.gmra.mrb[112].mxu0 %v11101_v10  ;;  %23206 = vmatprep.mubr.bf16.mxu1 %v2713_v11  ;;  %v2723_v10 = vsel %vm2662_vm3, %v2720_v41, %v2722_v58  ;;  %v11155_v11 = vsel %vm10571_vm2, %v11145_v42, %v11154_v60  ;;  %v12791_v16 = vshrl.u32 %v25743_v9, 16  ;;  %v12794_v25 = vshll.u32 %v25743_v9, 16 }
 0x199   : > { %23882 = vmatprep.mubr.bf16.mxu0 %v11110_v12  ;;  %v2725_v12 = vsel %vm2662_vm3, %v2722_v58, %v2724_v61  ;;  %v2730_v42 = vrot.slane %v25740_v23, 1  ;;  %v2734_v60 = vrot.slane %v25745_v46, 1  ;;  %v2740_v23 = vrot.slane %v26907_v7, 1 }
 0x19a   : > { %v12796_v37 = vrot.slane %v12794_v25, 3  ;;  %v12853_v25 = vshrl.u32 %v25758_v15, 16 }
 0x19b   : > { %v2733_v54 = vsel %vm2662_vm3, %v2730_v42, %v2732_v43  ;;  %v2735_v9 = vsel %vm2662_vm3, %v2732_v43, %v2734_v60 }
 0x19f   : > { %23207 = vmatmul.mubr.bf16.gmra.mrb[48].mxu1 %v2715_v30  ;;  %v12793_v30 = vrot.slane %v12791_v16, 2  ;;  %v25766_v16 = vld [vmem:[%s30297_s1 + $0x1c8] sm:$0xff]  }
 0x1a0   : > { %23883 = vmatmul.mubr.bf16.gmra.mrb[116].mxu0 %v11119_v31  ;;  %23210 = vmatprep.mubr.bf16.mxu1 %v2717_v32  ;;  %v12804_v31 = vrot.slane %v12802_v17, 3  ;;  %v25750_v32 = vld [vmem:[%s26315_s26 + $0x38] sm:$0xff]   ;;  %v2738_v17 = vrot.slane %v25751_v2, 1 }
 0x1a1   : > { %23886 = vmatprep.mubr.bf16.mxu0 %v11128_v33  ;;  %v2727_v33 = vsel %vm2662_vm3, %v2724_v61, %v2726_v18  ;;  %v12817_v41 = vshrl.u32 %v25750_v32, 16  ;;  %v12797_v44 = vor.u32 %v12796_v37, %v12793_v30  ;;  %v12820_v63 = vshll.u32 %v25750_v32, 16  ;;  %v25755_v30 = vld [vmem:[%s26315_s26 + $0x140] sm:$0xff]  }
 0x1a2   : > { %v12805_v45 = vor.u32 %v12804_v31, %v12801_v26  ;;  %v12814_v61 = vor.u32 %v12813_v48, %v12810_v47  ;;  %v12844_v18 = vshrl.u32 %v25756_v8, 16  ;;  %v12856_v26 = vshll.u32 %v25758_v15, 16  ;;  %v25763_v8 = vld [vmem:[%s26315_s26 + $0x160] sm:$0xff]  }
 0x1a3   : > { %v12822_v56 = vrot.slane %v12820_v63, 3  ;;  %v2739_v29 = vsel %vm2662_vm3, %v2736_v62, %v2738_v17  ;;  %v12849_v32 = vrot.slane %v12847_v19, 3  ;;  %v12855_v37 = vrot.slane %v12853_v25, 2  ;;  %v25772_v19 = vld [vmem:[%s26315_s26 + $0x88] sm:$0xff]  }
 0x1a4   : > { %v12806_v55 = vsel %vm10571_vm2, %v12797_v44, %v12805_v45  ;;  %v12846_v31 = vrot.slane %v12844_v18, 2  ;;  %v12858_v39 = vrot.slane %v12856_v26, 3  ;;  %v2742_v43 = vrot.slane %v25755_v30, 1 }
 0x1a5   : > { %v12865_v44 = vshll.u32 %v25760_v28, 16  ;;  %v12871_v63 = vshrl.u32 %v25762_v40, 16  ;;  %v12874_v48 = vshll.u32 %v25762_v40, 16 }
 0x1a6   : > { %v12859_v47 = vor.u32 %v12858_v39, %v12855_v37 }
 0x1a7   : > { %23211 = vmatmul.mubr.bf16.gmra.mrb[52].mxu1 %v2719_v50  ;;  %v12819_v50 = vrot.slane %v12817_v41, 2  ;;  %v25802_v41 = vld [vmem:[%s30297_s1 + $0x1d8] sm:$0xff]  }
 0x1a8   : > { %23887 = vmatmul.mubr.bf16.gmra.mrb[120].mxu0 %v11137_v51  ;;  %23214 = vmatprep.mubr.bf16.mxu1 %v2721_v52  ;;  %v25752_v51 = vld [vmem:[%s26315_s26 + $0x40] sm:$0xff]   ;;  %v2731_v52 = vsel %vm2662_vm3, %v2728_v21, %v2730_v42  ;;  %v12862_v42 = vshrl.u32 %v25760_v28, 16  ;;  %v12910_v28 = vshll.u32 %v25772_v19, 16 }
 0x1a9   : > { %23890 = vmatprep.mubr.bf16.mxu0 %v11146_v53  ;;  %v11191_v53 = vsel %vm10571_vm2, %v11181_v22, %v11190_v1  ;;  %v12826_v58 = vshrl.u32 %v25752_v51, 16  ;;  %v12829_v59 = vshll.u32 %v25752_v51, 16  ;;  %v12823_v0 = vor.u32 %v12822_v56, %v12819_v50  ;;  %v26183_v21 = vld [vmem:[%s30297_s1 + $0x1c0] sm:$0xff]   ;;  %v25759_v50 = vld [vmem:[%s26315_s26 + $0x150] sm:$0xff]  }
 0x1aa   : > { %v25823_v1 = vld [vmem:[%s30297_s1 + $0xc0] sm:$0xff]   ;;  %v12864_v51 = vrot.slane %v12862_v42, 2  ;;  %v12912_v40 = vrot.slane %v12910_v28, 3 }
 0x1ab   : > { %v12828_v5 = vrot.slane %v12826_v58, 2  ;;  %v12831_v6 = vrot.slane %v12829_v59, 3  ;;  %23446 = vmatprep.subr.bf16.mxu1 %v25823_v1  ;;  %v12873_v59 = vrot.slane %v12871_v63, 2  ;;  %v25781_v28 = vld [vmem:[%s26315_s26 + $0x1a0] sm:$0xff]  }
 0x1ad   : > { %v12832_v22 = vor.u32 %v12831_v6, %v12828_v5 }
 0x1af   : > { %23215 = vmatmul.mubr.bf16.gmra.mrb[56].mxu1 %v2723_v10  ;;  %v12815_v10 = vsel %vm10571_vm2, %v12805_v45, %v12814_v61  ;;  %v12850_v45 = vor.u32 %v12849_v32, %v12846_v31  ;;  %v25774_v31 = vld [vmem:[%s26315_s26 + $0x90] sm:$0xff]  }
 0x1b0   : > { %23891 = vmatmul.mubr.bf16.gmra.mrb[124].mxu0 %v11155_v11  ;;  %23218 = vmatprep.mubr.bf16.mxu1 %v2725_v12  ;;  %v2737_v11 = vsel %vm2662_vm3, %v2734_v60, %v2736_v62  ;;  %v12824_v12 = vsel %vm10571_vm2, %v12814_v61, %v12823_v0  ;;  %v12876_v60 = vrot.slane %v12874_v48, 3  ;;  %v25768_v61 = vld [vmem:[%s26315_s26 + $0x78] sm:$0xff]   ;;  %v12916_v42 = vshrl.u32 %v25774_v31, 16  ;;  %v25773_v48 = vld [vmem:[%s26315_s26 + $0x180] sm:$0xff]  }
 0x1b1   : > { %23894 = vmatprep.mubr.bf16.mxu0 %v11164_v13  ;;  %v12837_v13 = vrot.slane %v12835_v3, 2  ;;  %v12860_v58 = vsel %vm10571_vm2, %v12850_v45, %v12859_v47  ;;  %v12889_v6 = vshrl.u32 %v25768_v61, 16  ;;  %v12892_v7 = vshll.u32 %v25768_v61, 16 }
 0x1b2   : > { %v12877_v5 = vor.u32 %v12876_v60, %v12873_v59  ;;  %v25780_v59 = vld [vmem:[%s26315_s26 + $0xa8] sm:$0xff]   ;;  %v2758_v61 = vrot.slane %v25773_v48, 1 }
 0x1b3   : > { %v12841_v24 = vor.u32 %v12840_v14, %v12837_v13  ;;  %v25767_v13 = vld [vmem:[%s26315_s26 + $0x168] sm:$0xff]   ;;  %v12894_v18 = vrot.slane %v12892_v7, 3  ;;  %v25777_v7 = vld [vmem:[%s26315_s26 + $0x190] sm:$0xff]  }
 0x1b4   : > { %v2752_v25 = vrot.slane %v25767_v13, 1 }
 0x1b5   : > { %v12851_v56 = vsel %vm10571_vm2, %v12841_v24, %v12850_v45 }
 0x1b7   : > { %23219 = vmatmul.mubr.bf16.gmra.mrb[60].mxu1 %v2727_v33  ;;  %v25757_v33 = vld [vmem:[%s26315_s26 + $0x148] sm:$0xff]  }
 0x1b8   : > { %23895 = vmatmul.mubr.bf16.gmra.mrb[128].mxu0 %v11173_v34  ;;  %23222 = vmatprep.mubr.bf16.mxu1 %v2729_v35  ;;  %v12833_v34 = vsel %vm10571_vm2, %v12823_v0, %v12832_v22  ;;  %v2741_v35 = vsel %vm2662_vm3, %v2738_v17, %v2740_v23  ;;  %v2744_v46 = vrot.slane %v25757_v33, 1  ;;  %v2746_v0 = vrot.slane %v25759_v50, 1  ;;  %v25778_v50 = vld [vmem:[%s26315_s26 + $0xa0] sm:$0xff]  }
 0x1b9   : > { %23898 = vmatprep.mubr.bf16.mxu0 %v11182_v36  ;;  %v12842_v36 = vsel %vm10571_vm2, %v12832_v22, %v12841_v24  ;;  %v12891_v17 = vrot.slane %v12889_v6, 2  ;;  %v2750_v22 = vrot.slane %v25763_v8, 1  ;;  %v12934_v60 = vshrl.u32 %v25778_v50, 16 }
 0x1ba   : > { %v2745_v57 = vsel %vm2662_vm3, %v2742_v43, %v2744_v46  ;;  %v12946_v6 = vshll.u32 %v25780_v59, 16 }
 0x1bb   : > { %v12895_v26 = vor.u32 %v12894_v18, %v12891_v17  ;;  %v12936_v8 = vrot.slane %v12934_v60, 2  ;;  %v25786_v18 = vld [vmem:[%s26315_s26 + $0xb8] sm:$0xff]  }
 0x1bc   : > { %v12948_v17 = vrot.slane %v12946_v6, 3 }
 0x1bf   : > { %23223 = vmatmul.mubr.bf16.gmra.mrb[64].mxu1 %v2731_v52  ;;  %v25764_v52 = vld [vmem:[%s26315_s26 + $0x70] sm:$0xff]  }
 0x1c0   : > { %23899 = vmatmul.mubr.bf16.gmra.mrb[132].mxu0 %v11191_v53  ;;  %23226 = vmatprep.mubr.bf16.mxu1 %v2733_v54  ;;  %v2743_v53 = vsel %vm2662_vm3, %v2740_v23, %v2742_v43  ;;  %v12867_v54 = vrot.slane %v12865_v44, 3  ;;  %v12880_v62 = vshrl.u32 %v25764_v52, 16  ;;  %v12883_v2 = vshll.u32 %v25764_v52, 16 }
 0x1c1   : > { %23918 = vmatprep.mubr.bf16.mxu0 %v12806_v55  ;;  %v25761_v55 = vld [vmem:[%s26315_s26 + $0x158] sm:$0xff]   ;;  %v12919_v43 = vshll.u32 %v25774_v31, 16 }
 0x1c2   : > { %v12868_v3 = vor.u32 %v12867_v54, %v12864_v51  ;;  %v2748_v4 = vrot.slane %v25761_v55, 1 }
 0x1c3   : > { %v12921_v52 = vrot.slane %v12919_v43, 3 }
 0x1c4   : > { %v12869_v14 = vsel %vm10571_vm2, %v12859_v47, %v12868_v3  ;;  %v2749_v15 = vsel %vm2662_vm3, %v2746_v0, %v2748_v4  ;;  %v2751_v32 = vsel %vm2662_vm3, %v2748_v4, %v2750_v22 }
 0x1c7   : > { %23227 = vmatmul.mubr.bf16.gmra.mrb[68].mxu1 %v2735_v9  ;;  %v12882_v9 = vrot.slane %v12880_v62, 2  ;;  %v12937_v62 = vshll.u32 %v25778_v50, 16 }
 0x1c8   : > { %23919 = vmatmul.mubr.bf16.vlgmr.msra.gmra.mrb[0].mxu0 %v12815_v10  ;;  %23230 = vmatprep.mubr.bf16.mxu1 %v2737_v11  ;;  %v25770_v10 = vld [vmem:[%s26315_s26 + $0x80] sm:$0xff]   ;;  %v2747_v11 = vsel %vm2662_vm3, %v2744_v46, %v2746_v0  ;;  %v25843_v0 = vld [vmem:[%s30297_s1 + $0x1e8] sm:$0xff]  }
 0x1c9   : > { %24055 = vmatpush3.bf16.msra.mxu0 %v26183_v21  ;;  %23922 = vmatprep.mubr.bf16.mxu0 %v12824_v12  ;;  %v12885_v12 = vrot.slane %v12883_v2, 3  ;;  %v12898_v21 = vshrl.u32 %v25770_v10, 16  ;;  %v12901_v23 = vshll.u32 %v25770_v10, 16 }
 0x1ca   : > { %24056 = vmatprep.subr.bf16.mxu0 %v25766_v16 }
 0x1cb   : > { %v12886_v24 = vor.u32 %v12885_v12, %v12882_v9  ;;  %v12900_v30 = vrot.slane %v12898_v21, 2  ;;  %v12903_v33 = vrot.slane %v12901_v23, 3  ;;  %v25782_v9 = vld [vmem:[%s26315_s26 + $0xb0] sm:$0xff]   ;;  %v25779_v12 = vld [vmem:[%s26315_s26 + $0x198] sm:$0xff]   ;;  %v2762_v21 = vrot.slane %v25777_v7, 1  ;;  %v25796_v7 = vld [vmem:[%s26315_s26 + $0xe0] sm:$0xff]  }
 0x1cd   : > { %24057 = vmatpush3.bf16.msra.mxu0 %v25766_v16  ;;  %v12878_v16 = vsel %vm10571_vm2, %v12868_v3, %v12877_v5  ;;  %v12896_v37 = vsel %vm10571_vm2, %v12886_v24, %v12895_v26  ;;  %v12904_v44 = vor.u32 %v12903_v33, %v12900_v30  ;;  %v25788_v30 = vld [vmem:[%s26315_s26 + $0xc0] sm:$0xff]   ;;  %v25785_v33 = vld [vmem:[%s26315_s26 + $0x1a8] sm:$0xff]  }
 0x1ce   : > { %24058 = vmatprep.subr.bf16.mxu0 %v25784_v27 }
 0x1cf   : > { %23231 = vmatmul.mubr.bf16.gmra.mrb[72].mxu1 %v2739_v29  ;;  %v25769_v29 = vld [vmem:[%s26315_s26 + $0x170] sm:$0xff]   ;;  %v12905_v54 = vsel %vm10571_vm2, %v12895_v26, %v12904_v44  ;;  %v12961_v26 = vshrl.u32 %v25786_v18, 16 }
 0x1d0   : > { %23923 = vmatmul.mubr.bf16.gmra.mrb[4].mxu0 %v12833_v34  ;;  %23234 = vmatprep.mubr.bf16.mxu1 %v2741_v35  ;;  %v25771_v34 = vld [vmem:[%s26315_s26 + $0x178] sm:$0xff]   ;;  %v12887_v35 = vsel %vm10571_vm2, %v12877_v5, %v12886_v24  ;;  %v2754_v1 = vrot.slane %v25769_v29, 1  ;;  %v12943_v5 = vshrl.u32 %v25780_v59, 16  ;;  %v2764_v24 = vrot.slane %v25779_v12, 1 }
 0x1d1   : > { %23926 = vmatprep.mubr.bf16.mxu0 %v12842_v36  ;;  %24059 = vmatpush3.bf16.msra.mxu0 %v25784_v27  ;;  %v12907_v27 = vshrl.u32 %v25772_v19, 16  ;;  %v2753_v36 = vsel %vm2662_vm3, %v2750_v22, %v2752_v25  ;;  %v2756_v45 = vrot.slane %v25771_v34, 1  ;;  %v12952_v19 = vshrl.u32 %v25782_v9, 16 }
 0x1d2   : > { %24060 = vmatprep.subr.bf16.mxu0 %v25802_v41  ;;  %v2755_v51 = vsel %vm2662_vm3, %v2752_v25, %v2754_v1  ;;  %v12955_v22 = vshll.u32 %v25782_v9, 16 }
 0x1d3   : > { %v12909_v39 = vrot.slane %v12907_v27, 2  ;;  %v2757_v55 = vsel %vm2662_vm3, %v2754_v1, %v2756_v45  ;;  %v2759_v10 = vsel %vm2662_vm3, %v2756_v45, %v2758_v61  ;;  %v12964_v27 = vshll.u32 %v25786_v18, 16 }
 0x1d4   : > { %v12954_v29 = vrot.slane %v12952_v19, 2  ;;  %v12973_v1 = vshll.u32 %v25788_v30, 16  ;;  %v13009_v19 = vshll.u32 %v25796_v7, 16 }
 0x1d5   : > { %24061 = vmatpush3.bf16.msra.mxu0 %v25802_v41  ;;  %v25776_v41 = vld [vmem:[%s26315_s26 + $0x98] sm:$0xff]   ;;  %v12913_v46 = vor.u32 %v12912_v40, %v12909_v39  ;;  %v12966_v39 = vrot.slane %v12964_v27, 3  ;;  %v25790_v40 = vld [vmem:[%s26315_s26 + $0xc8] sm:$0xff]   ;;  %v25795_v27 = vld [vmem:[%s26315_s26 + $0x1d0] sm:$0xff]  }
 0x1d6   : > { %24062 = vmatprep.subr.bf16.mxu0 %v25825_v49  ;;  %v12925_v47 = vshrl.u32 %v25776_v41, 16  ;;  %v12928_v63 = vshll.u32 %v25776_v41, 16  ;;  %v12970_v41 = vshrl.u32 %v25788_v30, 16 }
 0x1d7   : > { %23235 = vmatmul.mubr.bf16.gmra.mrb[76].mxu1 %v2743_v53  ;;  %v25775_v53 = vld [vmem:[%s26315_s26 + $0x188] sm:$0xff]  }
 0x1d8   : > { %23927 = vmatmul.mubr.bf16.gmra.mrb[8].mxu0 %v12851_v56  ;;  %23238 = vmatprep.mubr.bf16.mxu1 %v2745_v57  ;;  %v12914_v56 = vsel %vm10571_vm2, %v12904_v44, %v12913_v46  ;;  %v12927_v57 = vrot.slane %v12925_v47, 2  ;;  %v2760_v3 = vrot.slane %v25775_v53, 1  ;;  %v2768_v44 = vrot.slane %v25785_v33, 1 }
 0x1d9   : > { %23930 = vmatprep.mubr.bf16.mxu0 %v12860_v58  ;;  %24063 = vmatpush3.bf16.msra.mxu0 %v25825_v49  ;;  %v12918_v49 = vrot.slane %v12916_v42, 2  ;;  %v12930_v58 = vrot.slane %v12928_v63, 3  ;;  %v2766_v42 = vrot.slane %v25781_v28, 1  ;;  %v12982_v47 = vshll.u32 %v25790_v40, 16  ;;  %v25787_v63 = vld [vmem:[%s26315_s26 + $0x1b0] sm:$0xff]  }
 0x1da   : > { %24064 = vmatprep.subr.bf16.mxu0 %v25843_v0  ;;  %v2763_v31 = vsel %vm2662_vm3, %v2760_v3, %v2762_v21  ;;  %v12972_v48 = vrot.slane %v12970_v41, 2  ;;  %v2770_v60 = vrot.slane %v25787_v63, 1  ;;  %v2778_v41 = vrot.slane %v25795_v27, 1 }
 0x1db   : > { %v12922_v2 = vor.u32 %v12921_v52, %v12918_v49  ;;  %v12931_v4 = vor.u32 %v12930_v58, %v12927_v57  ;;  %v25792_v49 = vld [vmem:[%s26315_s26 + $0xd0] sm:$0xff]   ;;  %v2767_v50 = vsel %vm2662_vm3, %v2764_v24, %v2766_v42  ;;  %v25789_v52 = vld [vmem:[%s26315_s26 + $0x1b8] sm:$0xff]   ;;  %v12984_v57 = vrot.slane %v12982_v47, 3  ;;  %v25799_v47 = vld [vmem:[%s26315_s26 + $0x1e0] sm:$0xff]  }
 0x1dc   : > { %v25794_v58 = vld [vmem:[%s26315_s26 + $0xd8] sm:$0xff]   ;;  %v12988_v59 = vshrl.u32 %v25792_v49, 16 }
 0x1dd   : > { %24065 = vmatpush3.bf16.msra.mxu0 %v25843_v0  ;;  %v12923_v13 = vsel %vm10571_vm2, %v12913_v46, %v12922_v2  ;;  %v12979_v46 = vshrl.u32 %v25790_v40, 16  ;;  %v2772_v0 = vrot.slane %v25789_v52, 1 }
 0x1de   : > { %v12990_v6 = vrot.slane %v12988_v59, 2  ;;  %v2782_v59 = vrot.slane %v25799_v47, 1  ;;  %v25813_v47 = vld [vmem:[%s26315_s26 + $0x210] sm:$0xff]  }
 0x1df   : > { %23239 = vmatmul.mubr.bf16.gmra.mrb[80].mxu1 %v2747_v11  ;;  %v12939_v11 = vrot.slane %v12937_v62, 3  ;;  %v2773_v12 = vsel %vm2662_vm3, %v2770_v60, %v2772_v0 }
 0x1e0   : > { %23931 = vmatmul.mubr.bf16.gmra.mrb[12].mxu0 %v12869_v14  ;;  %23242 = vmatprep.mubr.bf16.mxu1 %v2749_v15  ;;  %v2761_v14 = vsel %vm2662_vm3, %v2758_v61, %v2760_v3  ;;  %v12932_v15 = vsel %vm10571_vm2, %v12922_v2, %v12931_v4  ;;  %v12991_v61 = vshll.u32 %v25792_v49, 16  ;;  %v12997_v3 = vshrl.u32 %v25794_v58, 16 }
 0x1e1   : > { %23934 = vmatprep.mubr.bf16.mxu0 %v12878_v16  ;;  %v12945_v16 = vrot.slane %v12943_v5, 2  ;;  %v12940_v23 = vor.u32 %v12939_v11, %v12936_v8  ;;  %v25791_v5 = vld [vmem:[%s26315_s26 + $0x1c0] sm:$0xff]   ;;  %v2771_v8 = vsel %vm2662_vm3, %v2768_v44, %v2770_v60 }
 0x1e2   : > { %v12993_v9 = vrot.slane %v12991_v61, 3  ;;  %v2774_v18 = vrot.slane %v25791_v5, 1 }
 0x1e3   : > { %v12949_v25 = vor.u32 %v12948_v17, %v12945_v16  ;;  %v12941_v34 = vsel %vm10571_vm2, %v12931_v4, %v12940_v23  ;;  %v13000_v4 = vshll.u32 %v25794_v58, 16  ;;  %v25798_v16 = vld [vmem:[%s26315_s26 + $0xe8] sm:$0xff]   ;;  %v13006_v17 = vshrl.u32 %v25796_v7, 16 }
 0x1e4   : > { %v2775_v30 = vsel %vm2662_vm3, %v2772_v0, %v2774_v18 }
 0x1e5   : > { %v13008_v28 = vrot.slane %v13006_v17, 2 }
 0x1e7   : > { %23243 = vmatmul.mubr.bf16.gmra.mrb[84].mxu1 %v2751_v32  ;;  %v12957_v32 = vrot.slane %v12955_v22, 3  ;;  %v12994_v22 = vor.u32 %v12993_v9, %v12990_v6  ;;  %v25810_v6 = vld [vmem:[%s26315_s26 + $0x110] sm:$0xff]   ;;  %v25807_v9 = vld [vmem:[%s26315_s26 + $0x1f8] sm:$0xff]  }
 0x1e8   : > { %23935 = vmatmul.mubr.bf16.gmra.mrb[16].mxu0 %v12887_v35  ;;  %23246 = vmatprep.mubr.bf16.mxu1 %v2753_v36  ;;  %v2765_v35 = vsel %vm2662_vm3, %v2762_v21, %v2764_v24  ;;  %v12950_v36 = vsel %vm10571_vm2, %v12940_v23, %v12949_v25  ;;  %v25861_v21 = vld [vmem:[%s30297_s1 + $0x1f0] sm:$0xff]   ;;  %v13063_v17 = vshll.u32 %v25810_v6, 16 }
 0x1e9   : > { %23938 = vmatprep.mubr.bf16.mxu0 %v12896_v37  ;;  %v12963_v37 = vrot.slane %v12961_v26, 2  ;;  %v12958_v43 = vor.u32 %v12957_v32, %v12954_v29  ;;  %v13018_v26 = vshll.u32 %v25798_v16, 16  ;;  %24066 = vmatprep.subr.bf16.mxu0 %v25861_v21  ;;  %v25800_v29 = vld [vmem:[%s26315_s26 + $0xf0] sm:$0xff]   ;;  %v25797_v32 = vld [vmem:[%s26315_s26 + $0x1d8] sm:$0xff]  }
 0x1ea   : > { %24067 = vmatpush3.bf16.msra.mxu0 %v25861_v21  ;;  %v13024_v40 = vshrl.u32 %v25800_v29, 16 }
 0x1eb   : > { %v12967_v45 = vor.u32 %v12966_v39, %v12963_v37  ;;  %v12959_v53 = vsel %vm10571_vm2, %v12949_v25, %v12958_v43  ;;  %v13015_v25 = vshrl.u32 %v25798_v16, 16  ;;  %v13020_v37 = vrot.slane %v13018_v26, 3  ;;  %v25804_v39 = vld [vmem:[%s26315_s26 + $0xf8] sm:$0xff]   ;;  %v25809_v26 = vld [vmem:[%s26315_s26 + $0x200] sm:$0xff]  }
 0x1ec   : > { %v13026_v63 = vrot.slane %v13024_v40, 2  ;;  %v13060_v16 = vshrl.u32 %v25810_v6, 16  ;;  %v25818_v40 = vld [vmem:[%s26315_s26 + $0x130] sm:$0xff]  }
 0x1ee   : > { %v13062_v27 = vrot.slane %v13060_v16, 2 }
 0x1ef   : > { %23247 = vmatmul.mubr.bf16.gmra.mrb[88].mxu1 %v2755_v51  ;;  %v12975_v51 = vrot.slane %v12973_v1, 3 }
 0x1f0   : > { %23939 = vmatmul.mubr.bf16.gmra.mrb[20].mxu0 %v12905_v54  ;;  %23250 = vmatprep.mubr.bf16.mxu1 %v2757_v55  ;;  %v2769_v54 = vsel %vm2662_vm3, %v2766_v42, %v2768_v44  ;;  %v12968_v55 = vsel %vm10571_vm2, %v12958_v43, %v12967_v45  ;;  %v13027_v42 = vshll.u32 %v25800_v29, 16  ;;  %v2780_v43 = vrot.slane %v25797_v32, 1  ;;  %v27039_v29 = vld [vmem:[%s26315_s26 + $0x208] sm:$0xff]  }
 0x1f1   : > { %23942 = vmatprep.mubr.bf16.mxu0 %v12914_v56  ;;  %v12981_v56 = vrot.slane %v12979_v46, 2  ;;  %v12976_v62 = vor.u32 %v12975_v51, %v12972_v48  ;;  %v13036_v46 = vshll.u32 %v25804_v39, 16  ;;  %v25806_v48 = vld [vmem:[%s26315_s26 + $0x100] sm:$0xff]   ;;  %v25803_v51 = vld [vmem:[%s26315_s26 + $0x1e8] sm:$0xff]  }
 0x1f2   : > { %v13042_v58 = vshrl.u32 %v25806_v48, 16  ;;  %v13045_v60 = vshll.u32 %v25806_v48, 16  ;;  %v2783_v7 = vsel %vm2662_vm3, %v2780_v43, %v2782_v59  ;;  %v25816_v32 = vld [vmem:[%s26315_s26 + $0x128] sm:$0xff]  }
 0x1f3   : > { %v12985_v2 = vor.u32 %v12984_v57, %v12981_v56  ;;  %v12977_v11 = vsel %vm10571_vm2, %v12967_v45, %v12976_v62  ;;  %v13033_v45 = vshrl.u32 %v25804_v39, 16  ;;  %v13038_v56 = vrot.slane %v13036_v46, 3  ;;  %v25808_v57 = vld [vmem:[%s26315_s26 + $0x108] sm:$0xff]  }
 0x1f4   : > { %v13044_v5 = vrot.slane %v13042_v58, 2  ;;  %v13090_v48 = vshll.u32 %v25816_v32, 16 }
 0x1f5   : > { %v12995_v33 = vsel %vm10571_vm2, %v12985_v2, %v12994_v22 }
 0x1f7   : > { %23251 = vmatmul.mubr.bf16.gmra.mrb[92].mxu1 %v2759_v10  ;;  %v25793_v10 = vld [vmem:[%s26315_s26 + $0x1c8] sm:$0xff]  }
 0x1f8   : > { %23943 = vmatmul.mubr.bf16.gmra.mrb[24].mxu0 %v12923_v13  ;;  %23254 = vmatprep.mubr.bf16.mxu1 %v2761_v14  ;;  %v12986_v13 = vsel %vm10571_vm2, %v12976_v62, %v12985_v2  ;;  %v12999_v14 = vrot.slane %v12997_v3, 2  ;;  %v2776_v23 = vrot.slane %v25793_v10, 1  ;;  %v2784_v62 = vrot.slane %v25803_v51, 1 }
 0x1f9   : > { %23946 = vmatprep.mubr.bf16.mxu0 %v12932_v15  ;;  %v13002_v15 = vrot.slane %v13000_v4, 3  ;;  %v13051_v2 = vshrl.u32 %v25808_v57, 16  ;;  %v13054_v3 = vshll.u32 %v25808_v57, 16  ;;  %v25805_v4 = vld [vmem:[%s26315_s26 + $0x1f0] sm:$0xff]   ;;  %v13096_v51 = vshrl.u32 %v25818_v40, 16 }
 0x1fa   : > { %v2779_v49 = vsel %vm2662_vm3, %v2776_v23, %v2778_v41 }
 0x1fb   : > { %v13003_v24 = vor.u32 %v13002_v15, %v12999_v14  ;;  %v13056_v14 = vrot.slane %v13054_v3, 3  ;;  %v25812_v15 = vld [vmem:[%s26315_s26 + $0x118] sm:$0xff]  }
 0x1ff   : > { %23255 = vmatmul.mubr.bf16.gmra.mrb[96].mxu1 %v2763_v31  ;;  %v13011_v31 = vrot.slane %v13009_v19, 3  ;;  %v25814_v19 = vld [vmem:[%s26315_s26 + $0x120] sm:$0xff]  }
 0x200   : > { %23947 = vmatmul.mubr.bf16.gmra.mrb[28].mxu0 %v12941_v34  ;;  %23258 = vmatprep.mubr.bf16.mxu1 %v2765_v35  ;;  %v2777_v34 = vsel %vm2662_vm3, %v2774_v18, %v2776_v23  ;;  %v13004_v35 = vsel %vm10571_vm2, %v12994_v22, %v13003_v24  ;;  %v2786_v18 = vrot.slane %v25805_v4, 1  ;;  %v2788_v22 = vrot.slane %v25807_v9, 1 }
 0x201   : > { %23950 = vmatprep.mubr.bf16.mxu0 %v12950_v36  ;;  %v13017_v36 = vrot.slane %v13015_v25, 2  ;;  %v13012_v1 = vor.u32 %v13011_v31, %v13008_v28  ;;  %v13072_v25 = vshll.u32 %v25812_v15, 16  ;;  %v13065_v28 = vrot.slane %v13063_v17, 3  ;;  %v25826_v17 = vld [vmem:[%s26315_s26 + $0x18] sm:$0xff]  }
 0x202   : > { %v13078_v31 = vshrl.u32 %v25814_v19, 16  ;;  %v13081_v39 = vshll.u32 %v25814_v19, 16  ;;  %v2794_v4 = vrot.slane %v25813_v47, 1  ;;  %v13098_v9 = vrot.slane %v13096_v51, 2 }
 0x203   : > { %v13021_v44 = vor.u32 %v13020_v37, %v13017_v36  ;;  %v13013_v52 = vsel %vm10571_vm2, %v13003_v24, %v13012_v1  ;;  %v13069_v24 = vshrl.u32 %v25812_v15, 16  ;;  %v13074_v37 = vrot.slane %v13072_v25, 3 }
 0x205   : > { %v13071_v36 = vrot.slane %v13069_v24, 2 }
 0x207   : > { %23259 = vmatmul.mubr.bf16.gmra.mrb[100].mxu1 %v2767_v50  ;;  %v13029_v50 = vrot.slane %v13027_v42, 3  ;;  %v13087_v42 = vshrl.u32 %v25816_v32, 16  ;;  %v13075_v46 = vor.u32 %v13074_v37, %v13071_v36  ;;  %v25828_v32 = vld [vmem:[%s26315_s26 + $0x20] sm:$0xff]   ;;  %v25829_v37 = vld [vmem:[%s26315_s26 + $0x150] sm:$0xff]  }
 0x208   : > { %23951 = vmatmul.mubr.bf16.gmra.mrb[32].mxu0 %v12959_v53  ;;  %23262 = vmatprep.mubr.bf16.mxu1 %v2769_v54  ;;  %v2781_v53 = vsel %vm2662_vm3, %v2778_v41, %v2780_v43  ;;  %v13022_v54 = vsel %vm10571_vm2, %v13012_v1, %v13021_v44  ;;  %v2790_v41 = vrot.slane %v25809_v26, 1  ;;  %v25879_v1 = vld [vmem:[%s30297_s1 + $0x1f8] sm:$0xff]   ;;  %v13066_v43 = vor.u32 %v13065_v28, %v13062_v27 }
 0x209   : > { %23954 = vmatprep.mubr.bf16.mxu0 %v12968_v55  ;;  %v13035_v55 = vrot.slane %v13033_v45, 2  ;;  %v13030_v61 = vor.u32 %v13029_v50, %v13026_v63  ;;  %v13080_v45 = vrot.slane %v13078_v31, 2  ;;  %v13083_v63 = vrot.slane %v13081_v39, 3  ;;  %24068 = vmatprep.subr.bf16.mxu0 %v25879_v1  ;;  %v27054_v50 = vld [vmem:[%s26315_s26 + $0x218] sm:$0xff]  }
 0x20a   : > { %24069 = vmatpush3.bf16.msra.mxu0 %v25879_v1  ;;  %v2796_v6 = vrot.slane %v27054_v50, 1  ;;  %v4426_v31 = vshrl.u32 %v25826_v17, 16  ;;  %v4435_v47 = vshrl.u32 %v25828_v32, 16  ;;  %v13132_v51 = vshrl.u32 %v25829_v37, 16 }
 0x20b   : > { %v13039_v0 = vor.u32 %v13038_v56, %v13035_v55  ;;  %v13031_v10 = vsel %vm10571_vm2, %v13021_v44, %v13030_v61  ;;  %v2792_v44 = vrot.slane %v27039_v29, 1  ;;  %v13089_v55 = vrot.slane %v13087_v42, 2  ;;  %v25821_v56 = vld [vmem:[%s26315_s26 + $0x138] sm:$0xff]  }
 0x20c   : > { %v2797_v27 = vsel %vm2662_vm3, %v2794_v4, %v2796_v6 }
 0x20d   : > { %v2793_v58 = vsel %vm2662_vm3, %v2790_v41, %v2792_v44 }
 0x20f   : > { %23263 = vmatmul.mubr.bf16.gmra.mrb[104].mxu1 %v2771_v8  ;;  %v13047_v8 = vrot.slane %v13045_v60, 3  ;;  %v13092_v60 = vrot.slane %v13090_v48, 3  ;;  %v25830_v48 = vld [vmem:[%s26315_s26 + $0x28] sm:$0xff]  }
 0x210   : > { %23955 = vmatmul.mubr.bf16.gmra.mrb[36].mxu0 %v12977_v11  ;;  %23266 = vmatprep.mubr.bf16.mxu1 %v2773_v12  ;;  %v2785_v11 = vsel %vm2662_vm3, %v2782_v59, %v2784_v62  ;;  %v13040_v12 = vsel %vm10571_vm2, %v13030_v61, %v13039_v0  ;;  %v13076_v59 = vsel %vm10571_vm2, %v13066_v43, %v13075_v46 }
 0x211   : > { %23958 = vmatprep.mubr.bf16.mxu0 %v12986_v13  ;;  %v13053_v13 = vrot.slane %v13051_v2, 2  ;;  %v13048_v21 = vor.u32 %v13047_v8, %v13044_v5  ;;  %v13084_v5 = vor.u32 %v13083_v63, %v13080_v45  ;;  %v25817_v8 = vld [vmem:[%s26315_s26 + $0x220] ss:$0 sps:$4 sm:$0x11]   ;;  %v4438_v63 = vshll.u32 %v25828_v32, 16 }
 0x213   : > { %v13057_v23 = vor.u32 %v13056_v14, %v13053_v13  ;;  %v13093_v13 = vor.u32 %v13092_v60, %v13089_v55  ;;  %v13085_v26 = vsel %vm10571_vm2, %v13075_v46, %v13084_v5  ;;  %v4428_v46 = vrot.slane %v4426_v31, 1  ;;  %v25832_v55 = vld [vmem:[%s26315_s26 + $0x30] sm:$0xff]   ;;  %v25842_v31 = vld [vmem:[%s30297_s1 + $0xc8] sm:$0xff]  }
 0x214   : > { %v4444_v60 = vshrl.u32 %v25830_v48, 16 }
 0x215   : > { %v13067_v57 = vsel %vm10571_vm2, %v13057_v23, %v13066_v43  ;;  %v13094_v28 = vsel %vm10571_vm2, %v13084_v5, %v13093_v13 }
 0x217   : > { %23267 = vmatmul.mubr.bf16.gmra.mrb[108].mxu1 %v2775_v30  ;;  %v2787_v30 = vsel %vm2662_vm3, %v2784_v62, %v2786_v18 }
 0x218   : > { %23959 = vmatmul.mubr.bf16.gmra.mrb[40].mxu0 %v12995_v33  ;;  %23270 = vmatprep.mubr.bf16.mxu1 %v2777_v34  ;;  %v13049_v33 = vsel %vm10571_vm2, %v13039_v0, %v13048_v21  ;;  %v2789_v34 = vsel %vm2662_vm3, %v2786_v18, %v2788_v22  ;;  %v25822_v0 = vld [vmem:[%s26315_s26 + $0x10] sm:$0xff]  }
 0x219   : > { %23962 = vmatprep.mubr.bf16.mxu0 %v13004_v35  ;;  %v13058_v35 = vsel %vm10571_vm2, %v13048_v21, %v13057_v23  ;;  %v4417_v16 = vshrl.u32 %v25822_v0, 16  ;;  %v4420_v21 = vshll.u32 %v25822_v0, 16  ;;  %v2795_v23 = vsel %vm2662_vm3, %v2792_v44, %v2794_v4 }
 0x21f   : > { %23271 = vmatmul.mubr.bf16.gmra.mrb[112].mxu1 %v2779_v49  ;;  %v25819_v49 = vld [vmem:[%s26315_s26] sm:$0xfe]  }
 0x220   : > { %23963 = vmatmul.mubr.bf16.gmra.mrb[44].mxu0 %v13013_v52  ;;  %23274 = vmatprep.mubr.bf16.mxu1 %v2781_v53  ;;  %v13099_v52 = vshll.u32 %v25818_v40, 16  ;;  %v25820_v53 = vld [vmem:[%s26315_s26 + $0x8] sm:$0xff]   ;;  %v4400_v61 = vshrl.u32 %v25819_v49, 16  ;;  %v4403_v62 = vshll.u32 %v25819_v49, 16  ;;  %v4419_v40 = vrot.slane %v4417_v16, 1 }
 0x221   : > { %23966 = vmatprep.mubr.bf16.mxu0 %v13022_v54  ;;  %v2791_v54 = vsel %vm2662_vm3, %v2788_v22, %v2790_v41  ;;  %v4408_v2 = vshrl.u32 %v25820_v53, 16  ;;  %v4411_v3 = vshll.u32 %v25820_v53, 16  ;;  %v25827_v22 = vld [vmem:[%s26315_s26 + $0x148] sm:$0xff]   ;;  %v4422_v41 = vrot.slane %v4420_v21, 2 }
 0x222   : > { %v4402_v14 = vrot.slane %v4400_v61, 1  ;;  %v4405_v15 = vrot.slane %v4403_v62, 2  ;;  %v13123_v36 = vshrl.u32 %v25827_v22, 16  ;;  %v13126_v44 = vshll.u32 %v25827_v22, 16  ;;  %v25833_v62 = vld [vmem:[%s26315_s26 + $0x160] sm:$0xff]  }
 0x223   : > { %v4410_v18 = vrot.slane %v4408_v2, 1  ;;  %v4413_v19 = vrot.slane %v4411_v3, 2  ;;  %v4447_v61 = vshll.u32 %v25830_v48, 16  ;;  %v4423_v0 = vor.u32 %v4422_v41, %v4419_v40  ;;  %v25836_v22 = vld [vmem:[%s26315_s26 + $0x40] sm:$0xff]   ;;  %v25838_v41 = vld [vmem:[%s26315_s26 + $0x48] sm:$0xff]  }
 0x224   : > { %v4406_v39 = vor.u32 %v4405_v15, %v4402_v14  ;;  %v13125_v50 = vrot.slane %v13123_v36, 2  ;;  %v4446_v14 = vrot.slane %v4444_v60, 1  ;;  %v13150_v16 = vshrl.u32 %v25833_v62, 16 }
 0x225   : > { %v4414_v42 = vor.u32 %v4413_v19, %v4410_v18  ;;  %v4449_v15 = vrot.slane %v4447_v61, 2  ;;  %v13153_v21 = vshll.u32 %v25833_v62, 16  ;;  %v4471_v40 = vshrl.u32 %v25836_v22, 16  ;;  %v25878_v61 = vld [vmem:[%s30297_s1 + $0xd8] sm:$0xff]  }
 0x226   : > { %v4483_v60 = vshll.u32 %v25838_v41, 16 }
 0x227   : > { %23275 = vmatmul.mubr.bf16.gmra.mrb[116].mxu1 %v2783_v7  ;;  %v25824_v7 = vld [vmem:[%s26315_s26 + $0x140] sm:$0xff]   ;;  %v4473_v62 = vrot.slane %v4471_v40, 1 }
 0x228   : > { %23967 = vmatmul.mubr.bf16.gmra.mrb[48].mxu0 %v13031_v10  ;;  %23278 = vmatprep.mubr.bf16.mxu1 %v2785_v11  ;;  %v13101_v10 = vrot.slane %v13099_v52, 3  ;;  %v13105_v11 = vshrl.u32 %v25821_v56, 16  ;;  %v13114_v24 = vshrl.u32 %v25824_v7, 16  ;;  %v13117_v25 = vshll.u32 %v25824_v7, 16  ;;  %v25831_v52 = vld [vmem:[%s26315_s26 + $0x158] sm:$0xff]  }
 0x229   : > { %23970 = vmatprep.mubr.bf16.mxu0 %v13040_v12  ;;  %v13108_v12 = vshll.u32 %v25821_v56, 16  ;;  %v13141_v2 = vshrl.u32 %v25831_v52, 16  ;;  %v13144_v3 = vshll.u32 %v25831_v52, 16  ;;  %v4440_v7 = vrot.slane %v4438_v63, 2  ;;  %v25840_v52 = vld [vmem:[%s26315_s26 + $0x50] sm:$0xff]  }
 0x22a   : > { %v13107_v29 = vrot.slane %v13105_v11, 2  ;;  %v13116_v1 = vrot.slane %v13114_v24, 2  ;;  %v13119_v43 = vrot.slane %v13117_v25, 3  ;;  %v4453_v11 = vshrl.u32 %v25832_v55, 16 }
 0x22b   : > { %v13143_v18 = vrot.slane %v13141_v2, 2  ;;  %v13146_v19 = vrot.slane %v13144_v3, 3 }
 0x22c   : > { %v13120_v4 = vor.u32 %v13119_v43, %v13116_v1  ;;  %v4450_v1 = vor.u32 %v4449_v15, %v4446_v14  ;;  %v4485_v15 = vrot.slane %v4483_v60, 2 }
 0x22d   : > { %v13147_v43 = vor.u32 %v13146_v19, %v13143_v18  ;;  %v25845_v19 = vld [vmem:[%s26315_s26 + $0x188] sm:$0xff]  }
 0x22f   : > { %23279 = vmatmul.mubr.bf16.gmra.mrb[120].mxu1 %v2787_v30  ;;  %v13110_v30 = vrot.slane %v13108_v12, 3  ;;  %v4456_v12 = vshll.u32 %v25832_v55, 16 }
 0x230   : > { %23971 = vmatmul.mubr.bf16.gmra.mrb[52].mxu0 %v13049_v33  ;;  %23282 = vmatprep.mubr.bf16.mxu1 %v2789_v34  ;;  %v2798_v33 = vrot.slane %v25817_v8, 1  ;;  %v13102_v34 = vor.u32 %v13101_v10, %v13098_v9  ;;  %v25834_v8 = vld [vmem:[%s26315_s26 + $0x38] sm:$0xff]   ;;  %v13134_v9 = vrot.slane %v13132_v51, 2 }
 0x231   : > { %23974 = vmatprep.mubr.bf16.mxu0 %v13058_v35  ;;  %v4429_v35 = vshll.u32 %v25826_v17, 16  ;;  %v13111_v45 = vor.u32 %v13110_v30, %v13107_v29  ;;  %v25835_v17 = vld [vmem:[%s26315_s26 + $0x168] sm:$0xff]   ;;  %v4462_v24 = vshrl.u32 %v25834_v8, 16  ;;  %v4465_v25 = vshll.u32 %v25834_v8, 16  ;;  %v25839_v51 = vld [vmem:[%s26315_s26 + $0x178] sm:$0xff]   ;;  %v25902_v8 = vld [vmem:[%s30297_s1 + $0x200] sm:$0xff]  }
 0x232   : > { %v2799_v53 = vsel %vm2662_vm3, %v2796_v6, %v2798_v33  ;;  %v13103_v56 = vsel %vm10571_vm2, %v13093_v13, %v13102_v34  ;;  %v4437_v6 = vrot.slane %v4435_v47, 1  ;;  %v13159_v30 = vshrl.u32 %v25835_v17, 16  ;;  %24206 = vmatprep.subr.bf16.mxu0 %v25902_v8 }
 0x233   : > { %v4431_v49 = vrot.slane %v4429_v35, 2  ;;  %v4455_v33 = vrot.slane %v4453_v11, 1  ;;  %v26184_v35 = vld [vmem:[%s30297_s1 + $0xc0] sm:$0xff]   ;;  %v4458_v36 = vrot.slane %v4456_v12, 2  ;;  %v4467_v47 = vrot.slane %v4465_v25, 2 }
 0x234   : > { %v4441_v32 = vor.u32 %v4440_v7, %v4437_v6  ;;  %v13161_v63 = vrot.slane %v13159_v30, 2  ;;  %v13177_v3 = vshrl.u32 %v25839_v51, 16  ;;  %v13180_v6 = vshll.u32 %v25839_v51, 16 }
 0x235   : > { %v4432_v5 = vor.u32 %v4431_v49, %v4428_v46  ;;  %v4464_v46 = vrot.slane %v4462_v24, 1  ;;  %v4489_v7 = vshrl.u32 %v25840_v52, 16  ;;  %v4492_v11 = vshll.u32 %v25840_v52, 16 }
 0x236   : > { %v4451_v55 = vsel %vm4398_vm4, %v4441_v32, %v4450_v1  ;;  %v13182_v25 = vrot.slane %v13180_v6, 3 }
 0x237   : > { %23283 = vmatmul.mubr.bf16.gmra.mrb[124].mxu1 %v2791_v54  ;;  %v13135_v54 = vshll.u32 %v25829_v37, 16  ;;  %v13152_v37 = vrot.slane %v13150_v16, 2  ;;  %v25900_v16 = vld [vmem:[%s30297_s1 + $0xe0] sm:$0xff]  }
 0x238   : > { %23975 = vmatmul.mubr.bf16.gmra.mrb[56].mxu0 %v13067_v57  ;;  %23286 = vmatprep.mubr.bf16.mxu1 %v2793_v58  ;;  %v4415_v57 = vsel %vm4398_vm4, %v4406_v39, %v4414_v42  ;;  %v13112_v58 = vsel %vm10571_vm2, %v13102_v34, %v13111_v45  ;;  %v13162_v34 = vshll.u32 %v25835_v17, 16  ;;  %v13155_v39 = vrot.slane %v13153_v21, 3  ;;  %v25846_v21 = vld [vmem:[%s26315_s26 + $0x60] sm:$0xff]  }
 0x239   : > { %23978 = vmatprep.mubr.bf16.mxu0 %v13076_v59  ;;  %v13128_v59 = vrot.slane %v13126_v44, 3  ;;  %v13137_v10 = vrot.slane %v13135_v54, 3  ;;  %v4474_v44 = vshll.u32 %v25836_v22, 16  ;;  %v13179_v17 = vrot.slane %v13177_v3, 2 }
 0x23a   : > { %v13164_v49 = vrot.slane %v13162_v34, 3  ;;  %v4507_v40 = vshrl.u32 %v25846_v21, 16 }
 0x23b   : > { %v13129_v13 = vor.u32 %v13128_v59, %v13125_v50  ;;  %v4459_v59 = vor.u32 %v4458_v36, %v4455_v33  ;;  %v4494_v33 = vrot.slane %v4492_v11, 2  ;;  %v13198_v36 = vshll.u32 %v25845_v19, 16 }
 0x23c   : > { %v13165_v14 = vor.u32 %v13164_v49, %v13161_v63  ;;  %v25849_v63 = vld [vmem:[%s26315_s26 + $0x198] sm:$0xff]  }
 0x23d   : > { %v13130_v29 = vsel %vm10571_vm2, %v13120_v4, %v13129_v13  ;;  %v4460_v22 = vsel %vm4398_vm4, %v4450_v1, %v4459_v59  ;;  %v13200_v52 = vrot.slane %v13198_v36, 3 }
 0x23f   : > { %23287 = vmatmul.mubr.bf16.gmra.mrb[128].mxu1 %v2795_v23  ;;  %v4424_v23 = vsel %vm4398_vm4, %v4414_v42, %v4423_v0  ;;  %v13138_v42 = vor.u32 %v13137_v10, %v13134_v9  ;;  %v4468_v9 = vor.u32 %v4467_v47, %v4464_v46 }
 0x240   : > { %23979 = vmatmul.mubr.bf16.gmra.mrb[60].mxu0 %v13085_v26  ;;  %23290 = vmatprep.mubr.bf16.mxu1 %v2797_v27  ;;  %v25837_v26 = vld [vmem:[%s26315_s26 + $0x170] sm:$0xff]   ;;  %v13121_v27 = vsel %vm10571_vm2, %v13111_v45, %v13120_v4  ;;  %v13156_v4 = vor.u32 %v13155_v39, %v13152_v37 }
 0x241   : > { %23982 = vmatprep.mubr.bf16.mxu0 %v13094_v28  ;;  %v4433_v28 = vsel %vm4398_vm4, %v4423_v0, %v4432_v5  ;;  %v25860_v45 = vld [vmem:[%s30297_s1 + $0xd0] sm:$0xff]   ;;  %v13168_v48 = vshrl.u32 %v25837_v26, 16  ;;  %v13171_v50 = vshll.u32 %v25837_v26, 16  ;;  %v13139_v54 = vsel %vm10571_vm2, %v13129_v13, %v13138_v42  ;;  %v25844_v13 = vld [vmem:[%s26315_s26 + $0x58] sm:$0xff]  }
 0x242   : > { %v4476_v0 = vrot.slane %v4474_v44, 2  ;;  %v4469_v24 = vsel %vm4398_vm4, %v4459_v59, %v4468_v9  ;;  %v25847_v26 = vld [vmem:[%s26315_s26 + $0x190] sm:$0xff]   ;;  %v13213_v59 = vshrl.u32 %v25849_v63, 16 }
 0x243   : > { %v13170_v2 = vrot.slane %v13168_v48, 2  ;;  %v13204_v44 = vshrl.u32 %v25847_v26, 16  ;;  %v13207_v47 = vshll.u32 %v25847_v26, 16  ;;  %v25850_v48 = vld [vmem:[%s26315_s26 + $0x70] sm:$0xff]  }
 0x244   : > { %v4477_v30 = vor.u32 %v4476_v0, %v4473_v62  ;;  %v13216_v0 = vshll.u32 %v25849_v63, 16  ;;  %v13215_v11 = vrot.slane %v13213_v59, 2  ;;  %v25859_v63 = vld [vmem:[%s26315_s26 + $0x1c0] sm:$0xff]  }
 0x245   : > { %v13209_v62 = vrot.slane %v13207_v47, 3 }
 0x246   : > { %v4478_v49 = vsel %vm4398_vm4, %v4468_v9, %v4477_v30 }
 0x247   : > { %23291 = vmatmul.mubr.bf16.gmra.mrb[132].mxu1 %v2799_v53  ;;  %v4442_v53 = vsel %vm4398_vm4, %v4432_v5, %v4441_v32  ;;  %v13173_v5 = vrot.slane %v13171_v50, 3  ;;  %v13195_v32 = vshrl.u32 %v25845_v19, 16  ;;  %v25855_v19 = vld [vmem:[%s26315_s26 + $0x1b0] sm:$0xff]  }
 0x248   : > { %23983 = vmatmul.mubr.bf16.gmra.mrb[64].mxu0 %v13103_v56  ;;  %23310 = vmatprep.mubr.bf16.mxu1 %v4415_v57  ;;  %v4480_v56 = vshrl.u32 %v25838_v41, 16  ;;  %v25841_v57 = vld [vmem:[%s26315_s26 + $0x180] sm:$0xff]   ;;  %v4510_v41 = vshll.u32 %v25846_v21, 16 }
 0x249   : > { %23986 = vmatprep.mubr.bf16.mxu0 %v13112_v58  ;;  %v13148_v58 = vsel %vm10571_vm2, %v13138_v42, %v13147_v43  ;;  %v13186_v12 = vshrl.u32 %v25841_v57, 16  ;;  %v13189_v18 = vshll.u32 %v25841_v57, 16  ;;  %v13174_v37 = vor.u32 %v13173_v5, %v13170_v2 }
 0x24a   : > { %v4482_v10 = vrot.slane %v4480_v56, 1  ;;  %v13183_v42 = vor.u32 %v13182_v25, %v13179_v17  ;;  %v13197_v46 = vrot.slane %v13195_v32, 2  ;;  %v4512_v60 = vrot.slane %v4510_v41, 2 }
 0x24b   : > { %v13188_v34 = vrot.slane %v13186_v12, 2  ;;  %v13175_v50 = vsel %vm10571_vm2, %v13165_v14, %v13174_v37  ;;  %v4528_v5 = vshll.u32 %v25850_v48, 16 }
 0x24c   : > { %v4486_v39 = vor.u32 %v4485_v15, %v4482_v10  ;;  %v13201_v6 = vor.u32 %v13200_v52, %v13197_v46  ;;  %v25852_v10 = vld [vmem:[%s26315_s26 + $0x78] sm:$0xff]  }
 0x24e   : > { %v4487_v51 = vsel %vm4398_vm4, %v4477_v30, %v4486_v39 }
 0x24f   : > { %23311 = vmatmul.mubr.bf16.vlgmr.msra.gmra.mrb[0].mxu1 %v4424_v23  ;;  %v13157_v23 = vsel %vm10571_vm2, %v13147_v43, %v13156_v4 }
 0x250   : > { %23987 = vmatmul.mubr.bf16.gmra.mrb[68].mxu0 %v13121_v27  ;;  %23447 = vmatpush3.bf16.msra.mxu1 %v26184_v35  ;;  %v13166_v27 = vsel %vm10571_vm2, %v13156_v4, %v13165_v14  ;;  %v13191_v35 = vrot.slane %v13189_v18, 3  ;;  %v4525_v4 = vshrl.u32 %v25850_v48, 16  ;;  %v25854_v14 = vld [vmem:[%s26315_s26 + $0x80] sm:$0xff]   ;;  %v13218_v18 = vrot.slane %v13216_v0, 3 }
 0x251   : > { %23314 = vmatprep.mubr.bf16.mxu1 %v4433_v28  ;;  %23990 = vmatprep.mubr.bf16.mxu0 %v13130_v29  ;;  %v4498_v28 = vshrl.u32 %v25844_v13, 16  ;;  %v4501_v29 = vshll.u32 %v25844_v13, 16  ;;  %v25853_v13 = vld [vmem:[%s26315_s26 + $0x1a8] sm:$0xff]  }
 0x252   : > { %23448 = vmatprep.subr.bf16.mxu1 %v25842_v31  ;;  %v13192_v2 = vor.u32 %v13191_v35, %v13188_v34  ;;  %v4527_v25 = vrot.slane %v4525_v4, 1  ;;  %v13231_v26 = vshrl.u32 %v25853_v13, 16  ;;  %v13234_v30 = vshll.u32 %v25853_v13, 16 }
 0x253   : > { %v4500_v1 = vrot.slane %v4498_v28, 1  ;;  %v4503_v43 = vrot.slane %v4501_v29, 2  ;;  %v4546_v34 = vshll.u32 %v25854_v14, 16  ;;  %v13219_v35 = vor.u32 %v13218_v18, %v13215_v11 }
 0x254   : > { %23449 = vmatpush3.bf16.msra.mxu1 %v25842_v31  ;;  %v4491_v31 = vrot.slane %v4489_v7, 1  ;;  %v13202_v21 = vsel %vm10571_vm2, %v13192_v2, %v13201_v6  ;;  %v13233_v41 = vrot.slane %v13231_v26, 2  ;;  %v13236_v47 = vrot.slane %v13234_v30, 3 }
 0x255   : > { %23450 = vmatprep.subr.bf16.mxu1 %v25860_v45  ;;  %v4504_v3 = vor.u32 %v4503_v43, %v4500_v1  ;;  %v25857_v1 = vld [vmem:[%s26315_s26 + $0x1b8] sm:$0xff]   ;;  %v25858_v43 = vld [vmem:[%s26315_s26 + $0x90] sm:$0xff]   ;;  %v13258_v4 = vshrl.u32 %v25859_v63, 16 }
 0x256   : > { %v4495_v57 = vor.u32 %v4494_v33, %v4491_v31  ;;  %v4543_v33 = vshrl.u32 %v25854_v14, 16  ;;  %v13237_v0 = vor.u32 %v13236_v47, %v13233_v41  ;;  %v25865_v14 = vld [vmem:[%s26315_s26 + $0x1d0] sm:$0xff]  }
 0x257   : > { %23315 = vmatmul.mubr.bf16.gmra.mrb[4].mxu1 %v4442_v53  ;;  %v25851_v53 = vld [vmem:[%s26315_s26 + $0x1a0] sm:$0xff]  }
 0x258   : > { %23991 = vmatmul.mubr.bf16.gmra.mrb[72].mxu0 %v13139_v54  ;;  %23318 = vmatprep.mubr.bf16.mxu1 %v4451_v55  ;;  %v13184_v54 = vsel %vm10571_vm2, %v13174_v37, %v13183_v42  ;;  %v13222_v9 = vshrl.u32 %v25851_v53, 16  ;;  %v13225_v12 = vshll.u32 %v25851_v53, 16  ;;  %v4496_v15 = vsel %vm4398_vm4, %v4486_v39, %v4495_v57 }
 0x259   : > { %23994 = vmatprep.mubr.bf16.mxu0 %v13148_v58  ;;  %23451 = vmatpush3.bf16.msra.mxu1 %v25860_v45  ;;  %v25848_v45 = vld [vmem:[%s26315_s26 + $0x68] sm:$0xff]   ;;  %v4509_v58 = vrot.slane %v4507_v40, 1  ;;  %v4505_v17 = vsel %vm4398_vm4, %v4495_v57, %v4504_v3  ;;  %v13240_v39 = vshrl.u32 %v25855_v19, 16  ;;  %v4545_v52 = vrot.slane %v4543_v33, 1 }
 0x25a   : > { %23452 = vmatprep.subr.bf16.mxu1 %v25878_v61  ;;  %v4516_v55 = vshrl.u32 %v25848_v45, 16  ;;  %v4519_v56 = vshll.u32 %v25848_v45, 16  ;;  %v13224_v28 = vrot.slane %v13222_v9, 2  ;;  %v13227_v29 = vrot.slane %v13225_v12, 3  ;;  %v25856_v40 = vld [vmem:[%s26315_s26 + $0x88] sm:$0xff]   ;;  %v25864_v9 = vld [vmem:[%s26315_s26 + $0xa0] sm:$0xff]  }
 0x25b   : > { %v13249_v53 = vshrl.u32 %v25857_v1, 16  ;;  %v13252_v57 = vshll.u32 %v25857_v1, 16  ;;  %v13276_v33 = vshrl.u32 %v25865_v14, 16 }
 0x25c   : > { %v4518_v7 = vrot.slane %v4516_v55, 1  ;;  %v4521_v8 = vrot.slane %v4519_v56, 2  ;;  %v13242_v55 = vrot.slane %v13240_v39, 2  ;;  %v13228_v59 = vor.u32 %v13227_v29, %v13224_v28  ;;  %v25868_v39 = vld [vmem:[%s26315_s26 + $0xb0] sm:$0xff]  }
 0x25d   : > { %23453 = vmatpush3.bf16.msra.mxu1 %v25878_v61  ;;  %v13206_v61 = vrot.slane %v13204_v44, 2  ;;  %v13254_v13 = vrot.slane %v13252_v57, 3  ;;  %v4579_v28 = vshrl.u32 %v25864_v9, 16  ;;  %v4582_v29 = vshll.u32 %v25864_v9, 16 }
 0x25e   : > { %23454 = vmatprep.subr.bf16.mxu1 %v25900_v16  ;;  %v4522_v32 = vor.u32 %v4521_v8, %v4518_v7  ;;  %v13261_v7 = vshll.u32 %v25859_v63, 16  ;;  %v25863_v8 = vld [vmem:[%s26315_s26 + $0x1c8] sm:$0xff]   ;;  %v13229_v11 = vsel %vm10571_vm2, %v13219_v35, %v13228_v59 }
 0x25f   : > { %23319 = vmatmul.mubr.bf16.gmra.mrb[8].mxu1 %v4460_v22  ;;  %v4534_v22 = vshrl.u32 %v25852_v10, 16  ;;  %v13210_v31 = vor.u32 %v13209_v62, %v13206_v61  ;;  %v4561_v61 = vshrl.u32 %v25858_v43, 16  ;;  %v4564_v62 = vshll.u32 %v25858_v43, 16  ;;  %v25869_v43 = vld [vmem:[%s26315_s26 + $0x1e0] sm:$0xff]  }
 0x260   : > { %23995 = vmatmul.mubr.bf16.gmra.mrb[76].mxu0 %v13157_v23  ;;  %23322 = vmatprep.mubr.bf16.mxu1 %v4469_v24  ;;  %v4537_v23 = vshll.u32 %v25852_v10, 16  ;;  %v4513_v24 = vor.u32 %v4512_v60, %v4509_v58  ;;  %v25919_v58 = vld [vmem:[%s30297_s1 + $0xe8] sm:$0xff]   ;;  %v4581_v63 = vrot.slane %v4579_v28, 1 }
 0x261   : > { %23998 = vmatprep.mubr.bf16.mxu0 %v13166_v27  ;;  %23455 = vmatpush3.bf16.msra.mxu1 %v25900_v16  ;;  %v13193_v16 = vsel %vm10571_vm2, %v13183_v42, %v13192_v2  ;;  %v4530_v27 = vrot.slane %v4528_v5, 2  ;;  %v4536_v36 = vrot.slane %v4534_v22, 1  ;;  %v13243_v42 = vshll.u32 %v25855_v19, 16  ;;  %v25862_v5 = vld [vmem:[%s26315_s26 + $0x98] sm:$0xff]   ;;  %v25874_v28 = vld [vmem:[%s26315_s26 + $0xc8] sm:$0xff]  }
 0x262   : > { %v4539_v37 = vrot.slane %v4537_v23, 2  ;;  %v4514_v44 = vsel %vm4398_vm4, %v4504_v3, %v4513_v24  ;;  %v13211_v45 = vsel %vm10571_vm2, %v13201_v6, %v13210_v31  ;;  %v4523_v46 = vsel %vm4398_vm4, %v4513_v24, %v4522_v32  ;;  %23456 = vmatprep.subr.bf16.mxu1 %v25919_v58 }
 0x263   : > { %v13220_v48 = vsel %vm10571_vm2, %v13210_v31, %v13219_v35  ;;  %v13245_v56 = vrot.slane %v13243_v42, 3  ;;  %v13251_v6 = vrot.slane %v13249_v53, 2  ;;  %v4563_v19 = vrot.slane %v4561_v61, 1  ;;  %v25870_v61 = vld [vmem:[%s26315_s26 + $0xb8] sm:$0xff]  }
 0x264   : > { %v4540_v60 = vor.u32 %v4539_v37, %v4536_v36  ;;  %v4566_v22 = vrot.slane %v4564_v62, 2  ;;  %v13260_v23 = vrot.slane %v13258_v4, 2  ;;  %v13263_v24 = vrot.slane %v13261_v7, 3  ;;  %v25867_v37 = vld [vmem:[%s26315_s26 + $0x1d8] sm:$0xff]  }
 0x265   : > { %23457 = vmatpush3.bf16.msra.mxu1 %v25919_v58  ;;  %v13246_v26 = vor.u32 %v13245_v56, %v13242_v55  ;;  %v13255_v30 = vor.u32 %v13254_v13, %v13251_v6  ;;  %v13279_v36 = vshll.u32 %v25865_v14, 16  ;;  %v4597_v55 = vshrl.u32 %v25868_v39, 16 }
 0x266   : > { %v4567_v47 = vor.u32 %v4566_v22, %v4563_v19  ;;  %v13264_v53 = vor.u32 %v13263_v24, %v13260_v23  ;;  %v4600_v56 = vshll.u32 %v25868_v39, 16 }
 0x267   : > { %23323 = vmatmul.mubr.bf16.gmra.mrb[12].mxu1 %v4478_v49  ;;  %v4552_v49 = vshrl.u32 %v25856_v40, 16  ;;  %v13247_v41 = vsel %vm10571_vm2, %v13237_v0, %v13246_v26  ;;  %v4599_v13 = vrot.slane %v4597_v55, 1 }
 0x268   : > { %23999 = vmatmul.mubr.bf16.gmra.mrb[80].mxu0 %v13175_v50  ;;  %23326 = vmatprep.mubr.bf16.mxu1 %v4487_v51  ;;  %v4555_v50 = vshll.u32 %v25856_v40, 16  ;;  %v4531_v51 = vor.u32 %v4530_v27, %v4527_v25  ;;  %v13270_v25 = vshll.u32 %v25863_v8, 16 }
 0x269   : > { %24002 = vmatprep.mubr.bf16.mxu0 %v13184_v54  ;;  %v4548_v54 = vrot.slane %v4546_v34, 2  ;;  %v4554_v2 = vrot.slane %v4552_v49, 1  ;;  %v25866_v34 = vld [vmem:[%s26315_s26 + $0xa8] sm:$0xff]   ;;  %v4584_v49 = vrot.slane %v4582_v29, 2 }
 0x26a   : > { %v4557_v3 = vrot.slane %v4555_v50, 2  ;;  %v4532_v10 = vsel %vm4398_vm4, %v4522_v32, %v4531_v51  ;;  %v4541_v12 = vsel %vm4398_vm4, %v4531_v51, %v4540_v60  ;;  %v13272_v1 = vrot.slane %v13270_v25, 3 }
 0x26b   : > { %v4549_v18 = vor.u32 %v4548_v54, %v4545_v52  ;;  %v13278_v50 = vrot.slane %v13276_v33, 2  ;;  %v13281_v51 = vrot.slane %v13279_v36, 3  ;;  %v13288_v52 = vshll.u32 %v25867_v37, 16 }
 0x26c   : > { %v4558_v27 = vor.u32 %v4557_v3, %v4554_v2  ;;  %v25871_v2 = vld [vmem:[%s26315_s26 + $0x1e8] sm:$0xff]   ;;  %v25872_v3 = vld [vmem:[%s26315_s26 + $0xc0] sm:$0xff]  }
 0x26d   : > { %v4550_v40 = vsel %vm4398_vm4, %v4540_v60, %v4549_v18  ;;  %v13294_v60 = vshrl.u32 %v25869_v43, 16  ;;  %v13290_v7 = vrot.slane %v13288_v52, 3  ;;  %v13303_v14 = vshrl.u32 %v25871_v2, 16 }
 0x26e   : > { %v4559_v42 = vsel %vm4398_vm4, %v4549_v18, %v4558_v27  ;;  %v4568_v4 = vsel %vm4398_vm4, %v4558_v27, %v4567_v47  ;;  %v13306_v18 = vshll.u32 %v25871_v2, 16  ;;  %v13282_v19 = vor.u32 %v13281_v51, %v13278_v50 }
 0x26f   : > { %23327 = vmatmul.mubr.bf16.gmra.mrb[16].mxu1 %v4496_v15  ;;  %v13238_v15 = vsel %vm10571_vm2, %v13228_v59, %v13237_v0  ;;  %v13297_v0 = vshll.u32 %v25869_v43, 16  ;;  %v4615_v22 = vshrl.u32 %v25872_v3, 16  ;;  %v4618_v23 = vshll.u32 %v25872_v3, 16  ;;  %v25883_v3 = vld [vmem:[%s26315_s26 + $0x210] sm:$0xff]  }
 0x270   : > { %24003 = vmatmul.mubr.bf16.gmra.mrb[84].mxu0 %v13193_v16  ;;  %23330 = vmatprep.mubr.bf16.mxu1 %v4505_v17  ;;  %v4570_v16 = vshrl.u32 %v25862_v5, 16  ;;  %v4573_v17 = vshll.u32 %v25862_v5, 16  ;;  %v13265_v5 = vsel %vm10571_vm2, %v13255_v30, %v13264_v53  ;;  %v13305_v29 = vrot.slane %v13303_v14, 2 }
 0x271   : > { %24006 = vmatprep.mubr.bf16.mxu0 %v13202_v21  ;;  %v13267_v21 = vshrl.u32 %v25863_v8, 16  ;;  %v25873_v8 = vld [vmem:[%s26315_s26 + $0x1f0] sm:$0xff]   ;;  %v13308_v36 = vrot.slane %v13306_v18, 3 }
 0x272   : > { %v4572_v31 = vrot.slane %v4570_v16, 1  ;;  %v4575_v32 = vrot.slane %v4573_v17, 2  ;;  %v13296_v16 = vrot.slane %v13294_v60, 2  ;;  %v13299_v17 = vrot.slane %v13297_v0, 3  ;;  %v25882_v60 = vld [vmem:[%s26315_s26 + $0xe0] sm:$0xff]  }
 0x273   : > { %v13269_v35 = vrot.slane %v13267_v21, 2  ;;  %v13312_v27 = vshrl.u32 %v25873_v8, 16  ;;  %v13309_v52 = vor.u32 %v13308_v36, %v13305_v29 }
 0x274   : > { %v4576_v54 = vor.u32 %v4575_v32, %v4572_v31  ;;  %v25875_v31 = vld [vmem:[%s26315_s26 + $0x1f8] sm:$0xff]   ;;  %v25876_v32 = vld [vmem:[%s26315_s26 + $0xd0] sm:$0xff]  }
 0x275   : > { %v13273_v57 = vor.u32 %v13272_v1, %v13269_v35  ;;  %v4617_v1 = vrot.slane %v4615_v22, 1  ;;  %v13321_v43 = vshrl.u32 %v25875_v31, 16  ;;  %v4633_v50 = vshrl.u32 %v25876_v32, 16 }
 0x276   : > { %v4577_v6 = vsel %vm4398_vm4, %v4567_v47, %v4576_v54  ;;  %v13324_v47 = vshll.u32 %v25875_v31, 16  ;;  %v4636_v51 = vshll.u32 %v25876_v32, 16  ;;  %v13348_v22 = vshrl.u32 %v25883_v3, 16  ;;  %v25887_v32 = vld [vmem:[%s26315_s26 + $0x220] sm:$0xff]  }
 0x277   : > { %23331 = vmatmul.mubr.bf16.gmra.mrb[20].mxu1 %v4514_v44  ;;  %v13256_v44 = vsel %vm10571_vm2, %v13246_v26, %v13255_v30  ;;  %v13274_v9 = vsel %vm10571_vm2, %v13264_v53, %v13273_v57  ;;  %v13315_v30 = vshll.u32 %v25873_v8, 16  ;;  %v13351_v31 = vshll.u32 %v25883_v3, 16 }
 0x278   : > { %24007 = vmatmul.mubr.bf16.gmra.mrb[88].mxu0 %v13211_v45  ;;  %23334 = vmatprep.mubr.bf16.mxu1 %v4523_v46  ;;  %v4588_v45 = vshrl.u32 %v25866_v34, 16  ;;  %v4591_v46 = vshll.u32 %v25866_v34, 16  ;;  %v13283_v34 = vsel %vm10571_vm2, %v13273_v57, %v13282_v19  ;;  %v13323_v57 = vrot.slane %v13321_v43, 2 }
 0x279   : > { %24010 = vmatprep.mubr.bf16.mxu0 %v13220_v48  ;;  %v13285_v48 = vshrl.u32 %v25867_v37, 16  ;;  %v25877_v37 = vld [vmem:[%s26315_s26 + $0x200] sm:$0xff]   ;;  %v13326_v2 = vrot.slane %v13324_v47, 3 }
 0x27a   : > { %v4590_v58 = vrot.slane %v4588_v45, 1  ;;  %v4593_v59 = vrot.slane %v4591_v46, 2  ;;  %v13314_v45 = vrot.slane %v13312_v27, 2  ;;  %v13317_v46 = vrot.slane %v13315_v30, 3  ;;  %v25886_v27 = vld [vmem:[%s26315_s26 + $0xf0] sm:$0xff]  }
 0x27b   : > { %v13287_v62 = vrot.slane %v13285_v48, 2  ;;  %v13300_v48 = vor.u32 %v13299_v17, %v13296_v16  ;;  %v13330_v55 = vshrl.u32 %v25877_v37, 16  ;;  %v4651_v16 = vshrl.u32 %v25882_v60, 16 }
 0x27c   : > { %v4594_v21 = vor.u32 %v4593_v59, %v4590_v58  ;;  %v13333_v58 = vshll.u32 %v25877_v37, 16  ;;  %v25881_v59 = vld [vmem:[%s26315_s26 + $0x208] sm:$0xff]   ;;  %v13318_v14 = vor.u32 %v13317_v46, %v13314_v45  ;;  %v4654_v17 = vshll.u32 %v25882_v60, 16 }
 0x27d   : > { %v13291_v24 = vor.u32 %v13290_v7, %v13287_v62  ;;  %v13339_v8 = vshrl.u32 %v25881_v59, 16  ;;  %v13327_v18 = vor.u32 %v13326_v2, %v13323_v57  ;;  %v4669_v45 = vshrl.u32 %v25886_v27, 16 }
 0x27e   : > { %v13319_v29 = vsel %vm10571_vm2, %v13309_v52, %v13318_v14  ;;  %v13369_v57 = vshll.u32 %v25887_v32, 16 }
 0x27f   : > { %23335 = vmatmul.mubr.bf16.gmra.mrb[24].mxu1 %v4532_v10  ;;  %v4606_v10 = vshrl.u32 %v25870_v61, 16  ;;  %v13292_v39 = vsel %vm10571_vm2, %v13282_v19, %v13291_v24  ;;  %v13301_v62 = vsel %vm10571_vm2, %v13291_v24, %v13300_v48  ;;  %v13341_v24 = vrot.slane %v13339_v8, 2 }
 0x280   : > { %24011 = vmatmul.mubr.bf16.gmra.mrb[92].mxu0 %v13229_v11  ;;  %23338 = vmatprep.mubr.bf16.mxu1 %v4541_v12  ;;  %v4609_v11 = vshll.u32 %v25870_v61, 16  ;;  %v4585_v12 = vor.u32 %v4584_v49, %v4581_v63  ;;  %v25937_v63 = vld [vmem:[%s30297_s1 + $0xf0] sm:$0xff]  }
 0x281   : > { %24014 = vmatprep.mubr.bf16.mxu0 %v13238_v15  ;;  %v4602_v15 = vrot.slane %v4600_v56, 2  ;;  %v4608_v25 = vrot.slane %v4606_v10, 1  ;;  %v25880_v56 = vld [vmem:[%s26315_s26 + $0xd8] sm:$0xff]   ;;  %23458 = vmatprep.subr.bf16.mxu1 %v25937_v63  ;;  %v4635_v10 = vrot.slane %v4633_v50, 1 }
 0x282   : > { %v4611_v26 = vrot.slane %v4609_v11, 2  ;;  %v4586_v33 = vsel %vm4398_vm4, %v4576_v54, %v4585_v12  ;;  %v4595_v35 = vsel %vm4398_vm4, %v4585_v12, %v4594_v21  ;;  %23459 = vmatpush3.bf16.msra.mxu1 %v25937_v63  ;;  %v4638_v11 = vrot.slane %v4636_v51, 2 }
 0x283   : > { %v13332_v12 = vrot.slane %v13330_v55, 2  ;;  %v4672_v63 = vshll.u32 %v25886_v27, 16 }
 0x284   : > { %v4612_v49 = vor.u32 %v4611_v26, %v4608_v25  ;;  %v25885_v26 = vld [vmem:[%s26315_s26 + $0x218] sm:$0xff]  }
 0x285   : > { %v13357_v36 = vshrl.u32 %v25885_v26, 16  ;;  %v13360_v37 = vshll.u32 %v25885_v26, 16  ;;  %v25893_v26 = vld [vmem:[%s26315_s26 + $0x238] sm:$0xff]  }
 0x287   : > { %23339 = vmatmul.mubr.bf16.gmra.mrb[28].mxu1 %v4550_v40  ;;  %v4624_v40 = vshrl.u32 %v25874_v28, 16  ;;  %v13359_v51 = vrot.slane %v13357_v36, 2 }
 0x288   : > { %24015 = vmatmul.mubr.bf16.gmra.mrb[96].mxu0 %v13247_v41  ;;  %23342 = vmatprep.mubr.bf16.mxu1 %v4559_v42  ;;  %v4627_v41 = vshll.u32 %v25874_v28, 16  ;;  %v4603_v42 = vor.u32 %v4602_v15, %v4599_v13  ;;  %v13335_v13 = vrot.slane %v13333_v58, 3  ;;  %v27211_v58 = vld [vmem:[%s26315_s26 + $0x100] sm:$0xff]  }
 0x289   : > { %24018 = vmatprep.mubr.bf16.mxu0 %v13256_v44  ;;  %v4620_v44 = vrot.slane %v4618_v23, 2  ;;  %v4626_v53 = vrot.slane %v4624_v40, 1  ;;  %v25884_v23 = vld [vmem:[%s26315_s26 + $0xe8] sm:$0xff]   ;;  %v4653_v40 = vrot.slane %v4651_v16, 1 }
 0x28a   : > { %v4629_v54 = vrot.slane %v4627_v41, 2  ;;  %v4604_v61 = vsel %vm4398_vm4, %v4594_v21, %v4603_v42  ;;  %v4613_v0 = vsel %vm4398_vm4, %v4603_v42, %v4612_v49  ;;  %v4656_v41 = vrot.slane %v4654_v17, 2 }
 0x28b   : > { %v4621_v7 = vor.u32 %v4620_v44, %v4617_v1  ;;  %v13350_v42 = vrot.slane %v13348_v22, 2  ;;  %v13336_v1 = vor.u32 %v13335_v13, %v13332_v12  ;;  %v13353_v44 = vrot.slane %v13351_v31, 3  ;;  %v19024_v12 = vld [vmem:[%s30300_s4] sm:$0xff] }
 0x28c   : > { %v4630_v15 = vor.u32 %v4629_v54, %v4626_v53  ;;  %v25889_v53 = vld [vmem:[%s26315_s26 + $0x228] sm:$0xff]  }
 0x28d   : > { %v4622_v28 = vsel %vm4398_vm4, %v4612_v49, %v4621_v7  ;;  %v25888_v49 = vld [vmem:[%s26315_s26 + $0xf8] sm:$0xff]   ;;  %v13337_v55 = vsel %vm10571_vm2, %v13327_v18, %v13336_v1  ;;  %v13375_v3 = vshrl.u32 %v25889_v53, 16 }
 0x28e   : > { %v4631_v30 = vsel %vm4398_vm4, %v4621_v7, %v4630_v15  ;;  %v4678_v60 = vshrl.u32 %v25888_v49, 16  ;;  %v4681_v2 = vshll.u32 %v25888_v49, 16  ;;  %v19028_v49 = vld [vmem:[%s30300_s4 + $0x20] sm:$0xff] }
 0x28f   : > { %23343 = vmatmul.mubr.bf16.gmra.mrb[32].mxu1 %v4568_v4  ;;  %v13310_v4 = vsel %vm10571_vm2, %v13300_v48, %v13309_v52  ;;  %v13366_v48 = vshrl.u32 %v25887_v32, 16  ;;  %v13362_v52 = vrot.slane %v13360_v37, 3  ;;  %v25895_v32 = vld [vmem:[%s26315_s26 + $0x240] ss:$0 sps:$4 sm:$0x77]  }
 0x290   : > { %24019 = vmatmul.mubr.bf16.gmra.mrb[100].mxu0 %v13265_v5  ;;  %23346 = vmatprep.mubr.bf16.mxu1 %v4577_v6  ;;  %v4642_v5 = vshrl.u32 %v25880_v56, 16  ;;  %v4645_v6 = vshll.u32 %v25880_v56, 16  ;;  %v4680_v13 = vrot.slane %v4678_v60, 1  ;;  %v4683_v17 = vrot.slane %v4681_v2, 2 }
 0x291   : > { %24022 = vmatprep.mubr.bf16.mxu0 %v13274_v9  ;;  %v13342_v9 = vshll.u32 %v25881_v59, 16  ;;  %v27224_v8 = vor.u32 %v13362_v52, %v13359_v51  ;;  %v26185_v51 = vld [vmem:[%s30297_s1 + $0x100] sm:$0xff]  }
 0x292   : > { %v4644_v19 = vrot.slane %v4642_v5, 1  ;;  %v4647_v21 = vrot.slane %v4645_v6, 2  ;;  %v4674_v5 = vrot.slane %v4672_v63, 2  ;;  %v13368_v6 = vrot.slane %v13366_v48, 2  ;;  %v25896_v48 = vld [vmem:[%s26315_s26 + $0x118] sm:$0xff]  }
 0x293   : > { %v13344_v25 = vrot.slane %v13342_v9, 3  ;;  %v13371_v9 = vrot.slane %v13369_v57, 3  ;;  %v13402_v63 = vshrl.u32 %v25895_v32, 16  ;;  %v4714_v60 = vshrl.u32 %v25896_v48, 16 }
 0x294   : > { %v27202_v43 = vor.u32 %v4647_v21, %v4644_v19  ;;  %v25892_v21 = vld [vmem:[%s26315_s26 + $0x108] sm:$0xff]  }
 0x295   : > { %v13345_v46 = vor.u32 %v13344_v25, %v13341_v24  ;;  %v13372_v31 = vor.u32 %v13371_v9, %v13368_v6  ;;  %v19031_v9 = vld [vmem:[%s30300_s4 + $0x38] sm:$0xff] }
 0x297   : > { %23347 = vmatmul.mubr.bf16.gmra.mrb[36].mxu1 %v4586_v33  ;;  %v13328_v33 = vsel %vm10571_vm2, %v13318_v14, %v13327_v18  ;;  %v13346_v59 = vsel %vm10571_vm2, %v13336_v1, %v13345_v46  ;;  %v4687_v14 = vshrl.u32 %v27211_v58, 16  ;;  %v13377_v18 = vrot.slane %v13375_v3, 2 }
 0x298   : > { %24023 = vmatmul.mubr.bf16.gmra.mrb[104].mxu0 %v13283_v34  ;;  %23350 = vmatprep.mubr.bf16.mxu1 %v4595_v35  ;;  %v4660_v34 = vshrl.u32 %v25884_v23, 16  ;;  %v4663_v35 = vshll.u32 %v25884_v23, 16  ;;  %v13393_v1 = vshrl.u32 %v25893_v26, 16  ;;  %v13373_v52 = vsel %vm10571_vm2, %v27224_v8, %v13372_v31 }
 0x299   : > { %24026 = vmatprep.mubr.bf16.mxu0 %v13292_v39  ;;  %v4639_v39 = vor.u32 %v4638_v11, %v4635_v10  ;;  %v13378_v10 = vshll.u32 %v25889_v53, 16  ;;  %v26225_v11 = vmov 0  }
 0x29a   : > { %v4662_v47 = vrot.slane %v4660_v34, 1  ;;  %v4665_v50 = vrot.slane %v4663_v35, 2  ;;  %25488 = vset.pattern.permute.xlu0 %v26225_v11  ;;  %20044 = vst [vmem:[%s27220_s24] sm:$0xf] %v26225_v11  ;;  %20045 = vst [vmem:[%s27220_s24 + $0x4] sm:$0xf] %v26225_v11  ;;  %25489 = vset.pattern.permute.xlu1 %v26225_v11  ;;  %v4684_v34 = vor.u32 %v4683_v17, %v4680_v13  ;;  %v13395_v57 = vrot.slane %v13393_v1, 2 }
 0x29b   : > { %v4640_v54 = vsel %vm4398_vm4, %v4630_v15, %v4639_v39  ;;  %v4649_v56 = vsel %vm4398_vm4, %v4639_v39, %v27202_v43  ;;  %20046 = vst [vmem:[%s27220_s24 + $0x8] sm:$0xf] %v26225_v11  ;;  %20047 = vst [vmem:[%s27220_s24 + $0xc] sm:$0xf] %v26225_v11  ;;  %v4690_v15 = vshll.u32 %v27211_v58, 16  ;;  %19162 = vperm.xlu0 %25488, %v19024_v12   ;;  %v13380_v25 = vrot.slane %v13378_v10, 3 }
 0x29c   : > { %v27222_v7 = vor.u32 %v4665_v50, %v4662_v47  ;;  %20048 = vst [vmem:[%s27220_s24 + $0x10] sm:$0x3] %v26225_v11  ;;  %21073 = vst [vmem:[%s27220_s24 + $0x230] sm:$0xc] %v26225_v11  ;;  %v19025_v39 = vld [vmem:[%s30300_s4 + $0x8] sm:$0xff]  ;;  %v25899_v12 = vld [vmem:[%s26315_s26 + $0x120] sm:$0xff]  }
 0x29d   : > { %21074 = vst [vmem:[%s27220_s24 + $0x234] sm:$0xf] %v26225_v11  ;;  %21075 = vst [vmem:[%s27220_s24 + $0x238] sm:$0xf] %v26225_v11  ;;  %v4692_v35 = vrot.slane %v4690_v15, 2  ;;  %v19032_v13 = vld [vmem:[%s30300_s4 + $0x40] sm:$0xff] }
 0x29e   : > { %21076 = vst [vmem:[%s27220_s24 + $0x23c] sm:$0xf] %v26225_v11  ;;  %21077 = vst [vmem:[%s27220_s24 + $0x240] sm:$0xf] %v26225_v11  ;;  %v25897_v15 = vld [vmem:[%s26315_s26 + $0x20] sm:$0xf8]  }
 0x29f   : > { %23351 = vmatmul.mubr.bf16.gmra.mrb[40].mxu1 %v4604_v61  ;;  %v25891_v61 = vld [vmem:[%s26315_s26 + $0x230] sm:$0xff]   ;;  %21078 = vst [vmem:[%s27220_s24 + $0x244] sm:$0xf] %v26225_v11  ;;  %21079 = vst [vmem:[%s27220_s24 + $0x248] sm:$0xf] %v26225_v11  ;;  %19167 = vperm.xlu0 %25488, %v19025_v39  }
 0x2a0   : > { %24027 = vmatmul.mubr.bf16.gmra.mrb[108].mxu0 %v13301_v62  ;;  %23354 = vmatprep.mubr.bf16.mxu1 %v4613_v0  ;;  %v4657_v62 = vor.u32 %v4656_v41, %v4653_v40  ;;  %v13354_v0 = vor.u32 %v13353_v44, %v13350_v42  ;;  %21080 = vst [vmem:[%s27220_s24 + $0x24c] sm:$0xf] %v26225_v11  ;;  %21081 = vst [vmem:[%s27220_s24 + $0x250] sm:$0x7] %v26225_v11  ;;  %v13384_v16 = vshrl.u32 %v25891_v61, 16  ;;  %v25955_v40 = vld [vmem:[%s30297_s1 + $0xf8] sm:$0xff]  }
 0x2a1   : > { %24030 = vmatprep.mubr.bf16.mxu0 %v13310_v4  ;;  %v4671_v4 = vrot.slane %v4669_v45, 1  ;;  %v13387_v19 = vshll.u32 %v25891_v61, 16  ;;  %v4696_v41 = vshrl.u32 %v25892_v21, 16  ;;  %v4699_v42 = vshll.u32 %v25892_v21, 16  ;;  %23460 = vmatprep.subr.bf16.mxu1 %v25955_v40  ;;  %v19029_v61 = vld [vmem:[%s30300_s4 + $0x28] sm:$0xff]  ;;  %v25901_v39 = vld [vmem:[%s26315_s26 + $0x30] sm:$0xff]  }
 0x2a2   : > { %v4658_v22 = vsel %vm4398_vm4, %v27202_v43, %v4657_v62  ;;  %v13355_v23 = vsel %vm10571_vm2, %v13345_v46, %v13354_v0  ;;  %v4667_v24 = vsel %vm4398_vm4, %v4657_v62, %v27222_v7  ;;  %v13364_v27 = vsel %vm10571_vm2, %v13354_v0, %v27224_v8  ;;  %v19027_v46 = vld [vmem:[%s30300_s4 + $0x18] sm:$0xff]  ;;  %23461 = vmatpush3.bf16.msra.mxu1 %v25955_v40  ;;  %v19030_v0 = vld [vmem:[%s30300_s4 + $0x30] sm:$0xff] }
 0x2a3   : > { %v13386_v36 = vrot.slane %v13384_v16, 2  ;;  %v13389_v37 = vrot.slane %v13387_v19, 3  ;;  %v13396_v43 = vshll.u32 %v25893_v26, 16  ;;  %v13381_v44 = vor.u32 %v13380_v25, %v13377_v18  ;;  %24358 = vmatprep.subr.bf16.mxu1 %v26185_v51  ;;  %19182 = vperm.xlu0 %25488, %v19028_v49   ;;  %v25903_v19 = vld [vmem:[%s26315_s26 + $0x128] sm:$0xff]   ;;  %v25907_v40 = vld [vmem:[%s26315_s26 + $0x138] sm:$0xff]  }
 0x2a4   : > { %v13404_v8 = vrot.slane %v13402_v63, 2  ;;  %v4716_v11 = vrot.slane %v4714_v60, 1  ;;  %v19033_v25 = vld [vmem:[%s30300_s4 + $0x48] sm:$0xff]  ;;  %v4750_v49 = vshrl.u32 %v25907_v40, 16  ;;  %v25906_v60 = vld [vmem:[%s26315_s26 + $0x40] sm:$0xff]  }
 0x2a5   : > { %v13398_v58 = vrot.slane %v13396_v43, 3  ;;  %v13390_v2 = vor.u32 %v13389_v37, %v13386_v36 }
 0x2a7   : > { %23355 = vmatmul.mubr.bf16.gmra.mrb[44].mxu1 %v4622_v28  ;;  %v4689_v28 = vrot.slane %v4687_v14, 1  ;;  %19192 = vperm.xlu0 %25488, %v19030_v0   ;;  %v13391_v16 = vsel %vm10571_vm2, %v13381_v44, %v13390_v2  ;;  %v19040_v0 = vld [vmem:[%s30300_s4 + $0x80] sm:$0xff] }
 0x2a8   : > { %24031 = vmatmul.mubr.bf16.gmra.mrb[112].mxu0 %v13319_v29  ;;  %23358 = vmatprep.mubr.bf16.mxu1 %v4631_v30  ;;  %v25894_v29 = vld [vmem:[%s26315_s26 + $0x110] sm:$0xff]   ;;  %v4675_v30 = vor.u32 %v4674_v5, %v4671_v4  ;;  %v4717_v4 = vshll.u32 %v25896_v48, 16  ;;  %v13399_v5 = vor.u32 %v13398_v58, %v13395_v57  ;;  %v19039_v58 = vld [vmem:[%s30300_s4 + $0x78] sm:$0xff] }
 0x2a9   : > { %24034 = vmatprep.mubr.bf16.mxu0 %v13328_v33  ;;  %v19026_v33 = vld [vmem:[%s30300_s4 + $0x10] sm:$0xff]  ;;  %v4705_v45 = vshrl.u32 %v25894_v29, 16  ;;  %v4708_v47 = vshll.u32 %v25894_v29, 16  ;;  %v4693_v62 = vor.u32 %v4692_v35, %v4689_v28  ;;  %v19035_v35 = vld [vmem:[%s30300_s4 + $0x58] sm:$0xff] }
 0x2aa   : > { %19172 = vperm.xlu1 %25489, %v19026_v33   ;;  %v4676_v50 = vsel %vm4398_vm4, %v27222_v7, %v4675_v30  ;;  %v4685_v53 = vsel %vm4398_vm4, %v4675_v30, %v4684_v34  ;;  %v4719_v18 = vrot.slane %v4717_v4, 2  ;;  %v13400_v21 = vsel %vm10571_vm2, %v13390_v2, %v13399_v5  ;;  %v19034_v28 = vld [vmem:[%s30300_s4 + $0x50] sm:$0xff] }
 0x2ab   : > { %v4707_v6 = vrot.slane %v4705_v45, 1  ;;  %v4710_v7 = vrot.slane %v4708_v47, 2  ;;  %v4694_v14 = vsel %vm4398_vm4, %v4684_v34, %v4693_v62  ;;  %19202 = vperm.xlu0 %25488, %v19032_v13   ;;  %v4732_v30 = vshrl.u32 %v25903_v19, 16  ;;  %v25905_v34 = vld [vmem:[%s26315_s26 + $0x130] sm:$0xff]   ;;  %v27321_v47 = vld [vmem:[%s26315_s26 + $0x38] sm:$0xff]  }
 0x2ac   : > { %v4720_v29 = vor.u32 %v4719_v18, %v4716_v11  ;;  %v4741_v63 = vshrl.u32 %v25905_v34, 16  ;;  %v4744_v48 = vshll.u32 %v25905_v34, 16 }
 0x2ad   : > { %v4711_v26 = vor.u32 %v4710_v7, %v4707_v6  ;;  %v25911_v6 = vld [vmem:[%s26315_s26 + $0x148] sm:$0xff]  }
 0x2ae   : > { %19177 = vperm.xlu1 %25489, %v19027_v46   ;;  %v4743_v57 = vrot.slane %v4741_v63, 1  ;;  %v4768_v18 = vshrl.u32 %v25911_v6, 16  ;;  %v25917_v63 = vld [vmem:[%s26315_s26 + $0x160] sm:$0xff]  }
 0x2af   : > { %23359 = vmatmul.mubr.bf16.gmra.mrb[48].mxu1 %v4640_v54  ;;  %v4698_v54 = vrot.slane %v4696_v41, 1  ;;  %19212 = vperm.xlu0 %25488, %v19034_v28   ;;  %v19036_v41 = vld [vmem:[%s30300_s4 + $0x60] sm:$0xff]  ;;  %v4721_v43 = vsel %vm4398_vm4, %v4711_v26, %v4720_v29  ;;  %v27366_v28 = vld [vmem:[%s26315_s26 + $0x58] sm:$0xff]  }
 0x2b0   : > { %24035 = vmatmul.mubr.bf16.gmra.mrb[116].mxu0 %v13337_v55  ;;  %23362 = vmatprep.mubr.bf16.mxu1 %v4649_v56  ;;  %v4701_v55 = vrot.slane %v4699_v42, 2  ;;  %v13382_v56 = vsel %vm10571_vm2, %v13372_v31, %v13381_v44  ;;  %v4735_v31 = vshll.u32 %v25903_v19, 16  ;;  %v4734_v44 = vrot.slane %v4732_v30, 1  ;;  %v19044_v30 = vld [vmem:[%s30300_s4 + $0xa0] sm:$0xff] }
 0x2b1   : > { %24038 = vmatprep.mubr.bf16.mxu0 %v13346_v59  ;;  %v13405_v59 = vshll.u32 %v25895_v32, 16  ;;  %v15009_v32 = vrot.slane %v25897_v15, 3  ;;  %v26186_v15 = vld [vmem:[%s30297_s1 + $0x200] sm:$0xff]   ;;  %v4771_v19 = vshll.u32 %v25911_v6, 16  ;;  %v4770_v34 = vrot.slane %v4768_v18, 1 }
 0x2b2   : > { %v4702_v3 = vor.u32 %v4701_v55, %v4698_v54  ;;  %19187 = vperm.xlu1 %25489, %v19029_v61   ;;  %v4737_v45 = vrot.slane %v4735_v31, 2  ;;  %v4753_v55 = vshll.u32 %v25907_v40, 16  ;;  %v4752_v61 = vrot.slane %v4750_v49, 1  ;;  %v25978_v49 = vld [vmem:[%s30297_s1 + $0x220] sm:$0xff]  }
 0x2b3   : > { %v13407_v10 = vrot.slane %v13405_v59, 3  ;;  %19222 = vperm.xlu0 %25488, %v19036_v41   ;;  %v4746_v59 = vrot.slane %v4744_v48, 2 }
 0x2b4   : > { %v4703_v17 = vsel %vm4398_vm4, %v4693_v62, %v4702_v3  ;;  %v4712_v42 = vsel %vm4398_vm4, %v4702_v3, %v4711_v26  ;;  %v4738_v54 = vor.u32 %v4737_v45, %v4734_v44  ;;  %v25909_v62 = vld [vmem:[%s26315_s26 + $0x140] sm:$0xff]  }
 0x2b5   : > { %v4762_v11 = vshll.u32 %v25909_v62, 16  ;;  %v4747_v13 = vor.u32 %v4746_v59, %v4743_v57  ;;  %v25921_v59 = vld [vmem:[%s26315_s26 + $0x168] sm:$0xff]  }
 0x2b6   : > { %19197 = vperm.xlu1 %25489, %v19031_v9   ;;  %v25920_v9 = vld [vmem:[%s30297_s1 + $0x208] sm:$0xff]  }
 0x2b7   : > { %23363 = vmatmul.mubr.bf16.gmra.mrb[52].mxu1 %v4658_v22  ;;  %v25898_v22 = vld [vmem:[%s26315_s26 + $0x28] sm:$0xff]   ;;  %v4764_v26 = vrot.slane %v4762_v11, 2  ;;  %v4748_v31 = vsel %vm4398_vm4, %v4738_v54, %v4747_v13  ;;  %v25925_v11 = vld [vmem:[%s26315_s26 + $0x178] sm:$0xff]  }
 0x2b8   : > { %24039 = vmatmul.mubr.bf16.gmra.mrb[120].mxu0 %v13355_v23  ;;  %23366 = vmatprep.mubr.bf16.mxu1 %v4667_v24  ;;  %v4723_v23 = vshrl.u32 %v25899_v12, 16  ;;  %v4726_v24 = vshll.u32 %v25899_v12, 16  ;;  %v15010_v33 = vrot.slane %v25898_v22, 3  ;;  %v19041_v12 = vld [vmem:[%s30300_s4 + $0x88] sm:$0xff] }
 0x2b9   : > { %24042 = vmatprep.mubr.bf16.mxu0 %v13364_v27  ;;  %v13408_v27 = vor.u32 %v13407_v10, %v13404_v8  ;;  %v27344_v8 = vld [vmem:[%s26315_s26 + $0x48] sm:$0xff]   ;;  %v4759_v10 = vshrl.u32 %v25909_v62, 16  ;;  %v4795_v62 = vshrl.u32 %v25917_v63, 16 }
 0x2ba   : > { %19207 = vperm.xlu1 %25489, %v19033_v25   ;;  %v4725_v36 = vrot.slane %v4723_v23, 1  ;;  %v4728_v37 = vrot.slane %v4726_v24, 2  ;;  %v15011_v46 = vsel %vm15008_vm5, %v15009_v32, %v15010_v33  ;;  %v15018_v22 = vrot.slane %v27344_v8, 3  ;;  %v25915_v23 = vld [vmem:[%s26315_s26 + $0x158] sm:$0xff]   ;;  %v25938_v24 = vld [vmem:[%s30297_s1 + $0x210] sm:$0xff]  }
 0x2bb   : > { %v13409_v1 = vsel %vm10571_vm2, %v13399_v5, %v13408_v27  ;;  %v4755_v5 = vrot.slane %v4753_v55, 2  ;;  %v4761_v25 = vrot.slane %v4759_v10, 1  ;;  %v25910_v27 = vld [vmem:[%s26315_s26 + $0x50] sm:$0xff]   ;;  %v4786_v41 = vshrl.u32 %v25915_v23, 16 }
 0x2bc   : > { %v4729_v51 = vor.u32 %v4728_v37, %v4725_v36  ;;  %v15020_v44 = vrot.slane %v25910_v27, 3  ;;  %v4807_v8 = vshll.u32 %v25921_v59, 16  ;;  %v25923_v10 = vld [vmem:[%s26315_s26 + $0x170] sm:$0xff]   ;;  %v4822_v27 = vshrl.u32 %v25925_v11, 16 }
 0x2be   : > { %19217 = vperm.xlu1 %25489, %v19035_v35   ;;  %v4730_v2 = vsel %vm4398_vm4, %v4720_v29, %v4729_v51  ;;  %v4739_v4 = vsel %vm4398_vm4, %v4729_v51, %v4738_v54  ;;  %v19043_v29 = vld [vmem:[%s30300_s4 + $0x98] sm:$0xff]  ;;  %v4773_v35 = vrot.slane %v4771_v19, 2  ;;  %v25914_v51 = vld [vmem:[%s26315_s26 + $0x60] sm:$0xff]  }
 0x2bf   : > { %23367 = vmatmul.mubr.bf16.gmra.mrb[56].mxu1 %v4676_v50  ;;  %v19037_v50 = vld [vmem:[%s30300_s4 + $0x68] sm:$0xff]  ;;  %v19048_v54 = vld [vmem:[%s30300_s4 + $0xc0] sm:$0xff] }
 0x2c0   : > { %24043 = vmatmul.mubr.bf16.gmra.mrb[124].mxu0 %v13373_v52  ;;  %23370 = vmatprep.mubr.bf16.mxu1 %v4685_v53  ;;  %v19038_v52 = vld [vmem:[%s30300_s4 + $0x70] sm:$0xff]  ;;  %v15012_v53 = vrot.slane %v25901_v39, 3  ;;  %v25956_v39 = vld [vmem:[%s30297_s1 + $0x218] sm:$0xff]   ;;  %v4774_v45 = vor.u32 %v4773_v35, %v4770_v34 }
 0x2c1   : > { %24046 = vmatprep.mubr.bf16.mxu0 %v13382_v56  ;;  %v15014_v56 = vrot.slane %v27321_v47, 3  ;;  %19232 = vperm.xlu0 %25488, %v19038_v52   ;;  %v4789_v47 = vshll.u32 %v25915_v23, 16  ;;  %v4788_v52 = vrot.slane %v4786_v41, 1  ;;  %v19055_v41 = vld [vmem:[%s30300_s4 + $0xf8] sm:$0xff] }
 0x2c2   : > { %19227 = vperm.xlu1 %25489, %v19037_v50   ;;  %v15013_v3 = vsel %vm15008_vm5, %v15010_v33, %v15012_v53 }
 0x2c3   : > { %v15015_v7 = vsel %vm15008_vm5, %v15012_v53, %v15014_v56  ;;  %v19047_v53 = vld [vmem:[%s30300_s4 + $0xb8] sm:$0xff] }
 0x2c5   : > { %19242 = vperm.xlu0 %25488, %v19040_v0   ;;  %v4798_v0 = vshll.u32 %v25917_v63, 16  ;;  %v27448_v63 = vld [vmem:[%s26315_s26 + $0x88] sm:$0xff]  }
 0x2c6   : > { %19237 = vperm.xlu1 %25489, %v19039_v58   ;;  %v4791_v58 = vrot.slane %v4789_v47, 2 }
 0x2c7   : > { %23371 = vmatmul.mubr.bf16.gmra.mrb[60].mxu1 %v4694_v14  ;;  %v19042_v14 = vld [vmem:[%s30300_s4 + $0x90] sm:$0xff] }
 0x2c8   : > { %24047 = vmatmul.mubr.bf16.gmra.mrb[128].mxu0 %v13391_v16  ;;  %23374 = vmatprep.mubr.bf16.mxu1 %v4703_v17  ;;  %v15016_v16 = vrot.slane %v25906_v60, 3  ;;  %v4756_v17 = vor.u32 %v4755_v5, %v4752_v61  ;;  %v27405_v61 = vld [vmem:[%s26315_s26 + $0x68] sm:$0xff]   ;;  %v15024_v5 = vrot.slane %v25914_v51, 3  ;;  %v4792_v6 = vor.u32 %v4791_v58, %v4788_v52  ;;  %v19058_v52 = vld [vmem:[%s30300_s4 + $0x110] sm:$0xff] }
 0x2c9   : > { %24050 = vmatprep.mubr.bf16.mxu0 %v13400_v21  ;;  %v25913_v21 = vld [vmem:[%s26315_s26 + $0x150] sm:$0xff]   ;;  %19252 = vperm.xlu0 %25488, %v19042_v14  }
 0x2ca   : > { %19247 = vperm.xlu1 %25489, %v19041_v12   ;;  %v15017_v32 = vsel %vm15008_vm5, %v15014_v56, %v15016_v16  ;;  %v4757_v33 = vsel %vm4398_vm4, %v4747_v13, %v4756_v17  ;;  %v15019_v36 = vsel %vm15008_vm5, %v15016_v16, %v15018_v22  ;;  %v4777_v37 = vshrl.u32 %v25913_v21, 16  ;;  %v25918_v14 = vld [vmem:[%s26315_s26 + $0x70] sm:$0xff]   ;;  %v19052_v16 = vld [vmem:[%s30300_s4 + $0xe0] sm:$0xff] }
 0x2cb   : > { %v4780_v40 = vshll.u32 %v25913_v21, 16  ;;  %v15021_v56 = vsel %vm15008_vm5, %v15018_v22, %v15020_v44  ;;  %v4797_v12 = vrot.slane %v4795_v62, 1  ;;  %v4800_v13 = vrot.slane %v4798_v0, 2  ;;  %v25931_v58 = vld [vmem:[%s26315_s26 + $0x190] sm:$0xff]   ;;  %v27461_v0 = vld [vmem:[%s26315_s26 + $0x98] sm:$0xff]  }
 0x2cc   : > { %v4779_v48 = vrot.slane %v4777_v37, 1  ;;  %v4809_v22 = vrot.slane %v4807_v8, 2  ;;  %v25928_v62 = vld [vmem:[%s26315_s26 + $0x90] sm:$0xff]  }
 0x2cd   : > { %19262 = vperm.xlu0 %25488, %v19044_v30   ;;  %v4782_v50 = vrot.slane %v4780_v40, 2  ;;  %v19054_v30 = vld [vmem:[%s30300_s4 + $0xf0] sm:$0xff]  ;;  %v4824_v40 = vrot.slane %v4822_v27, 1  ;;  %v19063_v27 = vld [vmem:[%s30300_s4 + $0x138] sm:$0xff] }
 0x2ce   : > { %19257 = vperm.xlu1 %25489, %v19043_v29   ;;  %v4801_v29 = vor.u32 %v4800_v13, %v4797_v12  ;;  %v19061_v13 = vld [vmem:[%s30300_s4 + $0x128] sm:$0xff] }
 0x2cf   : > { %23375 = vmatmul.mubr.bf16.gmra.mrb[64].mxu1 %v4712_v42  ;;  %v19045_v42 = vld [vmem:[%s30300_s4 + $0xa8] sm:$0xff] }
 0x2d0   : > { %24051 = vmatmul.mubr.bf16.gmra.mrb[132].mxu0 %v13409_v1  ;;  %23378 = vmatprep.mubr.bf16.mxu1 %v4721_v43  ;;  %v4765_v1 = vor.u32 %v4764_v26, %v4761_v25  ;;  %v19046_v43 = vld [vmem:[%s30300_s4 + $0xb0] sm:$0xff]  ;;  %v4813_v25 = vshrl.u32 %v25923_v10, 16  ;;  %v4816_v26 = vshll.u32 %v25923_v10, 16  ;;  %v4849_v10 = vshrl.u32 %v25931_v58, 16 }
 0x2d1   : > { %24070 = vmatprep.mubr.bf16.mxu0 %v15011_v46  ;;  %v15022_v46 = vrot.slane %v27366_v28, 3  ;;  %19272 = vperm.xlu0 %25488, %v19046_v43   ;;  %v19053_v28 = vld [vmem:[%s30300_s4 + $0xe8] sm:$0xff] }
 0x2d2   : > { %19267 = vperm.xlu1 %25489, %v19045_v42   ;;  %v4766_v55 = vsel %vm4398_vm4, %v4756_v17, %v4765_v1  ;;  %v4775_v57 = vsel %vm4398_vm4, %v4765_v1, %v4774_v45  ;;  %v4815_v35 = vrot.slane %v4813_v25, 1  ;;  %v4818_v37 = vrot.slane %v4816_v26, 2  ;;  %v19056_v42 = vld [vmem:[%s30300_s4 + $0x100] sm:$0xff] }
 0x2d3   : > { %v15023_v60 = vsel %vm15008_vm5, %v15020_v44, %v15022_v46  ;;  %v15025_v18 = vsel %vm15008_vm5, %v15022_v46, %v15024_v5  ;;  %v4802_v1 = vsel %vm4398_vm4, %v4792_v6, %v4801_v29  ;;  %v25929_v46 = vld [vmem:[%s26315_s26 + $0x188] sm:$0xff]   ;;  %v25932_v25 = vld [vmem:[%s26315_s26 + $0xa0] sm:$0xff]  }
 0x2d4   : > { %v4819_v51 = vor.u32 %v4818_v37, %v4815_v35  ;;  %v25934_v35 = vld [vmem:[%s26315_s26 + $0xa8] sm:$0xff]  }
 0x2d5   : > { %19282 = vperm.xlu0 %25488, %v19048_v54  }
 0x2d6   : > { %19277 = vperm.xlu1 %25489, %v19047_v53  }
 0x2d7   : > { %23379 = vmatmul.mubr.bf16.gmra.mrb[68].mxu1 %v4730_v2  ;;  %v19049_v2 = vld [vmem:[%s30300_s4 + $0xc8] sm:$0xff] }
 0x2d8   : > { %24071 = vmatmul.mubr.bf16.vlgmr.msra.gmra.mrb[0].mxu0 %v15013_v3  ;;  %23382 = vmatprep.mubr.bf16.mxu1 %v4739_v4  ;;  %v4783_v3 = vor.u32 %v4782_v50, %v4779_v48  ;;  %v19050_v4 = vld [vmem:[%s30300_s4 + $0xd0] sm:$0xff]  ;;  %v19057_v50 = vld [vmem:[%s30300_s4 + $0x108] sm:$0xff] }
 0x2d9   : > { %24207 = vmatpush3.bf16.msra.mxu0 %v26186_v15  ;;  %24074 = vmatprep.mubr.bf16.mxu0 %v15015_v7  ;;  %v4804_v7 = vshrl.u32 %v25921_v59, 16  ;;  %v19051_v15 = vld [vmem:[%s30300_s4 + $0xd8] sm:$0xff] }
 0x2da   : > { %24208 = vmatprep.subr.bf16.mxu0 %v25920_v9  ;;  %19287 = vperm.xlu1 %25489, %v19049_v2   ;;  %v4784_v17 = vsel %vm4398_vm4, %v4774_v45, %v4783_v3  ;;  %v4793_v19 = vsel %vm4398_vm4, %v4783_v3, %v4792_v6  ;;  %v25933_v59 = vld [vmem:[%s26315_s26 + $0x198] sm:$0xff]   ;;  %v19060_v3 = vld [vmem:[%s30300_s4 + $0x120] sm:$0xff] }
 0x2db   : > { %19292 = vperm.xlu0 %25488, %v19050_v4   ;;  %v4806_v21 = vrot.slane %v4804_v7, 1  ;;  %v19059_v2 = vld [vmem:[%s30300_s4 + $0x118] sm:$0xff]  ;;  %v4858_v12 = vshrl.u32 %v25933_v59, 16 }
 0x2dd   : > { %24209 = vmatpush3.bf16.msra.mxu0 %v25920_v9  ;;  %v15026_v9 = vrot.slane %v27405_v61, 3  ;;  %v4860_v26 = vrot.slane %v4858_v12, 1  ;;  %v19071_v12 = vld [vmem:[%s30300_s4 + $0x178] sm:$0xff] }
 0x2de   : > { %24210 = vmatprep.subr.bf16.mxu0 %v25938_v24  ;;  %19297 = vperm.xlu1 %25489, %v19051_v15   ;;  %v25995_v15 = vld [vmem:[%s30297_s1 + $0x228] sm:$0xff]  }
 0x2df   : > { %23383 = vmatmul.mubr.bf16.gmra.mrb[72].mxu1 %v4748_v31  ;;  %v15027_v23 = vsel %vm15008_vm5, %v15024_v5, %v15026_v9  ;;  %19302 = vperm.xlu0 %25488, %v19052_v16   ;;  %v15028_v31 = vrot.slane %v25918_v14, 3  ;;  %v19062_v16 = vld [vmem:[%s30300_s4 + $0x130] sm:$0xff] }
 0x2e0   : > { %24075 = vmatmul.mubr.bf16.gmra.mrb[4].mxu0 %v15017_v32  ;;  %23386 = vmatprep.mubr.bf16.mxu1 %v4757_v33  ;;  %v4810_v32 = vor.u32 %v4809_v22, %v4806_v21  ;;  %v4825_v33 = vshll.u32 %v25925_v11, 16  ;;  %v4852_v11 = vshll.u32 %v25931_v58, 16  ;;  %v4861_v21 = vshll.u32 %v25933_v59, 16  ;;  %v25940_v58 = vld [vmem:[%s26315_s26 + $0xb8] sm:$0xff]  }
 0x2e1   : > { %24078 = vmatprep.mubr.bf16.mxu0 %v15019_v36  ;;  %24211 = vmatpush3.bf16.msra.mxu0 %v25938_v24  ;;  %v25922_v24 = vld [vmem:[%s26315_s26 + $0x78] sm:$0xff]   ;;  %v25927_v36 = vld [vmem:[%s26315_s26 + $0x180] sm:$0xff]   ;;  %v15029_v43 = vsel %vm15008_vm5, %v15026_v9, %v15028_v31  ;;  %v4851_v22 = vrot.slane %v4849_v10, 1 }
 0x2e2   : > { %24212 = vmatprep.subr.bf16.mxu0 %v25956_v39  ;;  %v15030_v34 = vrot.slane %v25922_v24, 3  ;;  %19307 = vperm.xlu1 %25489, %v19053_v28   ;;  %v4811_v44 = vsel %vm4398_vm4, %v4801_v29, %v4810_v32  ;;  %v4827_v45 = vrot.slane %v4825_v33, 2  ;;  %v4831_v48 = vshrl.u32 %v25927_v36, 16  ;;  %v19064_v28 = vld [vmem:[%s30300_s4 + $0x140] sm:$0xff]  ;;  %v25939_v33 = vld [vmem:[%s26315_s26 + $0x1a8] sm:$0xff]  }
 0x2e3   : > { %19312 = vperm.xlu0 %25488, %v19054_v30   ;;  %v4820_v4 = vsel %vm4398_vm4, %v4810_v32, %v4819_v51  ;;  %v4854_v24 = vrot.slane %v4852_v11, 2  ;;  %v4863_v32 = vrot.slane %v4861_v21, 2  ;;  %v25942_v10 = vld [vmem:[%s26315_s26 + $0xc0] sm:$0xff]   ;;  %v27537_v21 = vld [vmem:[%s26315_s26 + $0xc8] sm:$0xff]  }
 0x2e4   : > { %v15031_v47 = vsel %vm15008_vm5, %v15028_v31, %v15030_v34  ;;  %v4828_v54 = vor.u32 %v4827_v45, %v4824_v40  ;;  %v15042_v45 = vrot.slane %v25934_v35, 3 }
 0x2e5   : > { %24213 = vmatpush3.bf16.msra.mxu0 %v25956_v39  ;;  %v25924_v39 = vld [vmem:[%s26315_s26 + $0x80] sm:$0xff]   ;;  %v4855_v40 = vor.u32 %v4854_v24, %v4851_v22  ;;  %v19073_v24 = vld [vmem:[%s30300_s4 + $0x188] sm:$0xff] }
 0x2e6   : > { %24214 = vmatprep.subr.bf16.mxu0 %v25978_v49  ;;  %19317 = vperm.xlu1 %25489, %v19055_v41   ;;  %v15032_v53 = vrot.slane %v25924_v39, 3  ;;  %v4829_v6 = vsel %vm4398_vm4, %v4819_v51, %v4828_v54  ;;  %v19065_v39 = vld [vmem:[%s30300_s4 + $0x148] sm:$0xff]  ;;  %v19066_v41 = vld [vmem:[%s30300_s4 + $0x150] sm:$0xff]  ;;  %v19068_v51 = vld [vmem:[%s30300_s4 + $0x160] sm:$0xff] }
 0x2e7   : > { %23387 = vmatmul.mubr.bf16.gmra.mrb[76].mxu1 %v4766_v55  ;;  %19322 = vperm.xlu0 %25488, %v19056_v42   ;;  %v4840_v55 = vshrl.u32 %v25929_v46, 16  ;;  %v15040_v42 = vrot.slane %v25932_v25, 3 }
 0x2e8   : > { %24079 = vmatmul.mubr.bf16.gmra.mrb[8].mxu0 %v15021_v56  ;;  %23390 = vmatprep.mubr.bf16.mxu1 %v4775_v57  ;;  %v4843_v56 = vshll.u32 %v25929_v46, 16  ;;  %v15034_v57 = vrot.slane %v27448_v63, 3  ;;  %v15033_v5 = vsel %vm15008_vm5, %v15030_v34, %v15032_v53  ;;  %v25941_v46 = vld [vmem:[%s26315_s26 + $0x1b0] sm:$0xff]  }
 0x2e9   : > { %24082 = vmatprep.mubr.bf16.mxu0 %v15023_v60  ;;  %24215 = vmatpush3.bf16.msra.mxu0 %v25978_v49  ;;  %v4834_v49 = vshll.u32 %v25927_v36, 16  ;;  %v4833_v60 = vrot.slane %v4831_v48, 1  ;;  %v4842_v7 = vrot.slane %v4840_v55, 1  ;;  %v4885_v59 = vshrl.u32 %v25941_v46, 16 }
 0x2ea   : > { %19327 = vperm.xlu1 %25489, %v19057_v50   ;;  %v4845_v8 = vrot.slane %v4843_v56, 2  ;;  %v15035_v9 = vsel %vm15008_vm5, %v15032_v53, %v15034_v57  ;;  %24216 = vmatprep.subr.bf16.mxu0 %v25995_v15  ;;  %v19067_v50 = vld [vmem:[%s30300_s4 + $0x158] sm:$0xff] }
 0x2eb   : > { %v4836_v61 = vrot.slane %v4834_v49, 2  ;;  %19332 = vperm.xlu0 %25488, %v19058_v52   ;;  %v25936_v49 = vld [vmem:[%s26315_s26 + $0xb0] sm:$0xff]  }
 0x2ed   : > { %v4837_v14 = vor.u32 %v4836_v61, %v4833_v60  ;;  %24217 = vmatpush3.bf16.msra.mxu0 %v25995_v15  ;;  %v4888_v60 = vshll.u32 %v25941_v46, 16 }
 0x2ee   : > { %19337 = vperm.xlu1 %25489, %v19059_v2   ;;  %v19070_v2 = vld [vmem:[%s30300_s4 + $0x170] sm:$0xff] }
 0x2ef   : > { %23391 = vmatmul.mubr.bf16.gmra.mrb[80].mxu1 %v4784_v17  ;;  %19342 = vperm.xlu0 %25488, %v19060_v3   ;;  %v15036_v17 = vrot.slane %v25928_v62, 3  ;;  %v4838_v29 = vsel %vm4398_vm4, %v4828_v54, %v4837_v14  ;;  %v19069_v62 = vld [vmem:[%s30300_s4 + $0x168] sm:$0xff]  ;;  %v15044_v3 = vrot.slane %v25936_v49, 3 }
 0x2f0   : > { %24083 = vmatmul.mubr.bf16.gmra.mrb[12].mxu0 %v15025_v18  ;;  %23394 = vmatprep.mubr.bf16.mxu1 %v4793_v19  ;;  %v4846_v18 = vor.u32 %v4845_v8, %v4842_v7  ;;  %v15038_v19 = vrot.slane %v27461_v0, 3  ;;  %v4887_v7 = vrot.slane %v4885_v59, 1  ;;  %v25945_v8 = vld [vmem:[%s26315_s26 + $0x1c0] sm:$0xff]  }
 0x2f1   : > { %24086 = vmatprep.mubr.bf16.mxu0 %v15027_v23  ;;  %v25935_v23 = vld [vmem:[%s26315_s26 + $0x1a0] sm:$0xff]   ;;  %v15037_v30 = vsel %vm15008_vm5, %v15034_v57, %v15036_v17  ;;  %v15043_v57 = vsel %vm15008_vm5, %v15040_v42, %v15042_v45  ;;  %v15045_v15 = vsel %vm15008_vm5, %v15042_v45, %v15044_v3  ;;  %v4903_v22 = vshrl.u32 %v25945_v8, 16 }
 0x2f2   : > { %19347 = vperm.xlu1 %25489, %v19061_v13   ;;  %v4847_v31 = vsel %vm4398_vm4, %v4837_v14, %v4846_v18  ;;  %v15039_v34 = vsel %vm15008_vm5, %v15036_v17, %v15038_v19  ;;  %v4867_v36 = vshrl.u32 %v25935_v23, 16  ;;  %v4870_v37 = vshll.u32 %v25935_v23, 16  ;;  %v19072_v13 = vld [vmem:[%s30300_s4 + $0x180] sm:$0xff] }
 0x2f3   : > { %19352 = vperm.xlu0 %25488, %v19062_v16   ;;  %v4856_v52 = vsel %vm4398_vm4, %v4846_v18, %v4855_v40  ;;  %v15041_v53 = vsel %vm15008_vm5, %v15038_v19, %v15040_v42  ;;  %v25947_v18 = vld [vmem:[%s26315_s26 + $0x1c8] sm:$0xff]   ;;  %v4906_v23 = vshll.u32 %v25945_v8, 16  ;;  %v25950_v59 = vld [vmem:[%s26315_s26 + $0xe0] sm:$0xff]  }
 0x2f4   : > { %v4869_v63 = vrot.slane %v4867_v36, 1  ;;  %v4872_v48 = vrot.slane %v4870_v37, 2  ;;  %v25946_v36 = vld [vmem:[%s26315_s26 + $0xd0] sm:$0xff]   ;;  %v27550_v37 = vld [vmem:[%s26315_s26 + $0xd8] sm:$0xff]  }
 0x2f5   : > { %v4908_v35 = vrot.slane %v4906_v23, 2  ;;  %v25954_v23 = vld [vmem:[%s26315_s26 + $0xf0] sm:$0xff]  }
 0x2f6   : > { %19357 = vperm.xlu1 %25489, %v19063_v27   ;;  %v4873_v0 = vor.u32 %v4872_v48, %v4869_v63  ;;  %v15048_v27 = vrot.slane %v25942_v10, 3  ;;  %v19077_v48 = vld [vmem:[%s30300_s4 + $0x1a8] sm:$0xff] }
 0x2f7   : > { %23395 = vmatmul.mubr.bf16.gmra.mrb[84].mxu1 %v4802_v1  ;;  %19362 = vperm.xlu0 %25488, %v19064_v28   ;;  %v4864_v1 = vor.u32 %v4863_v32, %v4860_v26  ;;  %v19074_v26 = vld [vmem:[%s30300_s4 + $0x190] sm:$0xff]  ;;  %v19081_v10 = vld [vmem:[%s30300_s4 + $0x1c8] sm:$0xff] }
 0x2f8   : > { %24087 = vmatmul.mubr.bf16.gmra.mrb[16].mxu0 %v15029_v43  ;;  %23398 = vmatprep.mubr.bf16.mxu1 %v4811_v44  ;;  %v4876_v43 = vshrl.u32 %v25939_v33, 16  ;;  %v4879_v44 = vshll.u32 %v25939_v33, 16  ;;  %v25949_v32 = vld [vmem:[%s26315_s26 + $0x1d0] sm:$0xff]   ;;  %v25951_v33 = vld [vmem:[%s26315_s26 + $0x1d8] sm:$0xff]  }
 0x2f9   : > { %24090 = vmatprep.mubr.bf16.mxu0 %v15031_v47  ;;  %v25943_v47 = vld [vmem:[%s26315_s26 + $0x1b8] sm:$0xff]   ;;  %v4865_v54 = vsel %vm4398_vm4, %v4855_v40, %v4864_v1  ;;  %v4874_v14 = vsel %vm4398_vm4, %v4864_v1, %v4873_v0  ;;  %v19076_v40 = vld [vmem:[%s30300_s4 + $0x1a0] sm:$0xff]  ;;  %v4921_v46 = vshrl.u32 %v25949_v32, 16  ;;  %v4930_v63 = vshrl.u32 %v25951_v33, 16 }
 0x2fa   : > { %19367 = vperm.xlu1 %25489, %v19065_v39   ;;  %v4878_v55 = vrot.slane %v4876_v43, 1  ;;  %v4881_v56 = vrot.slane %v4879_v44, 2  ;;  %v4894_v61 = vshrl.u32 %v25943_v47, 16  ;;  %v19075_v39 = vld [vmem:[%s30300_s4 + $0x198] sm:$0xff] }
 0x2fb   : > { %19372 = vperm.xlu0 %25488, %v19066_v41  }
 0x2fc   : > { %v4896_v11 = vrot.slane %v4894_v61, 1  ;;  %v19079_v61 = vld [vmem:[%s30300_s4 + $0x1b8] sm:$0xff] }
 0x2fe   : > { %19377 = vperm.xlu1 %25489, %v19067_v50   ;;  %v19078_v50 = vld [vmem:[%s30300_s4 + $0x1b0] sm:$0xff] }
 0x2ff   : > { %23399 = vmatmul.mubr.bf16.gmra.mrb[88].mxu1 %v4820_v4  ;;  %19382 = vperm.xlu0 %25488, %v19068_v51   ;;  %v4882_v4 = vor.u32 %v4881_v56, %v4878_v55  ;;  %v26012_v51 = vld [vmem:[%s30297_s1 + $0x230] sm:$0xff]   ;;  %v4933_v55 = vshll.u32 %v25951_v33, 16  ;;  %v4923_v56 = vrot.slane %v4921_v46, 1  ;;  %v25960_v46 = vld [vmem:[%s26315_s26 + $0x100] sm:$0xff]  }
 0x300   : > { %24091 = vmatmul.mubr.bf16.gmra.mrb[20].mxu0 %v15033_v5  ;;  %23402 = vmatprep.mubr.bf16.mxu1 %v4829_v6  ;;  %v4897_v5 = vshll.u32 %v25943_v47, 16  ;;  %v15046_v6 = vrot.slane %v25940_v58, 3  ;;  %v4924_v47 = vshll.u32 %v25949_v32, 16  ;;  %v27606_v32 = vld [vmem:[%s26315_s26 + $0xf8] sm:$0xff]  }
 0x301   : > { %24094 = vmatprep.mubr.bf16.mxu0 %v15035_v9  ;;  %v4890_v9 = vrot.slane %v4888_v60, 2  ;;  %v4883_v16 = vsel %vm4398_vm4, %v4873_v0, %v4882_v4  ;;  %24218 = vmatprep.subr.bf16.mxu0 %v26012_v51  ;;  %v4932_v60 = vrot.slane %v4930_v63, 1  ;;  %v19087_v63 = vld [vmem:[%s30300_s4 + $0x1f8] sm:$0xff] }
 0x302   : > { %19387 = vperm.xlu1 %25489, %v19069_v62   ;;  %v4899_v17 = vrot.slane %v4897_v5, 2  ;;  %v15047_v19 = vsel %vm15008_vm5, %v15044_v3, %v15046_v6  ;;  %v15049_v42 = vsel %vm15008_vm5, %v15046_v6, %v15048_v27  ;;  %v4926_v58 = vrot.slane %v4924_v47, 2  ;;  %24219 = vmatpush3.bf16.msra.mxu0 %v26012_v51  ;;  %v19080_v62 = vld [vmem:[%s30300_s4 + $0x1c0] sm:$0xff]  ;;  %v25957_v5 = vld [vmem:[%s26315_s26 + $0x1e8] sm:$0xff]  }
 0x303   : > { %19392 = vperm.xlu0 %25488, %v19070_v2   ;;  %v4891_v25 = vor.u32 %v4890_v9, %v4887_v7  ;;  %v25952_v7 = vld [vmem:[%s26315_s26 + $0xe8] sm:$0xff]  }
 0x304   : > { %v4900_v28 = vor.u32 %v4899_v17, %v4896_v11  ;;  %v4927_v11 = vor.u32 %v4926_v58, %v4923_v56  ;;  %v15058_v17 = vrot.slane %v25952_v7, 3  ;;  %v25967_v58 = vld [vmem:[%s26315_s26 + $0x210] sm:$0xff]   ;;  %v27641_v7 = vld [vmem:[%s26315_s26 + $0x118] sm:$0xff]  }
 0x305   : > { %v4892_v41 = vsel %vm4398_vm4, %v4882_v4, %v4891_v25  ;;  %v4935_v4 = vrot.slane %v4933_v55, 2  ;;  %v27629_v55 = vld [vmem:[%s26315_s26 + $0x108] sm:$0xff]  }
 0x306   : > { %19397 = vperm.xlu1 %25489, %v19071_v12   ;;  %v4901_v1 = vsel %vm4398_vm4, %v4891_v25, %v4900_v28  ;;  %v19082_v12 = vld [vmem:[%s30300_s4 + $0x1d0] sm:$0xff]  ;;  %v19084_v25 = vld [vmem:[%s30300_s4 + $0x1e0] sm:$0xff] }
 0x307   : > { %23403 = vmatmul.mubr.bf16.gmra.mrb[92].mxu1 %v4838_v29  ;;  %19402 = vperm.xlu0 %25488, %v19072_v13   ;;  %v4912_v29 = vshrl.u32 %v25947_v18, 16  ;;  %v15056_v13 = vrot.slane %v25950_v59, 3  ;;  %v19089_v59 = vld [vmem:[%s30300_s4 + $0x208] sm:$0xff] }
 0x308   : > { %24095 = vmatmul.mubr.bf16.gmra.mrb[24].mxu0 %v15037_v30  ;;  %23406 = vmatprep.mubr.bf16.mxu1 %v4847_v31  ;;  %v4915_v30 = vshll.u32 %v25947_v18, 16  ;;  %v15050_v31 = vrot.slane %v27537_v21, 3  ;;  %v25959_v18 = vld [vmem:[%s26315_s26 + $0x1f0] sm:$0xff]  }
 0x309   : > { %24098 = vmatprep.mubr.bf16.mxu0 %v15039_v34  ;;  %v4905_v34 = vrot.slane %v4903_v22, 1  ;;  %v4914_v43 = vrot.slane %v4912_v29, 1  ;;  %v4957_v33 = vshrl.u32 %v25959_v18, 16 }
 0x30a   : > { %19407 = vperm.xlu1 %25489, %v19073_v24   ;;  %v4917_v44 = vrot.slane %v4915_v30, 2  ;;  %v15051_v45 = vsel %vm15008_vm5, %v15048_v27, %v15050_v31  ;;  %v19083_v24 = vld [vmem:[%s30300_s4 + $0x1d8] sm:$0xff] }
 0x30b   : > { %19412 = vperm.xlu0 %25488, %v19074_v26   ;;  %v4909_v49 = vor.u32 %v4908_v35, %v4905_v34  ;;  %v4960_v34 = vshll.u32 %v25959_v18, 16 }
 0x30d   : > { %v4910_v0 = vsel %vm4398_vm4, %v4900_v28, %v4909_v49 }
 0x30e   : > { %19417 = vperm.xlu1 %25489, %v19075_v39   ;;  %v19086_v39 = vld [vmem:[%s30300_s4 + $0x1f0] sm:$0xff] }
 0x30f   : > { %23407 = vmatmul.mubr.bf16.gmra.mrb[96].mxu1 %v4856_v52  ;;  %19422 = vperm.xlu0 %25488, %v19076_v40   ;;  %v15052_v52 = vrot.slane %v25946_v36, 3  ;;  %v19085_v36 = vld [vmem:[%s30300_s4 + $0x1e8] sm:$0xff]  ;;  %v15060_v40 = vrot.slane %v25954_v23, 3 }
 0x310   : > { %24099 = vmatmul.mubr.bf16.gmra.mrb[28].mxu0 %v15041_v53  ;;  %23410 = vmatprep.mubr.bf16.mxu1 %v4865_v54  ;;  %v4918_v53 = vor.u32 %v4917_v44, %v4914_v43  ;;  %v15054_v54 = vrot.slane %v27550_v37, 3  ;;  %v4959_v43 = vrot.slane %v4957_v33, 1  ;;  %v25963_v44 = vld [vmem:[%s26315_s26 + $0x200] sm:$0xff]  }
 0x311   : > { %24102 = vmatprep.mubr.bf16.mxu0 %v15043_v57  ;;  %v25953_v57 = vld [vmem:[%s26315_s26 + $0x1e0] sm:$0xff]   ;;  %v15053_v2 = vsel %vm15008_vm5, %v15050_v31, %v15052_v52  ;;  %v15059_v31 = vsel %vm15008_vm5, %v15056_v13, %v15058_v17  ;;  %v4975_v56 = vshrl.u32 %v25963_v44, 16 }
 0x312   : > { %19427 = vperm.xlu1 %25489, %v19077_v48   ;;  %v4919_v3 = vsel %vm4398_vm4, %v4909_v49, %v4918_v53  ;;  %v15055_v6 = vsel %vm15008_vm5, %v15052_v52, %v15054_v54  ;;  %v4939_v8 = vshrl.u32 %v25953_v57, 16  ;;  %v4942_v9 = vshll.u32 %v25953_v57, 16  ;;  %v19088_v48 = vld [vmem:[%s30300_s4 + $0x200] sm:$0xff] }
 0x313   : > { %19432 = vperm.xlu0 %25488, %v19078_v50   ;;  %v4928_v26 = vsel %vm4398_vm4, %v4918_v53, %v4927_v11  ;;  %v15057_v27 = vsel %vm15008_vm5, %v15054_v54, %v15056_v13  ;;  %v15061_v50 = vsel %vm15008_vm5, %v15058_v17, %v15060_v40  ;;  %v25965_v53 = vld [vmem:[%s26315_s26 + $0x208] sm:$0xff]   ;;  %v4978_v57 = vshll.u32 %v25963_v44, 16 }
 0x314   : > { %v4941_v21 = vrot.slane %v4939_v8, 1  ;;  %v4944_v22 = vrot.slane %v4942_v9, 2  ;;  %v25969_v8 = vld [vmem:[%s26315_s26 + $0x218] sm:$0xff]  }
 0x315   : > { %v4980_v9 = vrot.slane %v4978_v57, 2 }
 0x316   : > { %19437 = vperm.xlu1 %25489, %v19079_v61   ;;  %v4945_v37 = vor.u32 %v4944_v22, %v4941_v21  ;;  %v19090_v61 = vld [vmem:[%s30300_s4 + $0x210] sm:$0xff]  ;;  %v5002_v21 = vshrl.u32 %v25969_v8, 16  ;;  %v19093_v22 = vld [vmem:[%s30300_s4 + $0x228] sm:$0xff] }
 0x317   : > { %23411 = vmatmul.mubr.bf16.gmra.mrb[100].mxu1 %v4874_v14  ;;  %19442 = vperm.xlu0 %25488, %v19080_v62   ;;  %v4936_v14 = vor.u32 %v4935_v4, %v4932_v60  ;;  %v15064_v62 = vrot.slane %v25960_v46, 3  ;;  %v15066_v4 = vrot.slane %v27629_v55, 3 }
 0x318   : > { %24103 = vmatmul.mubr.bf16.gmra.mrb[32].mxu0 %v15045_v15  ;;  %23414 = vmatprep.mubr.bf16.mxu1 %v4883_v16  ;;  %v4948_v15 = vshrl.u32 %v25957_v5, 16  ;;  %v4951_v16 = vshll.u32 %v25957_v5, 16  ;;  %v4977_v5 = vrot.slane %v4975_v56, 1 }
 0x319   : > { %24106 = vmatprep.mubr.bf16.mxu0 %v15047_v19  ;;  %v25961_v19 = vld [vmem:[%s26315_s26 + $0x1f8] sm:$0xff]   ;;  %v4937_v28 = vsel %vm4398_vm4, %v4927_v11, %v4936_v14  ;;  %v4946_v49 = vsel %vm4398_vm4, %v4936_v14, %v4945_v37  ;;  %v15067_v18 = vsel %vm15008_vm5, %v15064_v62, %v15066_v4 }
 0x31a   : > { %19447 = vperm.xlu1 %25489, %v19081_v10   ;;  %v4950_v29 = vrot.slane %v4948_v15, 1  ;;  %v4953_v30 = vrot.slane %v4951_v16, 2  ;;  %v4966_v35 = vshrl.u32 %v25961_v19, 16  ;;  %v4993_v10 = vshrl.u32 %v25967_v58, 16  ;;  %v19091_v11 = vld [vmem:[%s30300_s4 + $0x218] sm:$0xff] }
 0x31b   : > { %19452 = vperm.xlu0 %25488, %v19082_v12   ;;  %v19092_v12 = vld [vmem:[%s30300_s4 + $0x220] sm:$0xff]  ;;  %v4981_v23 = vor.u32 %v4980_v9, %v4977_v5  ;;  %v25979_v9 = vld [vmem:[%s26315_s26 + $0x28] sm:$0xff]  }
 0x31c   : > { %v4968_v47 = vrot.slane %v4966_v35, 1  ;;  %v5004_v35 = vrot.slane %v5002_v21, 1  ;;  %v6647_v21 = vshll.u32 %v25979_v9, 16 }
 0x31e   : > { %19457 = vperm.xlu1 %25489, %v19083_v24  }
 0x31f   : > { %23415 = vmatmul.mubr.bf16.gmra.mrb[104].mxu1 %v4892_v41  ;;  %19462 = vperm.xlu0 %25488, %v19084_v25   ;;  %v4954_v41 = vor.u32 %v4953_v30, %v4950_v29  ;;  %v15070_v25 = vrot.slane %v27641_v7, 3  ;;  %v5005_v30 = vshll.u32 %v25969_v8, 16 }
 0x320   : > { %24107 = vmatmul.mubr.bf16.gmra.mrb[36].mxu0 %v15049_v42  ;;  %23418 = vmatprep.mubr.bf16.mxu1 %v4901_v1  ;;  %v4969_v42 = vshll.u32 %v25961_v19, 16  ;;  %v15062_v1 = vrot.slane %v27606_v32, 3  ;;  %v4996_v19 = vshll.u32 %v25967_v58, 16  ;;  %v25973_v32 = vld [vmem:[%s26315_s26 + $0x10] sm:$0xfe]   ;;  %v25976_v58 = vld [vmem:[%s26315_s26 + $0x20] sm:$0xff]  }
 0x321   : > { %24110 = vmatprep.mubr.bf16.mxu0 %v15051_v45  ;;  %v4962_v45 = vrot.slane %v4960_v34, 2  ;;  %v4955_v51 = vsel %vm4398_vm4, %v4945_v37, %v4954_v41  ;;  %v25968_v34 = vld [vmem:[%s26315_s26 + $0x120] sm:$0xff]  }
 0x322   : > { %19467 = vperm.xlu1 %25489, %v19085_v36   ;;  %v4971_v52 = vrot.slane %v4969_v42, 2  ;;  %v15063_v54 = vsel %vm15008_vm5, %v15060_v40, %v15062_v1  ;;  %v15065_v14 = vsel %vm15008_vm5, %v15062_v1, %v15064_v62  ;;  %v4998_v33 = vrot.slane %v4996_v19, 2  ;;  %v19095_v36 = vld [vmem:[%s30300_s4 + $0x238] sm:$0xff]  ;;  %v19096_v37 = vld [vmem:[%s30300_s4 + $0x240] sm:$0xff]  ;;  %v27675_v40 = vld [vmem:[%s26315_s26 + $0x128] sm:$0xff]  }
 0x323   : > { %19472 = vperm.xlu0 %25488, %v19086_v39   ;;  %v4963_v60 = vor.u32 %v4962_v45, %v4959_v43  ;;  %v5007_v1 = vrot.slane %v5005_v30, 2  ;;  %v25974_v43 = vld [vmem:[%s26315_s26 + $0x18] sm:$0xff]   ;;  %v15074_v55 = vrot.slane %v27675_v40, 3  ;;  %v6644_v19 = vshrl.u32 %v25979_v9, 16  ;;  %v27727_v40 = vpop.permute.xlu0 %19162 }
 0x324   : > { %v27691_v62 = vld [vmem:[%s26315_s26 + $0x138] sm:$0xff]  }
 0x325   : > { %v4964_v13 = vsel %vm4398_vm4, %v4954_v41, %v4963_v60 }
 0x326   : > { %19477 = vperm.xlu1 %25489, %v19087_v63   ;;  %v6621_v63 = vshll.u32 %v25973_v32, 16 }
 0x327   : > { %23419 = vmatmul.mubr.bf16.gmra.mrb[108].mxu1 %v4910_v0  ;;  %19482 = vperm.xlu0 %25488, %v19088_v48   ;;  %v4972_v0 = vor.u32 %v4971_v52, %v4968_v47  ;;  %v6618_v47 = vshrl.u32 %v25973_v32, 16  ;;  %v19097_v48 = vld [vmem:[%s30300_s4 + $0x248] sm:$0xff]  ;;  %v5008_v52 = vor.u32 %v5007_v1, %v5004_v35  ;;  %v6649_v35 = vrot.slane %v6647_v21, 2  ;;  %v19106_v1 = vld [vmem:[%s30300_s4 + $0x290] sm:$0xff]  ;;  %v25986_v21 = vld [vmem:[%s26315_s26 + $0x160] sm:$0xff]  }
 0x328   : > { %24111 = vmatmul.mubr.bf16.gmra.mrb[40].mxu0 %v15053_v2  ;;  %23422 = vmatprep.mubr.bf16.mxu1 %v4919_v3  ;;  %v4984_v2 = vshrl.u32 %v25965_v53, 16  ;;  %v4987_v3 = vshll.u32 %v25965_v53, 16  ;;  %v6626_v53 = vshrl.u32 %v25974_v43, 16  ;;  %v27724_v32 = vld [vmem:[%s26315_s26 + $0x148] sm:$0xff]  }
 0x329   : > { %24114 = vmatprep.mubr.bf16.mxu0 %v15055_v6  ;;  %v25964_v6 = vld [vmem:[%s26315_s26 + $0x110] sm:$0xff]   ;;  %v4973_v15 = vsel %vm4398_vm4, %v4963_v60, %v4972_v0  ;;  %v4982_v39 = vsel %vm4398_vm4, %v4972_v0, %v4981_v23  ;;  %v6620_v60 = vrot.slane %v6618_v47, 1  ;;  %v19099_v0 = vld [vmem:[%s30300_s4 + $0x258] sm:$0xff]  ;;  %v27736_v47 = vpop.permute.xlu1 %19172 }
 0x32a   : > { %19487 = vperm.xlu1 %25489, %v19089_v59   ;;  %v4986_v16 = vrot.slane %v4984_v2, 1  ;;  %v4989_v17 = vrot.slane %v4987_v3, 2  ;;  %v15068_v24 = vrot.slane %v25964_v6, 3  ;;  %v25972_v59 = vld [vmem:[%s26315_s26 + $0x130] sm:$0xff]   ;;  %v19100_v2 = vld [vmem:[%s30300_s4 + $0x260] sm:$0xff]  ;;  %v6628_v6 = vrot.slane %v6626_v53, 1 }
 0x32b   : > { %19492 = vperm.xlu0 %25488, %v19090_v61   ;;  %v6623_v61 = vrot.slane %v6621_v63, 2  ;;  %v19108_v53 = vld [vmem:[%s30300_s4 + $0x2a0] sm:$0xff] }
 0x32c   : > { %v4990_v29 = vor.u32 %v4989_v17, %v4986_v16  ;;  %v15069_v41 = vsel %vm15008_vm5, %v15066_v4, %v15068_v24  ;;  %v15071_v44 = vsel %vm15008_vm5, %v15068_v24, %v15070_v25 }
 0x32d   : > { %v6624_v16 = vor.u32 %v6623_v61, %v6620_v60  ;;  %v27754_v61 = vld [vmem:[%s26315_s26 + $0x158] sm:$0xff]  }
 0x32e   : > { %19497 = vperm.xlu1 %25489, %v19091_v11   ;;  %v4991_v42 = vsel %vm4398_vm4, %v4981_v23, %v4990_v29  ;;  %v6638_v11 = vshll.u32 %v25976_v58, 16  ;;  %v25983_v23 = vld [vmem:[%s26315_s26 + $0x38] sm:$0xff]  }
 0x32f   : > { %23423 = vmatmul.mubr.bf16.gmra.mrb[112].mxu1 %v4928_v26  ;;  %19502 = vperm.xlu0 %25488, %v19092_v12   ;;  %v4995_v26 = vrot.slane %v4993_v10, 1  ;;  %v6635_v10 = vshrl.u32 %v25976_v58, 16  ;;  %v19101_v12 = vld [vmem:[%s30300_s4 + $0x268] sm:$0xff]  ;;  %v27749_v58 = vpop.permute.xlu0 %19167 }
 0x330   : > { %24115 = vmatmul.mubr.bf16.gmra.mrb[44].mxu0 %v15057_v27  ;;  %23426 = vmatprep.mubr.bf16.mxu1 %v4937_v28  ;;  %v19094_v27 = vld [vmem:[%s30300_s4 + $0x230] sm:$0xff]  ;;  %v26029_v28 = vld [vmem:[%s30297_s1 + $0x238] sm:$0xff]  }
 0x331   : > { %24118 = vmatprep.mubr.bf16.mxu0 %v15059_v31  ;;  %v25971_v31 = vld [vmem:[%s26315_s26 + $0x220] ss:$0 sps:$4 sm:$0x33]   ;;  %24220 = vmatprep.subr.bf16.mxu0 %v26029_v28  ;;  %v6637_v24 = vrot.slane %v6635_v10, 1 }
 0x332   : > { %19507 = vperm.xlu1 %25489, %v19093_v22   ;;  %24221 = vmatpush3.bf16.msra.mxu0 %v26029_v28  ;;  %v5011_v45 = vshrl.u32 %v25971_v31, 16  ;;  %v5014_v46 = vshll.u32 %v25971_v31, 16  ;;  %v25981_v22 = vld [vmem:[%s26315_s26 + $0x30] sm:$0xff]   ;;  %v19104_v28 = vld [vmem:[%s30300_s4 + $0x280] sm:$0xff] }
 0x333   : > { %19512 = vperm.xlu0 %25488, %v19094_v27   ;;  %v19103_v27 = vld [vmem:[%s30300_s4 + $0x278] sm:$0xff] }
 0x334   : > { %v5013_v56 = vrot.slane %v5011_v45, 1  ;;  %v5016_v57 = vrot.slane %v5014_v46, 2  ;;  %v15082_v46 = vrot.slane %v27724_v32, 3 }
 0x336   : > { %19517 = vperm.xlu1 %25489, %v19095_v36   ;;  %v6653_v36 = vshrl.u32 %v25981_v22, 16 }
 0x337   : > { %23427 = vmatmul.mubr.bf16.gmra.mrb[116].mxu1 %v4946_v49  ;;  %19522 = vperm.xlu0 %25488, %v19096_v37   ;;  %v4999_v49 = vor.u32 %v4998_v33, %v4995_v26  ;;  %v25977_v26 = vld [vmem:[%s26315_s26 + $0x140] sm:$0xff]   ;;  %v6656_v37 = vshll.u32 %v25981_v22, 16 }
 0x338   : > { %24119 = vmatmul.mubr.bf16.gmra.mrb[48].mxu0 %v15061_v50  ;;  %23430 = vmatprep.mubr.bf16.mxu1 %v4955_v51  ;;  %v19098_v50 = vld [vmem:[%s30300_s4 + $0x250] sm:$0xff]  ;;  %v15072_v51 = vrot.slane %v25968_v34, 3  ;;  %v6646_v34 = vrot.slane %v6644_v19, 1  ;;  %v6655_v63 = vrot.slane %v6653_v36, 1  ;;  %v19112_v22 = vld [vmem:[%s30300_s4 + $0x2c0] sm:$0xff] }
 0x339   : > { %24122 = vmatprep.mubr.bf16.mxu0 %v15063_v54  ;;  %v6629_v54 = vshll.u32 %v25974_v43, 16  ;;  %v5000_v3 = vsel %vm4398_vm4, %v4990_v29, %v4999_v49  ;;  %v5009_v5 = vsel %vm4398_vm4, %v4999_v49, %v5008_v52  ;;  %v15080_v43 = vrot.slane %v25977_v26, 3  ;;  %v25982_v49 = vld [vmem:[%s26315_s26 + $0x150] sm:$0xff]  }
 0x33a   : > { %19527 = vperm.xlu1 %25489, %v19097_v48   ;;  %v15073_v4 = vsel %vm15008_vm5, %v15070_v25, %v15072_v51  ;;  %v15075_v8 = vsel %vm15008_vm5, %v15072_v51, %v15074_v55  ;;  %v6640_v25 = vrot.slane %v6638_v11, 2  ;;  %v6650_v45 = vor.u32 %v6649_v35, %v6646_v34  ;;  %v25985_v51 = vld [vmem:[%s26315_s26 + $0x40] sm:$0xff]   ;;  %v19113_v34 = vld [vmem:[%s30300_s4 + $0x2c8] sm:$0xff] }
 0x33b   : > { %19532 = vperm.xlu0 %25488, %v19098_v50   ;;  %v6631_v7 = vrot.slane %v6629_v54, 2  ;;  %v6658_v48 = vrot.slane %v6656_v37, 2  ;;  %v15083_v60 = vsel %vm15008_vm5, %v15080_v43, %v15082_v46  ;;  %v15086_v11 = vrot.slane %v27754_v61, 3  ;;  %v19114_v37 = vld [vmem:[%s30300_s4 + $0x2d0] sm:$0xff]  ;;  %v26191_v61 = vld [vmem:[%s30297_s1 + $0x120] sm:$0xff]  }
 0x33d   : > { %v6632_v17 = vor.u32 %v6631_v7, %v6628_v6  ;;  %v19110_v6 = vld [vmem:[%s30300_s4 + $0x2b0] sm:$0xff]  ;;  %v15084_v7 = vrot.slane %v25982_v49, 3  ;;  %v25996_v49 = vld [vmem:[%s26315_s26 + $0x68] sm:$0xff]  }
 0x33e   : > { %19537 = vperm.xlu1 %25489, %v19099_v0   ;;  %v26187_v0 = vld [vmem:[%s30297_s1 + $0x100] sm:$0xff]  }
 0x33f   : > { %23431 = vmatmul.mubr.bf16.gmra.mrb[120].mxu1 %v4964_v13  ;;  %19542 = vperm.xlu0 %25488, %v19100_v2   ;;  %v5017_v13 = vor.u32 %v5016_v57, %v5013_v56  ;;  %v6633_v31 = vsel %vm4398_vm4, %v6624_v16, %v6632_v17  ;;  %v25987_v57 = vld [vmem:[%s26315_s26 + $0x48] sm:$0xff]   ;;  %v6659_v2 = vor.u32 %v6658_v48, %v6655_v63  ;;  %v19111_v16 = vld [vmem:[%s30300_s4 + $0x2b8] sm:$0xff]  ;;  %v25990_v63 = vld [vmem:[%s26315_s26 + $0x170] sm:$0xff]  }
 0x340   : > { %24123 = vmatmul.mubr.bf16.gmra.mrb[52].mxu0 %v15065_v14  ;;  %23434 = vmatprep.mubr.bf16.mxu1 %v4973_v15  ;;  %v19102_v14 = vld [vmem:[%s30300_s4 + $0x270] sm:$0xff]  ;;  %v15076_v15 = vrot.slane %v25972_v59, 3  ;;  %v6680_v9 = vshrl.u32 %v25987_v57, 16  ;;  %v6683_v10 = vshll.u32 %v25987_v57, 16 }
 0x341   : > { %24126 = vmatprep.mubr.bf16.mxu0 %v15067_v18  ;;  %v15078_v18 = vrot.slane %v27691_v62, 3  ;;  %v5018_v29 = vsel %vm4398_vm4, %v5008_v52, %v5017_v13  ;;  %v19107_v52 = vld [vmem:[%s30300_s4 + $0x298] sm:$0xff]  ;;  %v19109_v62 = vld [vmem:[%s30300_s4 + $0x2a8] sm:$0xff] }
 0x342   : > { %19547 = vperm.xlu1 %25489, %v19101_v12   ;;  %v15077_v30 = vsel %vm15008_vm5, %v15074_v55, %v15076_v15  ;;  %v25989_v12 = vld [vmem:[%s26315_s26 + $0x50] sm:$0xff]   ;;  %v26188_v13 = vld [vmem:[%s30297_s1 + $0x108] sm:$0xff]   ;;  %v6685_v26 = vrot.slane %v6683_v10, 2 }
 0x343   : > { %19552 = vperm.xlu0 %25488, %v19102_v14   ;;  %v15079_v33 = vsel %vm15008_vm5, %v15076_v15, %v15078_v18  ;;  %v15081_v55 = vsel %vm15008_vm5, %v15078_v18, %v15080_v43  ;;  %v25991_v14 = vld [vmem:[%s26315_s26 + $0x58] sm:$0xff]   ;;  %v27773_v15 = vpop.permute.xlu0 %19182  ;;  %v6692_v32 = vshll.u32 %v25989_v12, 16 }
 0x344   : > { %v6701_v36 = vshll.u32 %v25991_v14, 16 }
 0x346   : > { %19557 = vperm.xlu1 %25489, %v19103_v27   ;;  %v26189_v27 = vld [vmem:[%s30297_s1 + $0x110] sm:$0xff]  }
 0x347   : > { %23435 = vmatmul.mubr.bf16.gmra.mrb[124].mxu1 %v4982_v39  ;;  %v6662_v39 = vshrl.u32 %v25983_v23, 16  ;;  %19562 = vperm.xlu0 %25488, %v19104_v28   ;;  %v15087_v28 = vsel %vm15008_vm5, %v15084_v7, %v15086_v11 }
 0x348   : > { %24127 = vmatmul.mubr.bf16.gmra.mrb[56].mxu0 %v15069_v41  ;;  %23438 = vmatprep.mubr.bf16.mxu1 %v4991_v42  ;;  %v19105_v41 = vld [vmem:[%s30300_s4 + $0x288] sm:$0xff]  ;;  %v6641_v42 = vor.u32 %v6640_v25, %v6637_v24  ;;  %v6682_v25 = vrot.slane %v6680_v9, 1 }
 0x349   : > { %24130 = vmatprep.mubr.bf16.mxu0 %v15071_v44  ;;  %v6665_v44 = vshll.u32 %v25983_v23, 16  ;;  %v6664_v50 = vrot.slane %v6662_v39, 1  ;;  %v15085_v23 = vsel %vm15008_vm5, %v15082_v46, %v15084_v7  ;;  %v15088_v39 = vrot.slane %v25986_v21, 3  ;;  %v19118_v7 = vld [vmem:[%s30300_s4 + $0x2f0] sm:$0xff]  ;;  %v19119_v21 = vld [vmem:[%s30300_s4 + $0x2f8] sm:$0xff] }
 0x34a   : > { %19567 = vperm.xlu1 %25489, %v19105_v41   ;;  %v6642_v54 = vsel %vm4398_vm4, %v6632_v17, %v6641_v42  ;;  %v6651_v59 = vsel %vm4398_vm4, %v6641_v42, %v6650_v45  ;;  %v6660_v17 = vsel %vm4398_vm4, %v6650_v45, %v6659_v2  ;;  %v6686_v41 = vor.u32 %v6685_v26, %v6682_v25  ;;  %v27800_v42 = vpop.permute.xlu0 %19192  ;;  %v26190_v45 = vld [vmem:[%s30297_s1 + $0x118] sm:$0xff]  }
 0x34b   : > { %19572 = vperm.xlu0 %25488, %v19106_v1   ;;  %v6667_v56 = vrot.slane %v6665_v44, 2  ;;  %v25993_v44 = vld [vmem:[%s26315_s26 + $0x60] sm:$0xff]   ;;  %v6694_v46 = vrot.slane %v6692_v32, 2  ;;  %v26193_v32 = vld [vmem:[%s30297_s1 + $0x130] sm:$0xff]  }
 0x34e   : > { %19577 = vperm.xlu1 %25489, %v19107_v52   ;;  %v6703_v52 = vrot.slane %v6701_v36, 2 }
 0x34f   : > { %23439 = vmatmul.mubr.bf16.gmra.mrb[128].mxu1 %v5000_v3  ;;  %19582 = vperm.xlu0 %25488, %v19108_v53   ;;  %v6671_v3 = vshrl.u32 %v25985_v51, 16 }
 0x350   : > { %24131 = vmatmul.mubr.bf16.gmra.mrb[60].mxu0 %v15073_v4  ;;  %23442 = vmatprep.mubr.bf16.mxu1 %v5009_v5  ;;  %v6674_v4 = vshll.u32 %v25985_v51, 16  ;;  %v27762_v5 = vpop.permute.xlu1 %19177 }
 0x351   : > { %24134 = vmatprep.mubr.bf16.mxu0 %v15075_v8  ;;  %v6668_v8 = vor.u32 %v6667_v56, %v6664_v50  ;;  %v6673_v18 = vrot.slane %v6671_v3, 1  ;;  %v19115_v50 = vld [vmem:[%s30300_s4 + $0x2d8] sm:$0xff]  ;;  %v19117_v3 = vld [vmem:[%s30300_s4 + $0x2e8] sm:$0xff] }
 0x352   : > { %19587 = vperm.xlu1 %25489, %v19109_v62   ;;  %v6676_v19 = vrot.slane %v6674_v4, 2  ;;  %v6710_v62 = vshll.u32 %v25993_v44, 16 }
 0x353   : > { %19592 = vperm.xlu0 %25488, %v19110_v6   ;;  %v6669_v24 = vsel %vm4398_vm4, %v6659_v2, %v6668_v8  ;;  %v27827_v2 = vpop.permute.xlu0 %19202  ;;  %v6719_v6 = vshll.u32 %v25996_v49, 16 }
 0x354   : > { %v6677_v35 = vor.u32 %v6676_v19, %v6673_v18  ;;  %30303 = vst [vmem:[#allocation3_spill] sm:$0xff] %v27827_v2  ;;  %v26000_v19 = vld [vmem:[%s26315_s26 + $0x78] sm:$0xff]  }
 0x356   : > { %19597 = vperm.xlu1 %25489, %v19111_v16   ;;  %v6678_v51 = vsel %vm4398_vm4, %v6668_v8, %v6677_v35  ;;  %v6687_v56 = vsel %vm4398_vm4, %v6677_v35, %v6686_v41  ;;  %v15092_v8 = vrot.slane %v25990_v63, 3  ;;  %v6712_v16 = vrot.slane %v6710_v62, 2  ;;  %v19121_v35 = vld [vmem:[%s30300_s4 + $0x308] sm:$0xff]  ;;  %v26194_v63 = vld [vmem:[%s30297_s1 + $0x138] sm:$0xff]  }
 0x357   : > { %23443 = vmatmul.mubr.bf16.gmra.mrb[132].mxu1 %v5018_v29  ;;  %v27790_v29 = vld [vmem:[%s26315_s26 + $0x168] sm:$0xff]   ;;  %19602 = vperm.xlu0 %25488, %v19112_v22   ;;  %v27890_v62 = vld [vmem:[%s26315_s26 + $0x198] sm:$0xff]  }
 0x358   : > { %24135 = vmatmul.mubr.bf16.gmra.mrb[64].mxu0 %v15077_v30  ;;  %23462 = vmatprep.mubr.bf16.mxu1 %v6633_v31  ;;  %v6689_v30 = vshrl.u32 %v25989_v12, 16  ;;  %v27792_v31 = vpop.permute.xlu1 %19187  ;;  %v15090_v1 = vrot.slane %v27790_v29, 3  ;;  %v25998_v12 = vld [vmem:[%s26315_s26 + $0x70] sm:$0xff]   ;;  %v27857_v29 = vld [vmem:[%s26315_s26 + $0x188] sm:$0xff]  }
 0x359   : > { %24138 = vmatprep.mubr.bf16.mxu0 %v15079_v33  ;;  %v6698_v33 = vshrl.u32 %v25991_v14, 16  ;;  %v26192_v14 = vld [vmem:[%s30297_s1 + $0x128] sm:$0xff]  }
 0x35a   : > { %v6691_v43 = vrot.slane %v6689_v30, 1  ;;  %19607 = vperm.xlu1 %25489, %v19113_v34   ;;  %v15091_v57 = vsel %vm15008_vm5, %v15088_v39, %v15090_v1  ;;  %v15093_v25 = vsel %vm15008_vm5, %v15090_v1, %v15092_v8  ;;  %v6725_v30 = vshrl.u32 %v25998_v12, 16 }
 0x35b   : > { %v6700_v48 = vrot.slane %v6698_v33, 1  ;;  %19612 = vperm.xlu0 %25488, %v19114_v37   ;;  %v6728_v33 = vshll.u32 %v25998_v12, 16  ;;  %v6734_v34 = vshrl.u32 %v26000_v19, 16  ;;  %v6737_v37 = vshll.u32 %v26000_v19, 16 }
 0x35c   : > { %v27813_v53 = vpop.permute.xlu1 %19197  ;;  %v6695_v4 = vor.u32 %v6694_v46, %v6691_v43  ;;  %v26002_v46 = vld [vmem:[%s26315_s26 + $0x80] sm:$0xff]  }
 0x35d   : > { %v6704_v9 = vor.u32 %v6703_v52, %v6700_v48  ;;  %v6730_v48 = vrot.slane %v6728_v33, 2 }
 0x35e   : > { %19617 = vperm.xlu1 %25489, %v19115_v50   ;;  %v6696_v22 = vsel %vm4398_vm4, %v6686_v41, %v6695_v4  ;;  %v19122_v41 = vld [vmem:[%s30300_s4 + $0x310] sm:$0xff]  ;;  %v6736_v50 = vrot.slane %v6734_v34, 1  ;;  %v27919_v34 = vld [vmem:[%s26315_s26 + $0x1a8] sm:$0xff]  }
 0x35f   : > { %23463 = vmatmul.mubr.bf16.vlgmr.msra.gmra.mrb[0].mxu1 %v6642_v54  ;;  %v19116_v54 = vld [vmem:[%s30300_s4 + $0x2e0] sm:$0xff]  ;;  %v6705_v26 = vsel %vm4398_vm4, %v6695_v4, %v6704_v9  ;;  %v6746_v4 = vshll.u32 %v26002_v46, 16 }
 0x360   : > { %24139 = vmatmul.mubr.bf16.gmra.mrb[68].mxu0 %v15081_v55  ;;  %24366 = vmatpush3.bf16.msra.mxu1 %v26187_v0  ;;  %v15089_v55 = vsel %vm15008_vm5, %v15086_v11, %v15088_v39  ;;  %v6716_v0 = vshrl.u32 %v25996_v49, 16  ;;  %v25999_v49 = vld [vmem:[%s26315_s26 + $0x190] sm:$0xff]  }
 0x361   : > { %23466 = vmatprep.mubr.bf16.mxu1 %v6651_v59  ;;  %24142 = vmatprep.mubr.bf16.mxu0 %v15083_v60  ;;  %v27822_v59 = vld [vmem:[%s26315_s26 + $0x178] sm:$0xff]   ;;  %v6707_v60 = vshrl.u32 %v25993_v44, 16  ;;  %v15098_v44 = vrot.slane %v27857_v29, 3  ;;  %v6748_v19 = vrot.slane %v6746_v4, 2  ;;  %v19128_v29 = vld [vmem:[%s30300_s4 + $0x340] sm:$0xff] }
 0x362   : > { %24359 = vmatprep.subr.bf16.mxu1 %v26188_v13  ;;  %19622 = vperm.xlu0 %25488, %v19116_v54   ;;  %v15094_v10 = vrot.slane %v27822_v59, 3  ;;  %v6718_v18 = vrot.slane %v6716_v0, 1  ;;  %v19123_v54 = vld [vmem:[%s30300_s4 + $0x318] sm:$0xff]  ;;  %v6743_v0 = vshrl.u32 %v26002_v46, 16 }
 0x363   : > { %v6709_v11 = vrot.slane %v6707_v60, 1  ;;  %19627 = vperm.xlu1 %25489, %v19117_v3  }
 0x364   : > { %24367 = vmatpush3.bf16.msra.mxu1 %v26188_v13  ;;  %v27837_v13 = vpop.permute.xlu1 %19207 }
 0x365   : > { %24360 = vmatprep.subr.bf16.mxu1 %v26189_v27  ;;  %30304 = vst [vmem:[#allocation4_spill] sm:$0xff] %v27837_v13  ;;  %v6713_v36 = vor.u32 %v6712_v16, %v6709_v11  ;;  %v15100_v11 = vrot.slane %v25999_v49, 3  ;;  %v15102_v16 = vrot.slane %v27890_v62, 3  ;;  %v19132_v62 = vld [vmem:[%s30300_s4 + $0x360] sm:$0xff] }
 0x366   : > { %19632 = vperm.xlu0 %25488, %v19118_v7   ;;  %v19125_v7 = vld [vmem:[%s30300_s4 + $0x328] sm:$0xff] }
 0x367   : > { %23467 = vmatmul.mubr.bf16.gmra.mrb[4].mxu1 %v6660_v17  ;;  %v25994_v17 = vld [vmem:[%s26315_s26 + $0x180] sm:$0xff]   ;;  %19637 = vperm.xlu1 %25489, %v19119_v21   ;;  %v15103_v33 = vsel %vm15008_vm5, %v15100_v11, %v15102_v16 }
 0x368   : > { %24143 = vmatmul.mubr.bf16.gmra.mrb[72].mxu0 %v15085_v23  ;;  %23470 = vmatprep.mubr.bf16.mxu1 %v6669_v24  ;;  %v6721_v23 = vrot.slane %v6719_v6, 2  ;;  %v19120_v24 = vld [vmem:[%s30300_s4 + $0x300] sm:$0xff]  ;;  %v27865_v39 = vpop.permute.xlu1 %19217  ;;  %v15096_v1 = vrot.slane %v25994_v17, 3  ;;  %v6745_v17 = vrot.slane %v6743_v0, 1 }
 0x369   : > { %24146 = vmatprep.mubr.bf16.mxu0 %v15087_v28  ;;  %24368 = vmatpush3.bf16.msra.mxu1 %v26189_v27  ;;  %v27853_v27 = vpop.permute.xlu0 %19212  ;;  %v15095_v28 = vsel %vm15008_vm5, %v15092_v8, %v15094_v10  ;;  %30306 = vst [vmem:[#allocation6_spill] sm:$0xff] %v27865_v39  ;;  %v26003_v21 = vld [vmem:[%s26315_s26 + $0x1a0] sm:$0xff]  }
 0x36a   : > { %24361 = vmatprep.subr.bf16.mxu1 %v26190_v45  ;;  %30305 = vst [vmem:[#allocation5_spill] sm:$0xff] %v27853_v27  ;;  %19642 = vperm.xlu0 %25488, %v19120_v24   ;;  %v6722_v43 = vor.u32 %v6721_v23, %v6718_v18  ;;  %v15097_v59 = vsel %vm15008_vm5, %v15094_v10, %v15096_v1  ;;  %v19126_v10 = vld [vmem:[%s30300_s4 + $0x330] sm:$0xff]  ;;  %v26008_v23 = vld [vmem:[%s26315_s26 + $0x98] sm:$0xff]   ;;  %v15104_v46 = vrot.slane %v26003_v21, 3 }
 0x36b   : > { %19647 = vperm.xlu1 %25489, %v19121_v35   ;;  %v26006_v18 = vld [vmem:[%s26315_s26 + $0x90] sm:$0xff]   ;;  %v19127_v24 = vld [vmem:[%s30300_s4 + $0x338] sm:$0xff] }
 0x36c   : > { %v6723_v60 = vsel %vm4398_vm4, %v6713_v36, %v6722_v43  ;;  %v27892_v3 = vpop.permute.xlu1 %19227  ;;  %v6761_v35 = vshrl.u32 %v26006_v18, 16  ;;  %v15105_v0 = vsel %vm15008_vm5, %v15102_v16, %v15104_v46 }
 0x36d   : > { %24369 = vmatpush3.bf16.msra.mxu1 %v26190_v45  ;;  %v6727_v45 = vrot.slane %v6725_v30, 1  ;;  %v27877_v52 = vpop.permute.xlu0 %19222  ;;  %30308 = vst [vmem:[#allocation8_spill] sm:$0xff] %v27892_v3  ;;  %v15101_v30 = vsel %vm15008_vm5, %v15098_v44, %v15100_v11  ;;  %v26116_v3 = vld [vmem:[%s26315_s26 + $0x138] sm:$0xff]  }
 0x36e   : > { %24362 = vmatprep.subr.bf16.mxu1 %v26191_v61  ;;  %30307 = vst [vmem:[#allocation7_spill] sm:$0xff] %v27877_v52  ;;  %19652 = vperm.xlu0 %25488, %v19122_v41   ;;  %v6763_v49 = vrot.slane %v6761_v35, 1 }
 0x36f   : > { %23471 = vmatmul.mubr.bf16.gmra.mrb[8].mxu1 %v6678_v51  ;;  %v26004_v51 = vld [vmem:[%s26315_s26 + $0x88] sm:$0xff]   ;;  %19657 = vperm.xlu1 %25489, %v19123_v54   ;;  %v6731_v8 = vor.u32 %v6730_v48, %v6727_v45  ;;  %v19130_v45 = vld [vmem:[%s30300_s4 + $0x350] sm:$0xff]  ;;  %v15106_v48 = vrot.slane %v27919_v34, 3  ;;  %v19135_v34 = vld [vmem:[%s30300_s4 + $0x378] sm:$0xff] }
 0x370   : > { %24147 = vmatmul.mubr.bf16.gmra.mrb[76].mxu0 %v15089_v55  ;;  %23474 = vmatprep.mubr.bf16.mxu1 %v6687_v56  ;;  %v6714_v55 = vsel %vm4398_vm4, %v6704_v9, %v6713_v36  ;;  %v6739_v56 = vrot.slane %v6737_v37, 2  ;;  %v6752_v6 = vshrl.u32 %v26004_v51, 16  ;;  %v6755_v9 = vshll.u32 %v26004_v51, 16 }
 0x371   : > { %24150 = vmatprep.mubr.bf16.mxu0 %v15091_v57  ;;  %24370 = vmatpush3.bf16.msra.mxu1 %v26191_v61  ;;  %v19124_v57 = vld [vmem:[%s30300_s4 + $0x320] sm:$0xff]  ;;  %v15099_v61 = vsel %vm15008_vm5, %v15096_v1, %v15098_v44  ;;  %v6764_v36 = vshll.u32 %v26006_v18, 16  ;;  %v6770_v37 = vshrl.u32 %v26008_v23, 16  ;;  %v19129_v1 = vld [vmem:[%s30300_s4 + $0x348] sm:$0xff]  ;;  %v6773_v44 = vshll.u32 %v26008_v23, 16 }
 0x372   : > { %24363 = vmatprep.subr.bf16.mxu1 %v26192_v14  ;;  %19662 = vperm.xlu0 %25488, %v19124_v57   ;;  %v6740_v12 = vor.u32 %v6739_v56, %v6736_v50  ;;  %v26010_v50 = vld [vmem:[%s26315_s26 + $0xa0] sm:$0xff]   ;;  %v26013_v57 = vld [vmem:[%s26315_s26 + $0xa8] sm:$0xff]  }
 0x373   : > { %19667 = vperm.xlu1 %25489, %v19125_v7   ;;  %v6766_v54 = vrot.slane %v6764_v36, 2  ;;  %v6772_v56 = vrot.slane %v6770_v37, 1  ;;  %v15107_v7 = vsel %vm15008_vm5, %v15104_v46, %v15106_v48  ;;  %v6788_v11 = vshrl.u32 %v26013_v57, 16  ;;  %v19136_v37 = vld [vmem:[%s30300_s4 + $0x380] sm:$0xff] }
 0x375   : > { %24371 = vmatpush3.bf16.msra.mxu1 %v26192_v14  ;;  %v27900_v14 = vpop.permute.xlu0 %19232  ;;  %v6767_v16 = vor.u32 %v6766_v54, %v6763_v49  ;;  %v19138_v54 = vld [vmem:[%s30300_s4 + $0x390] sm:$0xff] }
 0x376   : > { %24364 = vmatprep.subr.bf16.mxu1 %v26193_v32  ;;  %30309 = vst [vmem:[#allocation9_spill] sm:$0xff] %v27900_v14  ;;  %19672 = vperm.xlu0 %25488, %v19126_v10   ;;  %v6782_v10 = vshll.u32 %v26010_v50, 16  ;;  %v26166_v14 = vld [vmem:[%s26315_s26 + $0x200] sm:$0xff]  }
 0x377   : > { %23475 = vmatmul.mubr.bf16.gmra.mrb[12].mxu1 %v6696_v22  ;;  %v6754_v22 = vrot.slane %v6752_v6, 1  ;;  %19677 = vperm.xlu1 %25489, %v19127_v24  }
 0x378   : > { %24151 = vmatmul.mubr.bf16.gmra.mrb[80].mxu0 %v15093_v25  ;;  %23478 = vmatprep.mubr.bf16.mxu1 %v6705_v26  ;;  %v6732_v25 = vsel %vm4398_vm4, %v6722_v43, %v6731_v8  ;;  %v6757_v26 = vrot.slane %v6755_v9, 2  ;;  %v6749_v43 = vor.u32 %v6748_v19, %v6745_v17  ;;  %v6779_v9 = vshrl.u32 %v26010_v50, 16  ;;  %v19134_v19 = vld [vmem:[%s30300_s4 + $0x370] sm:$0xff] }
 0x379   : > { %24154 = vmatprep.mubr.bf16.mxu0 %v15095_v28  ;;  %24372 = vmatpush3.bf16.msra.mxu1 %v26193_v32  ;;  %v27910_v28 = vpop.permute.xlu1 %19237  ;;  %v6741_v32 = vsel %vm4398_vm4, %v6731_v8, %v6740_v12  ;;  %v27921_v41 = vpop.permute.xlu0 %19242  ;;  %v27948_v8 = vld [vmem:[%s26315_s26 + $0x1b8] sm:$0xff]   ;;  %v6791_v17 = vshll.u32 %v26013_v57, 16 }
 0x37a   : > { %24365 = vmatprep.subr.bf16.mxu1 %v26194_v63  ;;  %30310 = vst [vmem:[#allocation10_spill] sm:$0xff] %v27910_v28  ;;  %30311 = vst [vmem:[#allocation11_spill] sm:$0xff] %v27921_v41  ;;  %19682 = vperm.xlu0 %25488, %v19128_v29   ;;  %v15110_v23 = vrot.slane %v27948_v8, 3  ;;  %v6781_v24 = vrot.slane %v6779_v9, 1  ;;  %v26011_v29 = vld [vmem:[%s26315_s26 + $0x1c0] sm:$0xff]  }
 0x37b   : > { %19687 = vperm.xlu1 %25489, %v19129_v1   ;;  %v6793_v36 = vrot.slane %v6791_v17, 2  ;;  %v26019_v8 = vld [vmem:[%s26315_s26 + $0xc0] sm:$0xff]  }
 0x37d   : > { %24373 = vmatpush3.bf16.msra.mxu1 %v26194_v63  ;;  %v6758_v63 = vor.u32 %v6757_v26, %v6754_v22  ;;  %v27931_v51 = vpop.permute.xlu1 %19247  ;;  %v27944_v6 = vpop.permute.xlu0 %19252  ;;  %v6784_v26 = vrot.slane %v6782_v10, 2  ;;  %v19140_v10 = vld [vmem:[%s30300_s4 + $0x3a0] sm:$0xff] }
 0x37e   : > { %30312 = vst [vmem:[#allocation12_spill] sm:$0xff] %v27931_v51  ;;  %19692 = vperm.xlu0 %25488, %v19130_v45   ;;  %30313 = vst [vmem:[#allocation13_spill] sm:$0xff] %v27944_v6  ;;  %v27975_v45 = vld [vmem:[%s26315_s26 + $0x1c8] sm:$0xff]  }
 0x37f   : > { %23479 = vmatmul.mubr.bf16.gmra.mrb[16].mxu1 %v6714_v55  ;;  %v26007_v55 = vld [vmem:[%s26315_s26 + $0x1b0] sm:$0xff]   ;;  %v6759_v4 = vsel %vm4398_vm4, %v6749_v43, %v6758_v63  ;;  %v6768_v35 = vsel %vm4398_vm4, %v6758_v63, %v6767_v16  ;;  %v19137_v63 = vld [vmem:[%s30300_s4 + $0x388] sm:$0xff]  ;;  %v6785_v49 = vor.u32 %v6784_v26, %v6781_v24 }
 0x380   : > { %24155 = vmatmul.mubr.bf16.gmra.mrb[84].mxu0 %v15097_v59  ;;  %23482 = vmatprep.mubr.bf16.mxu1 %v6723_v60  ;;  %v19131_v59 = vld [vmem:[%s30300_s4 + $0x358] sm:$0xff]  ;;  %v6750_v60 = vsel %vm4398_vm4, %v6740_v12, %v6749_v43  ;;  %v19133_v12 = vld [vmem:[%s30300_s4 + $0x368] sm:$0xff]  ;;  %v15108_v21 = vrot.slane %v26007_v55, 3  ;;  %v15112_v55 = vrot.slane %v26011_v29, 3  ;;  %v6815_v29 = vshrl.u32 %v26019_v8, 16 }
 0x381   : > { %24158 = vmatprep.mubr.bf16.mxu0 %v15099_v61  ;;  %v6775_v61 = vrot.slane %v6773_v44, 2  ;;  %19697 = vperm.xlu1 %25489, %v19131_v59   ;;  %v27953_v18 = vpop.permute.xlu1 %19257  ;;  %v19141_v26 = vld [vmem:[%s30300_s4 + $0x3a8] sm:$0xff] }
 0x382   : > { %19702 = vperm.xlu0 %25488, %v19132_v62   ;;  %30314 = vst [vmem:[#allocation14_spill] sm:$0xff] %v27953_v18  ;;  %v15109_v1 = vsel %vm15008_vm5, %v15106_v48, %v15108_v21  ;;  %v15111_v44 = vsel %vm15008_vm5, %v15108_v21, %v15110_v23  ;;  %v19139_v62 = vld [vmem:[%s30300_s4 + $0x398] sm:$0xff]  ;;  %v26021_v21 = vld [vmem:[%s26315_s26 + $0xc8] sm:$0xff]  }
 0x383   : > { %v6776_v22 = vor.u32 %v6775_v61, %v6772_v56  ;;  %v15114_v61 = vrot.slane %v27975_v45, 3  ;;  %v26112_v18 = vld [vmem:[%s26315_s26 + $0x128] sm:$0xff]  }
 0x385   : > { %19707 = vperm.xlu1 %25489, %v19133_v12   ;;  %v6777_v43 = vsel %vm4398_vm4, %v6767_v16, %v6776_v22  ;;  %v27977_v46 = vpop.permute.xlu1 %19267  ;;  %v26016_v16 = vld [vmem:[%s26315_s26 + $0x1d0] sm:$0xff]   ;;  %v15115_v24 = vsel %vm15008_vm5, %v15112_v55, %v15114_v61 }
 0x386   : > { %19712 = vperm.xlu0 %25488, %v19134_v19   ;;  %30316 = vst [vmem:[#allocation16_spill] sm:$0xff] %v27977_v46  ;;  %v26108_v46 = vld [vmem:[%s26315_s26 + $0x118] sm:$0xff]  }
 0x387   : > { %23483 = vmatmul.mubr.bf16.gmra.mrb[20].mxu1 %v6732_v25  ;;  %v26015_v25 = vld [vmem:[%s26315_s26 + $0xb0] sm:$0xff]  }
 0x388   : > { %24159 = vmatmul.mubr.bf16.gmra.mrb[88].mxu0 %v15101_v30  ;;  %23486 = vmatprep.mubr.bf16.mxu1 %v6741_v32  ;;  %v6790_v30 = vrot.slane %v6788_v11, 1  ;;  %v26017_v32 = vld [vmem:[%s26315_s26 + $0xb8] sm:$0xff]   ;;  %v6797_v50 = vshrl.u32 %v26015_v25, 16  ;;  %v6800_v48 = vshll.u32 %v26015_v25, 16  ;;  %v15113_v11 = vsel %vm15008_vm5, %v15110_v23, %v15112_v55 }
 0x389   : > { %24162 = vmatprep.mubr.bf16.mxu0 %v15103_v33  ;;  %v27962_v33 = vpop.permute.xlu0 %19262  ;;  %19717 = vperm.xlu1 %25489, %v19135_v34   ;;  %v6806_v57 = vshrl.u32 %v26017_v32, 16  ;;  %v6809_v59 = vshll.u32 %v26017_v32, 16  ;;  %v27993_v9 = vpop.permute.xlu1 %19277  ;;  %v19142_v32 = vld [vmem:[%s30300_s4 + $0x3b0] sm:$0xff]  ;;  %v15116_v34 = vrot.slane %v26016_v16, 3 }
 0x38a   : > { %30315 = vst [vmem:[#allocation15_spill] sm:$0xff] %v27962_v33  ;;  %19722 = vperm.xlu0 %25488, %v19136_v37   ;;  %v6794_v56 = vor.u32 %v6793_v36, %v6790_v30  ;;  %30318 = vst [vmem:[#allocation18_spill] sm:$0xff] %v27993_v9  ;;  %v6818_v30 = vshll.u32 %v26019_v8, 16  ;;  %v6824_v36 = vshrl.u32 %v26021_v21, 16  ;;  %v6827_v37 = vshll.u32 %v26021_v21, 16  ;;  %v19145_v8 = vld [vmem:[%s30300_s4 + $0x3c8] sm:$0xff] }
 0x38b   : > { %v6808_v17 = vrot.slane %v6806_v57, 1  ;;  %v6811_v19 = vrot.slane %v6809_v59, 2  ;;  %v26020_v57 = vld [vmem:[%s26315_s26 + $0x1e0] sm:$0xff]   ;;  %v19146_v16 = vld [vmem:[%s30300_s4 + $0x3d0] sm:$0xff] }
 0x38c   : > { %v6795_v12 = vsel %vm4398_vm4, %v6785_v49, %v6794_v56  ;;  %v6826_v59 = vrot.slane %v6824_v36, 1  ;;  %v19148_v36 = vld [vmem:[%s30300_s4 + $0x3e0] sm:$0xff] }
 0x38d   : > { %19727 = vperm.xlu1 %25489, %v19137_v63   ;;  %v6817_v63 = vrot.slane %v6815_v29, 1 }
 0x38e   : > { %19732 = vperm.xlu0 %25488, %v19138_v54   ;;  %v15117_v54 = vsel %vm15008_vm5, %v15114_v61, %v15116_v34 }
 0x38f   : > { %23487 = vmatmul.mubr.bf16.gmra.mrb[24].mxu1 %v6750_v60  ;;  %v27985_v60 = vpop.permute.xlu0 %19272 }
 0x390   : > { %24163 = vmatmul.mubr.bf16.gmra.mrb[92].mxu0 %v15105_v0  ;;  %23490 = vmatprep.mubr.bf16.mxu1 %v6759_v4  ;;  %30317 = vst [vmem:[#allocation17_spill] sm:$0xff] %v27985_v60  ;;  %v6786_v0 = vsel %vm4398_vm4, %v6776_v22, %v6785_v49  ;;  %v6799_v4 = vrot.slane %v6797_v50, 1  ;;  %v28004_v22 = vld [vmem:[%s26315_s26 + $0x1d8] sm:$0xff]   ;;  %v6820_v49 = vrot.slane %v6818_v30, 2  ;;  %v26023_v50 = vld [vmem:[%s26315_s26 + $0xd0] sm:$0xff]  }
 0x391   : > { %24166 = vmatprep.mubr.bf16.mxu0 %v15107_v7  ;;  %v6802_v7 = vrot.slane %v6800_v48, 2  ;;  %19737 = vperm.xlu1 %25489, %v19139_v62   ;;  %v19144_v48 = vld [vmem:[%s30300_s4 + $0x3c0] sm:$0xff]  ;;  %v6829_v62 = vrot.slane %v6827_v37, 2 }
 0x392   : > { %19742 = vperm.xlu0 %25488, %v19140_v10   ;;  %v6821_v61 = vor.u32 %v6820_v49, %v6817_v63  ;;  %v6833_v10 = vshrl.u32 %v26023_v50, 16 }
 0x393   : > { %v28006_v25 = vpop.permute.xlu0 %19282  ;;  %v6803_v23 = vor.u32 %v6802_v7, %v6799_v4 }
 0x394   : > { %30319 = vst [vmem:[#allocation19_spill] sm:$0xff] %v28006_v25  ;;  %v6835_v30 = vrot.slane %v6833_v10, 1  ;;  %v19150_v10 = vld [vmem:[%s30300_s4 + $0x3f0] sm:$0xff] }
 0x395   : > { %19747 = vperm.xlu1 %25489, %v19141_v26   ;;  %v6804_v45 = vsel %vm4398_vm4, %v6794_v56, %v6803_v23  ;;  %v28033_v56 = vld [vmem:[%s26315_s26 + $0x1e8] sm:$0xff]  }
 0x396   : > { %19752 = vperm.xlu0 %25488, %v19142_v32  }
 0x397   : > { %23491 = vmatmul.mubr.bf16.gmra.mrb[28].mxu1 %v6768_v35  ;;  %v6812_v35 = vor.u32 %v6811_v19, %v6808_v17  ;;  %v28029_v4 = vpop.permute.xlu0 %19292  ;;  %v15120_v17 = vrot.slane %v26020_v57, 3  ;;  %v6830_v19 = vor.u32 %v6829_v62, %v6826_v59 }
 0x398   : > { %24167 = vmatmul.mubr.bf16.gmra.mrb[96].mxu0 %v15109_v1  ;;  %23494 = vmatprep.mubr.bf16.mxu1 %v6777_v43  ;;  %v15118_v1 = vrot.slane %v28004_v22, 3  ;;  %v28015_v43 = vpop.permute.xlu1 %19287  ;;  %30321 = vst [vmem:[#allocation21_spill] sm:$0xff] %v28029_v4  ;;  %v15122_v22 = vrot.slane %v28033_v56, 3 }
 0x399   : > { %24170 = vmatprep.mubr.bf16.mxu0 %v15111_v44  ;;  %30320 = vst [vmem:[#allocation20_spill] sm:$0xff] %v28015_v43  ;;  %v19143_v44 = vld [vmem:[%s30300_s4 + $0x3b8] sm:$0xff]  ;;  %v6813_v55 = vsel %vm4398_vm4, %v6803_v23, %v6812_v35  ;;  %v6822_v29 = vsel %vm4398_vm4, %v6812_v35, %v6821_v61 }
 0x39a   : > { %v15119_v7 = vsel %vm15008_vm5, %v15116_v34, %v15118_v1  ;;  %19757 = vperm.xlu1 %25489, %v19143_v44   ;;  %19762 = vperm.xlu0 %25488, %v19144_v48   ;;  %v19147_v23 = vld [vmem:[%s30300_s4 + $0x3d8] sm:$0xff]  ;;  %v26027_v34 = vld [vmem:[%s26315_s26 + $0xe0] sm:$0xff]   ;;  %v15121_v37 = vsel %vm15008_vm5, %v15118_v1, %v15120_v17  ;;  %v6831_v44 = vsel %vm4398_vm4, %v6821_v61, %v6830_v19 }
 0x39b   : > { %v28044_v26 = vpop.permute.xlu0 %19302  ;;  %v15123_v48 = vsel %vm15008_vm5, %v15120_v17, %v15122_v22  ;;  %v6851_v57 = vshrl.u32 %v26027_v34, 16  ;;  %v6854_v59 = vshll.u32 %v26027_v34, 16 }
 0x39c   : > { %30323 = vst [vmem:[#allocation23_spill] sm:$0xff] %v28044_v26 }
 0x39d   : > { %v6853_v17 = vrot.slane %v6851_v57, 1 }
 0x39e   : > { %19767 = vperm.xlu1 %25489, %v19145_v8   ;;  %19772 = vperm.xlu0 %25488, %v19146_v16  }
 0x39f   : > { %23495 = vmatmul.mubr.bf16.gmra.mrb[32].mxu1 %v6786_v0  ;;  %v26025_v0 = vld [vmem:[%s26315_s26 + $0xd8] sm:$0xff]   ;;  %v28067_v8 = vpop.permute.xlu0 %19312 }
 0x3a0   : > { %24171 = vmatmul.mubr.bf16.gmra.mrb[100].mxu0 %v15113_v11  ;;  %23498 = vmatprep.mubr.bf16.mxu1 %v6795_v12  ;;  %v6836_v11 = vshll.u32 %v26023_v50, 16  ;;  %v28038_v12 = vpop.permute.xlu1 %19297  ;;  %v6842_v21 = vshrl.u32 %v26025_v0, 16  ;;  %v26030_v50 = vld [vmem:[%s26315_s26 + $0xe8] sm:$0xff]   ;;  %30325 = vst [vmem:[#allocation25_spill] sm:$0xff] %v28067_v8 }
 0x3a1   : > { %24174 = vmatprep.mubr.bf16.mxu0 %v15115_v24  ;;  %30322 = vst [vmem:[#allocation22_spill] sm:$0xff] %v28038_v12  ;;  %v6845_v24 = vshll.u32 %v26025_v0, 16  ;;  %v6863_v56 = vshll.u32 %v26030_v50, 16  ;;  %v26104_v12 = vld [vmem:[%s26315_s26 + $0x108] sm:$0xff]  }
 0x3a2   : > { %v6838_v32 = vrot.slane %v6836_v11, 2  ;;  %v6844_v63 = vrot.slane %v6842_v21, 1  ;;  %19777 = vperm.xlu1 %25489, %v19147_v23   ;;  %19782 = vperm.xlu0 %25488, %v19148_v36   ;;  %v19151_v11 = vld [vmem:[%s30300_s4 + $0x3f8] sm:$0xff]  ;;  %v6856_v21 = vrot.slane %v6854_v59, 2 }
 0x3a3   : > { %v6847_v49 = vrot.slane %v6845_v24, 2  ;;  %v26032_v24 = vld [vmem:[%s26315_s26 + $0xf0] sm:$0xff]   ;;  %v6865_v36 = vrot.slane %v6863_v56, 2  ;;  %v19155_v56 = vld [vmem:[%s30300_s4 + $0x418] sm:$0xff] }
 0x3a4   : > { %v28062_v35 = vpop.permute.xlu1 %19307  ;;  %v6839_v1 = vor.u32 %v6838_v32, %v6835_v30  ;;  %v26028_v32 = vld [vmem:[%s26315_s26 + $0x200] sm:$0xff]  }
 0x3a5   : > { %30324 = vst [vmem:[#allocation24_spill] sm:$0xff] %v28062_v35  ;;  %v6848_v0 = vor.u32 %v6847_v49, %v6844_v63  ;;  %v28091_v63 = vpop.permute.xlu0 %19322  ;;  %v6857_v49 = vor.u32 %v6856_v21, %v6853_v17  ;;  %v26036_v17 = vld [vmem:[%s26315_s26 + $0x100] sm:$0xff]  }
 0x3a6   : > { %19792 = vperm.xlu0 %25488, %v19150_v10   ;;  %v6840_v16 = vsel %vm4398_vm4, %v6830_v19, %v6839_v1  ;;  %v28089_v19 = vld [vmem:[%s26315_s26 + $0x208] sm:$0xff]   ;;  %30327 = vst [vmem:[#allocation27_spill] sm:$0xff] %v28091_v63  ;;  %v26052_v63 = vld [vmem:[%s26315_s26 + $0x38] sm:$0xff]  }
 0x3a7   : > { %23499 = vmatmul.mubr.bf16.gmra.mrb[36].mxu1 %v6804_v45  ;;  %v26024_v45 = vld [vmem:[%s26315_s26 + $0x1f0] sm:$0xff]   ;;  %v6849_v30 = vsel %vm4398_vm4, %v6839_v1, %v6848_v0  ;;  %v15130_v59 = vrot.slane %v28089_v19, 3  ;;  %v6858_v10 = vsel %vm4398_vm4, %v6848_v0, %v6857_v49  ;;  %v26035_v0 = vld [vmem:[%s26315_s26 + $0x218] sm:$0xff]   ;;  %v6887_v19 = vshrl.u32 %v26036_v17, 16 }
 0x3a8   : > { %24175 = vmatmul.mubr.bf16.gmra.mrb[104].mxu0 %v15117_v54  ;;  %23502 = vmatprep.mubr.bf16.mxu1 %v6813_v55  ;;  %v28060_v54 = vld [vmem:[%s26315_s26 + $0x1f8] sm:$0xff]   ;;  %v19149_v55 = vld [vmem:[%s30300_s4 + $0x3e8] sm:$0xff]  ;;  %v15124_v62 = vrot.slane %v26024_v45, 3  ;;  %v28078_v23 = vpop.permute.xlu1 %19317 }
 0x3a9   : > { %24178 = vmatprep.mubr.bf16.mxu0 %v15119_v7  ;;  %v6860_v7 = vshrl.u32 %v26030_v50, 16  ;;  %v15126_v61 = vrot.slane %v28060_v54, 3  ;;  %19787 = vperm.xlu1 %25489, %v19149_v55   ;;  %30326 = vst [vmem:[#allocation26_spill] sm:$0xff] %v28078_v23  ;;  %v6869_v50 = vshrl.u32 %v26032_v24, 16  ;;  %v15128_v54 = vrot.slane %v26028_v32, 3 }
 0x3ab   : > { %v6862_v34 = vrot.slane %v6860_v7, 1  ;;  %v15127_v45 = vsel %vm15008_vm5, %v15124_v62, %v15126_v61  ;;  %v19154_v7 = vld [vmem:[%s30300_s4 + $0x410] sm:$0xff]  ;;  %v15129_v21 = vsel %vm15008_vm5, %v15126_v61, %v15128_v54  ;;  %v19157_v61 = vld [vmem:[%s30300_s4 + $0x428] sm:$0xff] }
 0x3ad   : > { %19797 = vperm.xlu1 %25489, %v19151_v11   ;;  %v6866_v55 = vor.u32 %v6865_v36, %v6862_v34  ;;  %v6871_v11 = vrot.slane %v6869_v50, 1  ;;  %v26038_v34 = vld [vmem:[%s26315_s26 + $0x108] sm:$0xff]   ;;  %v28111_v36 = vpop.permute.xlu0 %19332 }
 0x3ae   : > { %30329 = vst [vmem:[#allocation29_spill] sm:$0xff] %v28111_v36 }
 0x3af   : > { %23503 = vmatmul.mubr.bf16.gmra.mrb[40].mxu1 %v6822_v29  ;;  %v15125_v29 = vsel %vm15008_vm5, %v15122_v22, %v15124_v62  ;;  %v19153_v22 = vld [vmem:[%s30300_s4 + $0x408] sm:$0xff]  ;;  %v28097_v62 = vpop.permute.xlu1 %19327 }
 0x3b0   : > { %24179 = vmatmul.mubr.bf16.gmra.mrb[108].mxu0 %v15121_v37  ;;  %23506 = vmatprep.mubr.bf16.mxu1 %v6831_v44  ;;  %v26034_v37 = vld [vmem:[%s26315_s26 + $0xf8] sm:$0xff]   ;;  %v19152_v44 = vld [vmem:[%s30300_s4 + $0x400] sm:$0xff]  ;;  %30328 = vst [vmem:[#allocation28_spill] sm:$0xff] %v28097_v62 }
 0x3b1   : > { %24182 = vmatprep.mubr.bf16.mxu0 %v15123_v48  ;;  %19802 = vperm.xlu0 %25488, %v19152_v44   ;;  %v6872_v48 = vshll.u32 %v26032_v24, 16  ;;  %v6878_v1 = vshrl.u32 %v26034_v37, 16  ;;  %v6881_v57 = vshll.u32 %v26034_v37, 16  ;;  %v6867_v24 = vsel %vm4398_vm4, %v6857_v49, %v6866_v55  ;;  %v19156_v37 = vld [vmem:[%s30300_s4 + $0x420] sm:$0xff] }
 0x3b2   : > { %19807 = vperm.xlu1 %25489, %v19153_v22   ;;  %v15131_v44 = vsel %vm15008_vm5, %v15128_v54, %v15130_v59  ;;  %v6890_v22 = vshll.u32 %v26036_v17, 16  ;;  %v6896_v54 = vshrl.u32 %v26038_v34, 16 }
 0x3b3   : > { %v6883_v32 = vrot.slane %v6881_v57, 2  ;;  %v28121_v49 = vpop.permute.xlu1 %19337  ;;  %v15134_v57 = vrot.slane %v26035_v0, 3  ;;  %v26039_v0 = vld [vmem:[%s26315_s26 + $0x228] sm:$0xff]  }
 0x3b4   : > { %30330 = vst [vmem:[#allocation30_spill] sm:$0xff] %v28121_v49  ;;  %v6892_v17 = vrot.slane %v6890_v22, 2 }
 0x3b5   : > { %19812 = vperm.xlu0 %25488, %v19154_v7   ;;  %v19158_v7 = vld [vmem:[%s30300_s4 + $0x430] sm:$0xff] }
 0x3b6   : > { %19817 = vperm.xlu1 %25489, %v19155_v56   ;;  %v28126_v56 = vpop.permute.xlu0 %19342 }
 0x3b7   : > { %23507 = vmatmul.mubr.bf16.gmra.mrb[44].mxu1 %v6840_v16  ;;  %v6874_v16 = vrot.slane %v6872_v48, 2  ;;  %30331 = vst [vmem:[#allocation31_spill] sm:$0xff] %v28126_v56 }
 0x3b8   : > { %24183 = vmatmul.mubr.bf16.gmra.mrb[112].mxu0 %v15125_v29  ;;  %23510 = vmatprep.mubr.bf16.mxu1 %v6849_v30  ;;  %v26033_v29 = vld [vmem:[%s26315_s26 + $0x210] sm:$0xff]   ;;  %v6880_v30 = vrot.slane %v6878_v1, 1  ;;  %v6899_v1 = vshll.u32 %v26038_v34, 16 }
 0x3b9   : > { %24186 = vmatprep.mubr.bf16.mxu0 %v15127_v45  ;;  %19822 = vperm.xlu0 %25488, %v19156_v37   ;;  %v6875_v45 = vor.u32 %v6874_v16, %v6871_v11  ;;  %v15132_v50 = vrot.slane %v26033_v29, 3  ;;  %v6889_v16 = vrot.slane %v6887_v19, 1  ;;  %v26042_v37 = vld [vmem:[%s26315_s26 + $0x118] sm:$0xff]  }
 0x3ba   : > { %v6884_v48 = vor.u32 %v6883_v32, %v6880_v30  ;;  %19827 = vperm.xlu1 %25489, %v19157_v61   ;;  %v26037_v30 = vld [vmem:[%s26315_s26 + $0x220] sm:$0xff]   ;;  %v6898_v32 = vrot.slane %v6896_v54, 1  ;;  %v6901_v34 = vrot.slane %v6899_v1, 2  ;;  %v28139_v61 = vpop.permute.xlu1 %19347  ;;  %v6914_v54 = vshrl.u32 %v26042_v37, 16 }
 0x3bb   : > { %v6876_v11 = vsel %vm4398_vm4, %v6866_v55, %v6875_v45  ;;  %30332 = vst [vmem:[#allocation32_spill] sm:$0xff] %v28139_v61  ;;  %v6893_v55 = vor.u32 %v6892_v17, %v6889_v16  ;;  %v15138_v1 = vrot.slane %v26039_v0, 3 }
 0x3bc   : > { %v6885_v29 = vsel %vm4398_vm4, %v6875_v45, %v6884_v48  ;;  %v15136_v45 = vrot.slane %v26037_v30, 3  ;;  %v6902_v22 = vor.u32 %v6901_v34, %v6898_v32  ;;  %v26046_v30 = vld [vmem:[%s26315_s26 + $0x128] sm:$0xff]   ;;  %v26047_v34 = vld [vmem:[%s26315_s26 + $0x20] sm:$0xf8]  }
 0x3bd   : > { %19832 = vperm.xlu0 %25488, %v19158_v7   ;;  %v26044_v7 = vld [vmem:[%s26315_s26 + $0x120] sm:$0xff]  }
 0x3be   : > { %v15137_v16 = vsel %vm15008_vm5, %v15134_v57, %v15136_v45  ;;  %v6903_v17 = vsel %vm4398_vm4, %v6893_v55, %v6902_v22  ;;  %v15139_v32 = vsel %vm15008_vm5, %v15136_v45, %v15138_v1  ;;  %v6923_v0 = vshrl.u32 %v26044_v7, 16 }
 0x3bf   : > { %23511 = vmatmul.mubr.bf16.gmra.mrb[48].mxu1 %v6858_v10  ;;  %v19159_v10 = vld [vmem:[%s30300_s4 + $0x438] sm:$0xff]  ;;  %v6926_v61 = vshll.u32 %v26044_v7, 16  ;;  %v16746_v45 = vshrl.u32 %v26047_v34, 16 }
 0x3c0   : > { %24187 = vmatmul.mubr.bf16.gmra.mrb[116].mxu0 %v15129_v21  ;;  %23514 = vmatprep.mubr.bf16.mxu1 %v6867_v24  ;;  %v26040_v21 = vld [vmem:[%s26315_s26 + $0x110] sm:$0xff]   ;;  %v15133_v24 = vsel %vm15008_vm5, %v15130_v59, %v15132_v50  ;;  %v6925_v62 = vrot.slane %v6923_v0, 1 }
 0x3c1   : > { %24190 = vmatprep.mubr.bf16.mxu0 %v15131_v44  ;;  %v15135_v44 = vsel %vm15008_vm5, %v15132_v50, %v15134_v57  ;;  %19837 = vperm.xlu1 %25489, %v19159_v10   ;;  %v6905_v19 = vshrl.u32 %v26040_v21, 16  ;;  %v6908_v59 = vshll.u32 %v26040_v21, 16  ;;  %v6917_v50 = vshll.u32 %v26042_v37, 16  ;;  %v26048_v37 = vld [vmem:[%s26315_s26 + $0x28] sm:$0xff]  }
 0x3c2   : > { %v6894_v10 = vsel %vm4398_vm4, %v6884_v48, %v6893_v55  ;;  %v6916_v21 = vrot.slane %v6914_v54, 1  ;;  %v6935_v54 = vshll.u32 %v26046_v30, 16  ;;  %v16754_v56 = vshrl.u32 %v26048_v37, 16 }
 0x3c3   : > { %v6910_v38 = vrot.slane %v6908_v59, 2  ;;  %v6932_v59 = vshrl.u32 %v26046_v30, 16  ;;  %v6928_v7 = vrot.slane %v6926_v61, 2 }
 0x3c4   : > { %v6937_v30 = vrot.slane %v6935_v54, 2 }
 0x3c5   : > { %v6929_v61 = vor.u32 %v6928_v7, %v6925_v62  ;;  %v26053_v7 = vld [vmem:[%s26315_s26 + $0x140] sm:$0xff]  }
 0x3c7   : > { %23515 = vmatmul.mubr.bf16.gmra.mrb[52].mxu1 %v6876_v11  ;;  %v6907_v11 = vrot.slane %v6905_v19, 1 }
 0x3c8   : > { %24191 = vmatmul.mubr.bf16.gmra.mrb[120].mxu0 %v15133_v24  ;;  %23518 = vmatprep.mubr.bf16.mxu1 %v6885_v29  ;;  %v26041_v24 = vld [vmem:[%s26315_s26 + $0x230] sm:$0xff]   ;;  %v6919_v29 = vrot.slane %v6917_v50, 2  ;;  %v16749_v50 = vshll.u32 %v26047_v34, 16  ;;  %v16748_v34 = vrot.slane %v16746_v45, 3 }
 0x3c9   : > { %24194 = vmatprep.mubr.bf16.mxu0 %v15135_v44  ;;  %v28147_v44 = vld [vmem:[%s26315_s26 + $0x238] sm:$0xff]   ;;  %v6911_v48 = vor.u32 %v6910_v38, %v6907_v11  ;;  %v15140_v57 = vrot.slane %v26041_v24, 3  ;;  %v26049_v11 = vld [vmem:[%s26315_s26 + $0x130] sm:$0xff]  }
 0x3ca   : > { %v6920_v55 = vor.u32 %v6919_v29, %v6916_v21  ;;  %v15142_v19 = vrot.slane %v28147_v44, 3  ;;  %v26050_v24 = vld [vmem:[%s26315_s26 + $0x30] sm:$0xff]   ;;  %v26045_v29 = vld [vmem:[%s26315_s26 + $0x240] ss:$0 sps:$4 sm:$0x77]   ;;  %v6934_v44 = vrot.slane %v6932_v59, 1 }
 0x3cb   : > { %v15141_v38 = vsel %vm15008_vm5, %v15138_v1, %v15140_v57  ;;  %v16751_v49 = vrot.slane %v16749_v50, 4  ;;  %v6944_v1 = vshll.u32 %v26049_v11, 16  ;;  %v16763_v36 = vshrl.u32 %v26050_v24, 16 }
 0x3cc   : > { %v15143_v21 = vsel %vm15008_vm5, %v15140_v57, %v15142_v19  ;;  %v15144_v57 = vrot.slane %v26045_v29, 3  ;;  %v6938_v59 = vor.u32 %v6937_v30, %v6934_v44  ;;  %v16772_v50 = vshrl.u32 %v26052_v63, 16  ;;  %v26055_v30 = vld [vmem:[%s26315_s26 + $0x148] sm:$0xff]  }
 0x3cd   : > { %v16752_v45 = vor.u32 %v16751_v49, %v16748_v34  ;;  %v6930_v62 = vsel %vm4398_vm4, %v6920_v55, %v6929_v61 }
 0x3ce   : > { %v6939_v29 = vsel %vm4398_vm4, %v6929_v61, %v6938_v59 }
 0x3cf   : > { %23519 = vmatmul.mubr.bf16.gmra.mrb[56].mxu1 %v6894_v10  ;;  %v16757_v10 = vshll.u32 %v26048_v37, 16  ;;  %v16756_v37 = vrot.slane %v16754_v56, 3 }
 0x3d0   : > { %24195 = vmatmul.mubr.bf16.gmra.mrb[124].mxu0 %v15137_v16  ;;  %23522 = vmatprep.mubr.bf16.mxu1 %v6903_v17  ;;  %v6912_v16 = vsel %vm4398_vm4, %v6902_v22, %v6911_v48  ;;  %v6921_v17 = vsel %vm4398_vm4, %v6911_v48, %v6920_v55  ;;  %v6941_v22 = vshrl.u32 %v26049_v11, 16  ;;  %v16766_v48 = vshll.u32 %v26050_v24, 16  ;;  %v26056_v55 = vld [vmem:[%s26315_s26 + $0x48] sm:$0xff]  }
 0x3d1   : > { %24198 = vmatprep.mubr.bf16.mxu0 %v15139_v32  ;;  %v26051_v32 = vld [vmem:[%s26315_s26 + $0x138] sm:$0xff]   ;;  %v16759_v0 = vrot.slane %v16757_v10, 4  ;;  %v16775_v10 = vshll.u32 %v26052_v63, 16  ;;  %v16765_v11 = vrot.slane %v16763_v36, 3  ;;  %v16774_v63 = vrot.slane %v16772_v50, 3 }
 0x3d2   : > { %v6950_v54 = vshrl.u32 %v26051_v32, 16  ;;  %v6953_v35 = vshll.u32 %v26051_v32, 16  ;;  %v16768_v24 = vrot.slane %v16766_v48, 4  ;;  %v6971_v48 = vshll.u32 %v26055_v30, 16 }
 0x3d3   : > { %v16760_v56 = vor.u32 %v16759_v0, %v16756_v37  ;;  %v16777_v34 = vrot.slane %v16775_v10, 4  ;;  %v6959_v37 = vshrl.u32 %v26053_v7, 16  ;;  %v6962_v0 = vshll.u32 %v26053_v7, 16 }
 0x3d4   : > { %v6952_v44 = vrot.slane %v6950_v54, 1  ;;  %v6955_v49 = vrot.slane %v6953_v35, 2  ;;  %v6968_v35 = vshrl.u32 %v26055_v30, 16  ;;  %v16790_v54 = vshrl.u32 %v26056_v55, 16 }
 0x3d5   : > { %v16761_v32 = vsel %vm16744_vm6, %v16752_v45, %v16760_v56  ;;  %v16793_v45 = vshll.u32 %v26056_v55, 16  ;;  %v6961_v50 = vrot.slane %v6959_v37, 1  ;;  %v6964_v10 = vrot.slane %v6962_v0, 2 }
 0x3d6   : > { %v6956_v61 = vor.u32 %v6955_v49, %v6952_v44  ;;  %v26059_v44 = vld [vmem:[%s26315_s26 + $0x158] sm:$0xff]   ;;  %v16792_v30 = vrot.slane %v16790_v54, 3 }
 0x3d7   : > { %23523 = vmatmul.mubr.bf16.gmra.mrb[60].mxu1 %v6912_v16  ;;  %v6943_v16 = vrot.slane %v6941_v22, 1  ;;  %v16769_v22 = vor.u32 %v16768_v24, %v16765_v11  ;;  %v26058_v11 = vld [vmem:[%s26315_s26 + $0x50] sm:$0xff]  }
 0x3d8   : > { %24199 = vmatmul.mubr.bf16.gmra.mrb[128].mxu0 %v15141_v38  ;;  %23526 = vmatprep.mubr.bf16.mxu1 %v6921_v17  ;;  %v6946_v38 = vrot.slane %v6944_v1, 2  ;;  %v26054_v17 = vld [vmem:[%s26315_s26 + $0x40] sm:$0xff]   ;;  %v16799_v55 = vshrl.u32 %v26058_v11, 16  ;;  %v16802_v37 = vshll.u32 %v26058_v11, 16 }
 0x3d9   : > { %24202 = vmatprep.mubr.bf16.mxu0 %v15143_v21  ;;  %v15145_v21 = vsel %vm15008_vm5, %v15142_v19, %v15144_v57  ;;  %v16781_v19 = vshrl.u32 %v26054_v17, 16  ;;  %v16784_v1 = vshll.u32 %v26054_v17, 16  ;;  %v16778_v57 = vor.u32 %v16777_v34, %v16774_v63  ;;  %v26060_v63 = vld [vmem:[%s26315_s26 + $0x58] sm:$0xff]  }
 0x3da   : > { %v6947_v36 = vor.u32 %v6946_v38, %v6943_v16  ;;  %v16770_v7 = vsel %vm16744_vm6, %v16760_v56, %v16769_v22  ;;  %v26057_v38 = vld [vmem:[%s26315_s26 + $0x150] sm:$0xff]   ;;  %v6970_v17 = vrot.slane %v6968_v35, 1  ;;  %v6965_v34 = vor.u32 %v6964_v10, %v6961_v50 }
 0x3db   : > { %v16783_v16 = vrot.slane %v16781_v19, 3  ;;  %v16779_v49 = vsel %vm16744_vm6, %v16769_v22, %v16778_v57  ;;  %v6980_v56 = vshll.u32 %v26057_v38, 16  ;;  %v6986_v19 = vshrl.u32 %v26059_v44, 16 }
 0x3dc   : > { %v6957_v24 = vsel %vm4398_vm4, %v6947_v36, %v6956_v61  ;;  %v16808_v35 = vshrl.u32 %v26060_v63, 16  ;;  %v6966_v54 = vsel %vm4398_vm4, %v6956_v61, %v6965_v34 }
 0x3dd   : > { %v6982_v10 = vrot.slane %v6980_v56, 2 }
 0x3df   : > { %23527 = vmatmul.mubr.bf16.gmra.mrb[64].mxu1 %v6930_v62  ;;  %v6948_v62 = vsel %vm4398_vm4, %v6938_v59, %v6947_v36  ;;  %v6977_v59 = vshrl.u32 %v26057_v38, 16  ;;  %v26062_v38 = vld [vmem:[%s26315_s26 + $0x60] sm:$0xff]  }
 0x3e0   : > { %24203 = vmatmul.mubr.bf16.gmra.mrb[132].mxu0 %v15145_v21  ;;  %23530 = vmatprep.mubr.bf16.mxu1 %v6939_v29  ;;  %v16786_v21 = vrot.slane %v16784_v1, 4  ;;  %v6973_v29 = vrot.slane %v6971_v48, 2  ;;  %v6989_v1 = vshll.u32 %v26059_v44, 16  ;;  %v16811_v48 = vshll.u32 %v26060_v63, 16 }
 0x3e1   : > { %24222 = vmatprep.mubr.bf16.mxu0 %v16761_v32  ;;  %v16795_v32 = vrot.slane %v16793_v45, 4  ;;  %v26061_v45 = vld [vmem:[%s26315_s26 + $0x160] sm:$0xff]   ;;  %v6979_v50 = vrot.slane %v6977_v59, 1  ;;  %v16810_v44 = vrot.slane %v16808_v35, 3  ;;  %v16820_v56 = vshll.u32 %v26062_v38, 16 }
 0x3e2   : > { %v16787_v0 = vor.u32 %v16786_v21, %v16783_v16  ;;  %v6974_v36 = vor.u32 %v6973_v29, %v6970_v17  ;;  %v6991_v21 = vrot.slane %v6989_v1, 2  ;;  %v26063_v17 = vld [vmem:[%s26315_s26 + $0x168] sm:$0xff]   ;;  %v6995_v61 = vshrl.u32 %v26061_v45, 16 }
 0x3e3   : > { %v16796_v22 = vor.u32 %v16795_v32, %v16792_v30  ;;  %v26064_v30 = vld [vmem:[%s26315_s26 + $0x68] sm:$0xff]   ;;  %v6998_v32 = vshll.u32 %v26061_v45, 16  ;;  %v6983_v63 = vor.u32 %v6982_v10, %v6979_v50  ;;  %v26065_v10 = vld [vmem:[%s26315_s26 + $0x170] sm:$0xff]  }
 0x3e4   : > { %v16788_v11 = vsel %vm16744_vm6, %v16778_v57, %v16787_v0  ;;  %v6975_v16 = vsel %vm4398_vm4, %v6965_v34, %v6974_v36  ;;  %v16817_v57 = vshrl.u32 %v26062_v38, 16  ;;  %v16829_v1 = vshll.u32 %v26064_v30, 16 }
 0x3e5   : > { %v16797_v29 = vsel %vm16744_vm6, %v16787_v0, %v16796_v22  ;;  %v6997_v35 = vrot.slane %v6995_v61, 1 }
 0x3e6   : > { %v16819_v50 = vrot.slane %v16817_v57, 3 }
 0x3e7   : > { %23531 = vmatmul.mubr.bf16.gmra.mrb[68].mxu1 %v6948_v62  ;;  %v16801_v62 = vrot.slane %v16799_v55, 3  ;;  %v7004_v55 = vshrl.u32 %v26063_v17, 16 }
 0x3e8   : > { %24223 = vmatmul.mubr.bf16.vlgmr.msra.gmra.mrb[0].mxu0 %v16770_v7  ;;  %23534 = vmatprep.mubr.bf16.mxu1 %v6957_v24  ;;  %v16804_v7 = vrot.slane %v16802_v37, 4  ;;  %v6988_v24 = vrot.slane %v6986_v19, 1  ;;  %v7007_v37 = vshll.u32 %v26063_v17, 16  ;;  %v16826_v19 = vshrl.u32 %v26064_v30, 16 }
 0x3e9   : > { %24226 = vmatprep.mubr.bf16.mxu0 %v16779_v49  ;;  %v16813_v49 = vrot.slane %v16811_v48, 4  ;;  %v7000_v48 = vrot.slane %v6998_v32, 2  ;;  %v7006_v38 = vrot.slane %v7004_v55, 1 }
 0x3ea   : > { %v16805_v59 = vor.u32 %v16804_v7, %v16801_v62  ;;  %v6992_v34 = vor.u32 %v6991_v21, %v6988_v24  ;;  %v26066_v62 = vld [vmem:[%s26315_s26 + $0x70] sm:$0xff]   ;;  %v26067_v24 = vld [vmem:[%s26315_s26 + $0x178] sm:$0xff]   ;;  %v16828_v17 = vrot.slane %v16826_v19, 3 }
 0x3eb   : > { %v16814_v0 = vor.u32 %v16813_v49, %v16810_v44  ;;  %v26068_v44 = vld [vmem:[%s26315_s26 + $0x78] sm:$0xff]   ;;  %v7001_v49 = vor.u32 %v7000_v48, %v6997_v35  ;;  %v16835_v30 = vshrl.u32 %v26066_v62, 16  ;;  %v16838_v61 = vshll.u32 %v26066_v62, 16 }
 0x3ec   : > { %v16806_v45 = vsel %vm16744_vm6, %v16796_v22, %v16805_v59  ;;  %v6993_v7 = vsel %vm4398_vm4, %v6983_v63, %v6992_v34  ;;  %v7016_v22 = vshll.u32 %v26065_v10, 16  ;;  %v7022_v57 = vshrl.u32 %v26067_v24, 16 }
 0x3ed   : > { %v16815_v21 = vsel %vm16744_vm6, %v16805_v59, %v16814_v0  ;;  %v16844_v55 = vshrl.u32 %v26068_v44, 16  ;;  %v7002_v19 = vsel %vm4398_vm4, %v6992_v34, %v7001_v49 }
 0x3ee   : > { %v7018_v48 = vrot.slane %v7016_v22, 2 }
 0x3ef   : > { %23535 = vmatmul.mubr.bf16.gmra.mrb[72].mxu1 %v6966_v54  ;;  %v6984_v54 = vsel %vm4398_vm4, %v6974_v36, %v6983_v63  ;;  %v7013_v36 = vshrl.u32 %v26065_v10, 16  ;;  %v26070_v10 = vld [vmem:[%s26315_s26 + $0x80] sm:$0xff]  }
 0x3f0   : > { %24227 = vmatmul.mubr.bf16.gmra.mrb[4].mxu0 %v16788_v11  ;;  %23538 = vmatprep.mubr.bf16.mxu1 %v6975_v16  ;;  %v16822_v11 = vrot.slane %v16820_v56, 4  ;;  %v7009_v16 = vrot.slane %v7007_v37, 2  ;;  %v7025_v56 = vshll.u32 %v26067_v24, 16  ;;  %v16847_v37 = vshll.u32 %v26068_v44, 16 }
 0x3f1   : > { %24230 = vmatprep.mubr.bf16.mxu0 %v16797_v29  ;;  %v16831_v29 = vrot.slane %v16829_v1, 4  ;;  %v26069_v1 = vld [vmem:[%s26315_s26 + $0x180] sm:$0xff]   ;;  %v7015_v35 = vrot.slane %v7013_v36, 1  ;;  %v16846_v24 = vrot.slane %v16844_v55, 3  ;;  %v16856_v22 = vshll.u32 %v26070_v10, 16 }
 0x3f2   : > { %v16823_v32 = vor.u32 %v16822_v11, %v16819_v50  ;;  %v7010_v63 = vor.u32 %v7009_v16, %v7006_v38  ;;  %v7027_v11 = vrot.slane %v7025_v56, 2  ;;  %v26071_v38 = vld [vmem:[%s26315_s26 + $0x188] sm:$0xff]   ;;  %v7031_v34 = vshrl.u32 %v26069_v1, 16 }
 0x3f3   : > { %v16832_v59 = vor.u32 %v16831_v29, %v16828_v17  ;;  %v26072_v17 = vld [vmem:[%s26315_s26 + $0x88] sm:$0xff]   ;;  %v7034_v29 = vshll.u32 %v26069_v1, 16  ;;  %v7019_v44 = vor.u32 %v7018_v48, %v7015_v35  ;;  %v26073_v48 = vld [vmem:[%s26315_s26 + $0x190] sm:$0xff]  }
 0x3f4   : > { %v16824_v62 = vsel %vm16744_vm6, %v16814_v0, %v16823_v32  ;;  %v7011_v50 = vsel %vm4398_vm4, %v7001_v49, %v7010_v63  ;;  %v16853_v0 = vshrl.u32 %v26070_v10, 16  ;;  %v16865_v56 = vshll.u32 %v26072_v17, 16 }
 0x3f5   : > { %v16833_v16 = vsel %vm16744_vm6, %v16823_v32, %v16832_v59  ;;  %v7033_v55 = vrot.slane %v7031_v34, 1 }
 0x3f6   : > { %v16855_v35 = vrot.slane %v16853_v0, 3 }
 0x3f7   : > { %23539 = vmatmul.mubr.bf16.gmra.mrb[76].mxu1 %v6984_v54  ;;  %v16837_v54 = vrot.slane %v16835_v30, 3  ;;  %v7040_v30 = vshrl.u32 %v26071_v38, 16 }
 0x3f8   : > { %24231 = vmatmul.mubr.bf16.gmra.mrb[8].mxu0 %v16806_v45  ;;  %23542 = vmatprep.mubr.bf16.mxu1 %v6993_v7  ;;  %v16840_v45 = vrot.slane %v16838_v61, 4  ;;  %v7024_v7 = vrot.slane %v7022_v57, 1  ;;  %v7043_v61 = vshll.u32 %v26071_v38, 16  ;;  %v16862_v57 = vshrl.u32 %v26072_v17, 16 }
 0x3f9   : > { %24234 = vmatprep.mubr.bf16.mxu0 %v16815_v21  ;;  %v16849_v21 = vrot.slane %v16847_v37, 4  ;;  %v7036_v37 = vrot.slane %v7034_v29, 2  ;;  %v7042_v10 = vrot.slane %v7040_v30, 1 }
 0x3fa   : > { %v16841_v36 = vor.u32 %v16840_v45, %v16837_v54  ;;  %v7028_v49 = vor.u32 %v7027_v11, %v7024_v7  ;;  %v26074_v54 = vld [vmem:[%s26315_s26 + $0x90] sm:$0xff]   ;;  %v26075_v7 = vld [vmem:[%s26315_s26 + $0x198] sm:$0xff]   ;;  %v16864_v38 = vrot.slane %v16862_v57, 3 }
 0x3fb   : > { %v16850_v32 = vor.u32 %v16849_v21, %v16846_v24  ;;  %v26076_v24 = vld [vmem:[%s26315_s26 + $0x98] sm:$0xff]   ;;  %v7037_v21 = vor.u32 %v7036_v37, %v7033_v55  ;;  %v16871_v17 = vshrl.u32 %v26074_v54, 16  ;;  %v16874_v34 = vshll.u32 %v26074_v54, 16 }
 0x3fc   : > { %v16842_v1 = vsel %vm16744_vm6, %v16832_v59, %v16841_v36  ;;  %v7029_v45 = vsel %vm4398_vm4, %v7019_v44, %v7028_v49  ;;  %v7052_v59 = vshll.u32 %v26073_v48, 16  ;;  %v7058_v0 = vshrl.u32 %v26075_v7, 16 }
 0x3fd   : > { %v16851_v11 = vsel %vm16744_vm6, %v16841_v36, %v16850_v32  ;;  %v16880_v30 = vshrl.u32 %v26076_v24, 16  ;;  %v7038_v57 = vsel %vm4398_vm4, %v7028_v49, %v7037_v21 }
 0x3fe   : > { %v7054_v37 = vrot.slane %v7052_v59, 2 }
 0x3ff   : > { %23543 = vmatmul.mubr.bf16.gmra.mrb[80].mxu1 %v7002_v19  ;;  %v7020_v19 = vsel %vm4398_vm4, %v7010_v63, %v7019_v44  ;;  %v7049_v63 = vshrl.u32 %v26073_v48, 16  ;;  %v26078_v48 = vld [vmem:[%s26315_s26 + $0xa0] sm:$0xff]  }
 0x400   : > { %24235 = vmatmul.mubr.bf16.gmra.mrb[12].mxu0 %v16824_v62  ;;  %23546 = vmatprep.mubr.bf16.mxu1 %v7011_v50  ;;  %v16858_v62 = vrot.slane %v16856_v22, 4  ;;  %v7045_v50 = vrot.slane %v7043_v61, 2  ;;  %v7061_v22 = vshll.u32 %v26075_v7, 16  ;;  %v16883_v61 = vshll.u32 %v26076_v24, 16 }
 0x401   : > { %24238 = vmatprep.mubr.bf16.mxu0 %v16833_v16  ;;  %v16867_v16 = vrot.slane %v16865_v56, 4  ;;  %v26077_v56 = vld [vmem:[%s26315_s26 + $0x1a0] sm:$0xff]   ;;  %v7051_v55 = vrot.slane %v7049_v63, 1  ;;  %v16882_v7 = vrot.slane %v16880_v30, 3  ;;  %v16892_v59 = vshll.u32 %v26078_v48, 16 }
 0x402   : > { %v16859_v29 = vor.u32 %v16858_v62, %v16855_v35  ;;  %v7046_v44 = vor.u32 %v7045_v50, %v7042_v10  ;;  %v7063_v62 = vrot.slane %v7061_v22, 2  ;;  %v26079_v10 = vld [vmem:[%s26315_s26 + $0x1a8] sm:$0xff]   ;;  %v7067_v49 = vshrl.u32 %v26077_v56, 16 }
 0x403   : > { %v16868_v36 = vor.u32 %v16867_v16, %v16864_v38  ;;  %v26080_v38 = vld [vmem:[%s26315_s26 + $0xa8] sm:$0xff]   ;;  %v7070_v16 = vshll.u32 %v26077_v56, 16  ;;  %v7055_v24 = vor.u32 %v7054_v37, %v7051_v55  ;;  %v26081_v37 = vld [vmem:[%s26315_s26 + $0x1b0] sm:$0xff]  }
 0x404   : > { %v16860_v54 = vsel %vm16744_vm6, %v16850_v32, %v16859_v29  ;;  %v7047_v35 = vsel %vm4398_vm4, %v7037_v21, %v7046_v44  ;;  %v16889_v32 = vshrl.u32 %v26078_v48, 16  ;;  %v16901_v22 = vshll.u32 %v26080_v38, 16 }
 0x405   : > { %v16869_v50 = vsel %vm16744_vm6, %v16859_v29, %v16868_v36  ;;  %v7069_v30 = vrot.slane %v7067_v49, 1 }
 0x406   : > { %v16891_v55 = vrot.slane %v16889_v32, 3 }
 0x407   : > { %23547 = vmatmul.mubr.bf16.gmra.mrb[84].mxu1 %v7020_v19  ;;  %v16873_v19 = vrot.slane %v16871_v17, 3  ;;  %v7076_v17 = vshrl.u32 %v26079_v10, 16 }
 0x408   : > { %24239 = vmatmul.mubr.bf16.gmra.mrb[16].mxu0 %v16842_v1  ;;  %23550 = vmatprep.mubr.bf16.mxu1 %v7029_v45  ;;  %v16876_v1 = vrot.slane %v16874_v34, 4  ;;  %v7060_v45 = vrot.slane %v7058_v0, 1  ;;  %v7079_v34 = vshll.u32 %v26079_v10, 16  ;;  %v16898_v0 = vshrl.u32 %v26080_v38, 16 }
 0x409   : > { %24242 = vmatprep.mubr.bf16.mxu0 %v16851_v11  ;;  %v16885_v11 = vrot.slane %v16883_v61, 4  ;;  %v7072_v61 = vrot.slane %v7070_v16, 2  ;;  %v7078_v48 = vrot.slane %v7076_v17, 1 }
 0x40a   : > { %v16877_v63 = vor.u32 %v16876_v1, %v16873_v19  ;;  %v7064_v21 = vor.u32 %v7063_v62, %v7060_v45  ;;  %v26082_v19 = vld [vmem:[%s26315_s26 + $0xb0] sm:$0xff]   ;;  %v26083_v45 = vld [vmem:[%s26315_s26 + $0x1b8] sm:$0xff]   ;;  %v16900_v10 = vrot.slane %v16898_v0, 3 }
 0x40b   : > { %v16886_v29 = vor.u32 %v16885_v11, %v16882_v7  ;;  %v26084_v7 = vld [vmem:[%s26315_s26 + $0xb8] sm:$0xff]   ;;  %v7073_v11 = vor.u32 %v7072_v61, %v7069_v30  ;;  %v16907_v38 = vshrl.u32 %v26082_v19, 16  ;;  %v16910_v49 = vshll.u32 %v26082_v19, 16 }
 0x40c   : > { %v16878_v56 = vsel %vm16744_vm6, %v16868_v36, %v16877_v63  ;;  %v7065_v1 = vsel %vm4398_vm4, %v7055_v24, %v7064_v21  ;;  %v7088_v36 = vshll.u32 %v26081_v37, 16  ;;  %v7094_v32 = vshrl.u32 %v26083_v45, 16 }
 0x40d   : > { %v16887_v62 = vsel %vm16744_vm6, %v16877_v63, %v16886_v29  ;;  %v16916_v17 = vshrl.u32 %v26084_v7, 16  ;;  %v7074_v0 = vsel %vm4398_vm4, %v7064_v21, %v7073_v11 }
 0x40e   : > { %v7090_v61 = vrot.slane %v7088_v36, 2 }
 0x40f   : > { %23551 = vmatmul.mubr.bf16.gmra.mrb[88].mxu1 %v7038_v57  ;;  %v7056_v57 = vsel %vm4398_vm4, %v7046_v44, %v7055_v24  ;;  %v7085_v44 = vshrl.u32 %v26081_v37, 16  ;;  %v26086_v37 = vld [vmem:[%s26315_s26 + $0xc0] sm:$0xff]  }
 0x410   : > { %24243 = vmatmul.mubr.bf16.gmra.mrb[20].mxu0 %v16860_v54  ;;  %23554 = vmatprep.mubr.bf16.mxu1 %v7047_v35  ;;  %v16894_v54 = vrot.slane %v16892_v59, 4  ;;  %v7081_v35 = vrot.slane %v7079_v34, 2  ;;  %v7097_v59 = vshll.u32 %v26083_v45, 16  ;;  %v16919_v34 = vshll.u32 %v26084_v7, 16 }
 0x411   : > { %24246 = vmatprep.mubr.bf16.mxu0 %v16869_v50  ;;  %v16903_v50 = vrot.slane %v16901_v22, 4  ;;  %v26085_v22 = vld [vmem:[%s26315_s26 + $0x1c0] sm:$0xff]   ;;  %v7087_v30 = vrot.slane %v7085_v44, 1  ;;  %v16918_v45 = vrot.slane %v16916_v17, 3  ;;  %v16928_v36 = vshll.u32 %v26086_v37, 16 }
 0x412   : > { %v16895_v16 = vor.u32 %v16894_v54, %v16891_v55  ;;  %v7082_v24 = vor.u32 %v7081_v35, %v7078_v48  ;;  %v7099_v54 = vrot.slane %v7097_v59, 2  ;;  %v26087_v48 = vld [vmem:[%s26315_s26 + $0x1c8] sm:$0xff]   ;;  %v7103_v21 = vshrl.u32 %v26085_v22, 16 }
 0x413   : > { %v16904_v63 = vor.u32 %v16903_v50, %v16900_v10  ;;  %v26088_v10 = vld [vmem:[%s26315_s26 + $0xc8] sm:$0xff]   ;;  %v7106_v50 = vshll.u32 %v26085_v22, 16  ;;  %v7091_v7 = vor.u32 %v7090_v61, %v7087_v30  ;;  %v26089_v61 = vld [vmem:[%s26315_s26 + $0x1d0] sm:$0xff]  }
 0x414   : > { %v16896_v19 = vsel %vm16744_vm6, %v16886_v29, %v16895_v16  ;;  %v7083_v55 = vsel %vm4398_vm4, %v7073_v11, %v7082_v24  ;;  %v16925_v29 = vshrl.u32 %v26086_v37, 16  ;;  %v16937_v59 = vshll.u32 %v26088_v10, 16 }
 0x415   : > { %v16905_v35 = vsel %vm16744_vm6, %v16895_v16, %v16904_v63  ;;  %v7105_v17 = vrot.slane %v7103_v21, 1 }
 0x416   : > { %v16927_v30 = vrot.slane %v16925_v29, 3 }
 0x417   : > { %23555 = vmatmul.mubr.bf16.gmra.mrb[92].mxu1 %v7056_v57  ;;  %v16909_v57 = vrot.slane %v16907_v38, 3  ;;  %v7112_v38 = vshrl.u32 %v26087_v48, 16 }
 0x418   : > { %24247 = vmatmul.mubr.bf16.gmra.mrb[24].mxu0 %v16878_v56  ;;  %23558 = vmatprep.mubr.bf16.mxu1 %v7065_v1  ;;  %v16912_v56 = vrot.slane %v16910_v49, 4  ;;  %v7096_v1 = vrot.slane %v7094_v32, 1  ;;  %v7115_v49 = vshll.u32 %v26087_v48, 16  ;;  %v16934_v32 = vshrl.u32 %v26088_v10, 16 }
 0x419   : > { %24250 = vmatprep.mubr.bf16.mxu0 %v16887_v62  ;;  %v16921_v62 = vrot.slane %v16919_v34, 4  ;;  %v7108_v34 = vrot.slane %v7106_v50, 2  ;;  %v7114_v37 = vrot.slane %v7112_v38, 1 }
 0x41a   : > { %v16913_v44 = vor.u32 %v16912_v56, %v16909_v57  ;;  %v7100_v11 = vor.u32 %v7099_v54, %v7096_v1  ;;  %v26090_v57 = vld [vmem:[%s26315_s26 + $0xd0] sm:$0xff]   ;;  %v26091_v1 = vld [vmem:[%s26315_s26 + $0x1d8] sm:$0xff]   ;;  %v16936_v48 = vrot.slane %v16934_v32, 3 }
 0x41b   : > { %v16922_v16 = vor.u32 %v16921_v62, %v16918_v45  ;;  %v26092_v45 = vld [vmem:[%s26315_s26 + $0xd8] sm:$0xff]   ;;  %v7109_v62 = vor.u32 %v7108_v34, %v7105_v17  ;;  %v16943_v10 = vshrl.u32 %v26090_v57, 16  ;;  %v16946_v21 = vshll.u32 %v26090_v57, 16 }
 0x41c   : > { %v16914_v22 = vsel %vm16744_vm6, %v16904_v63, %v16913_v44  ;;  %v7101_v56 = vsel %vm4398_vm4, %v7091_v7, %v7100_v11  ;;  %v7124_v63 = vshll.u32 %v26089_v61, 16  ;;  %v7130_v29 = vshrl.u32 %v26091_v1, 16 }
 0x41d   : > { %v16923_v54 = vsel %vm16744_vm6, %v16913_v44, %v16922_v16  ;;  %v16952_v38 = vshrl.u32 %v26092_v45, 16  ;;  %v7110_v32 = vsel %vm4398_vm4, %v7100_v11, %v7109_v62 }
 0x41e   : > { %v7126_v34 = vrot.slane %v7124_v63, 2 }
 0x41f   : > { %23559 = vmatmul.mubr.bf16.gmra.mrb[96].mxu1 %v7074_v0  ;;  %v7092_v0 = vsel %vm4398_vm4, %v7082_v24, %v7091_v7  ;;  %v7121_v24 = vshrl.u32 %v26089_v61, 16  ;;  %v26094_v61 = vld [vmem:[%s26315_s26 + $0xe0] sm:$0xff]  }
 0x420   : > { %24251 = vmatmul.mubr.bf16.gmra.mrb[28].mxu0 %v16896_v19  ;;  %23562 = vmatprep.mubr.bf16.mxu1 %v7083_v55  ;;  %v16930_v19 = vrot.slane %v16928_v36, 4  ;;  %v7117_v55 = vrot.slane %v7115_v49, 2  ;;  %v7133_v36 = vshll.u32 %v26091_v1, 16  ;;  %v16955_v49 = vshll.u32 %v26092_v45, 16 }
 0x421   : > { %24254 = vmatprep.mubr.bf16.mxu0 %v16905_v35  ;;  %v16939_v35 = vrot.slane %v16937_v59, 4  ;;  %v26093_v59 = vld [vmem:[%s26315_s26 + $0x1e0] sm:$0xff]   ;;  %v7123_v17 = vrot.slane %v7121_v24, 1  ;;  %v16954_v1 = vrot.slane %v16952_v38, 3  ;;  %v16961_v63 = vshrl.u32 %v26094_v61, 16 }
 0x422   : > { %v16931_v50 = vor.u32 %v16930_v19, %v16927_v30  ;;  %v7118_v7 = vor.u32 %v7117_v55, %v7114_v37  ;;  %v7135_v19 = vrot.slane %v7133_v36, 2  ;;  %v26095_v37 = vld [vmem:[%s26315_s26 + $0x1e8] sm:$0xff]   ;;  %v7139_v11 = vshrl.u32 %v26093_v59, 16 }
 0x423   : > { %v16940_v44 = vor.u32 %v16939_v35, %v16936_v48  ;;  %v26096_v48 = vld [vmem:[%s26315_s26 + $0xe8] sm:$0xff]   ;;  %v7142_v35 = vshll.u32 %v26093_v59, 16  ;;  %v7127_v45 = vor.u32 %v7126_v34, %v7123_v17 }
 0x424   : > { %v16932_v57 = vsel %vm16744_vm6, %v16922_v16, %v16931_v50  ;;  %v7119_v30 = vsel %vm4398_vm4, %v7109_v62, %v7118_v7  ;;  %v16964_v62 = vshll.u32 %v26094_v61, 16  ;;  %v16970_v36 = vshrl.u32 %v26096_v48, 16  ;;  %v26097_v61 = vld [vmem:[%s26315_s26 + $0x1f0] sm:$0xff]  }
 0x425   : > { %v16941_v55 = vsel %vm16744_vm6, %v16931_v50, %v16940_v44  ;;  %v16973_v38 = vshll.u32 %v26096_v48, 16  ;;  %v7144_v59 = vrot.slane %v7142_v35, 2  ;;  %v7128_v34 = vsel %vm4398_vm4, %v7118_v7, %v7127_v45  ;;  %v26100_v35 = vld [vmem:[%s26315_s26 + $0xf8] sm:$0xff]  }
 0x426   : > { %v16972_v48 = vrot.slane %v16970_v36, 3  ;;  %v16988_v36 = vshrl.u32 %v26100_v35, 16 }
 0x427   : > { %23563 = vmatmul.mubr.bf16.gmra.mrb[100].mxu1 %v7092_v0  ;;  %v16945_v0 = vrot.slane %v16943_v10, 3  ;;  %v7148_v10 = vshrl.u32 %v26095_v37, 16 }
 0x428   : > { %24255 = vmatmul.mubr.bf16.gmra.mrb[32].mxu0 %v16914_v22  ;;  %23566 = vmatprep.mubr.bf16.mxu1 %v7101_v56  ;;  %v16948_v22 = vrot.slane %v16946_v21, 4  ;;  %v7132_v56 = vrot.slane %v7130_v29, 1  ;;  %v7151_v21 = vshll.u32 %v26095_v37, 16 }
 0x429   : > { %24258 = vmatprep.mubr.bf16.mxu0 %v16923_v54  ;;  %v16957_v54 = vrot.slane %v16955_v49, 4  ;;  %v7150_v37 = vrot.slane %v7148_v10, 1 }
 0x42a   : > { %v16949_v24 = vor.u32 %v16948_v22, %v16945_v0  ;;  %v7136_v16 = vor.u32 %v7135_v19, %v7132_v56  ;;  %v16963_v22 = vrot.slane %v16961_v63, 3  ;;  %v16966_v19 = vrot.slane %v16964_v62, 4 }
 0x42b   : > { %v16958_v50 = vor.u32 %v16957_v54, %v16954_v1  ;;  %v26099_v1 = vld [vmem:[%s26315_s26 + $0x1f8] sm:$0xff]   ;;  %v7160_v63 = vshll.u32 %v26097_v61, 16 }
 0x42c   : > { %v16950_v0 = vsel %vm16744_vm6, %v16940_v44, %v16949_v24  ;;  %v7137_v56 = vsel %vm4398_vm4, %v7127_v45, %v7136_v16  ;;  %v7157_v44 = vshrl.u32 %v26097_v61, 16  ;;  %v16967_v45 = vor.u32 %v16966_v19, %v16963_v22  ;;  %v26102_v19 = vld [vmem:[%s26315_s26 + $0x100] sm:$0xff]  }
 0x42d   : > { %v16959_v54 = vsel %vm16744_vm6, %v16949_v24, %v16958_v50  ;;  %v7166_v10 = vshrl.u32 %v26099_v1, 16  ;;  %v7162_v22 = vrot.slane %v7160_v63, 2  ;;  %v16997_v25 = vshrl.u32 %v26102_v19, 16 }
 0x42e   : > { %v7159_v61 = vrot.slane %v7157_v44, 1 }
 0x42f   : > { %23567 = vmatmul.mubr.bf16.gmra.mrb[104].mxu1 %v7110_v32  ;;  %v7141_v32 = vrot.slane %v7139_v11, 1  ;;  %v16975_v11 = vrot.slane %v16973_v38, 4  ;;  %v16991_v38 = vshll.u32 %v26100_v35, 16  ;;  %v16990_v35 = vrot.slane %v16988_v36, 3 }
 0x430   : > { %24259 = vmatmul.mubr.bf16.gmra.mrb[36].mxu0 %v16932_v57  ;;  %23570 = vmatprep.mubr.bf16.mxu1 %v7119_v30  ;;  %v26098_v57 = vld [vmem:[%s26315_s26 + $0xf0] sm:$0xff]   ;;  %v17006_v36 = vshrl.u32 %v26104_v12, 16 }
 0x431   : > { %24262 = vmatprep.mubr.bf16.mxu0 %v16941_v55  ;;  %v7153_v55 = vrot.slane %v7151_v21, 2  ;;  %v7145_v7 = vor.u32 %v7144_v59, %v7141_v32  ;;  %v16979_v23 = vshrl.u32 %v26098_v57, 16  ;;  %v16982_v26 = vshll.u32 %v26098_v57, 16 }
 0x432   : > { %v28251_v29 = vpop.f32.mrb[0].mxu1  ;;  %v7169_v21 = vshll.u32 %v26099_v1, 16  ;;  %v16976_v24 = vor.u32 %v16975_v11, %v16972_v48  ;;  %v26103_v11 = vld [vmem:[%s26315_s26 + $0x208] sm:$0xff]   ;;  %v16993_v43 = vrot.slane %v16991_v38, 4  ;;  %v17009_v38 = vshll.u32 %v26104_v12, 16 }
 0x433   : > { %v28253_v49 = vpop.f32.mrb[1].mxu1  ;;  %v7154_v62 = vor.u32 %v7153_v55, %v7150_v37  ;;  %v7146_v59 = vsel %vm4398_vm4, %v7136_v16, %v7145_v7  ;;  %v16981_v57 = vrot.slane %v16979_v23, 3  ;;  %v16968_v55 = vsel %vm16744_vm6, %v16958_v50, %v16967_v45 }
 0x434   : > { %v28255_v17 = vpop.f32.mrb[2].mxu1  ;;  %v7171_v48 = vrot.slane %v7169_v21, 2  ;;  %v16977_v16 = vsel %vm16744_vm6, %v16967_v45, %v16976_v24  ;;  %v7187_v21 = vshll.u32 %v26103_v11, 16  ;;  %v16994_v45 = vor.u32 %v16993_v43, %v16990_v35 }
 0x435   : > { %v28261_v30 = vpop.f32.mrb[3].mxu1  ;;  %v7155_v1 = vsel %vm4398_vm4, %v7145_v7, %v7154_v62  ;;  %v17000_v7 = vshll.u32 %v26102_v19, 16  ;;  %v26105_v19 = vld [vmem:[%s26315_s26 + $0x210] sm:$0xff]  }
 0x437   : > { %23571 = vmatmul.mubr.bf16.gmra.mrb[108].mxu1 %v7128_v34  ;;  %v26101_v34 = vld [vmem:[%s26315_s26 + $0x200] sm:$0xff]  }
 0x438   : > { %24263 = vmatmul.mubr.bf16.gmra.mrb[40].mxu0 %v16950_v0  ;;  %23574 = vmatprep.mubr.bf16.mxu1 %v7137_v56  ;;  %v16984_v56 = vrot.slane %v16982_v26, 4  ;;  %v7175_v44 = vshrl.u32 %v26101_v34, 16  ;;  %v7178_v63 = vshll.u32 %v26101_v34, 16  ;;  %v7163_v26 = vor.u32 %v7162_v22, %v7159_v61 }
 0x439   : > { %24266 = vmatprep.mubr.bf16.mxu0 %v16959_v54  ;;  %v7168_v54 = vrot.slane %v7166_v10, 1  ;;  %v7184_v10 = vshrl.u32 %v26103_v11, 16  ;;  %v7189_v11 = vrot.slane %v7187_v21, 2 }
 0x43a   : > { %v28267_v8 = vpop.f32.mrb[4].mxu1  ;;  %v16985_v23 = vor.u32 %v16984_v56, %v16981_v57  ;;  %v7177_v34 = vrot.slane %v7175_v44, 1  ;;  %v7164_v22 = vsel %vm4398_vm4, %v7154_v62, %v7163_v26  ;;  %v16999_v56 = vrot.slane %v16997_v25, 3 }
 0x43b   : > { %v28269_v32 = vpop.f32.mrb[5].mxu1  ;;  %v7172_v50 = vor.u32 %v7171_v48, %v7168_v54  ;;  %v17002_v48 = vrot.slane %v17000_v7, 4  ;;  %v7186_v12 = vrot.slane %v7184_v10, 1  ;;  %v17008_v44 = vrot.slane %v17006_v36, 3 }
 0x43c   : > { %v28273_v0 = vpop.f32.mrb[6].mxu1  ;;  %v16986_v57 = vsel %vm16744_vm6, %v16976_v24, %v16985_v23  ;;  %v16995_v35 = vsel %vm16744_vm6, %v16985_v23, %v16994_v45  ;;  %v7193_v25 = vshrl.u32 %v26105_v19, 16  ;;  %v7196_v24 = vshll.u32 %v26105_v19, 16 }
 0x43d   : > { %v28276_v37 = vpop.f32.mrb[7].mxu1  ;;  %v7173_v43 = vsel %vm4398_vm4, %v7163_v26, %v7172_v50  ;;  %v17003_v26 = vor.u32 %v17002_v48, %v16999_v56  ;;  %v7190_v7 = vor.u32 %v7189_v11, %v7186_v12  ;;  %v17024_v36 = vshrl.u32 %v26108_v46, 16  ;;  %v26110_v48 = vld [vmem:[%s26315_s26 + $0x120] sm:$0xff]  }
 0x43e   : > { %v7195_v19 = vrot.slane %v7193_v25, 1  ;;  %v7198_v56 = vrot.slane %v7196_v24, 2  ;;  %v17033_v41 = vshrl.u32 %v26110_v48, 16 }
 0x43f   : > { %23575 = vmatmul.mubr.bf16.gmra.mrb[112].mxu1 %v7146_v59  ;;  %v17004_v11 = vsel %vm16744_vm6, %v16994_v45, %v17003_v26 }
 0x440   : > { %24267 = vmatmul.mubr.bf16.gmra.mrb[44].mxu0 %v16968_v55  ;;  %23578 = vmatprep.mubr.bf16.mxu1 %v7155_v1  ;;  %v7180_v55 = vrot.slane %v7178_v63, 2  ;;  %v26106_v1 = vld [vmem:[%s26315_s26 + $0x110] sm:$0xff]   ;;  %v17011_v63 = vrot.slane %v17009_v38, 4  ;;  %v17027_v38 = vshll.u32 %v26108_v46, 16 }
 0x441   : > { %24270 = vmatprep.mubr.bf16.mxu0 %v16977_v16  ;;  %v26107_v16 = vld [vmem:[%s26315_s26 + $0x218] sm:$0xff]   ;;  %v17015_v9 = vshrl.u32 %v26106_v1, 16  ;;  %v17018_v33 = vshll.u32 %v26106_v1, 16 }
 0x442   : > { %v28283_v4 = vpop.f32.mrb[8].mxu1  ;;  %v7181_v62 = vor.u32 %v7180_v55, %v7177_v34  ;;  %v7202_v10 = vshrl.u32 %v26107_v16, 16  ;;  %v7205_v21 = vshll.u32 %v26107_v16, 16  ;;  %v17012_v23 = vor.u32 %v17011_v63, %v17008_v44  ;;  %v26111_v44 = vld [vmem:[%s26315_s26 + $0x228] sm:$0xff]  }
 0x443   : > { %v28285_v59 = vpop.f32.mrb[9].mxu1  ;;  %v17017_v1 = vrot.slane %v17015_v9, 3  ;;  %v17026_v63 = vrot.slane %v17024_v36, 3  ;;  %v17029_v51 = vrot.slane %v17027_v38, 4  ;;  %v17042_v36 = vshrl.u32 %v26112_v18, 16 }
 0x444   : > { %v28287_v61 = vpop.f32.mrb[10].mxu1  ;;  %v7182_v55 = vsel %vm4398_vm4, %v7172_v50, %v7181_v62  ;;  %v7191_v16 = vsel %vm4398_vm4, %v7181_v62, %v7190_v7  ;;  %v7204_v46 = vrot.slane %v7202_v10, 1  ;;  %v17013_v50 = vsel %vm16744_vm6, %v17003_v26, %v17012_v23 }
 0x445   : > { %v28293_v54 = vpop.f32.mrb[11].mxu1  ;;  %v17036_v62 = vshll.u32 %v26110_v48, 16  ;;  %v7220_v10 = vshrl.u32 %v26111_v44, 16  ;;  %v17030_v26 = vor.u32 %v17029_v51, %v17026_v63  ;;  %v17045_v38 = vshll.u32 %v26112_v18, 16 }
 0x446   : > { %v26113_v48 = vld [vmem:[%s26315_s26 + $0x230] ss:$0 sps:$4 sm:$0x33]   ;;  %v17044_v63 = vrot.slane %v17042_v36, 3 }
 0x447   : > { %23579 = vmatmul.mubr.bf16.gmra.mrb[116].mxu1 %v7164_v22  ;;  %v26109_v22 = vld [vmem:[%s26315_s26 + $0x220] sm:$0xff]  }
 0x448   : > { %24271 = vmatmul.mubr.bf16.gmra.mrb[48].mxu0 %v16986_v57  ;;  %23582 = vmatprep.mubr.bf16.mxu1 %v7173_v43  ;;  %v17020_v43 = vrot.slane %v17018_v33, 4  ;;  %v7211_v25 = vshrl.u32 %v26109_v22, 16  ;;  %v7199_v33 = vor.u32 %v7198_v56, %v7195_v19  ;;  %v7214_v24 = vshll.u32 %v26109_v22, 16 }
 0x449   : > { %24274 = vmatprep.mubr.bf16.mxu0 %v16995_v35  ;;  %v7207_v35 = vrot.slane %v7205_v21, 2  ;;  %v7223_v21 = vshll.u32 %v26111_v44, 16  ;;  %v26114_v44 = vld [vmem:[%s26315_s26 + $0x130] sm:$0xff]  }
 0x44a   : > { %v28299_v60 = vpop.f32.mrb[12].mxu1  ;;  %v17021_v9 = vor.u32 %v17020_v43, %v17017_v1  ;;  %v7200_v22 = vsel %vm4398_vm4, %v7190_v7, %v7199_v33  ;;  %v7216_v1 = vrot.slane %v7214_v24, 2  ;;  %v17035_v43 = vrot.slane %v17033_v41, 3 }
 0x44b   : > { %30333 = vst [vmem:[#allocation33_spill] sm:$0xff] %v28299_v60  ;;  %v28301_v34 = vpop.f32.mrb[13].mxu1  ;;  %v7208_v45 = vor.u32 %v7207_v35, %v7204_v46  ;;  %v17038_v46 = vrot.slane %v17036_v62, 4  ;;  %v7222_v35 = vrot.slane %v7220_v10, 1  ;;  %v7225_v18 = vrot.slane %v7223_v21, 2 }
 0x44c   : > { %30334 = vst [vmem:[#allocation34_spill] sm:$0xff] %v28301_v34  ;;  %v28305_v57 = vpop.f32.mrb[14].mxu1  ;;  %v17022_v56 = vsel %vm16744_vm6, %v17012_v23, %v17021_v9  ;;  %v7229_v23 = vshrl.u32 %v26113_v48, 16  ;;  %v7232_v41 = vshll.u32 %v26113_v48, 16  ;;  %v17063_v21 = vshll.u32 %v26116_v3, 16 }
 0x44d   : > { %30335 = vst [vmem:[#allocation35_spill] sm:$0xff] %v28305_v57  ;;  %v28308_v12 = vpop.f32.mrb[15].mxu1  ;;  %v7209_v51 = vsel %vm4398_vm4, %v7199_v33, %v7208_v45  ;;  %v17039_v24 = vor.u32 %v17038_v46, %v17035_v43  ;;  %v17054_v33 = vshll.u32 %v26114_v44, 16 }
 0x44e   : > { %30336 = vst [vmem:[#allocation36_spill] sm:$0xff] %v28308_v12 }
 0x44f   : > { %23583 = vmatmul.mubr.bf16.gmra.mrb[120].mxu1 %v7182_v55  ;;  %v17040_v43 = vsel %vm16744_vm6, %v17030_v26, %v17039_v24  ;;  %v17056_v46 = vrot.slane %v17054_v33, 4 }
 0x450   : > { %24275 = vmatmul.mubr.bf16.gmra.mrb[52].mxu0 %v17004_v11  ;;  %23586 = vmatprep.mubr.bf16.mxu1 %v7191_v16  ;;  %v7213_v11 = vrot.slane %v7211_v25, 1  ;;  %v17047_v25 = vrot.slane %v17045_v38, 4 }
 0x451   : > { %24278 = vmatprep.mubr.bf16.mxu0 %v17013_v50  ;;  %v17031_v50 = vsel %vm16744_vm6, %v17021_v9, %v17030_v26  ;;  %v17060_v9 = vshrl.u32 %v26116_v3, 16 }
 0x452   : > { %v28315_v6 = vpop.f32.mrb[16].mxu1  ;;  %v7217_v7 = vor.u32 %v7216_v1, %v7213_v11  ;;  %v17048_v10 = vor.u32 %v17047_v25, %v17044_v63  ;;  %v26120_v63 = vld [vmem:[%s26315_s26 + $0x148] sm:$0xff]  }
 0x453   : > { %30337 = vst [vmem:[#allocation37_spill] sm:$0xff] %v28315_v6  ;;  %v28317_v55 = vpop.f32.mrb[17].mxu1  ;;  %v17078_v33 = vshrl.u32 %v26120_v63, 16 }
 0x454   : > { %30338 = vst [vmem:[#allocation38_spill] sm:$0xff] %v28317_v55  ;;  %v28319_v19 = vpop.f32.mrb[18].mxu1  ;;  %v7218_v11 = vsel %vm4398_vm4, %v7208_v45, %v7217_v7  ;;  %v17049_v3 = vsel %vm16744_vm6, %v17039_v24, %v17048_v10  ;;  %v17081_v24 = vshll.u32 %v26120_v63, 16 }
 0x455   : > { %30339 = vst [vmem:[#allocation39_spill] sm:$0xff] %v28319_v19  ;;  %v28324_v16 = vpop.f32.mrb[19].mxu1  ;;  %v17051_v19 = vshrl.u32 %v26114_v44, 16  ;;  %v17062_v44 = vrot.slane %v17060_v9, 3 }
 0x456   : > { %30340 = vst [vmem:[#allocation40_spill] sm:$0xff] %v28324_v16  ;;  %v7226_v16 = vor.u32 %v7225_v18, %v7222_v35  ;;  %v26115_v35 = vld [vmem:[%s26315_s26 + $0x128] sm:$0xff]   ;;  %v26118_v18 = vld [vmem:[%s26315_s26 + $0x140] sm:$0xff]   ;;  %v17083_v63 = vrot.slane %v17081_v24, 4 }
 0x457   : > { %23587 = vmatmul.mubr.bf16.gmra.mrb[124].mxu1 %v7200_v22  ;;  %v7231_v22 = vrot.slane %v7229_v23, 1  ;;  %v8905_v23 = vrot.slane %v26115_v35, 2  ;;  %v17069_v26 = vshrl.u32 %v26118_v18, 16 }
 0x458   : > { %24279 = vmatmul.mubr.bf16.gmra.mrb[56].mxu0 %v17022_v56  ;;  %23590 = vmatprep.mubr.bf16.mxu1 %v7209_v51  ;;  %v7234_v56 = vrot.slane %v7232_v41, 2  ;;  %v7227_v48 = vsel %vm4398_vm4, %v7217_v7, %v7226_v16  ;;  %v17053_v51 = vrot.slane %v17051_v19, 3  ;;  %v17072_v19 = vshll.u32 %v26118_v18, 16  ;;  %v26119_v18 = vld [vmem:[%s26315_s26 + $0x138] sm:$0xff]  }
 0x459   : > { %24282 = vmatprep.mubr.bf16.mxu0 %v17031_v50  ;;  %v17065_v50 = vrot.slane %v17063_v21, 4 }
 0x45a   : > { %v28330_v62 = vpop.f32.mrb[20].mxu1  ;;  %v7235_v45 = vor.u32 %v7234_v56, %v7231_v22  ;;  %v17057_v25 = vor.u32 %v17056_v46, %v17053_v51  ;;  %v26117_v22 = vld [vmem:[%s26315_s26 + $0x130] sm:$0xff]   ;;  %v17071_v46 = vrot.slane %v17069_v26, 3  ;;  %v17074_v35 = vrot.slane %v17072_v19, 4 }
 0x45b   : > { %30341 = vst [vmem:[#allocation41_spill] sm:$0xff] %v28330_v62  ;;  %v28332_v36 = vpop.f32.mrb[21].mxu1  ;;  %v17066_v41 = vor.u32 %v17065_v50, %v17062_v44  ;;  %v17080_v50 = vrot.slane %v17078_v33, 3 }
 0x45c   : > { %30342 = vst [vmem:[#allocation42_spill] sm:$0xff] %v28332_v36  ;;  %v28334_v38 = vpop.f32.mrb[22].mxu1 }
 0x45d   : > { %30343 = vst [vmem:[#allocation43_spill] sm:$0xff] %v28334_v38  ;;  %v28337_v1 = vpop.f32.mrb[23].mxu1  ;;  %v17067_v44 = vsel %vm16744_vm6, %v17057_v25, %v17066_v41 }
 0x45e   : > { %30344 = vst [vmem:[#allocation44_spill] sm:$0xff] %v28337_v1 }
 0x45f   : > { %23591 = vmatmul.mubr.bf16.gmra.mrb[128].mxu1 %v7218_v11  ;;  %v7236_v11 = vsel %vm4398_vm4, %v7226_v16, %v7235_v45  ;;  %v8907_v16 = vrot.slane %v26117_v22, 2  ;;  %v8909_v45 = vrot.slane %v26119_v18, 2  ;;  %v26121_v22 = vld [vmem:[%s26315_s26 + $0x140] sm:$0xff]  }
 0x460   : > { %24283 = vmatmul.mubr.bf16.gmra.mrb[60].mxu0 %v17040_v43  ;;  %23594 = vmatprep.mubr.bf16.mxu1 %v7227_v48  ;;  %v17058_v43 = vsel %vm16744_vm6, %v17048_v10, %v17057_v25  ;;  %v30349_v48 = vrot.slane %v26515_v20, 2  ;;  %v17075_v10 = vor.u32 %v17074_v35, %v17071_v46 }
 0x461   : > { %24286 = vmatprep.mubr.bf16.mxu0 %v17049_v3  ;;  %v26122_v3 = vld [vmem:[%s26315_s26 + $0x150] sm:$0xff]   ;;  %v8910_v46 = vsel %vm8835_vm0, %v8907_v16, %v8909_v45 }
 0x462   : > { %v28345_v7 = vpop.f32.mrb[24].mxu1  ;;  %v8906_v51 = vsel %vm8835_vm0, %v30349_v48, %v8905_v23  ;;  %v17087_v20 = vshrl.u32 %v26122_v3, 16  ;;  %v17090_v26 = vshll.u32 %v26122_v3, 16  ;;  %v17084_v48 = vor.u32 %v17083_v63, %v17080_v50  ;;  %v26123_v3 = vld [vmem:[%s26315_s26 + $0x148] sm:$0xff]  }
 0x463   : > { %30345 = vst [vmem:[#allocation45_spill] sm:$0xff] %v28345_v7  ;;  %v28347_v9 = vpop.f32.mrb[25].mxu1 }
 0x464   : > { %30346 = vst [vmem:[#allocation46_spill] sm:$0xff] %v28347_v9  ;;  %v28349_v21 = vpop.f32.mrb[26].mxu1  ;;  %v17089_v35 = vrot.slane %v17087_v20, 3  ;;  %v17092_v18 = vrot.slane %v17090_v26, 4  ;;  %v17085_v50 = vsel %vm16744_vm6, %v17075_v10, %v17084_v48  ;;  %v26145_v9 = vld [vmem:[%s26315_s26 + $0x1a0] sm:$0xff]  }
 0x465   : > { %30347 = vst [vmem:[#allocation47_spill] sm:$0xff] %v28349_v21  ;;  %v28353_v56 = vpop.f32.mrb[27].mxu1  ;;  %v26124_v21 = vld [vmem:[%s26315_s26 + $0x158] sm:$0xff]  }
 0x466   : > { %30348 = vst [vmem:[#allocation48_spill] sm:$0xff] %v28353_v56  ;;  %v17096_v56 = vshrl.u32 %v26124_v21, 16  ;;  %v17099_v25 = vshll.u32 %v26124_v21, 16 }
 0x467   : > { %23595 = vmatmul.mubr.bf16.gmra.mrb[132].mxu1 %v7236_v11  ;;  %v8908_v11 = vsel %vm8835_vm0, %v8905_v23, %v8907_v16  ;;  %v8911_v23 = vrot.slane %v26121_v22, 2  ;;  %v26125_v22 = vld [vmem:[%s26315_s26 + $0x150] sm:$0xff]  }
 0x468   : > { %24287 = vmatmul.mubr.bf16.gmra.mrb[64].mxu0 %v17058_v43  ;;  %23682 = vmatprep.mubr.bf16.mxu1 %v8906_v51  ;;  %v17076_v51 = vsel %vm16744_vm6, %v17066_v41, %v17075_v10  ;;  %v17098_v21 = vrot.slane %v17096_v56, 3  ;;  %v17101_v63 = vrot.slane %v17099_v25, 4 }
 0x469   : > { %24290 = vmatprep.mubr.bf16.mxu0 %v17067_v44  ;;  %v26126_v44 = vld [vmem:[%s26315_s26 + $0x160] sm:$0xff]  }
 0x46a   : > { %v28363_v19 = vpop.f32.mrb[28].mxu1  ;;  %v17105_v41 = vshrl.u32 %v26126_v44, 16  ;;  %v17108_v16 = vshll.u32 %v26126_v44, 16  ;;  %v17102_v26 = vor.u32 %v17101_v63, %v17098_v21  ;;  %v26127_v44 = vld [vmem:[%s26315_s26 + $0x158] sm:$0xff]  }
 0x46b   : > { %30350 = vst [vmem:[#allocation49_spill] sm:$0xff] %v28363_v19  ;;  %v28365_v33 = vpop.f32.mrb[29].mxu1 }
 0x46c   : > { %30351 = vst [vmem:[#allocation50_spill] sm:$0xff] %v28365_v33  ;;  %v28367_v24 = vpop.f32.mrb[30].mxu1  ;;  %v26128_v33 = vld [vmem:[%s26315_s26 + $0x168] sm:$0xff]  }
 0x46d   : > { %30352 = vst [vmem:[#allocation51_spill] sm:$0xff] %v28367_v24  ;;  %v28371_v43 = vpop.f32.mrb[31].mxu1  ;;  %v8913_v24 = vrot.slane %v26123_v3, 2  ;;  %v17114_v19 = vshrl.u32 %v26128_v33, 16  ;;  %v17117_v56 = vshll.u32 %v26128_v33, 16  ;;  %v17110_v3 = vrot.slane %v17108_v16, 4 }
 0x46e   : > { %30353 = vst [vmem:[#allocation52_spill] sm:$0xff] %v28371_v43  ;;  %v17093_v43 = vor.u32 %v17092_v18, %v17089_v35  ;;  %v17107_v18 = vrot.slane %v17105_v41, 3 }
 0x46f   : > { %23683 = vmatmul.mubr.bf16.vlgmr.msra.gmra.mrb[68].mxu1 %v8908_v11  ;;  %v8912_v11 = vsel %vm8835_vm0, %v8909_v45, %v8911_v23  ;;  %v8914_v35 = vsel %vm8835_vm0, %v8911_v23, %v8913_v24  ;;  %v17116_v33 = vrot.slane %v17114_v19, 3  ;;  %v17119_v63 = vrot.slane %v17117_v56, 4 }
 0x470   : > { %24291 = vmatmul.mubr.bf16.gmra.mrb[68].mxu0 %v17076_v51  ;;  %23686 = vmatprep.mubr.bf16.mxu1 %v8910_v46  ;;  %v17094_v46 = vsel %vm16744_vm6, %v17084_v48, %v17093_v43  ;;  %v17103_v21 = vsel %vm16744_vm6, %v17093_v43, %v17102_v26  ;;  %v8915_v45 = vrot.slane %v26125_v22, 2  ;;  %v8917_v48 = vrot.slane %v26127_v44, 2  ;;  %v26134_v22 = vld [vmem:[%s26315_s26 + $0x180] sm:$0xff]  }
 0x471   : > { %24294 = vmatprep.mubr.bf16.mxu0 %v17085_v50  ;;  %v26130_v50 = vld [vmem:[%s26315_s26 + $0x170] sm:$0xff]   ;;  %v17120_v16 = vor.u32 %v17119_v63, %v17116_v33 }
 0x472   : > { %v28379_v20 = vpop.f32.mrb[32].mxu1  ;;  %v17126_v23 = vshll.u32 %v26130_v50, 16 }
 0x473   : > { %30354 = vst [vmem:[#allocation53_spill] sm:$0xff] %v28379_v20  ;;  %v28381_v10 = vpop.f32.mrb[33].mxu1 }
 0x474   : > { %30355 = vst [vmem:[#allocation54_spill] sm:$0xff] %v28381_v10  ;;  %v28383_v25 = vpop.f32.mrb[34].mxu1  ;;  %v26132_v10 = vld [vmem:[%s26315_s26 + $0x178] sm:$0xff]  }
 0x475   : > { %30356 = vst [vmem:[#allocation55_spill] sm:$0xff] %v28383_v25  ;;  %v28387_v51 = vpop.f32.mrb[35].mxu1  ;;  %v17123_v25 = vshrl.u32 %v26130_v50, 16  ;;  %v17132_v20 = vshrl.u32 %v26132_v10, 16  ;;  %v17135_v19 = vshll.u32 %v26132_v10, 16  ;;  %v17128_v50 = vrot.slane %v17126_v23, 4 }
 0x476   : > { %30357 = vst [vmem:[#allocation56_spill] sm:$0xff] %v28387_v51  ;;  %v17111_v51 = vor.u32 %v17110_v3, %v17107_v18  ;;  %v8918_v3 = vsel %vm8835_vm0, %v8915_v45, %v8917_v48 }
 0x477   : > { %23687 = vmatmul.mubr.bf16.gmra.mrb[72].mxu1 %v8912_v11  ;;  %v8916_v11 = vsel %vm8835_vm0, %v8913_v24, %v8915_v45  ;;  %v17125_v44 = vrot.slane %v17123_v25, 3  ;;  %v17134_v10 = vrot.slane %v17132_v20, 3  ;;  %v17137_v63 = vrot.slane %v17135_v19, 4 }
 0x478   : > { %24295 = vmatmul.mubr.bf16.gmra.mrb[72].mxu0 %v17094_v46  ;;  %23690 = vmatprep.mubr.bf16.mxu1 %v8914_v35  ;;  %v26129_v46 = vld [vmem:[%s26315_s26 + $0x160] sm:$0xff]   ;;  %v17112_v18 = vsel %vm16744_vm6, %v17102_v26, %v17111_v51  ;;  %v17121_v33 = vsel %vm16744_vm6, %v17111_v51, %v17120_v16 }
 0x479   : > { %24298 = vmatprep.mubr.bf16.mxu0 %v17103_v21  ;;  %v26131_v21 = vld [vmem:[%s26315_s26 + $0x168] sm:$0xff]   ;;  %v8919_v24 = vrot.slane %v26129_v46, 2  ;;  %v17129_v26 = vor.u32 %v17128_v50, %v17125_v44  ;;  %v17138_v23 = vor.u32 %v17137_v63, %v17134_v10  ;;  %v26133_v46 = vld [vmem:[%s26315_s26 + $0x170] sm:$0xff]   ;;  %v26140_v10 = vld [vmem:[%s26315_s26 + $0x198] sm:$0xff]  }
 0x47a   : > { %v28395_v41 = vpop.f32.mrb[36].mxu1  ;;  %v8921_v45 = vrot.slane %v26131_v21, 2  ;;  %v26135_v21 = vld [vmem:[%s26315_s26 + $0x178] sm:$0xff]  }
 0x47b   : > { %30358 = vst [vmem:[#allocation57_spill] sm:$0xff] %v28395_v41  ;;  %v28397_v43 = vpop.f32.mrb[37].mxu1  ;;  %v17130_v44 = vsel %vm16744_vm6, %v17120_v16, %v17129_v26 }
 0x47c   : > { %30359 = vst [vmem:[#allocation58_spill] sm:$0xff] %v28397_v43  ;;  %v28399_v56 = vpop.f32.mrb[38].mxu1  ;;  %v26136_v43 = vld [vmem:[%s26315_s26 + $0x188] sm:$0xff]   ;;  %v8922_v50 = vsel %vm8835_vm0, %v8919_v24, %v8921_v45 }
 0x47d   : > { %30360 = vst [vmem:[#allocation59_spill] sm:$0xff] %v28399_v56  ;;  %v28404_v35 = vpop.f32.mrb[39].mxu1  ;;  %v17141_v56 = vshrl.u32 %v26134_v22, 16  ;;  %v17150_v51 = vshrl.u32 %v26136_v43, 16  ;;  %v17153_v20 = vshll.u32 %v26136_v43, 16  ;;  %v17139_v43 = vsel %vm16744_vm6, %v17129_v26, %v17138_v23 }
 0x47e   : > { %30361 = vst [vmem:[#allocation60_spill] sm:$0xff] %v28404_v35  ;;  %v17144_v35 = vshll.u32 %v26134_v22, 16  ;;  %v26138_v22 = vld [vmem:[%s26315_s26 + $0x190] sm:$0xff]  }
 0x47f   : > { %23691 = vmatmul.mubr.bf16.gmra.mrb[76].mxu1 %v8916_v11  ;;  %v17152_v63 = vrot.slane %v17150_v51, 3  ;;  %v17162_v16 = vshll.u32 %v26138_v22, 16 }
 0x480   : > { %24299 = vmatmul.mubr.bf16.gmra.mrb[76].mxu0 %v17112_v18  ;;  %23694 = vmatprep.mubr.bf16.mxu1 %v8918_v3  ;;  %v8920_v18 = vsel %vm8835_vm0, %v8917_v48, %v8919_v24  ;;  %v17143_v3 = vrot.slane %v17141_v56, 3  ;;  %v17146_v41 = vrot.slane %v17144_v35, 4  ;;  %v8923_v48 = vrot.slane %v26133_v46, 2 }
 0x481   : > { %24302 = vmatprep.mubr.bf16.mxu0 %v17121_v33  ;;  %v17159_v35 = vshrl.u32 %v26138_v22, 16  ;;  %v17171_v24 = vshll.u32 %v26140_v10, 16 }
 0x482   : > { %v28411_v25 = vpop.f32.mrb[40].mxu1  ;;  %v17147_v56 = vor.u32 %v17146_v41, %v17143_v3  ;;  %v26137_v41 = vld [vmem:[%s26315_s26 + $0x180] sm:$0xff]  }
 0x483   : > { %30362 = vst [vmem:[#allocation61_spill] sm:$0xff] %v28411_v25  ;;  %v28413_v19 = vpop.f32.mrb[41].mxu1  ;;  %v17161_v3 = vrot.slane %v17159_v35, 3 }
 0x484   : > { %30363 = vst [vmem:[#allocation62_spill] sm:$0xff] %v28413_v19  ;;  %v28415_v11 = vpop.f32.mrb[42].mxu1  ;;  %v17155_v19 = vrot.slane %v17153_v20, 4  ;;  %v17148_v46 = vsel %vm16744_vm6, %v17138_v23, %v17147_v56 }
 0x485   : > { %30364 = vst [vmem:[#allocation63_spill] sm:$0xff] %v28415_v11  ;;  %v28420_v33 = vpop.f32.mrb[43].mxu1  ;;  %v17168_v11 = vshrl.u32 %v26140_v10, 16  ;;  %v26139_v10 = vld [vmem:[%s26315_s26 + $0x188] sm:$0xff]  }
 0x486   : > { %30365 = vst [vmem:[#allocation64_spill] sm:$0xff] %v28420_v33  ;;  %v8925_v33 = vrot.slane %v26135_v21, 2  ;;  %v17156_v26 = vor.u32 %v17155_v19, %v17152_v63  ;;  %v17164_v21 = vrot.slane %v17162_v16, 4  ;;  %v26144_v63 = vld [vmem:[%s26315_s26 + $0x1a8] sm:$0xff]  }
 0x487   : > { %23695 = vmatmul.mubr.bf16.gmra.mrb[80].mxu1 %v8920_v18  ;;  %v8924_v18 = vsel %vm8835_vm0, %v8921_v45, %v8923_v48  ;;  %v8927_v45 = vrot.slane %v26137_v41, 2 }
 0x488   : > { %24303 = vmatmul.mubr.bf16.gmra.mrb[80].mxu0 %v17130_v44  ;;  %23698 = vmatprep.mubr.bf16.mxu1 %v8922_v50  ;;  %v26142_v44 = vld [vmem:[%s26315_s26 + $0x1a0] sm:$0xff]   ;;  %v8926_v22 = vsel %vm8835_vm0, %v8923_v48, %v8925_v33  ;;  %v17157_v19 = vsel %vm16744_vm6, %v17147_v56, %v17156_v26  ;;  %v26146_v56 = vld [vmem:[%s26315_s26 + $0x1b0] sm:$0xff]  }
 0x489   : > { %24306 = vmatprep.mubr.bf16.mxu0 %v17139_v43  ;;  %v17170_v43 = vrot.slane %v17168_v11, 3  ;;  %v17177_v23 = vshrl.u32 %v26142_v44, 16  ;;  %v17180_v35 = vshll.u32 %v26142_v44, 16  ;;  %v17186_v11 = vshrl.u32 %v26144_v63, 16 }
 0x48a   : > { %v28427_v25 = vpop.f32.mrb[44].mxu1  ;;  %v8928_v41 = vsel %vm8835_vm0, %v8925_v33, %v8927_v45  ;;  %v17198_v33 = vshll.u32 %v26146_v56, 16 }
 0x48b   : > { %30366 = vst [vmem:[#allocation65_spill] sm:$0xff] %v28427_v25  ;;  %v28429_v51 = vpop.f32.mrb[45].mxu1  ;;  %v17173_v25 = vrot.slane %v17171_v24, 4  ;;  %v17189_v24 = vshll.u32 %v26144_v63, 16  ;;  %v17179_v44 = vrot.slane %v17177_v23, 3  ;;  %v26150_v63 = vld [vmem:[%s26315_s26 + $0x1c0] sm:$0xff]  }
 0x48c   : > { %30367 = vst [vmem:[#allocation66_spill] sm:$0xff] %v28429_v51  ;;  %v28431_v20 = vpop.f32.mrb[46].mxu1  ;;  %v17213_v7 = vshrl.u32 %v26150_v63, 16  ;;  %v17200_v1 = vrot.slane %v17198_v33, 4  ;;  %v26149_v33 = vld [vmem:[%s26315_s26 + $0x1b0] sm:$0xff]  }
 0x48d   : > { %30368 = vst [vmem:[#allocation67_spill] sm:$0xff] %v28431_v20  ;;  %v28437_v50 = vpop.f32.mrb[47].mxu1  ;;  %v8929_v20 = vrot.slane %v26139_v10, 2  ;;  %v17174_v48 = vor.u32 %v17173_v25, %v17170_v43  ;;  %v28459_v43 = vld [vmem:[%s26315_s26 + $0x198] sm:$0xff]  }
 0x48e   : > { %30369 = vst [vmem:[#allocation68_spill] sm:$0xff] %v28437_v50  ;;  %v17165_v50 = vor.u32 %v17164_v21, %v17161_v3 }
 0x48f   : > { %23699 = vmatmul.mubr.bf16.gmra.mrb[84].mxu1 %v8924_v18  ;;  %v26148_v18 = vld [vmem:[%s26315_s26 + $0x1b8] sm:$0xff]   ;;  %v8930_v21 = vsel %vm8835_vm0, %v8927_v45, %v8929_v20  ;;  %v26152_v45 = vld [vmem:[%s26315_s26 + $0x1c8] sm:$0xff]  }
 0x490   : > { %24307 = vmatmul.mubr.bf16.gmra.mrb[84].mxu0 %v17148_v46  ;;  %23702 = vmatprep.mubr.bf16.mxu1 %v8926_v22  ;;  %v26141_v22 = vld [vmem:[%s26315_s26 + $0x190] sm:$0xff]   ;;  %v17166_v25 = vsel %vm16744_vm6, %v17156_v26, %v17165_v50  ;;  %v17175_v10 = vsel %vm16744_vm6, %v17165_v50, %v17174_v48  ;;  %v17204_v23 = vshrl.u32 %v26148_v18, 16  ;;  %v8933_v50 = vrot.slane %v28459_v43, 2 }
 0x491   : > { %24310 = vmatprep.mubr.bf16.mxu0 %v17157_v19  ;;  %v17182_v19 = vrot.slane %v17180_v35, 4  ;;  %v17207_v35 = vshll.u32 %v26148_v18, 16  ;;  %v8931_v26 = vrot.slane %v26141_v22, 2  ;;  %v26154_v18 = vld [vmem:[%s26315_s26 + $0x1d0] sm:$0xff]   ;;  %v26147_v22 = vld [vmem:[%s26315_s26 + $0x1a8] sm:$0xff]   ;;  %v17222_v38 = vshrl.u32 %v26152_v45, 16 }
 0x492   : > { %v28443_v16 = vpop.f32.mrb[48].mxu1  ;;  %v17225_v36 = vshll.u32 %v26152_v45, 16  ;;  %v17234_v55 = vshll.u32 %v26154_v18, 16 }
 0x493   : > { %30370 = vst [vmem:[#allocation69_spill] sm:$0xff] %v28443_v16  ;;  %v28446_v51 = vpop.f32.mrb[49].mxu1  ;;  %v17195_v16 = vshrl.u32 %v26146_v56, 16  ;;  %v8932_v43 = vsel %vm8835_vm0, %v8929_v20, %v8931_v26  ;;  %v8937_v20 = vrot.slane %v26147_v22, 2 }
 0x494   : > { %30371 = vst [vmem:[#allocation70_spill] sm:$0xff] %v28446_v51  ;;  %v28449_v46 = vpop.f32.mrb[50].mxu1  ;;  %v17188_v51 = vrot.slane %v17186_v11, 3  ;;  %v17216_v11 = vshll.u32 %v26150_v63, 16 }
 0x495   : > { %30372 = vst [vmem:[#allocation71_spill] sm:$0xff] %v28449_v46  ;;  %v28453_v3 = vpop.f32.mrb[51].mxu1  ;;  %v17191_v46 = vrot.slane %v17189_v24, 4 }
 0x496   : > { %30373 = vst [vmem:[#allocation72_spill] sm:$0xff] %v28453_v3  ;;  %v17183_v3 = vor.u32 %v17182_v19, %v17179_v44  ;;  %v17206_v44 = vrot.slane %v17204_v23, 3  ;;  %v17209_v19 = vrot.slane %v17207_v35, 4  ;;  %v17218_v23 = vrot.slane %v17216_v11, 4 }
 0x497   : > { %23703 = vmatmul.mubr.bf16.gmra.mrb[88].mxu1 %v8928_v41  ;;  %v17192_v56 = vor.u32 %v17191_v46, %v17188_v51  ;;  %v17197_v41 = vrot.slane %v17195_v16, 3  ;;  %v8934_v16 = vsel %vm8835_vm0, %v8931_v26, %v8933_v50  ;;  %v8935_v46 = vrot.slane %v26145_v9, 2  ;;  %v26151_v26 = vld [vmem:[%s26315_s26 + $0x1b8] sm:$0xff]  }
 0x498   : > { %24311 = vmatmul.mubr.bf16.gmra.mrb[88].mxu0 %v17166_v25  ;;  %23706 = vmatprep.mubr.bf16.mxu1 %v8930_v21  ;;  %v26156_v21 = vld [vmem:[%s26315_s26 + $0x1d8] sm:$0xff]   ;;  %v17184_v63 = vsel %vm16744_vm6, %v17174_v48, %v17183_v3  ;;  %v17210_v48 = vor.u32 %v17209_v19, %v17206_v44  ;;  %v17224_v9 = vrot.slane %v17222_v38, 3  ;;  %v26153_v19 = vld [vmem:[%s26315_s26 + $0x1c0] sm:$0xff]   ;;  %v26162_v38 = vld [vmem:[%s26315_s26 + $0x1f0] sm:$0xff]  }
 0x499   : > { %24314 = vmatprep.mubr.bf16.mxu0 %v17175_v10  ;;  %v17193_v35 = vsel %vm16744_vm6, %v17183_v3, %v17192_v56  ;;  %v17201_v62 = vor.u32 %v17200_v1, %v17197_v41  ;;  %v17240_v45 = vshrl.u32 %v26156_v21, 16  ;;  %v17243_v28 = vshll.u32 %v26156_v21, 16  ;;  %v26160_v41 = vld [vmem:[%s26315_s26 + $0x1e8] sm:$0xff]  }
 0x49a   : > { %v28465_v24 = vpop.f32.mrb[52].mxu1  ;;  %v8939_v1 = vrot.slane %v26149_v33, 2  ;;  %v8936_v22 = vsel %vm8835_vm0, %v8933_v50, %v8935_v46  ;;  %v8941_v50 = vrot.slane %v26151_v26, 2  ;;  %v17261_v6 = vshll.u32 %v26160_v41, 16 }
 0x49b   : > { %30374 = vst [vmem:[#allocation73_spill] sm:$0xff] %v28465_v24  ;;  %v28468_v25 = vpop.f32.mrb[53].mxu1  ;;  %v26158_v24 = vld [vmem:[%s26315_s26 + $0x1e0] sm:$0xff]   ;;  %v17202_v44 = vsel %vm16744_vm6, %v17192_v56, %v17201_v62  ;;  %v17245_v33 = vrot.slane %v17243_v28, 4  ;;  %v28499_v56 = vld [vmem:[%s26315_s26 + $0x1d0] sm:$0xff]   ;;  %v8943_v28 = vrot.slane %v26153_v19, 2 }
 0x49c   : > { %30375 = vst [vmem:[#allocation74_spill] sm:$0xff] %v28468_v25  ;;  %v28472_v10 = vpop.f32.mrb[54].mxu1  ;;  %v17215_v25 = vrot.slane %v17213_v7, 3  ;;  %v17249_v7 = vshrl.u32 %v26158_v24, 16  ;;  %v17252_v11 = vshll.u32 %v26158_v24, 16  ;;  %v8938_v24 = vsel %vm8835_vm0, %v8935_v46, %v8937_v20 }
 0x49d   : > { %30376 = vst [vmem:[#allocation75_spill] sm:$0xff] %v28472_v10  ;;  %v28477_v51 = vpop.f32.mrb[55].mxu1  ;;  %v17231_v10 = vshrl.u32 %v26154_v18, 16  ;;  %v17270_v26 = vshll.u32 %v26162_v38, 16 }
 0x49e   : > { %30377 = vst [vmem:[#allocation76_spill] sm:$0xff] %v28477_v51  ;;  %v17227_v51 = vrot.slane %v17225_v36, 4  ;;  %v17219_v3 = vor.u32 %v17218_v23, %v17215_v25  ;;  %v26155_v25 = vld [vmem:[%s26315_s26 + $0x1c8] sm:$0xff]   ;;  %v26164_v23 = vld [vmem:[%s26315_s26 + $0x1f8] sm:$0xff]  }
 0x49f   : > { %23707 = vmatmul.mubr.bf16.gmra.mrb[92].mxu1 %v8932_v43  ;;  %v17233_v21 = vrot.slane %v17231_v10, 3  ;;  %v17236_v43 = vrot.slane %v17234_v55, 4  ;;  %v17251_v10 = vrot.slane %v17249_v7, 3  ;;  %v17254_v55 = vrot.slane %v17252_v11, 4 }
 0x4a0   : > { %24315 = vmatmul.mubr.bf16.gmra.mrb[92].mxu0 %v17184_v63  ;;  %23710 = vmatprep.mubr.bf16.mxu1 %v8934_v16  ;;  %v17211_v63 = vsel %vm16744_vm6, %v17201_v62, %v17210_v48  ;;  %v17242_v16 = vrot.slane %v17240_v45, 3  ;;  %v17220_v46 = vsel %vm16744_vm6, %v17210_v48, %v17219_v3  ;;  %v17258_v62 = vshrl.u32 %v26160_v41, 16 }
 0x4a1   : > { %24318 = vmatprep.mubr.bf16.mxu0 %v17193_v35  ;;  %v17237_v45 = vor.u32 %v17236_v43, %v17233_v21  ;;  %v17276_v7 = vshrl.u32 %v26164_v23, 16  ;;  %v17279_v11 = vshll.u32 %v26164_v23, 16  ;;  %v8947_v41 = vrot.slane %v28499_v56, 2  ;;  %v26168_v21 = vld [vmem:[%s26315_s26 + $0x208] sm:$0xff]   ;;  %v26159_v43 = vld [vmem:[%s26315_s26 + $0x1d8] sm:$0xff]   ;;  %v28521_v56 = vpop.permute.xlu0 %19352 }
 0x4a2   : > { %v28484_v18 = vpop.f32.mrb[56].mxu1  ;;  %v17255_v19 = vor.u32 %v17254_v55, %v17251_v10  ;;  %v17272_v23 = vrot.slane %v17270_v26, 4  ;;  %30383 = vst [vmem:[#allocation82_spill] sm:$0xff] %v28521_v56  ;;  %v26174_v56 = vld [vmem:[%s26315_s26 + $0x220] sm:$0xff]   ;;  %v8949_v13 = vrot.slane %v26159_v43, 2  ;;  %v28553_v43 = vld [vmem:[%s26315_s26 + $0x1f8] sm:$0xff]  }
 0x4a3   : > { %30378 = vst [vmem:[#allocation77_spill] sm:$0xff] %v28484_v18  ;;  %v28490_v36 = vpop.f32.mrb[57].mxu1  ;;  %v17228_v18 = vor.u32 %v17227_v51, %v17224_v9  ;;  %v8945_v51 = vrot.slane %v26155_v25, 2  ;;  %v17246_v9 = vor.u32 %v17245_v33, %v17242_v16  ;;  %v17285_v25 = vshrl.u32 %v26166_v14, 16 }
 0x4a4   : > { %30379 = vst [vmem:[#allocation78_spill] sm:$0xff] %v28490_v36  ;;  %v28496_v35 = vpop.f32.mrb[58].mxu1  ;;  %v8940_v36 = vsel %vm8835_vm0, %v8937_v20, %v8939_v1  ;;  %v8942_v20 = vsel %vm8835_vm0, %v8939_v1, %v8941_v50  ;;  %v17288_v16 = vshll.u32 %v26166_v14, 16  ;;  %v17281_v55 = vrot.slane %v17279_v11, 4  ;;  %v28549_v11 = vld [vmem:[%s26315_s26 + $0x1f0] sm:$0xff]  }
 0x4a5   : > { %30380 = vst [vmem:[#allocation79_spill] sm:$0xff] %v28496_v35  ;;  %v28501_v52 = vpop.f32.mrb[59].mxu1  ;;  %v17267_v35 = vshrl.u32 %v26162_v38, 16  ;;  %v17229_v48 = vsel %vm16744_vm6, %v17219_v3, %v17228_v18  ;;  %v17263_v38 = vrot.slane %v17261_v6, 4  ;;  %v28517_v1 = vsel %vm16744_vm6, %v17228_v18, %v17237_v45  ;;  %v26161_v3 = vld [vmem:[%s26315_s26 + $0x1e0] sm:$0xff]  }
 0x4a6   : > { %30381 = vst [vmem:[#allocation80_spill] sm:$0xff] %v28501_v52  ;;  %v28526_v6 = vsel %vm8835_vm0, %v8943_v28, %v8945_v51  ;;  %v28529_v14 = vsel %vm16744_vm6, %v17237_v45, %v17246_v9  ;;  %v17278_v18 = vrot.slane %v17276_v7, 3  ;;  %v17297_v52 = vshll.u32 %v26168_v21, 16 }
 0x4a7   : > { %23711 = vmatmul.mubr.bf16.gmra.mrb[96].mxu1 %v8936_v22  ;;  %v17260_v22 = vrot.slane %v17258_v62, 3  ;;  %v17269_v33 = vrot.slane %v17267_v35, 3  ;;  %v26172_v62 = vld [vmem:[%s26315_s26 + $0x218] sm:$0xff]   ;;  %v28535_v35 = vpop.permute.xlu1 %19357  ;;  %v17287_v12 = vrot.slane %v17285_v25, 3  ;;  %v8951_v57 = vrot.slane %v26161_v3, 2  ;;  %v28555_v3 = vpop.permute.xlu0 %19362 }
 0x4a8   : > { %24319 = vmatmul.mubr.bf16.gmra.mrb[96].mxu0 %v17202_v44  ;;  %23714 = vmatprep.mubr.bf16.mxu1 %v8938_v24  ;;  %v28514_v24 = vsel %vm8835_vm0, %v8941_v50, %v8943_v28  ;;  %v28532_v50 = vld [vmem:[%s26315_s26 + $0x1e8] sm:$0xff]   ;;  %30385 = vst [vmem:[#allocation84_spill] sm:$0xff] %v28535_v35  ;;  %v17294_v28 = vshrl.u32 %v26168_v21, 16  ;;  %v17290_v35 = vrot.slane %v17288_v16, 4  ;;  %v17282_v34 = vor.u32 %v17281_v55, %v17278_v18  ;;  %v26178_v18 = vld [vmem:[%s26315_s26 + $0x230] sm:$0xff]  }
 0x4a9   : > { %24322 = vmatprep.mubr.bf16.mxu0 %v17211_v63  ;;  %v26170_v63 = vld [vmem:[%s26315_s26 + $0x210] sm:$0xff]   ;;  %v17264_v7 = vor.u32 %v17263_v38, %v17260_v22  ;;  %v17312_v21 = vshrl.u32 %v26172_v62, 16  ;;  %v17315_v60 = vshll.u32 %v26172_v62, 16  ;;  %v17299_v38 = vrot.slane %v17297_v52, 4  ;;  %30388 = vst [vmem:[#allocation87_spill] sm:$0xff] %v28555_v3 }
 0x4aa   : > { %v28511_v44 = vpop.f32.mrb[60].mxu1  ;;  %v17303_v39 = vshrl.u32 %v26170_v63, 16  ;;  %v17296_v22 = vrot.slane %v17294_v28, 3  ;;  %v17321_v25 = vshrl.u32 %v26174_v56, 16  ;;  %v17324_v16 = vshll.u32 %v26174_v56, 16 }
 0x4ab   : > { %30382 = vst [vmem:[#allocation81_spill] sm:$0xff] %v28511_v44  ;;  %v28523_v10 = vpop.f32.mrb[61].mxu1  ;;  %v28540_v44 = vsel %vm8835_vm0, %v8945_v51, %v8947_v41  ;;  %v17306_v51 = vshll.u32 %v26170_v63, 16  ;;  %v28565_v63 = vpop.permute.xlu1 %19367  ;;  %v28570_v56 = vsel %vm8835_vm0, %v8949_v13, %v8951_v57  ;;  %v17317_v28 = vrot.slane %v17315_v60, 4  ;;  %v26182_v3 = vld [vmem:[%s26315_s26 + $0x240] ss:$0 sps:$4 sm:$0xff]  }
 0x4ac   : > { %30384 = vst [vmem:[#allocation83_spill] sm:$0xff] %v28523_v10  ;;  %v28537_v26 = vpop.f32.mrb[62].mxu1  ;;  %v28543_v10 = vsel %vm16744_vm6, %v17246_v9, %v17255_v19  ;;  %v8953_v9 = vrot.slane %v28532_v50, 2  ;;  %30389 = vst [vmem:[#allocation88_spill] sm:$0xff] %v28565_v63  ;;  %v17305_v50 = vrot.slane %v17303_v39, 3  ;;  %v17300_v39 = vor.u32 %v17299_v38, %v17296_v22  ;;  %v28602_v38 = vpop.permute.xlu0 %19372 }
 0x4ad   : > { %30386 = vst [vmem:[#allocation85_spill] sm:$0xff] %v28537_v26  ;;  %v28546_v45 = vpop.f32.mrb[63].mxu1  ;;  %v17273_v26 = vor.u32 %v17272_v23, %v17269_v33  ;;  %v28561_v33 = vsel %vm16744_vm6, %v17255_v19, %v17264_v7  ;;  %v26176_v23 = vld [vmem:[%s26315_s26 + $0x228] sm:$0xff]   ;;  %v17308_v19 = vrot.slane %v17306_v51, 4  ;;  %v28591_v51 = vld [vmem:[%s26315_s26 + $0x210] sm:$0xff]   ;;  %v17342_v22 = vshll.u32 %v26178_v18, 16 }
 0x4ae   : > { %30387 = vst [vmem:[#allocation86_spill] sm:$0xff] %v28546_v45  ;;  %v17323_v45 = vrot.slane %v17321_v25, 3  ;;  %v17333_v60 = vshll.u32 %v26176_v23, 16  ;;  %30394 = vst [vmem:[#allocation93_spill] sm:$0xff] %v28602_v38 }
 0x4af   : > { %23715 = vmatmul.mubr.bf16.gmra.mrb[100].mxu1 %v8940_v36  ;;  %v28558_v36 = vsel %vm8835_vm0, %v8947_v41, %v8949_v13  ;;  %v26169_v41 = vld [vmem:[%s26315_s26 + $0x200] sm:$0xff]   ;;  %v28583_v62 = vsel %vm16744_vm6, %v17273_v26, %v17282_v34  ;;  %v17314_v13 = vrot.slane %v17312_v21, 3  ;;  %v17330_v21 = vshrl.u32 %v26176_v23, 16  ;;  %v28605_v27 = vpop.permute.xlu1 %19377 }
 0x4b0   : > { %24323 = vmatmul.mubr.bf16.gmra.mrb[100].mxu0 %v17220_v46  ;;  %23718 = vmatprep.mubr.bf16.mxu1 %v8942_v20  ;;  %v8955_v46 = vrot.slane %v28549_v11, 2  ;;  %v17291_v20 = vor.u32 %v17290_v35, %v17287_v12  ;;  %v28580_v12 = vsel %vm8835_vm0, %v8951_v57, %v8953_v9  ;;  %v26171_v35 = vld [vmem:[%s26315_s26 + $0x208] sm:$0xff]   ;;  %v26180_v11 = vld [vmem:[%s26315_s26 + $0x238] sm:$0xff]   ;;  %v8959_v2 = vrot.slane %v26169_v41, 2  ;;  %30395 = vst [vmem:[#allocation94_spill] sm:$0xff] %v28605_v27  ;;  %v28645_v38 = vpop.permute.xlu0 %19382 }
 0x4b1   : > { %24326 = vmatprep.mubr.bf16.mxu0 %v17229_v48  ;;  %v28573_v48 = vsel %vm16744_vm6, %v17264_v7, %v17273_v26  ;;  %v8957_v7 = vrot.slane %v28553_v43, 2  ;;  %v17339_v43 = vshrl.u32 %v26178_v18, 16  ;;  %v8961_v25 = vrot.slane %v26171_v35, 2  ;;  %v26181_v27 = vld [vmem:[%s26315_s26 + $0x230] ss:$0 sps:$4 sm:$0x33]  }
 0x4b2   : > { %v28567_v52 = vpop.f32.mrb[64].mxu1  ;;  %v28596_v57 = vsel %vm8835_vm0, %v8953_v9, %v8955_v46  ;;  %v28599_v26 = vsel %vm16744_vm6, %v17282_v34, %v17291_v20  ;;  %v17351_v9 = vshll.u32 %v26180_v11, 16  ;;  %v28613_v23 = vsel %vm16744_vm6, %v17291_v20, %v17300_v39  ;;  %30400 = vst [vmem:[#allocation99_spill] sm:$0xff] %v28645_v38 }
 0x4b3   : > { %30390 = vst [vmem:[#allocation89_spill] sm:$0xff] %v28567_v52  ;;  %v28577_v55 = vpop.f32.mrb[65].mxu1  ;;  %v28610_v34 = vsel %vm8835_vm0, %v8955_v46, %v8957_v7  ;;  %v8963_v41 = vrot.slane %v28591_v51, 2  ;;  %v17335_v18 = vrot.slane %v17333_v60, 4  ;;  %v17357_v35 = vshrl.u32 %v26182_v3, 16  ;;  %v26177_v46 = vld [vmem:[%s26315_s26 + $0x220] sm:$0xff]  }
 0x4b4   : > { %30391 = vst [vmem:[#allocation90_spill] sm:$0xff] %v28577_v55  ;;  %v28587_v52 = vpop.f32.mrb[66].mxu1  ;;  %v17326_v55 = vrot.slane %v17324_v16, 4  ;;  %v17318_v16 = vor.u32 %v17317_v28, %v17314_v13  ;;  %v17360_v13 = vshll.u32 %v26182_v3, 16  ;;  %v17341_v20 = vrot.slane %v17339_v43, 3 }
 0x4b5   : > { %30392 = vst [vmem:[#allocation91_spill] sm:$0xff] %v28587_v52  ;;  %v28593_v63 = vpop.f32.mrb[67].mxu1  ;;  %v17309_v52 = vor.u32 %v17308_v19, %v17305_v50  ;;  %v26175_v50 = vld [vmem:[%s26315_s26 + $0x218] sm:$0xff]   ;;  %v17332_v19 = vrot.slane %v17330_v21, 3  ;;  %v17344_v28 = vrot.slane %v17342_v22, 4  ;;  %v28639_v60 = vsel %vm8835_vm0, %v8961_v25, %v8963_v41 }
 0x4b6   : > { %30393 = vst [vmem:[#allocation92_spill] sm:$0xff] %v28593_v63  ;;  %v17348_v63 = vshrl.u32 %v26180_v11, 16  ;;  %30398 = vst [vmem:[#allocation97_spill] sm:$0xff] %v28639_v60  ;;  %v8965_v22 = vrot.slane %v26175_v50, 2 }
 0x4b7   : > { %23719 = vmatmul.mubr.bf16.gmra.mrb[104].mxu1 %v28514_v24  ;;  %v17327_v24 = vor.u32 %v17326_v55, %v17323_v45  ;;  %v28628_v45 = vld [vmem:[%s30298_s2] ss:$0 sm:$0xff]  ;;  %v28634_v3 = vsel %vm16744_vm6, %v17309_v52, %v17318_v16  ;;  %v26179_v55 = vld [vmem:[%s26315_s26 + $0x228] sm:$0xff]   ;;  %v17345_v60 = vor.u32 %v17344_v28, %v17341_v20 }
 0x4b8   : > { %24327 = vmatmul.mubr.bf16.gmra.mrb[104].mxu0 %v28517_v1  ;;  %23722 = vmatprep.mubr.bf16.mxu1 %v28526_v6  ;;  %v28619_v1 = vsel %vm8835_vm0, %v8957_v7, %v8959_v2  ;;  %v28622_v6 = vsel %vm16744_vm6, %v17300_v39, %v17309_v52  ;;  %30397 = vst [vmem:[#allocation96_spill] sm:$0xff] %v28634_v3  ;;  %v17350_v7 = vrot.slane %v17348_v63, 3  ;;  %v17353_v39 = vrot.slane %v17351_v9, 4 }
 0x4b9   : > { %24330 = vmatprep.mubr.bf16.mxu0 %v28529_v14  ;;  %v28631_v14 = vsel %vm8835_vm0, %v8959_v2, %v8961_v25  ;;  %v28642_v43 = vsel %vm16744_vm6, %v17318_v16, %v17327_v24  ;;  %v28650_v2 = vld [vmem:[%s30299_s3] ss:$0 sm:$0xff]  ;;  %v17359_v9 = vrot.slane %v17357_v35, 3  ;;  %v28653_v25 = vpop.permute.xlu1 %19387 }
 0x4ba   : > { %30396 = vst [vmem:[#allocation95_spill] sm:$0xff] %v28631_v14  ;;  %30399 = vst [vmem:[#allocation98_spill] sm:$0xff] %v28642_v43  ;;  %v8967_v43 = vrot.slane %v26177_v46, 2 }
 0x4bb   : > { %v24224_v11 = vpop.f32.mrb[0].mxu0 }
 0x4bc   : > { %v24374_v51 = vadd.f32 %v24224_v11, %v28251_v29  ;;  %v17515_v21 = vpop.f32.mrb[1].mxu0  ;;  %v17336_v29 = vor.u32 %v17335_v18, %v17332_v19  ;;  %v17362_v11 = vrot.slane %v17360_v13, 4  ;;  %v17354_v19 = vor.u32 %v17353_v39, %v17350_v7 }
 0x4bd   : > { %v24375_v63 = vadd.f32 %v17515_v21, %v28253_v49  ;;  %v24225_v52 = vpop.f32.mrb[2].mxu0  ;;  %v8969_v49 = vrot.slane %v26179_v55, 2  ;;  %v8971_v13 = vrot.slane %v26181_v27, 2  ;;  %v28680_v27 = vpop.permute.xlu0 %19392 }
 0x4be   : > { %v18611_v16 = vmul.f32 %v24374_v51, %v28628_v45  ;;  %v24376_v50 = vadd.f32 %v24225_v52, %v28255_v17  ;;  %v17518_v38 = vpop.f32.mrb[3].mxu0  ;;  %v28665_v17 = vsel %vm8835_vm0, %v8963_v41, %v8965_v22  ;;  %v28689_v55 = vpop.permute.xlu1 %19397 }
 0x4bf   : > { %v18609_v3 = vmul.f32 %v24375_v63, %v28628_v45  ;;  %v24377_v14 = vadd.f32 %v17518_v38, %v28261_v30  ;;  %23723 = vmatmul.mubr.bf16.gmra.mrb[108].mxu1 %v28540_v44  ;;  %v28671_v44 = vsel %vm16744_vm6, %v17327_v24, %v17336_v29  ;;  %v17363_v38 = vor.u32 %v17362_v11, %v17359_v9 }
 0x4c0   : > { %v18754_v18 = vadd.f32 %v28650_v2, %v18611_v16  ;;  %v18612_v35 = vmul.f32 %v24376_v50, %v28628_v45  ;;  %24331 = vmatmul.mubr.bf16.gmra.mrb[108].mxu0 %v28543_v10  ;;  %23726 = vmatprep.mubr.bf16.mxu1 %v28558_v36  ;;  %v28675_v10 = vsel %vm8835_vm0, %v8965_v22, %v8967_v43 }
 0x4c1   : > { %v18752_v46 = vadd.f32 %v28650_v2, %v18609_v3  ;;  %v18610_v30 = vmul.f32 %v24377_v14, %v28628_v45  ;;  %24334 = vmatprep.mubr.bf16.mxu0 %v28561_v33  ;;  %v28678_v36 = vsel %vm16744_vm6, %v17336_v29, %v17345_v60  ;;  %v28684_v33 = vsel %vm8835_vm0, %v8967_v43, %v8969_v49 }
 0x4c2   : > { %v18890_v20 = vmax.f32 %v18754_v18, 0.0  ;;  %v18755_v28 = vadd.f32 %v28650_v2, %v18612_v35  ;;  %v28687_v24 = vsel %vm16744_vm6, %v17345_v60, %v17354_v19  ;;  %v28694_v22 = vsel %vm8835_vm0, %v8969_v49, %v8971_v13 }
 0x4c3   : > { %v18888_v41 = vmax.f32 %v18752_v46, 0.0  ;;  %v18753_v14 = vadd.f32 %v28650_v2, %v18610_v30  ;;  %v24228_v3 = vpop.f32.mrb[4].mxu0  ;;  %v28699_v60 = vsel %vm16744_vm6, %v17354_v19, %v17363_v38  ;;  %v28723_v30 = vpop.permute.xlu1 %19407 }
 0x4c4   : > { %v19842_v7 = vmul.f32 %v27736_v47, %v18890_v20  ;;  %v18891_v39 = vmax.f32 %v18755_v28, 0.0  ;;  %v24378_v51 = vadd.f32 %v24228_v3, %v28267_v8  ;;  %v17531_v21 = vpop.f32.mrb[5].mxu0 }
 0x4c5   : > { %v19840_v63 = vmul.f32 %v27727_v40, %v18888_v41  ;;  %v18889_v52 = vmax.f32 %v18753_v14, 0.0  ;;  %v24379_v43 = vadd.f32 %v17531_v21, %v28269_v32  ;;  %v24229_v29 = vpop.f32.mrb[6].mxu0 }
 0x4c6   : > { %v22172_v9 = vpack.c.bf16 %v19842_v7, %v19842_v7  ;;  %v19843_v11 = vmul.f32 %v27762_v5, %v18891_v39  ;;  %v18615_v47 = vmul.f32 %v24378_v51, %v28628_v45  ;;  %v24380_v8 = vadd.f32 %v24229_v29, %v28273_v0  ;;  %v17534_v16 = vpop.f32.mrb[7].mxu0  ;;  %v28712_v0 = vpop.permute.xlu0 %19402 }
 0x4c7   : > { %v22170_v50 = vpack.c.bf16 %v19840_v63, %v19840_v63  ;;  %v19841_v49 = vmul.f32 %v27749_v58, %v18889_v52  ;;  %v18613_v40 = vmul.f32 %v24379_v43, %v28628_v45  ;;  %v24381_v18 = vadd.f32 %v17534_v16, %v28276_v37  ;;  %23727 = vmatmul.mubr.bf16.gmra.mrb[112].mxu1 %v28570_v56 }
 0x4c8   : > { %v20397_v32 = vrot.slane %v22172_v9, 6  ;;  %v22173_v19 = vpack.c.bf16 %v19843_v11, %v19843_v11  ;;  %v18758_v35 = vadd.f32 %v28650_v2, %v18615_v47  ;;  %v18616_v5 = vmul.f32 %v24380_v8, %v28628_v45  ;;  %24335 = vmatmul.mubr.bf16.gmra.mrb[112].mxu0 %v28573_v48  ;;  %23730 = vmatprep.mubr.bf16.mxu1 %v28580_v12 }
 0x4c9   : > { %v20392_v58 = vrot.slane %v22170_v50, 6  ;;  %v22171_v56 = vpack.c.bf16 %v19841_v49, %v19841_v49  ;;  %v18756_v13 = vadd.f32 %v28650_v2, %v18613_v40  ;;  %v18614_v46 = vmul.f32 %v24381_v18, %v28628_v45  ;;  %24338 = vmatprep.mubr.bf16.mxu0 %v28583_v62 }
 0x4ca   : > { %v20399_v48 = vrot.slane %v20397_v32, 4  ;;  %v20400_v12 = vrot.slane %v22173_v19, 6  ;;  %v18894_v38 = vmax.f32 %v18758_v35, 0.0  ;;  %v18759_v20 = vadd.f32 %v28650_v2, %v18616_v5  ;;  %v28739_v49 = vpop.permute.xlu0 %19412  ;;  %v28746_v35 = vpop.permute.xlu1 %19417 }
 0x4cb   : > { %v20393_v28 = vrot.slane %v20392_v58, 4  ;;  %20936 = vst [vmem:[%s27220_s24 + $0x10] sm:$0xc] %v20392_v58  ;;  %v20394_v41 = vrot.slane %v22171_v56, 6  ;;  %v18892_v14 = vmax.f32 %v18756_v13, 0.0  ;;  %v18757_v3 = vadd.f32 %v28650_v2, %v18614_v46  ;;  %v24232_v7 = vpop.f32.mrb[8].mxu0 }
 0x4cc   : > { %v20401_v39 = vsel %vm28716_vm9, %v20399_v48, %v20400_v12  ;;  %v20402_v62 = vrot.slane %v20400_v12, 4  ;;  %v19846_v51 = vmul.f32 %v27800_v42, %v18894_v38  ;;  %v18895_v21 = vmax.f32 %v18759_v20, 0.0  ;;  %v17547_v63 = vpop.f32.mrb[9].mxu0 }
 0x4cd   : > { %20939 = vst [vmem:[%s27220_s24 + $0x1c] sm:$0xf] %v20401_v39  ;;  %v20395_v52 = vsel %vm28716_vm9, %v20393_v28, %v20394_v41  ;;  %v20396_v43 = vrot.slane %v20394_v41, 4  ;;  %v19844_v29 = vmul.f32 %v27773_v15, %v18892_v14  ;;  %v18893_v9 = vmax.f32 %v18757_v3, 0.0  ;;  %v24233_v11 = vpop.f32.mrb[10].mxu0 }
 0x4ce   : > { %20937 = vst [vmem:[%s27220_s24 + $0x14] sm:$0xf] %v20395_v52  ;;  %v22176_v47 = vpack.c.bf16 %v19846_v51, %v19846_v51  ;;  %v19847_v8 = vmul.f32 %v27813_v53, %v18895_v21  ;;  %v24382_v16 = vadd.f32 %v24232_v7, %v28283_v4  ;;  %v24383_v42 = vadd.f32 %v17547_v63, %v28285_v59  ;;  %v17550_v50 = vpop.f32.mrb[11].mxu0  ;;  %v28764_v14 = vpop.permute.xlu0 %19422  ;;  %v30403_v63 = vld [vmem:[#allocation5_spill] sm:$0xff] }
 0x4cf   : > { %v20398_v40 = vsel %vm28716_vm9, %v20396_v43, %v20397_v32  ;;  %v22174_v18 = vpack.c.bf16 %v19844_v29, %v19844_v29  ;;  %v19845_v15 = vmul.f32 %v27792_v31, %v18893_v9  ;;  %v24384_v19 = vadd.f32 %v24233_v11, %v28287_v61  ;;  %23731 = vmatmul.mubr.bf16.gmra.mrb[116].mxu1 %v28596_v57  ;;  %v28770_v21 = vpop.permute.xlu1 %19427  ;;  %v30404_v43 = vld [vmem:[#allocation3_spill] sm:$0xff]  ;;  %v30405_v9 = vld [vmem:[#allocation33_spill] sm:$0xff] }
 0x4d0   : > { %20938 = vst [vmem:[%s27220_s24 + $0x18] sm:$0xf] %v20398_v40  ;;  %v20409_v53 = vrot.slane %v22176_v47, 6  ;;  %v22177_v4 = vpack.c.bf16 %v19847_v8, %v19847_v8  ;;  %v18619_v59 = vmul.f32 %v24382_v16, %v28628_v45  ;;  %v18617_v5 = vmul.f32 %v24383_v42, %v28628_v45  ;;  %24339 = vmatmul.mubr.bf16.gmra.mrb[116].mxu0 %v28599_v26  ;;  %v30406_v47 = vld [vmem:[#allocation34_spill] sm:$0xff] }
 0x4d1   : > { %23734 = vmatprep.mubr.bf16.mxu1 %v28610_v34  ;;  %v20403_v32 = vrot.slane %v22174_v18, 6  ;;  %v22175_v31 = vpack.c.bf16 %v19845_v15, %v19845_v15  ;;  %v18620_v61 = vmul.f32 %v24384_v19, %v28628_v45  ;;  %v24385_v57 = vadd.f32 %v17550_v50, %v28293_v54  ;;  %24342 = vmatprep.mubr.bf16.mxu0 %v28613_v23  ;;  %v30407_v50 = vld [vmem:[#allocation6_spill] sm:$0xff]  ;;  %v30408_v15 = vld [vmem:[#allocation35_spill] sm:$0xff] }
 0x4d2   : > { %v20411_v58 = vrot.slane %v20409_v53, 4  ;;  %v20412_v56 = vrot.slane %v22177_v4, 6  ;;  %v18762_v13 = vadd.f32 %v28650_v2, %v18619_v59  ;;  %v18760_v46 = vadd.f32 %v28650_v2, %v18617_v5 }
 0x4d3   : > { %v20404_v26 = vsel %vm28716_vm9, %v20402_v62, %v20403_v32  ;;  %v20405_v48 = vrot.slane %v20403_v32, 4  ;;  %v20406_v34 = vrot.slane %v22175_v31, 6  ;;  %v18763_v12 = vadd.f32 %v28650_v2, %v18620_v61  ;;  %v24236_v38 = vpop.f32.mrb[12].mxu0 }
 0x4d4   : > { %20940 = vst [vmem:[%s27220_s24 + $0x20] sm:$0xf] %v20404_v26  ;;  %v20413_v54 = vsel %vm28716_vm9, %v20411_v58, %v20412_v56  ;;  %v20414_v23 = vrot.slane %v20412_v56, 4  ;;  %v18898_v20 = vmax.f32 %v18762_v13, 0.0  ;;  %v18896_v28 = vmax.f32 %v18760_v46, 0.0  ;;  %v17563_v41 = vpop.f32.mrb[13].mxu0 }
 0x4d5   : > { %20943 = vst [vmem:[%s27220_s24 + $0x2c] sm:$0xf] %v20413_v54  ;;  %v20407_v3 = vsel %vm28716_vm9, %v20405_v48, %v20406_v34  ;;  %v20408_v7 = vrot.slane %v20406_v34, 4  ;;  %v18899_v39 = vmax.f32 %v18763_v12, 0.0  ;;  %v18618_v62 = vmul.f32 %v24385_v57, %v28628_v45  ;;  %v24237_v51 = vpop.f32.mrb[14].mxu0  ;;  %v30409_v57 = vld [vmem:[#allocation36_spill] sm:$0xff]  ;;  %v28793_v34 = vpop.permute.xlu0 %19432 }
 0x4d6   : > { %20941 = vst [vmem:[%s27220_s24 + $0x24] sm:$0xf] %v20407_v3  ;;  %v19850_v52 = vmul.f32 %v30403_v63, %v18898_v20  ;;  %v19848_v29 = vmul.f32 %v30404_v43, %v18896_v28  ;;  %v24386_v11 = vadd.f32 %v24236_v38, %v30405_v9  ;;  %v24387_v8 = vadd.f32 %v17563_v41, %v30406_v47  ;;  %v17566_v16 = vpop.f32.mrb[15].mxu0  ;;  %v30410_v56 = vld [vmem:[#allocation95_spill] sm:$0xff]  ;;  %v30411_v13 = vld [vmem:[#allocation96_spill] sm:$0xff]  ;;  %v28798_v41 = vpop.permute.xlu1 %19437  ;;  %v30413_v47 = vld [vmem:[#allocation9_spill] sm:$0xff] }
 0x4d7   : > { %v20410_v42 = vsel %vm28716_vm9, %v20408_v7, %v20409_v53  ;;  %v19851_v40 = vmul.f32 %v30407_v50, %v18899_v39  ;;  %v18761_v18 = vadd.f32 %v28650_v2, %v18618_v62  ;;  %v24388_v19 = vadd.f32 %v24237_v51, %v30408_v15  ;;  %23735 = vmatmul.mubr.bf16.gmra.mrb[120].mxu1 %v28619_v1  ;;  %v30412_v12 = vld [vmem:[#allocation4_spill] sm:$0xff] }
 0x4d8   : > { %20942 = vst [vmem:[%s27220_s24 + $0x28] sm:$0xf] %v20410_v42  ;;  %v22180_v4 = vpack.c.bf16 %v19850_v52, %v19850_v52  ;;  %v22178_v59 = vpack.c.bf16 %v19848_v29, %v19848_v29  ;;  %v18623_v5 = vmul.f32 %v24386_v11, %v28628_v45  ;;  %v18621_v32 = vmul.f32 %v24387_v8, %v28628_v45  ;;  %v30414_v42 = vld [vmem:[#allocation37_spill] sm:$0xff] }
 0x4d9   : > { %24343 = vmatmul.mubr.bf16.gmra.mrb[120].mxu0 %v28622_v6  ;;  %v22181_v31 = vpack.c.bf16 %v19851_v40, %v19851_v40  ;;  %v18897_v61 = vmax.f32 %v18761_v18, 0.0  ;;  %v18624_v53 = vmul.f32 %v24388_v19, %v28628_v45  ;;  %v24389_v58 = vadd.f32 %v17566_v16, %v30409_v57  ;;  %23738 = vmatprep.mubr.bf16.mxu1 %v30410_v56  ;;  %v30415_v18 = vld [vmem:[#allocation7_spill] sm:$0xff]  ;;  %v30416_v19 = vld [vmem:[#allocation10_spill] sm:$0xff] }
 0x4da   : > { %24346 = vmatprep.mubr.bf16.mxu0 %v30411_v13  ;;  %v20421_v1 = vrot.slane %v22180_v4, 6  ;;  %v20415_v46 = vrot.slane %v22178_v59, 6  ;;  %v18766_v26 = vadd.f32 %v28650_v2, %v18623_v5  ;;  %v18764_v48 = vadd.f32 %v28650_v2, %v18621_v32  ;;  %v30417_v59 = vld [vmem:[#allocation38_spill] sm:$0xff]  ;;  %v30418_v32 = vld [vmem:[#allocation97_spill] sm:$0xff]  ;;  %v30419_v57 = vld [vmem:[#allocation39_spill] sm:$0xff]  ;;  %v28817_v13 = vpop.permute.xlu0 %19442 }
 0x4db   : > { %v20424_v6 = vrot.slane %v22181_v31, 6  ;;  %v19849_v38 = vmul.f32 %v30412_v12, %v18897_v61  ;;  %v18767_v54 = vadd.f32 %v28650_v2, %v18624_v53  ;;  %v18622_v20 = vmul.f32 %v24389_v58, %v28628_v45  ;;  %v24240_v28 = vpop.f32.mrb[16].mxu0  ;;  %v30420_v56 = vld [vmem:[#allocation98_spill] sm:$0xff]  ;;  %v28822_v12 = vpop.permute.xlu1 %19447 }
 0x4dc   : > { %v20423_v3 = vrot.slane %v20421_v1, 4  ;;  %v20416_v7 = vsel %vm28716_vm9, %v20414_v23, %v20415_v46  ;;  %v20417_v39 = vrot.slane %v20415_v46, 4  ;;  %v18902_v62 = vmax.f32 %v18766_v26, 0.0  ;;  %v17579_v51 = vpop.f32.mrb[17].mxu0 }
 0x4dd   : > { %20944 = vst [vmem:[%s27220_s24 + $0x30] sm:$0xf] %v20416_v7  ;;  %v20426_v63 = vrot.slane %v20424_v6, 4  ;;  %v22179_v52 = vpack.c.bf16 %v19849_v38, %v19849_v38  ;;  %v18900_v43 = vmax.f32 %v18764_v48, 0.0  ;;  %v18903_v29 = vmax.f32 %v18767_v54, 0.0  ;;  %v24241_v9 = vpop.f32.mrb[18].mxu0 }
 0x4de   : > { %v20425_v11 = vsel %vm28716_vm9, %v20423_v3, %v20424_v6  ;;  %v19854_v8 = vmul.f32 %v30413_v47, %v18902_v62  ;;  %v18765_v16 = vadd.f32 %v28650_v2, %v18622_v20  ;;  %v24390_v50 = vadd.f32 %v24240_v28, %v30414_v42  ;;  %v17582_v40 = vpop.f32.mrb[19].mxu0  ;;  %v30421_v54 = vld [vmem:[#allocation8_spill] sm:$0xff] }
 0x4df   : > { %20947 = vst [vmem:[%s27220_s24 + $0x3c] sm:$0xf] %v20425_v11  ;;  %v20418_v23 = vrot.slane %v22179_v52, 6  ;;  %v19852_v15 = vmul.f32 %v30415_v18, %v18900_v43  ;;  %v19855_v4 = vmul.f32 %v30416_v19, %v18903_v29  ;;  %v24391_v5 = vadd.f32 %v17579_v51, %v30417_v59  ;;  %23739 = vmatmul.mubr.bf16.gmra.mrb[124].mxu1 %v30418_v32  ;;  %v30423_v59 = vld [vmem:[#allocation40_spill] sm:$0xff]  ;;  %v30424_v32 = vld [vmem:[#allocation41_spill] sm:$0xff] }
 0x4e0   : > { %v22184_v31 = vpack.c.bf16 %v19854_v8, %v19854_v8  ;;  %v18901_v61 = vmax.f32 %v18765_v16, 0.0  ;;  %v18627_v53 = vmul.f32 %v24390_v50, %v28628_v45  ;;  %v24392_v58 = vadd.f32 %v24241_v9, %v30419_v57  ;;  %23742 = vmatprep.mubr.bf16.mxu1 %v28665_v17  ;;  %v28851_v57 = vpop.permute.xlu1 %19457 }
 0x4e1   : > { %24347 = vmatmul.mubr.bf16.gmra.mrb[124].mxu0 %v30420_v56  ;;  %v20419_v46 = vsel %vm28716_vm9, %v20417_v39, %v20418_v23  ;;  %v20420_v26 = vrot.slane %v20418_v23, 4  ;;  %v22182_v48 = vpack.c.bf16 %v19852_v15, %v19852_v15  ;;  %v22185_v6 = vpack.c.bf16 %v19855_v4, %v19855_v4  ;;  %v30422_v23 = vld [vmem:[#allocation13_spill] sm:$0xff]  ;;  %v28844_v4 = vpop.permute.xlu0 %19452 }
 0x4e2   : > { %24350 = vmatprep.mubr.bf16.mxu0 %v28671_v44  ;;  %20945 = vst [vmem:[%s27220_s24 + $0x34] sm:$0xf] %v20419_v46  ;;  %v20433_v38 = vrot.slane %v22184_v31, 6  ;;  %v19853_v20 = vmul.f32 %v30421_v54, %v18901_v61  ;;  %v18770_v28 = vadd.f32 %v28650_v2, %v18627_v53  ;;  %v18625_v17 = vmul.f32 %v24391_v5, %v28628_v45  ;;  %v30425_v61 = vld [vmem:[#allocation42_spill] sm:$0xff] }
 0x4e3   : > { %v20422_v3 = vsel %vm28716_vm9, %v20420_v26, %v20421_v1  ;;  %v20427_v7 = vrot.slane %v22182_v48, 6  ;;  %v28830_v39 = vrot.slane %v22185_v6, 6  ;;  %v18628_v62 = vmul.f32 %v24392_v58, %v28628_v45  ;;  %v24244_v44 = vpop.f32.mrb[20].mxu0  ;;  %v30426_v26 = vld [vmem:[#allocation11_spill] sm:$0xff] }
 0x4e4   : > { %20946 = vst [vmem:[%s27220_s24 + $0x38] sm:$0xf] %v20422_v3  ;;  %v20435_v51 = vrot.slane %v20433_v38, 4  ;;  %v22183_v52 = vpack.c.bf16 %v19853_v20, %v19853_v20  ;;  %v18906_v43 = vmax.f32 %v18770_v28, 0.0  ;;  %v18768_v29 = vadd.f32 %v28650_v2, %v18625_v17  ;;  %v17595_v9 = vpop.f32.mrb[21].mxu0 }
 0x4e5   : > { %v20428_v11 = vsel %vm28716_vm9, %v20426_v63, %v20427_v7  ;;  %v20429_v47 = vrot.slane %v20427_v7, 4  ;;  %v20438_v1 = vrot.slane %v28830_v39, 4  ;;  %v18771_v8 = vadd.f32 %v28650_v2, %v18628_v62  ;;  %v24245_v16 = vpop.f32.mrb[22].mxu0 }
 0x4e6   : > { %20948 = vst [vmem:[%s27220_s24 + $0x40] sm:$0xf] %v20428_v11  ;;  %v20437_v42 = vsel %vm28716_vm9, %v20435_v51, %v28830_v39  ;;  %v20430_v50 = vrot.slane %v22183_v52, 6  ;;  %v19858_v18 = vmul.f32 %v30422_v23, %v18906_v43  ;;  %v18904_v15 = vmax.f32 %v18768_v29, 0.0  ;;  %v17598_v19 = vpop.f32.mrb[23].mxu0  ;;  %v30429_v43 = vld [vmem:[#allocation44_spill] sm:$0xff]  ;;  %v28876_v11 = vpop.permute.xlu0 %19462 }
 0x4e7   : > { %20951 = vst [vmem:[%s27220_s24 + $0x4c] sm:$0xf] %v20437_v42  ;;  %v18907_v63 = vmax.f32 %v18771_v8, 0.0  ;;  %v24393_v5 = vadd.f32 %v17582_v40, %v30423_v59  ;;  %v24394_v31 = vadd.f32 %v24244_v44, %v30424_v32  ;;  %v24395_v53 = vadd.f32 %v17595_v9, %v30425_v61  ;;  %23743 = vmatmul.mubr.bf16.gmra.mrb[128].mxu1 %v28675_v10  ;;  %v30427_v40 = vld [vmem:[#allocation14_spill] sm:$0xff]  ;;  %v28878_v23 = vpop.permute.xlu1 %19467 }
 0x4e8   : > { %v20431_v58 = vsel %vm28716_vm9, %v20429_v47, %v20430_v50  ;;  %v20432_v56 = vrot.slane %v20430_v50, 4  ;;  %v22188_v46 = vpack.c.bf16 %v19858_v18, %v19858_v18  ;;  %v19856_v48 = vmul.f32 %v30426_v26, %v18904_v15  ;;  %23746 = vmatprep.mubr.bf16.mxu1 %v28684_v33 }
 0x4e9   : > { %24351 = vmatmul.mubr.bf16.gmra.mrb[128].mxu0 %v28678_v36  ;;  %20949 = vst [vmem:[%s27220_s24 + $0x44] sm:$0xf] %v20431_v58  ;;  %v19859_v6 = vmul.f32 %v30427_v40, %v18907_v63  ;;  %v18626_v54 = vmul.f32 %v24393_v5, %v28628_v45  ;;  %v18631_v10 = vmul.f32 %v24394_v31, %v28628_v45  ;;  %v30428_v36 = vld [vmem:[#allocation43_spill] sm:$0xff]  ;;  %v30430_v31 = vld [vmem:[#allocation12_spill] sm:$0xff] }
 0x4ea   : > { %v18629_v20 = vmul.f32 %v24395_v53, %v28628_v45  ;;  %24354 = vmatprep.mubr.bf16.mxu0 %v28687_v24  ;;  %v20434_v28 = vsel %vm28716_vm9, %v20432_v56, %v20433_v38  ;;  %v28866_v17 = vrot.slane %v22188_v46, 6  ;;  %v22186_v3 = vpack.c.bf16 %v19856_v48, %v19856_v48  ;;  %v30431_v53 = vld [vmem:[#allocation17_spill] sm:$0xff]  ;;  %v30432_v56 = vld [vmem:[#allocation15_spill] sm:$0xff] }
 0x4eb   : > { %v24396_v7 = vadd.f32 %v24245_v16, %v30428_v36  ;;  %20950 = vst [vmem:[%s27220_s24 + $0x48] sm:$0xf] %v20434_v28  ;;  %v22189_v33 = vpack.c.bf16 %v19859_v6, %v19859_v6  ;;  %v18769_v39 = vadd.f32 %v28650_v2, %v18626_v54  ;;  %v18774_v62 = vadd.f32 %v28650_v2, %v18631_v10  ;;  %v24248_v51 = vpop.f32.mrb[24].mxu0  ;;  %v30433_v48 = vld [vmem:[#allocation45_spill] sm:$0xff]  ;;  %v30434_v10 = vld [vmem:[#allocation46_spill] sm:$0xff]  ;;  %v30435_v28 = vld [vmem:[#allocation47_spill] sm:$0xff] }
 0x4ec   : > { %v18772_v44 = vadd.f32 %v28650_v2, %v18629_v20  ;;  %v20447_v52 = vrot.slane %v28866_v17, 4  ;;  %v20439_v24 = vrot.slane %v22186_v3, 6  ;;  %v24397_v29 = vadd.f32 %v17598_v19, %v30429_v43  ;;  %v17611_v9 = vpop.f32.mrb[25].mxu0 }
 0x4ed   : > { %v18632_v38 = vmul.f32 %v24396_v7, %v28628_v45  ;;  %v20448_v47 = vrot.slane %v22189_v33, 6  ;;  %v18905_v8 = vmax.f32 %v18769_v39, 0.0  ;;  %v18910_v16 = vmax.f32 %v18774_v62, 0.0  ;;  %v24249_v50 = vpop.f32.mrb[26].mxu0  ;;  %v30436_v7 = vld [vmem:[#allocation18_spill] sm:$0xff]  ;;  %v28899_v62 = vpop.permute.xlu0 %19472 }
 0x4ee   : > { %v18908_v42 = vmax.f32 %v18772_v44, 0.0  ;;  %v20440_v18 = vsel %vm28716_vm9, %v20438_v1, %v20439_v24  ;;  %v20441_v15 = vrot.slane %v20439_v24, 4  ;;  %v18630_v59 = vmul.f32 %v24397_v29, %v28628_v45  ;;  %v17614_v19 = vpop.f32.mrb[27].mxu0 }
 0x4ef   : > { %v18775_v63 = vadd.f32 %v28650_v2, %v18632_v38  ;;  %20952 = vst [vmem:[%s27220_s24 + $0x50] sm:$0xf] %v20440_v18  ;;  %v20449_v5 = vsel %vm28716_vm9, %v20447_v52, %v20448_v47  ;;  %v20450_v32 = vrot.slane %v20448_v47, 4  ;;  %v19857_v61 = vmul.f32 %v30430_v31, %v18905_v8  ;;  %23747 = vmatmul.mubr.bf16.gmra.mrb[132].mxu1 %v28694_v22  ;;  %v28903_v38 = vpop.permute.xlu1 %19477 }
 0x4f0   : > { %v19862_v58 = vmul.f32 %v30431_v53, %v18910_v16  ;;  %20955 = vst [vmem:[%s27220_s24 + $0x5c] sm:$0xf] %v20449_v5  ;;  %v19860_v1 = vmul.f32 %v30432_v56, %v18908_v42  ;;  %v18773_v26 = vadd.f32 %v28650_v2, %v18630_v59  ;;  %v24398_v40 = vadd.f32 %v24248_v51, %v30433_v48 }
 0x4f1   : > { %v18911_v46 = vmax.f32 %v18775_v63, 0.0  ;;  %24355 = vmatmul.mubr.bf16.gmra.mrb[132].mxu0 %v28699_v60  ;;  %v22187_v6 = vpack.c.bf16 %v19857_v61, %v19857_v61  ;;  %v24399_v20 = vadd.f32 %v17611_v9, %v30434_v10  ;;  %v24400_v3 = vadd.f32 %v24249_v50, %v30435_v28  ;;  %v30437_v9 = vld [vmem:[#allocation16_spill] sm:$0xff]  ;;  %v30439_v10 = vld [vmem:[#allocation21_spill] sm:$0xff] }
 0x4f2   : > { %v22192_v54 = vpack.c.bf16 %v19862_v58, %v19862_v58  ;;  %v22190_v36 = vpack.c.bf16 %v19860_v1, %v19860_v1  ;;  %v18909_v22 = vmax.f32 %v18773_v26, 0.0  ;;  %v18635_v39 = vmul.f32 %v24398_v40, %v28628_v45  ;;  %v30438_v40 = vld [vmem:[#allocation48_spill] sm:$0xff] }
 0x4f3   : > { %v19863_v33 = vmul.f32 %v30436_v7, %v18911_v46  ;;  %v20442_v44 = vrot.slane %v22187_v6, 6  ;;  %v18633_v51 = vmul.f32 %v24399_v20, %v28628_v45  ;;  %v18636_v60 = vmul.f32 %v24400_v3, %v28628_v45  ;;  %v24252_v24 = vpop.f32.mrb[28].mxu0 }
 0x4f4   : > { %v20457_v52 = vrot.slane %v22192_v54, 6  ;;  %v20451_v43 = vrot.slane %v22190_v36, 6  ;;  %v19861_v47 = vmul.f32 %v30437_v9, %v18909_v22  ;;  %v18778_v8 = vadd.f32 %v28650_v2, %v18635_v39  ;;  %v17627_v16 = vpop.f32.mrb[29].mxu0  ;;  %v28922_v54 = vpop.permute.xlu0 %19482  ;;  %v30441_v36 = vld [vmem:[#allocation49_spill] sm:$0xff] }
 0x4f5   : > { %v22193_v29 = vpack.c.bf16 %v19863_v33, %v19863_v33  ;;  %v20443_v42 = vsel %vm28716_vm9, %v20441_v15, %v20442_v44  ;;  %v20444_v50 = vrot.slane %v20442_v44, 4  ;;  %v18776_v63 = vadd.f32 %v28650_v2, %v18633_v51  ;;  %v24253_v59 = vpop.f32.mrb[30].mxu0  ;;  %v28928_v33 = vpop.permute.xlu1 %19487 }
 0x4f6   : > { %v20459_v18 = vrot.slane %v20457_v52, 4  ;;  %20953 = vst [vmem:[%s27220_s24 + $0x54] sm:$0xf] %v20443_v42  ;;  %v20452_v5 = vsel %vm28716_vm9, %v20450_v32, %v20451_v43  ;;  %v20453_v31 = vrot.slane %v20451_v43, 4  ;;  %v22191_v53 = vpack.c.bf16 %v19861_v47, %v19861_v47  ;;  %v17630_v58 = vpop.f32.mrb[31].mxu0 }
 0x4f7   : > { %v20460_v61 = vrot.slane %v22193_v29, 6  ;;  %v20446_v56 = vsel %vm28716_vm9, %v20444_v50, %v28866_v17  ;;  %20956 = vst [vmem:[%s27220_s24 + $0x60] sm:$0xf] %v20452_v5  ;;  %v18914_v15 = vmax.f32 %v18778_v8, 0.0  ;;  %v18912_v1 = vmax.f32 %v18776_v63, 0.0  ;;  %v30440_v17 = vld [vmem:[#allocation19_spill] sm:$0xff] }
 0x4f8   : > { %v18779_v46 = vadd.f32 %v28650_v2, %v18636_v60  ;;  %20954 = vst [vmem:[%s27220_s24 + $0x58] sm:$0xf] %v20446_v56  ;;  %v20454_v48 = vrot.slane %v22191_v53, 6  ;;  %v24401_v6 = vadd.f32 %v17614_v19, %v30438_v40  ;;  %v24402_v7 = vadd.f32 %v24252_v24, %v30441_v36  ;;  %v30442_v19 = vld [vmem:[#allocation50_spill] sm:$0xff]  ;;  %v28947_v40 = vpop.permute.xlu0 %19492 }
 0x4f9   : > { %v20461_v26 = vsel %vm28716_vm9, %v20459_v18, %v20460_v61  ;;  %v20462_v32 = vrot.slane %v20460_v61, 4  ;;  %v19866_v20 = vmul.f32 %v30439_v10, %v18914_v15  ;;  %v19864_v28 = vmul.f32 %v30440_v17, %v18912_v1  ;;  %v30443_v29 = vld [vmem:[#allocation22_spill] sm:$0xff]  ;;  %v30444_v18 = vld [vmem:[#allocation51_spill] sm:$0xff]  ;;  %v28951_v17 = vpop.permute.xlu1 %19497 }
 0x4fa   : > { %20959 = vst [vmem:[%s27220_s24 + $0x6c] sm:$0xf] %v20461_v26  ;;  %v18915_v3 = vmax.f32 %v18779_v46, 0.0  ;;  %v20455_v22 = vsel %vm28716_vm9, %v20453_v31, %v20454_v48  ;;  %v20456_v39 = vrot.slane %v20454_v48, 4  ;;  %v18634_v44 = vmul.f32 %v24401_v6, %v28628_v45  ;;  %v30445_v46 = vld [vmem:[#allocation52_spill] sm:$0xff] }
 0x4fb   : > { %v24403_v51 = vadd.f32 %v17627_v16, %v30442_v19  ;;  %20957 = vst [vmem:[%s27220_s24 + $0x64] sm:$0xf] %v20455_v22  ;;  %v22196_v60 = vpack.c.bf16 %v19866_v20, %v19866_v20  ;;  %v22194_v43 = vpack.c.bf16 %v19864_v28, %v19864_v28  ;;  %v18639_v47 = vmul.f32 %v24402_v7, %v28628_v45  ;;  %v24256_v8 = vpop.f32.mrb[32].mxu0  ;;  %v30446_v28 = vld [vmem:[#allocation20_spill] sm:$0xff]  ;;  %v30447_v19 = vld [vmem:[#allocation53_spill] sm:$0xff] }
 0x4fc   : > { %v19867_v9 = vmul.f32 %v30443_v29, %v18915_v3  ;;  %v20458_v24 = vsel %vm28716_vm9, %v20456_v39, %v20457_v52  ;;  %v18777_v42 = vadd.f32 %v28650_v2, %v18634_v44  ;;  %v24404_v63 = vadd.f32 %v24253_v59, %v30444_v18  ;;  %v17643_v5 = vpop.f32.mrb[33].mxu0  ;;  %v30449_v29 = vld [vmem:[#allocation23_spill] sm:$0xff] }
 0x4fd   : > { %v18637_v50 = vmul.f32 %v24403_v51, %v28628_v45  ;;  %20958 = vst [vmem:[%s27220_s24 + $0x68] sm:$0xf] %v20458_v24  ;;  %v20469_v16 = vrot.slane %v22196_v60, 6  ;;  %v20463_v31 = vrot.slane %v22194_v43, 6  ;;  %v18782_v53 = vadd.f32 %v28650_v2, %v18639_v47  ;;  %v24257_v56 = vpop.f32.mrb[34].mxu0  ;;  %v30448_v60 = vld [vmem:[#allocation25_spill] sm:$0xff] }
 0x4fe   : > { %v22197_v61 = vpack.c.bf16 %v19867_v9, %v19867_v9  ;;  %v18913_v15 = vmax.f32 %v18777_v42, 0.0  ;;  %v18640_v52 = vmul.f32 %v24404_v63, %v28628_v45  ;;  %v24405_v26 = vadd.f32 %v17630_v58, %v30445_v46  ;;  %v17646_v48 = vpop.f32.mrb[35].mxu0  ;;  %v30451_v63 = vld [vmem:[#allocation55_spill] sm:$0xff] }
 0x4ff   : > { %v18780_v1 = vadd.f32 %v28650_v2, %v18637_v50  ;;  %v20471_v59 = vrot.slane %v20469_v16, 4  ;;  %v20464_v6 = vsel %vm28716_vm9, %v20462_v32, %v20463_v31  ;;  %v20465_v10 = vrot.slane %v20463_v31, 4  ;;  %v30450_v50 = vld [vmem:[#allocation54_spill] sm:$0xff] }
 0x500   : > { %v20472_v20 = vrot.slane %v22197_v61, 6  ;;  %20960 = vst [vmem:[%s27220_s24 + $0x70] sm:$0xf] %v20464_v6  ;;  %v19865_v3 = vmul.f32 %v30446_v28, %v18913_v15  ;;  %v18918_v36 = vmax.f32 %v18782_v53, 0.0  ;;  %v18783_v22 = vadd.f32 %v28650_v2, %v18640_v52 }
 0x501   : > { %v18916_v7 = vmax.f32 %v18780_v1, 0.0  ;;  %v18638_v44 = vmul.f32 %v24405_v26, %v28628_v45  ;;  %v24406_v51 = vadd.f32 %v24256_v8, %v30447_v19  ;;  %v24407_v18 = vadd.f32 %v17643_v5, %v30450_v50  ;;  %v30452_v1 = vld [vmem:[#allocation26_spill] sm:$0xff]  ;;  %v28968_v26 = vpop.permute.xlu0 %19502  ;;  %v30453_v19 = vld [vmem:[#allocation24_spill] sm:$0xff] }
 0x502   : > { %v20473_v58 = vsel %vm28716_vm9, %v20471_v59, %v20472_v20  ;;  %v20474_v39 = vrot.slane %v20472_v20, 4  ;;  %v22195_v32 = vpack.c.bf16 %v19865_v3, %v19865_v3  ;;  %v19870_v43 = vmul.f32 %v30448_v60, %v18918_v36 }
 0x503   : > { %20963 = vst [vmem:[%s27220_s24 + $0x7c] sm:$0xf] %v20473_v58  ;;  %v19868_v9 = vmul.f32 %v30449_v29, %v18916_v7  ;;  %v18919_v47 = vmax.f32 %v18783_v22, 0.0  ;;  %v18781_v24 = vadd.f32 %v28650_v2, %v18638_v44  ;;  %v18643_v42 = vmul.f32 %v24406_v51, %v28628_v45  ;;  %v24260_v61 = vpop.f32.mrb[36].mxu0 }
 0x504   : > { %v24408_v31 = vadd.f32 %v24257_v56, %v30451_v63  ;;  %v20466_v53 = vrot.slane %v22195_v32, 6  ;;  %v22200_v15 = vpack.c.bf16 %v19870_v43, %v19870_v43  ;;  %v17659_v46 = vpop.f32.mrb[37].mxu0  ;;  %v18641_v20 = vmul.f32 %v24407_v18, %v28628_v45  ;;  %v28973_v56 = vpop.permute.xlu1 %19507 }
 0x505   : > { %v22198_v8 = vpack.c.bf16 %v19868_v9, %v19868_v9  ;;  %v19871_v52 = vmul.f32 %v30452_v1, %v18919_v47  ;;  %v18917_v59 = vmax.f32 %v18781_v24, 0.0  ;;  %v18786_v6 = vadd.f32 %v28650_v2, %v18643_v42  ;;  %v24261_v5 = vpop.f32.mrb[38].mxu0  ;;  %v30454_v42 = vld [vmem:[#allocation29_spill] sm:$0xff] }
 0x506   : > { %v18644_v28 = vmul.f32 %v24408_v31, %v28628_v45  ;;  %v20467_v3 = vsel %vm28716_vm9, %v20465_v10, %v20466_v53  ;;  %v20468_v36 = vrot.slane %v20466_v53, 4  ;;  %v20481_v7 = vrot.slane %v22200_v15, 6  ;;  %v17662_v58 = vpop.f32.mrb[39].mxu0  ;;  %v30455_v31 = vld [vmem:[#allocation56_spill] sm:$0xff]  ;;  %v30456_v15 = vld [vmem:[#allocation57_spill] sm:$0xff] }
 0x507   : > { %v20475_v22 = vrot.slane %v22198_v8, 6  ;;  %20961 = vst [vmem:[%s27220_s24 + $0x74] sm:$0xf] %v20467_v3  ;;  %v22201_v44 = vpack.c.bf16 %v19871_v52, %v19871_v52  ;;  %v19869_v51 = vmul.f32 %v30453_v19, %v18917_v59  ;;  %v18922_v32 = vmax.f32 %v18786_v6, 0.0  ;;  %v28991_v52 = vpop.permute.xlu0 %19512 }
 0x508   : > { %v18784_v60 = vadd.f32 %v28650_v2, %v18641_v20  ;;  %v20470_v43 = vsel %vm28716_vm9, %v20468_v36, %v20469_v16  ;;  %v20483_v29 = vrot.slane %v20481_v7, 4  ;;  %v18787_v63 = vadd.f32 %v28650_v2, %v18644_v28  ;;  %v30457_v16 = vld [vmem:[#allocation58_spill] sm:$0xff]  ;;  %v28995_v36 = vpop.permute.xlu1 %19517  ;;  %v30458_v28 = vld [vmem:[#allocation27_spill] sm:$0xff] }
 0x509   : > { %v20476_v9 = vsel %vm28716_vm9, %v20474_v39, %v20475_v22  ;;  %v20477_v47 = vrot.slane %v20475_v22, 4  ;;  %20962 = vst [vmem:[%s27220_s24 + $0x78] sm:$0xf] %v20470_v43  ;;  %v20484_v10 = vrot.slane %v22201_v44, 6  ;;  %v22199_v24 = vpack.c.bf16 %v19869_v51, %v19869_v51 }
 0x50a   : > { %20964 = vst [vmem:[%s27220_s24 + $0x80] sm:$0xf] %v20476_v9  ;;  %v19874_v50 = vmul.f32 %v30454_v42, %v18922_v32  ;;  %v18920_v18 = vmax.f32 %v18784_v60, 0.0  ;;  %v24409_v53 = vadd.f32 %v17646_v48, %v30455_v31  ;;  %v24410_v8 = vadd.f32 %v24260_v61, %v30456_v15  ;;  %v30459_v9 = vld [vmem:[#allocation30_spill] sm:$0xff]  ;;  %v30460_v31 = vld [vmem:[#allocation59_spill] sm:$0xff] }
 0x50b   : > { %v24411_v1 = vadd.f32 %v17659_v46, %v30457_v16  ;;  %v20485_v39 = vsel %vm28716_vm9, %v20483_v29, %v20484_v10  ;;  %v20486_v59 = vrot.slane %v20484_v10, 4  ;;  %v20478_v6 = vrot.slane %v22199_v24, 6  ;;  %v24264_v3 = vpop.f32.mrb[40].mxu0 }
 0x50c   : > { %v22204_v20 = vpack.c.bf16 %v19874_v50, %v19874_v50  ;;  %20967 = vst [vmem:[%s27220_s24 + $0x8c] sm:$0xf] %v20485_v39  ;;  %v19872_v22 = vmul.f32 %v30458_v28, %v18920_v18  ;;  %v18923_v48 = vmax.f32 %v18787_v63, 0.0  ;;  %v18642_v61 = vmul.f32 %v24409_v53, %v28628_v45  ;;  %v17675_v44 = vpop.f32.mrb[41].mxu0  ;;  %v29018_v39 = vpop.permute.xlu0 %19522  ;;  %v30461_v28 = vld [vmem:[#allocation60_spill] sm:$0xff] }
 0x50d   : > { %v18647_v46 = vmul.f32 %v24410_v8, %v28628_v45  ;;  %v20479_v19 = vsel %vm28716_vm9, %v20477_v47, %v20478_v6  ;;  %v20480_v51 = vrot.slane %v20478_v6, 4  ;;  %v18645_v60 = vmul.f32 %v24411_v1, %v28628_v45  ;;  %v24265_v43 = vpop.f32.mrb[42].mxu0 }
 0x50e   : > { %v29003_v32 = vrot.slane %v22204_v20, 6  ;;  %20965 = vst [vmem:[%s27220_s24 + $0x84] sm:$0xf] %v20479_v19  ;;  %v22202_v29 = vpack.c.bf16 %v19872_v22, %v19872_v22  ;;  %v19875_v10 = vmul.f32 %v30459_v9, %v18923_v48  ;;  %v18785_v24 = vadd.f32 %v28650_v2, %v18642_v61  ;;  %v29010_v50 = vpop.f32.mrb[43].mxu0  ;;  %v29023_v61 = vpop.permute.xlu1 %19527 }
 0x50f   : > { %v18790_v42 = vadd.f32 %v28650_v2, %v18647_v46  ;;  %v20482_v18 = vsel %vm28716_vm9, %v20480_v51, %v20481_v7  ;;  %v18788_v63 = vadd.f32 %v28650_v2, %v18645_v60  ;;  %v24412_v53 = vadd.f32 %v24261_v5, %v30460_v31  ;;  %v30462_v7 = vld [vmem:[#allocation61_spill] sm:$0xff]  ;;  %v30463_v51 = vld [vmem:[#allocation28_spill] sm:$0xff] }
 0x510   : > { %v20495_v47 = vrot.slane %v29003_v32, 4  ;;  %20966 = vst [vmem:[%s27220_s24 + $0x88] sm:$0xf] %v20482_v18  ;;  %v20487_v15 = vrot.slane %v22202_v29, 6  ;;  %v22205_v8 = vpack.c.bf16 %v19875_v10, %v19875_v10  ;;  %v18921_v16 = vmax.f32 %v18785_v24, 0.0  ;;  %v30464_v29 = vld [vmem:[#allocation82_spill] sm:$0xff] }
 0x511   : > { %v18926_v1 = vmax.f32 %v18790_v42, 0.0  ;;  %v18924_v6 = vmax.f32 %v18788_v63, 0.0  ;;  %v18648_v20 = vmul.f32 %v24412_v53, %v28628_v45  ;;  %v24413_v22 = vadd.f32 %v17662_v58, %v30461_v28  ;;  %v30465_v10 = vld [vmem:[#allocation31_spill] sm:$0xff] }
 0x512   : > { %v24414_v48 = vadd.f32 %v24264_v3, %v30462_v7  ;;  %v20488_v5 = vsel %vm28716_vm9, %v20486_v59, %v20487_v15  ;;  %v20489_v46 = vrot.slane %v20487_v15, 4  ;;  %v20496_v19 = vrot.slane %v22205_v8, 6 }
 0x513   : > { %v19873_v60 = vmul.f32 %v30463_v51, %v18921_v16  ;;  %20968 = vst [vmem:[%s27220_s24 + $0x90] sm:$0xf] %v20488_v5  ;;  %v19878_v9 = vmul.f32 %v30464_v29, %v18926_v1  ;;  %v19876_v24 = vmul.f32 %v30465_v10, %v18924_v6  ;;  %v18791_v42 = vadd.f32 %v28650_v2, %v18648_v20  ;;  %v24268_v3 = vpop.f32.mrb[44].mxu0  ;;  %v30467_v5 = vld [vmem:[#allocation63_spill] sm:$0xff]  ;;  %v29043_v51 = vpop.permute.xlu0 %19532 }
 0x514   : > { %v18646_v58 = vmul.f32 %v24413_v22, %v28628_v45  ;;  %v20497_v18 = vsel %vm28716_vm9, %v20495_v47, %v20496_v19  ;;  %v20498_v63 = vrot.slane %v20496_v19, 4  ;;  %v18651_v59 = vmul.f32 %v24414_v48, %v28628_v45  ;;  %v17691_v53 = vpop.f32.mrb[45].mxu0  ;;  %v30466_v22 = vld [vmem:[#allocation62_spill] sm:$0xff]  ;;  %v29046_v10 = vpop.permute.xlu1 %19537 }
 0x515   : > { %v22203_v31 = vpack.c.bf16 %v19873_v60, %v19873_v60  ;;  %20971 = vst [vmem:[%s27220_s24 + $0x9c] sm:$0xf] %v20497_v18  ;;  %v22208_v15 = vpack.c.bf16 %v19878_v9, %v19878_v9  ;;  %v22206_v8 = vpack.c.bf16 %v19876_v24, %v19876_v24  ;;  %v18927_v16 = vmax.f32 %v18791_v42, 0.0  ;;  %v24269_v6 = vpop.f32.mrb[46].mxu0  ;;  %v30468_v60 = vld [vmem:[#allocation84_spill] sm:$0xff] }
 0x516   : > { %v18789_v1 = vadd.f32 %v28650_v2, %v18646_v58  ;;  %v18794_v20 = vadd.f32 %v28650_v2, %v18651_v59  ;;  %v24415_v7 = vadd.f32 %v17675_v44, %v30466_v22  ;;  %v24416_v47 = vadd.f32 %v24265_v43, %v30467_v5  ;;  %v29041_v19 = vpop.f32.mrb[47].mxu0  ;;  %v29053_v43 = vld [vmem:[%s30298_s2] ss:$0 sm:$0xff]  ;;  %v30472_v5 = vld [vmem:[#allocation65_spill] sm:$0xff] }
 0x517   : > { %v20490_v28 = vrot.slane %v22203_v31, 6  ;;  %v20505_v45 = vrot.slane %v22208_v15, 6  ;;  %v20499_v48 = vrot.slane %v22206_v8, 6  ;;  %v19879_v29 = vmul.f32 %v30468_v60, %v18927_v16  ;;  %v30469_v15 = vld [vmem:[#allocation32_spill] sm:$0xff]  ;;  %v30470_v16 = vld [vmem:[#allocation93_spill] sm:$0xff] }
 0x518   : > { %v18925_v9 = vmax.f32 %v18789_v1, 0.0  ;;  %v18930_v44 = vmax.f32 %v18794_v20, 0.0  ;;  %v18649_v42 = vmul.f32 %v29053_v43, %v24415_v7  ;;  %v18652_v22 = vmul.f32 %v29053_v43, %v24416_v47  ;;  %v30471_v7 = vld [vmem:[#allocation64_spill] sm:$0xff] }
 0x519   : > { %v20491_v24 = vsel %vm28716_vm9, %v20489_v46, %v20490_v28  ;;  %v20492_v2 = vrot.slane %v20490_v28, 4  ;;  %v20507_v58 = vrot.slane %v20505_v45, 4  ;;  %v20500_v18 = vsel %vm28716_vm9, %v20498_v63, %v20499_v48  ;;  %v29068_v28 = vld [vmem:[%s30299_s3] ss:$0 sm:$0xff] }
 0x51a   : > { %20969 = vst [vmem:[%s27220_s24 + $0x94] sm:$0xf] %v20491_v24  ;;  %v20501_v31 = vrot.slane %v20499_v48, 4  ;;  %v22209_v59 = vpack.c.bf16 %v19879_v29, %v19879_v29  ;;  %20972 = vst [vmem:[%s27220_s24 + $0xa0] sm:$0xf] %v20500_v18  ;;  %v19877_v8 = vmul.f32 %v30469_v15, %v18925_v9  ;;  %v19882_v1 = vmul.f32 %v30470_v16, %v18930_v44  ;;  %v29077_v15 = vpop.permute.xlu0 %19542 }
 0x51b   : > { %v20494_v46 = vsel %vm28716_vm9, %v20492_v2, %v29003_v32  ;;  %v18792_v20 = vadd.f32 %v29068_v28, %v18649_v42  ;;  %v24417_v32 = vadd.f32 %v29010_v50, %v30471_v7  ;;  %v24418_v48 = vadd.f32 %v24268_v3, %v30472_v5  ;;  %v24272_v60 = vpop.f32.mrb[48].mxu0  ;;  %v30473_v2 = vld [vmem:[#allocation66_spill] sm:$0xff]  ;;  %30474 = vst [vmem:[#allocation5_spill] sm:$0xff] %v29077_v15  ;;  %v29085_v3 = vpop.permute.xlu1 %19547 }
 0x51c   : > { %20970 = vst [vmem:[%s27220_s24 + $0x98] sm:$0xf] %v20494_v46  ;;  %v20508_v63 = vrot.slane %v22209_v59, 6  ;;  %v22207_v29 = vpack.c.bf16 %v19877_v8, %v19877_v8  ;;  %v22212_v9 = vpack.c.bf16 %v19882_v1, %v19882_v1  ;;  %v24419_v44 = vadd.f32 %v17691_v53, %v30473_v2  ;;  %v17707_v18 = vpop.f32.mrb[49].mxu0  ;;  %30475 = vst [vmem:[#allocation3_spill] sm:$0xff] %v29085_v3  ;;  %v30476_v53 = vld [vmem:[#allocation87_spill] sm:$0xff] }
 0x51d   : > { %v18928_v24 = vmax.f32 %v18792_v20, 0.0  ;;  %v18795_v47 = vadd.f32 %v29068_v28, %v18652_v22  ;;  %v18650_v46 = vmul.f32 %v29053_v43, %v24417_v32  ;;  %v29083_v50 = vpop.f32.mrb[50].mxu0  ;;  %v18655_v20 = vmul.f32 %v29053_v43, %v24418_v48  ;;  %v30477_v32 = vld [vmem:[#allocation67_spill] sm:$0xff] }
 0x51e   : > { %v20509_v42 = vsel %vm28716_vm9, %v20507_v58, %v20508_v63  ;;  %v20510_v59 = vrot.slane %v20508_v63, 4  ;;  %v20502_v8 = vrot.slane %v22207_v29, 6  ;;  %v29088_v16 = vrot.slane %v22212_v9, 6  ;;  %v29092_v7 = vpop.f32.mrb[51].mxu0 }
 0x51f   : > { %20975 = vst [vmem:[%s27220_s24 + $0xac] sm:$0xf] %v20509_v42  ;;  %v19880_v1 = vmul.f32 %v30476_v53, %v18928_v24  ;;  %v18931_v58 = vmax.f32 %v18795_v47, 0.0  ;;  %v18793_v63 = vadd.f32 %v29068_v28, %v18650_v46  ;;  %v18653_v22 = vmul.f32 %v29053_v43, %v24419_v44  ;;  %v30478_v24 = vld [vmem:[#allocation94_spill] sm:$0xff] }
 0x520   : > { %v24420_v5 = vadd.f32 %v24269_v6, %v30477_v32  ;;  %v20503_v2 = vsel %vm28716_vm9, %v20501_v31, %v20502_v8  ;;  %v20504_v29 = vrot.slane %v20502_v8, 4  ;;  %v20519_v9 = vrot.slane %v29088_v16, 4  ;;  %v30479_v31 = vld [vmem:[#allocation68_spill] sm:$0xff]  ;;  %v29109_v32 = vpop.permute.xlu0 %19552 }
 0x521   : > { %v22210_v42 = vpack.c.bf16 %v19880_v1, %v19880_v1  ;;  %20973 = vst [vmem:[%s27220_s24 + $0xa4] sm:$0xf] %v20503_v2  ;;  %v19883_v48 = vmul.f32 %v30478_v24, %v18931_v58  ;;  %v18929_v53 = vmax.f32 %v18793_v63, 0.0  ;;  %v18798_v47 = vadd.f32 %v29068_v28, %v18655_v20  ;;  %v30480_v58 = vld [vmem:[#allocation88_spill] sm:$0xff] }
 0x522   : > { %v18796_v46 = vadd.f32 %v29068_v28, %v18653_v22  ;;  %v20506_v44 = vsel %vm28716_vm9, %v20504_v29, %v20505_v45  ;;  %v18656_v6 = vmul.f32 %v29053_v43, %v24420_v5  ;;  %v24421_v8 = vadd.f32 %v29041_v19, %v30479_v31  ;;  %v29113_v22 = vpop.permute.xlu1 %19557 }
 0x523   : > { %v20511_v3 = vrot.slane %v22210_v42, 6  ;;  %20974 = vst [vmem:[%s27220_s24 + $0xa8] sm:$0xf] %v20506_v44  ;;  %v22213_v1 = vpack.c.bf16 %v19883_v48, %v19883_v48  ;;  %v19881_v63 = vmul.f32 %v30480_v58, %v18929_v53  ;;  %v18934_v2 = vmax.f32 %v18798_v47, 0.0  ;;  %v24276_v24 = vpop.f32.mrb[52].mxu0  ;;  %30481 = vst [vmem:[#allocation33_spill] sm:$0xff] %v29113_v22 }
 0x524   : > { %v18932_v20 = vmax.f32 %v18796_v46, 0.0  ;;  %v18799_v5 = vadd.f32 %v29068_v28, %v18656_v6  ;;  %v18654_v42 = vmul.f32 %v29053_v43, %v24421_v8  ;;  %v29119_v19 = vpop.f32.mrb[53].mxu0  ;;  %v30482_v47 = vld [vmem:[#allocation99_spill] sm:$0xff]  ;;  %v30484_v6 = vld [vmem:[#allocation70_spill] sm:$0xff] }
 0x525   : > { %v20512_v45 = vsel %vm28716_vm9, %v20510_v59, %v20511_v3  ;;  %v20513_v29 = vrot.slane %v20511_v3, 4  ;;  %v20520_v48 = vrot.slane %v22213_v1, 6  ;;  %v22211_v44 = vpack.c.bf16 %v19881_v63, %v19881_v63  ;;  %v29124_v31 = vpop.f32.mrb[54].mxu0  ;;  %v30483_v3 = vld [vmem:[#allocation69_spill] sm:$0xff] }
 0x526   : > { %20976 = vst [vmem:[%s27220_s24 + $0xb0] sm:$0xf] %v20512_v45  ;;  %v19886_v53 = vmul.f32 %v28680_v27, %v18934_v2  ;;  %v19884_v46 = vmul.f32 %v30482_v47, %v18932_v20  ;;  %v18935_v58 = vmax.f32 %v18799_v5, 0.0  ;;  %v18797_v59 = vadd.f32 %v29068_v28, %v18654_v42  ;;  %v29129_v8 = vpop.f32.mrb[55].mxu0  ;;  %v29136_v47 = vpop.permute.xlu0 %19562 }
 0x527   : > { %v24422_v22 = vadd.f32 %v24272_v60, %v30483_v3  ;;  %v24423_v15 = vadd.f32 %v17707_v18, %v30484_v6  ;;  %v20521_v1 = vsel %vm28716_vm9, %v20519_v9, %v20520_v48  ;;  %v20522_v63 = vrot.slane %v20520_v48, 4  ;;  %v29141_v48 = vpop.permute.xlu1 %19567 }
 0x528   : > { %v20514_v45 = vrot.slane %v22211_v44, 6  ;;  %v22216_v27 = vpack.c.bf16 %v19886_v53, %v19886_v53  ;;  %20979 = vst [vmem:[%s27220_s24 + $0xbc] sm:$0xf] %v20521_v1  ;;  %v22214_v2 = vpack.c.bf16 %v19884_v46, %v19884_v46  ;;  %v19887_v20 = vmul.f32 %v28689_v55, %v18935_v58 }
 0x529   : > { %v18933_v5 = vmax.f32 %v18797_v59, 0.0  ;;  %v18659_v42 = vmul.f32 %v29053_v43, %v24422_v22  ;;  %v18657_v9 = vmul.f32 %v29053_v43, %v24423_v15  ;;  %v30485_v59 = vld [vmem:[#allocation71_spill] sm:$0xff] }
 0x52a   : > { %v20515_v60 = vsel %vm28716_vm9, %v20513_v29, %v20514_v45  ;;  %v20516_v18 = vrot.slane %v20514_v45, 4  ;;  %v20529_v3 = vrot.slane %v22216_v27, 6  ;;  %v20523_v44 = vrot.slane %v22214_v2, 6 }
 0x52b   : > { %20977 = vst [vmem:[%s27220_s24 + $0xb4] sm:$0xf] %v20515_v60  ;;  %v22217_v53 = vpack.c.bf16 %v19887_v20, %v19887_v20  ;;  %v19885_v55 = vmul.f32 %v28653_v25, %v18933_v5  ;;  %v18802_v22 = vadd.f32 %v29068_v28, %v18659_v42  ;;  %v18800_v29 = vadd.f32 %v29068_v28, %v18657_v9  ;;  %v29152_v6 = vpop.f32.mrb[56].mxu0  ;;  %v30486_v42 = vld [vmem:[#allocation72_spill] sm:$0xff] }
 0x52c   : > { %v20518_v46 = vsel %vm28716_vm9, %v20516_v18, %v29088_v16  ;;  %v20531_v58 = vrot.slane %v20529_v3, 4  ;;  %v24424_v15 = vadd.f32 %v29083_v50, %v30485_v59  ;;  %v20524_v1 = vsel %vm28716_vm9, %v20522_v63, %v20523_v44  ;;  %v17739_v2 = vpop.f32.mrb[57].mxu0 }
 0x52d   : > { %20978 = vst [vmem:[%s27220_s24 + $0xb8] sm:$0xf] %v20518_v46  ;;  %v20525_v45 = vrot.slane %v20523_v44, 4  ;;  %v20532_v25 = vrot.slane %v22217_v53, 6  ;;  %v22215_v27 = vpack.c.bf16 %v19885_v55, %v19885_v55  ;;  %20980 = vst [vmem:[%s27220_s24 + $0xc0] sm:$0xf] %v20524_v1  ;;  %v24425_v60 = vadd.f32 %v29092_v7, %v30486_v42  ;;  %v29168_v46 = vpop.permute.xlu0 %19572 }
 0x52e   : > { %v18938_v20 = vmax.f32 %v18802_v22, 0.0  ;;  %v18936_v16 = vmax.f32 %v18800_v29, 0.0  ;;  %v18660_v5 = vmul.f32 %v29053_v43, %v24424_v15  ;;  %v29161_v50 = vpop.f32.mrb[58].mxu0  ;;  %v30487_v44 = vld [vmem:[#allocation73_spill] sm:$0xff] }
 0x52f   : > { %v20533_v18 = vsel %vm28716_vm9, %v20531_v58, %v20532_v25  ;;  %v20534_v63 = vrot.slane %v20532_v25, 4  ;;  %v20526_v9 = vrot.slane %v22215_v27, 6  ;;  %v24426_v53 = vadd.f32 %v24276_v24, %v30487_v44  ;;  %v29166_v55 = vpop.f32.mrb[59].mxu0  ;;  %v29175_v58 = vpop.permute.xlu1 %19577  ;;  %v30488_v25 = vld [vmem:[#allocation74_spill] sm:$0xff] }
 0x530   : > { %20983 = vst [vmem:[%s27220_s24 + $0xcc] sm:$0xf] %v20533_v18  ;;  %v19890_v22 = vmul.f32 %v28739_v49, %v18938_v20  ;;  %v19888_v29 = vmul.f32 %v28712_v0, %v18936_v16  ;;  %v18803_v7 = vadd.f32 %v29068_v28, %v18660_v5  ;;  %v18658_v59 = vmul.f32 %v29053_v43, %v24425_v60 }
 0x531   : > { %v20527_v15 = vsel %vm28716_vm9, %v20525_v45, %v20526_v9  ;;  %v20528_v24 = vrot.slane %v20526_v9, 4  ;;  %v18663_v1 = vmul.f32 %v29053_v43, %v24426_v53  ;;  %v24427_v27 = vadd.f32 %v29119_v19, %v30488_v25  ;;  %v30489_v45 = vld [vmem:[#allocation75_spill] sm:$0xff] }
 0x532   : > { %20981 = vst [vmem:[%s27220_s24 + $0xc4] sm:$0xf] %v20527_v15  ;;  %v22220_v49 = vpack.c.bf16 %v19890_v22, %v19890_v22  ;;  %v22218_v20 = vpack.c.bf16 %v19888_v29, %v19888_v29  ;;  %v18939_v0 = vmax.f32 %v18803_v7, 0.0  ;;  %v18801_v16 = vadd.f32 %v29068_v28, %v18658_v59  ;;  %v30490_v59 = vld [vmem:[#allocation76_spill] sm:$0xff] }
 0x533   : > { %v20530_v5 = vsel %vm28716_vm9, %v20528_v24, %v20529_v3  ;;  %v18806_v42 = vadd.f32 %v29068_v28, %v18663_v1  ;;  %v18661_v60 = vmul.f32 %v29053_v43, %v24427_v27  ;;  %v24428_v18 = vadd.f32 %v29124_v31, %v30489_v45  ;;  %v29192_v22 = vpop.f32.mrb[60].mxu0  ;;  %v29200_v31 = vpop.permute.xlu0 %19582  ;;  %v30491_v45 = vld [vmem:[#allocation77_spill] sm:$0xff] }
 0x534   : > { %20982 = vst [vmem:[%s27220_s24 + $0xc8] sm:$0xf] %v20530_v5  ;;  %v20541_v9 = vrot.slane %v22220_v49, 6  ;;  %v20535_v44 = vrot.slane %v22218_v20, 6  ;;  %v19891_v19 = vmul.f32 %v28746_v35, %v18939_v0  ;;  %v18937_v53 = vmax.f32 %v18801_v16, 0.0  ;;  %v29198_v24 = vpop.f32.mrb[61].mxu0  ;;  %v29206_v20 = vpop.permute.xlu1 %19587 }
 0x535   : > { %v18942_v29 = vmax.f32 %v18806_v42, 0.0  ;;  %v18804_v7 = vadd.f32 %v29068_v28, %v18661_v60  ;;  %v18664_v3 = vmul.f32 %v29053_v43, %v24428_v18  ;;  %v24429_v15 = vadd.f32 %v29129_v8, %v30490_v59  ;;  %v29204_v49 = vpop.f32.mrb[62].mxu0 }
 0x536   : > { %v20543_v1 = vrot.slane %v20541_v9, 4  ;;  %v20536_v25 = vsel %vm28716_vm9, %v20534_v63, %v20535_v44  ;;  %v20537_v35 = vrot.slane %v20535_v44, 4  ;;  %v22221_v27 = vpack.c.bf16 %v19891_v19, %v19891_v19  ;;  %v29212_v42 = vpop.f32.mrb[63].mxu0  ;;  %v30492_v44 = vld [vmem:[#allocation78_spill] sm:$0xff] }
 0x537   : > { %20984 = vst [vmem:[%s27220_s24 + $0xd0] sm:$0xf] %v20536_v25  ;;  %v19889_v0 = vmul.f32 %v28723_v30, %v18937_v53  ;;  %v19894_v16 = vmul.f32 %v28793_v34, %v18942_v29  ;;  %v18940_v8 = vmax.f32 %v18804_v7, 0.0  ;;  %v18807_v5 = vadd.f32 %v29068_v28, %v18664_v3 }
 0x538   : > { %v20544_v60 = vrot.slane %v22221_v27, 6  ;;  %v18662_v63 = vmul.f32 %v29053_v43, %v24429_v15  ;;  %v24430_v18 = vadd.f32 %v29152_v6, %v30491_v45  ;;  %v24431_v19 = vadd.f32 %v17739_v2, %v30492_v44 }
 0x539   : > { %v22219_v59 = vpack.c.bf16 %v19889_v0, %v19889_v0  ;;  %v22224_v25 = vpack.c.bf16 %v19894_v16, %v19894_v16  ;;  %v19892_v30 = vmul.f32 %v28764_v14, %v18940_v8  ;;  %v18943_v53 = vmax.f32 %v18807_v5, 0.0  ;;  %v29225_v0 = vpop.permute.xlu0 %19592 }
 0x53a   : > { %v20545_v34 = vsel %vm28716_vm9, %v20543_v1, %v20544_v60  ;;  %v20546_v29 = vrot.slane %v20544_v60, 4  ;;  %v18805_v7 = vadd.f32 %v29068_v28, %v18662_v63  ;;  %v18667_v3 = vmul.f32 %v29053_v43, %v24430_v18  ;;  %v30493_v1 = vld [vmem:[#allocation79_spill] sm:$0xff]  ;;  %v29233_v63 = vpop.permute.xlu1 %19597 }
 0x53b   : > { %20987 = vst [vmem:[%s27220_s24 + $0xdc] sm:$0xf] %v20545_v34  ;;  %v20538_v15 = vrot.slane %v22219_v59, 6  ;;  %v20553_v27 = vrot.slane %v22224_v25, 6  ;;  %v22222_v6 = vpack.c.bf16 %v19892_v30, %v19892_v30  ;;  %v19895_v2 = vmul.f32 %v28798_v41, %v18943_v53  ;;  %v29231_v60 = vpop.f32.mrb[64].mxu0 }
 0x53c   : > { %v18941_v16 = vmax.f32 %v18805_v7, 0.0  ;;  %v18810_v14 = vadd.f32 %v29068_v28, %v18667_v3  ;;  %v18665_v8 = vmul.f32 %v29053_v43, %v24431_v19  ;;  %v24432_v5 = vadd.f32 %v29161_v50, %v30493_v1  ;;  %v29237_v59 = vpop.f32.mrb[65].mxu0  ;;  %v30495_v1 = vld [vmem:[#allocation81_spill] sm:$0xff] }
 0x53d   : > { %v20539_v45 = vsel %vm28716_vm9, %v20537_v35, %v20538_v15  ;;  %v20540_v18 = vrot.slane %v20538_v15, 4  ;;  %v20555_v41 = vrot.slane %v20553_v27, 4  ;;  %v20547_v44 = vrot.slane %v22222_v6, 6  ;;  %v29242_v53 = vpop.f32.mrb[66].mxu0 }
 0x53e   : > { %20985 = vst [vmem:[%s27220_s24 + $0xd4] sm:$0xf] %v20539_v45  ;;  %v22225_v25 = vpack.c.bf16 %v19895_v2, %v19895_v2  ;;  %v19893_v19 = vmul.f32 %v28770_v21, %v18941_v16  ;;  %v18946_v30 = vmax.f32 %v18810_v14, 0.0  ;;  %v18808_v50 = vadd.f32 %v29068_v28, %v18665_v8  ;;  %v29249_v15 = vpop.f32.mrb[67].mxu0  ;;  %v30494_v8 = vld [vmem:[#allocation80_spill] sm:$0xff]  ;;  %v30496_v45 = vld [vmem:[#allocation83_spill] sm:$0xff] }
 0x53f   : > { %v20542_v34 = vsel %vm28716_vm9, %v20540_v18, %v20541_v9  ;;  %v20548_v35 = vsel %vm28716_vm9, %v20546_v29, %v20547_v44  ;;  %v20549_v7 = vrot.slane %v20547_v44, 4  ;;  %v18668_v3 = vmul.f32 %v29053_v43, %v24432_v5  ;;  %v29261_v18 = vpop.permute.xlu0 %19602 }
 0x540   : > { %20986 = vst [vmem:[%s27220_s24 + $0xd8] sm:$0xf] %v20542_v34  ;;  %20988 = vst [vmem:[%s27220_s24 + $0xe0] sm:$0xf] %v20548_v35  ;;  %v20556_v21 = vrot.slane %v22225_v25, 6  ;;  %v22223_v6 = vpack.c.bf16 %v19893_v19, %v19893_v19  ;;  %v19898_v2 = vmul.f32 %v28844_v4, %v18946_v30  ;;  %v18944_v16 = vmax.f32 %v18808_v50, 0.0  ;;  %v29265_v30 = vpop.permute.xlu1 %19607 }
 0x541   : > { %v18811_v14 = vadd.f32 %v29068_v28, %v18668_v3  ;;  %v24433_v9 = vadd.f32 %v29166_v55, %v30494_v8  ;;  %v24434_v29 = vadd.f32 %v29192_v22, %v30495_v1  ;;  %v24435_v5 = vadd.f32 %v29198_v24, %v30496_v45  ;;  %30497 = vst [vmem:[#allocation34_spill] sm:$0xff] %v29265_v30  ;;  %v30500_v30 = vld [vmem:[#allocation89_spill] sm:$0xff] }
 0x542   : > { %v20557_v44 = vsel %vm28716_vm9, %v20555_v41, %v20556_v21  ;;  %v20558_v25 = vrot.slane %v20556_v21, 4  ;;  %v20550_v4 = vrot.slane %v22223_v6, 6  ;;  %v22228_v19 = vpack.c.bf16 %v19898_v2, %v19898_v2  ;;  %v29271_v24 = vpop.f32.mrb[68].mxu1 }
 0x543   : > { %20991 = vst [vmem:[%s27220_s24 + $0xec] sm:$0xf] %v20557_v44  ;;  %v19896_v55 = vmul.f32 %v28817_v13, %v18944_v16  ;;  %v18947_v50 = vmax.f32 %v18811_v14, 0.0  ;;  %v18666_v22 = vmul.f32 %v29053_v43, %v24433_v9  ;;  %v18671_v34 = vmul.f32 %v29053_v43, %v24434_v29  ;;  %v29278_v6 = vpop.f32.mrb[68].mxu0  ;;  %v29280_v2 = vpop.f32.mrb[69].mxu1 }
 0x544   : > { %v20551_v35 = vsel %vm28716_vm9, %v20549_v7, %v20550_v4  ;;  %v20552_v41 = vrot.slane %v20550_v4, 4  ;;  %v29275_v3 = vrot.slane %v22228_v19, 6  ;;  %v18669_v21 = vmul.f32 %v29053_v43, %v24435_v5  ;;  %v29286_v9 = vpop.f32.mrb[69].mxu0  ;;  %v29288_v7 = vpop.f32.mrb[70].mxu1  ;;  %v30498_v5 = vld [vmem:[#allocation85_spill] sm:$0xff] }
 0x545   : > { %20989 = vst [vmem:[%s27220_s24 + $0xe4] sm:$0xf] %v20551_v35  ;;  %v22226_v13 = vpack.c.bf16 %v19896_v55, %v19896_v55  ;;  %v19899_v16 = vmul.f32 %v28851_v57, %v18947_v50  ;;  %v18809_v14 = vadd.f32 %v29068_v28, %v18666_v22  ;;  %v18814_v8 = vadd.f32 %v29068_v28, %v18671_v34  ;;  %v29296_v4 = vpop.f32.mrb[70].mxu0  ;;  %v29298_v57 = vpop.f32.mrb[71].mxu1 }
 0x546   : > { %v20554_v1 = vsel %vm28716_vm9, %v20552_v41, %v20553_v27  ;;  %v20567_v29 = vrot.slane %v29275_v3, 4  ;;  %v18812_v45 = vadd.f32 %v29068_v28, %v18669_v21  ;;  %v24436_v44 = vadd.f32 %v29204_v49, %v30498_v5  ;;  %v29301_v34 = vpop.f32.mrb[71].mxu0  ;;  %v30499_v41 = vld [vmem:[#allocation86_spill] sm:$0xff] }
 0x547   : > { %20990 = vst [vmem:[%s27220_s24 + $0xe8] sm:$0xf] %v20554_v1  ;;  %v20559_v19 = vrot.slane %v22226_v13, 6  ;;  %v22229_v55 = vpack.c.bf16 %v19899_v16, %v19899_v16  ;;  %v18945_v50 = vmax.f32 %v18809_v14, 0.0  ;;  %v18950_v22 = vmax.f32 %v18814_v8, 0.0  ;;  %v29311_v14 = vpop.permute.xlu0 %19612 }
 0x548   : > { %v18948_v27 = vmax.f32 %v18812_v45, 0.0  ;;  %v18672_v35 = vmul.f32 %v29053_v43, %v24436_v44  ;;  %v24437_v21 = vadd.f32 %v29212_v42, %v30499_v41  ;;  %v24438_v49 = vadd.f32 %v29231_v60, %v30500_v30  ;;  %v29318_v60 = vpop.permute.xlu1 %19617 }
 0x549   : > { %v20560_v5 = vsel %vm28716_vm9, %v20558_v25, %v20559_v19  ;;  %v20561_v1 = vrot.slane %v20559_v19, 4  ;;  %v20568_v13 = vrot.slane %v22229_v55, 6  ;;  %v19897_v16 = vmul.f32 %v28822_v12, %v18945_v50  ;;  %30501 = vst [vmem:[#allocation6_spill] sm:$0xff] %v29318_v60 }
 0x54a   : > { %20992 = vst [vmem:[%s27220_s24 + $0xf0] sm:$0xf] %v20560_v5  ;;  %v19902_v8 = vmul.f32 %v28899_v62, %v18950_v22  ;;  %v19900_v45 = vmul.f32 %v28876_v11, %v18948_v27  ;;  %v18815_v42 = vadd.f32 %v29068_v28, %v18672_v35  ;;  %v18670_v44 = vmul.f32 %v29053_v43, %v24437_v21  ;;  %v29323_v55 = vpop.f32.mrb[72].mxu1 }
 0x54b   : > { %v20569_v25 = vsel %vm28716_vm9, %v20567_v29, %v20568_v13  ;;  %v20570_v30 = vrot.slane %v20568_v13, 4  ;;  %v22227_v19 = vpack.c.bf16 %v19897_v16, %v19897_v16  ;;  %v18675_v12 = vmul.f32 %v29053_v43, %v24438_v49  ;;  %v29327_v27 = vpop.f32.mrb[72].mxu0  ;;  %v29329_v35 = vpop.f32.mrb[73].mxu1  ;;  %v30502_v29 = vld [vmem:[#allocation90_spill] sm:$0xff]  ;;  %v30503_v49 = vld [vmem:[#allocation91_spill] sm:$0xff] }
 0x54c   : > { %20995 = vst [vmem:[%s27220_s24 + $0xfc] sm:$0xf] %v20569_v25  ;;  %v22232_v50 = vpack.c.bf16 %v19902_v8, %v19902_v8  ;;  %v22230_v62 = vpack.c.bf16 %v19900_v45, %v19900_v45  ;;  %v18951_v22 = vmax.f32 %v18815_v42, 0.0  ;;  %v18813_v11 = vadd.f32 %v29068_v28, %v18670_v44  ;;  %v29336_v16 = vpop.f32.mrb[73].mxu0  ;;  %v29338_v8 = vpop.f32.mrb[74].mxu1 }
 0x54d   : > { %v20562_v41 = vrot.slane %v22227_v19, 6  ;;  %v18818_v21 = vadd.f32 %v29068_v28, %v18675_v12  ;;  %v24439_v5 = vadd.f32 %v29237_v59, %v30502_v29  ;;  %v24440_v13 = vadd.f32 %v29242_v53, %v30503_v49  ;;  %v29343_v19 = vpop.f32.mrb[74].mxu0  ;;  %v29345_v12 = vpop.f32.mrb[75].mxu1 }
 0x54e   : > { %v29340_v45 = vrot.slane %v22232_v50, 6  ;;  %v20571_v42 = vrot.slane %v22230_v62, 6  ;;  %v19903_v44 = vmul.f32 %v28903_v38, %v18951_v22  ;;  %v18949_v25 = vmax.f32 %v18813_v11, 0.0  ;;  %v29350_v60 = vpop.f32.mrb[75].mxu0 }
 0x54f   : > { %v20563_v59 = vsel %vm28716_vm9, %v20561_v1, %v20562_v41  ;;  %v20564_v53 = vrot.slane %v20562_v41, 4  ;;  %v18954_v29 = vmax.f32 %v18818_v21, 0.0  ;;  %v18673_v49 = vmul.f32 %v29053_v43, %v24439_v5  ;;  %v29363_v5 = vpop.permute.xlu0 %19622 }
 0x550   : > { %20993 = vst [vmem:[%s27220_s24 + $0xf4] sm:$0xf] %v20563_v59  ;;  %v20579_v50 = vrot.slane %v29340_v45, 4  ;;  %v20572_v38 = vsel %vm28716_vm9, %v20570_v30, %v20571_v42  ;;  %v20573_v62 = vrot.slane %v20571_v42, 4  ;;  %v22233_v22 = vpack.c.bf16 %v19903_v44, %v19903_v44  ;;  %v30504_v42 = vld [vmem:[#allocation92_spill] sm:$0xff] }
 0x551   : > { %v20566_v11 = vsel %vm28716_vm9, %v20564_v53, %v29275_v3  ;;  %20996 = vst [vmem:[%s27220_s24 + $0x100] sm:$0xf] %v20572_v38  ;;  %v19901_v1 = vmul.f32 %v28878_v23, %v18949_v25  ;;  %v19906_v41 = vmul.f32 %v28947_v40, %v18954_v29  ;;  %v18816_v21 = vadd.f32 %v29068_v28, %v18673_v49  ;;  %v29371_v53 = vpop.permute.xlu1 %19627 }
 0x552   : > { %20994 = vst [vmem:[%s27220_s24 + $0xf8] sm:$0xf] %v20566_v11  ;;  %v20580_v59 = vrot.slane %v22233_v22, 6  ;;  %v18676_v30 = vmul.f32 %v29053_v43, %v24440_v13  ;;  %v24441_v44 = vadd.f32 %v29249_v15, %v30504_v42  ;;  %v24442_v3 = vadd.f32 %v29278_v6, %v29271_v24  ;;  %30505 = vst [vmem:[#allocation35_spill] sm:$0xff] %v29371_v53  ;;  %v29375_v49 = vpop.f32.mrb[76].mxu1 }
 0x553   : > { %v22231_v23 = vpack.c.bf16 %v19901_v1, %v19901_v1  ;;  %v22236_v25 = vpack.c.bf16 %v19906_v41, %v19906_v41  ;;  %v18952_v40 = vmax.f32 %v18816_v21, 0.0  ;;  %v24443_v29 = vadd.f32 %v29286_v9, %v29280_v2  ;;  %v29381_v11 = vpop.f32.mrb[76].mxu0  ;;  %v29383_v24 = vpop.f32.mrb[77].mxu1 }
 0x554   : > { %v20581_v38 = vsel %vm28716_vm9, %v20579_v50, %v20580_v59  ;;  %v20582_v13 = vrot.slane %v20580_v59, 4  ;;  %v18819_v22 = vadd.f32 %v29068_v28, %v18676_v30  ;;  %v18674_v15 = vmul.f32 %v29053_v43, %v24441_v44  ;;  %v29390_v41 = vpop.f32.mrb[77].mxu0  ;;  %v29392_v50 = vpop.f32.mrb[78].mxu1 }
 0x555   : > { %20999 = vst [vmem:[%s27220_s24 + $0x10c] sm:$0xf] %v20581_v38  ;;  %v20574_v6 = vrot.slane %v22231_v23, 6  ;;  %v29386_v1 = vrot.slane %v22236_v25, 6  ;;  %v19904_v2 = vmul.f32 %v28922_v54, %v18952_v40  ;;  %v18679_v9 = vmul.f32 %v29053_v43, %v24442_v3  ;;  %v29398_v44 = vpop.f32.mrb[78].mxu0  ;;  %v29400_v23 = vpop.f32.mrb[79].mxu1 }
 0x556   : > { %v18955_v21 = vmax.f32 %v18819_v22, 0.0  ;;  %v18817_v59 = vadd.f32 %v29068_v28, %v18674_v15  ;;  %v18677_v30 = vmul.f32 %v29053_v43, %v24443_v29  ;;  %v24444_v42 = vadd.f32 %v29296_v4, %v29288_v7  ;;  %v29405_v38 = vpop.f32.mrb[79].mxu0  ;;  %v29417_v53 = vpop.permute.xlu0 %19632 }
 0x557   : > { %v20575_v54 = vsel %vm28716_vm9, %v20573_v62, %v20574_v6  ;;  %v20576_v3 = vrot.slane %v20574_v6, 4  ;;  %v20591_v25 = vrot.slane %v29386_v1, 4  ;;  %v22234_v40 = vpack.c.bf16 %v19904_v2, %v19904_v2 }
 0x558   : > { %20997 = vst [vmem:[%s27220_s24 + $0x104] sm:$0xf] %v20575_v54  ;;  %v19907_v29 = vmul.f32 %v28951_v17, %v18955_v21  ;;  %v18953_v22 = vmax.f32 %v18817_v59, 0.0  ;;  %v18822_v7 = vadd.f32 %v29068_v28, %v18679_v9  ;;  %v18820_v4 = vadd.f32 %v29068_v28, %v18677_v30  ;;  %v29421_v30 = vpop.permute.xlu1 %19637 }
 0x559   : > { %v20578_v15 = vsel %vm28716_vm9, %v20576_v3, %v29340_v45  ;;  %v20583_v62 = vrot.slane %v22234_v40, 6  ;;  %v18680_v6 = vmul.f32 %v29053_v43, %v24444_v42  ;;  %v24445_v2 = vadd.f32 %v29301_v34, %v29298_v57 }
 0x55a   : > { %20998 = vst [vmem:[%s27220_s24 + $0x108] sm:$0xf] %v20578_v15  ;;  %v22237_v17 = vpack.c.bf16 %v19907_v29, %v19907_v29  ;;  %v19905_v21 = vmul.f32 %v28928_v33, %v18953_v22  ;;  %v18958_v9 = vmax.f32 %v18822_v7, 0.0  ;;  %v18956_v59 = vmax.f32 %v18820_v4, 0.0  ;;  %v29427_v40 = vpop.f32.mrb[80].mxu1 }
 0x55b   : > { %v20584_v45 = vsel %vm28716_vm9, %v20582_v13, %v20583_v62  ;;  %v20585_v54 = vrot.slane %v20583_v62, 4  ;;  %v18823_v3 = vadd.f32 %v29068_v28, %v18680_v6  ;;  %v18678_v42 = vmul.f32 %v29053_v43, %v24445_v2  ;;  %v29432_v22 = vpop.f32.mrb[80].mxu0  ;;  %v29434_v7 = vpop.f32.mrb[81].mxu1 }
 0x55c   : > { %21000 = vst [vmem:[%s27220_s24 + $0x110] sm:$0xf] %v20584_v45  ;;  %v20592_v57 = vrot.slane %v22237_v17, 6  ;;  %v22235_v34 = vpack.c.bf16 %v19905_v21, %v19905_v21  ;;  %v19910_v29 = vmul.f32 %v28991_v52, %v18958_v9  ;;  %v19908_v33 = vmul.f32 %v28968_v26, %v18956_v59  ;;  %v29441_v6 = vpop.f32.mrb[81].mxu0  ;;  %v29443_v2 = vpop.f32.mrb[82].mxu1 }
 0x55d   : > { %v18959_v13 = vmax.f32 %v18823_v3, 0.0  ;;  %v18821_v4 = vadd.f32 %v29068_v28, %v18678_v42  ;;  %v24446_v15 = vadd.f32 %v29327_v27, %v29323_v55  ;;  %v24447_v62 = vadd.f32 %v29336_v16, %v29329_v35  ;;  %v29447_v9 = vpop.f32.mrb[82].mxu0  ;;  %v29449_v59 = vpop.f32.mrb[83].mxu1 }
 0x55e   : > { %v20593_v26 = vsel %vm28716_vm9, %v20591_v25, %v20592_v57  ;;  %v20594_v52 = vrot.slane %v20592_v57, 4  ;;  %v20586_v17 = vrot.slane %v22235_v34, 6  ;;  %v22240_v21 = vpack.c.bf16 %v19910_v29, %v19910_v29  ;;  %v29454_v45 = vpop.f32.mrb[83].mxu0 }
 0x55f   : > { %21003 = vst [vmem:[%s27220_s24 + $0x11c] sm:$0xf] %v20593_v26  ;;  %v22238_v55 = vpack.c.bf16 %v19908_v33, %v19908_v33  ;;  %v19911_v27 = vmul.f32 %v28995_v36, %v18959_v13  ;;  %v18957_v35 = vmax.f32 %v18821_v4, 0.0  ;;  %v18683_v16 = vmul.f32 %v29053_v43, %v24446_v15  ;;  %v29462_v13 = vpop.permute.xlu0 %19642  ;;  %v29470_v26 = vpop.permute.xlu1 %19647 }
 0x560   : > { %v20587_v25 = vsel %vm28716_vm9, %v20585_v54, %v20586_v17  ;;  %v20588_v3 = vrot.slane %v20586_v17, 4  ;;  %v20601_v42 = vrot.slane %v22240_v21, 6  ;;  %v18681_v57 = vmul.f32 %v29053_v43, %v24447_v62 }
 0x561   : > { %21001 = vst [vmem:[%s27220_s24 + $0x114] sm:$0xf] %v20587_v25  ;;  %v20595_v34 = vrot.slane %v22238_v55, 6  ;;  %v22241_v29 = vpack.c.bf16 %v19911_v27, %v19911_v27  ;;  %v19909_v33 = vmul.f32 %v28973_v56, %v18957_v35  ;;  %v18826_v36 = vadd.f32 %v29068_v28, %v18683_v16 }
 0x562   : > { %v20590_v4 = vsel %vm28716_vm9, %v20588_v3, %v29386_v1  ;;  %v20603_v15 = vrot.slane %v20601_v42, 4  ;;  %v18824_v54 = vadd.f32 %v29068_v28, %v18681_v57  ;;  %v24448_v62 = vadd.f32 %v29343_v19, %v29338_v8  ;;  %v29475_v27 = vpop.f32.mrb[84].mxu1 }
 0x563   : > { %21002 = vst [vmem:[%s27220_s24 + $0x118] sm:$0xf] %v20590_v4  ;;  %v20596_v56 = vsel %vm28716_vm9, %v20594_v52, %v20595_v34  ;;  %v20597_v17 = vrot.slane %v20595_v34, 4  ;;  %v20604_v21 = vrot.slane %v22241_v29, 6  ;;  %v22239_v55 = vpack.c.bf16 %v19909_v33, %v19909_v33  ;;  %v29481_v19 = vpop.f32.mrb[84].mxu0  ;;  %v29483_v25 = vpop.f32.mrb[85].mxu1 }
 0x564   : > { %21004 = vst [vmem:[%s27220_s24 + $0x120] sm:$0xf] %v20596_v56  ;;  %v18962_v1 = vmax.f32 %v18826_v36, 0.0  ;;  %v18960_v35 = vmax.f32 %v18824_v54, 0.0  ;;  %v18684_v16 = vmul.f32 %v29053_v43, %v24448_v62  ;;  %v24449_v8 = vadd.f32 %v29350_v60, %v29345_v12  ;;  %v29489_v29 = vpop.f32.mrb[85].mxu0  ;;  %v29491_v33 = vpop.f32.mrb[86].mxu1 }
 0x565   : > { %v20605_v52 = vsel %vm28716_vm9, %v20603_v15, %v20604_v21  ;;  %v20606_v3 = vrot.slane %v20604_v21, 4  ;;  %v20598_v57 = vrot.slane %v22239_v55, 6  ;;  %v24450_v34 = vadd.f32 %v29381_v11, %v29375_v49  ;;  %v29498_v15 = vpop.f32.mrb[86].mxu0  ;;  %v29500_v54 = vpop.f32.mrb[87].mxu1 }
 0x566   : > { %21007 = vst [vmem:[%s27220_s24 + $0x12c] sm:$0xf] %v20605_v52  ;;  %v19914_v60 = vmul.f32 %v29043_v51, %v18962_v1  ;;  %v19912_v12 = vmul.f32 %v29018_v39, %v18960_v35  ;;  %v18827_v36 = vadd.f32 %v29068_v28, %v18684_v16  ;;  %v18682_v4 = vmul.f32 %v29053_v43, %v24449_v8  ;;  %v29507_v56 = vpop.f32.mrb[87].mxu0  ;;  %v29517_v52 = vpop.permute.xlu0 %19652 }
 0x567   : > { %v20599_v49 = vsel %vm28716_vm9, %v20597_v17, %v20598_v57  ;;  %v20600_v11 = vrot.slane %v20598_v57, 4  ;;  %v18687_v62 = vmul.f32 %v29053_v43, %v24450_v34  ;;  %v24451_v51 = vadd.f32 %v29390_v41, %v29383_v24 }
 0x568   : > { %21005 = vst [vmem:[%s27220_s24 + $0x124] sm:$0xf] %v20599_v49  ;;  %v22244_v39 = vpack.c.bf16 %v19914_v60, %v19914_v60  ;;  %v22242_v21 = vpack.c.bf16 %v19912_v12, %v19912_v12  ;;  %v18963_v55 = vmax.f32 %v18827_v36, 0.0  ;;  %v18825_v1 = vadd.f32 %v29068_v28, %v18682_v4  ;;  %v29521_v60 = vpop.permute.xlu1 %19657 }
 0x569   : > { %v20602_v35 = vsel %vm28716_vm9, %v20600_v11, %v20601_v42  ;;  %v18830_v16 = vadd.f32 %v29068_v28, %v18687_v62  ;;  %v18685_v17 = vmul.f32 %v29053_v43, %v24451_v51  ;;  %v24452_v8 = vadd.f32 %v29398_v44, %v29392_v50 }
 0x56a   : > { %21006 = vst [vmem:[%s27220_s24 + $0x128] sm:$0xf] %v20602_v35  ;;  %v20613_v24 = vrot.slane %v22244_v39, 6  ;;  %v20607_v41 = vrot.slane %v22242_v21, 6  ;;  %v19915_v57 = vmul.f32 %v29046_v10, %v18963_v55  ;;  %v18961_v34 = vmax.f32 %v18825_v1, 0.0  ;;  %v29527_v50 = vpop.f32.mrb[88].mxu1 }
 0x56b   : > { %v18966_v12 = vmax.f32 %v18830_v16, 0.0  ;;  %v18828_v42 = vadd.f32 %v29068_v28, %v18685_v17  ;;  %v18688_v36 = vmul.f32 %v29053_v43, %v24452_v8  ;;  %v24453_v4 = vadd.f32 %v29405_v38, %v29400_v23  ;;  %v29531_v10 = vpop.f32.mrb[88].mxu0  ;;  %v29533_v51 = vpop.f32.mrb[89].mxu1 }
 0x56c   : > { %v20615_v44 = vrot.slane %v20613_v24, 4  ;;  %v20608_v49 = vsel %vm28716_vm9, %v20606_v3, %v20607_v41  ;;  %v20609_v11 = vrot.slane %v20607_v41, 4  ;;  %v22245_v62 = vpack.c.bf16 %v19915_v57, %v19915_v57  ;;  %v29539_v38 = vpop.f32.mrb[89].mxu0  ;;  %v29541_v1 = vpop.f32.mrb[90].mxu1  ;;  %v30506_v57 = vld [vmem:[#allocation5_spill] sm:$0xff] }
 0x56d   : > { %21008 = vst [vmem:[%s27220_s24 + $0x130] sm:$0xf] %v20608_v49  ;;  %v19913_v39 = vmul.f32 %v29023_v61, %v18961_v34  ;;  %v19918_v21 = vmul.f32 %v29109_v32, %v18966_v12  ;;  %v18964_v55 = vmax.f32 %v18828_v42, 0.0  ;;  %v18831_v23 = vadd.f32 %v29068_v28, %v18688_v36  ;;  %v29548_v61 = vpop.f32.mrb[90].mxu0  ;;  %v29550_v32 = vpop.f32.mrb[91].mxu1 }
 0x56e   : > { %v20616_v3 = vrot.slane %v22245_v62, 6  ;;  %v18686_v35 = vmul.f32 %v29053_v43, %v24453_v4  ;;  %v24454_v16 = vadd.f32 %v29432_v22, %v29427_v40  ;;  %v24455_v17 = vadd.f32 %v29441_v6, %v29434_v7  ;;  %v29553_v42 = vpop.f32.mrb[91].mxu0  ;;  %v30507_v62 = vld [vmem:[#allocation33_spill] sm:$0xff] }
 0x56f   : > { %v22243_v8 = vpack.c.bf16 %v19913_v39, %v19913_v39  ;;  %v22248_v41 = vpack.c.bf16 %v19918_v21, %v19918_v21  ;;  %v19916_v34 = vmul.f32 %v30506_v57, %v18964_v55  ;;  %v18967_v12 = vmax.f32 %v18831_v23, 0.0  ;;  %v29563_v21 = vpop.permute.xlu0 %19662 }
 0x570   : > { %v20617_v36 = vsel %vm28716_vm9, %v20615_v44, %v20616_v3  ;;  %v20618_v4 = vrot.slane %v20616_v3, 4  ;;  %v18829_v40 = vadd.f32 %v29068_v28, %v18686_v35  ;;  %v18691_v22 = vmul.f32 %v29053_v43, %v24454_v16  ;;  %v29569_v35 = vpop.permute.xlu1 %19667 }
 0x571   : > { %21011 = vst [vmem:[%s27220_s24 + $0x13c] sm:$0xf] %v20617_v36  ;;  %v20610_v7 = vrot.slane %v22243_v8, 6  ;;  %v29560_v6 = vrot.slane %v22248_v41, 6  ;;  %v22246_v49 = vpack.c.bf16 %v19916_v34, %v19916_v34  ;;  %v19919_v39 = vmul.f32 %v30507_v62, %v18967_v12  ;;  %30508 = vst [vmem:[#allocation36_spill] sm:$0xff] %v29569_v35  ;;  %v30509_v36 = vld [vmem:[#allocation3_spill] sm:$0xff] }
 0x572   : > { %v18965_v55 = vmax.f32 %v18829_v40, 0.0  ;;  %v18834_v23 = vadd.f32 %v29068_v28, %v18691_v22  ;;  %v18689_v44 = vmul.f32 %v29053_v43, %v24455_v17  ;;  %v24456_v3 = vadd.f32 %v29447_v9, %v29443_v2  ;;  %v29574_v34 = vpop.f32.mrb[92].mxu1 }
 0x573   : > { %v20611_v16 = vsel %vm28716_vm9, %v20609_v11, %v20610_v7  ;;  %v20612_v8 = vrot.slane %v20610_v7, 4  ;;  %v20627_v41 = vrot.slane %v29560_v6, 4  ;;  %v20619_v57 = vrot.slane %v22246_v49, 6  ;;  %v29579_v9 = vpop.f32.mrb[92].mxu0  ;;  %v29581_v22 = vpop.f32.mrb[93].mxu1 }
 0x574   : > { %21009 = vst [vmem:[%s27220_s24 + $0x134] sm:$0xf] %v20611_v16  ;;  %v22249_v12 = vpack.c.bf16 %v19919_v39, %v19919_v39  ;;  %v19917_v17 = vmul.f32 %v30509_v36, %v18965_v55  ;;  %v18970_v40 = vmax.f32 %v18834_v23, 0.0  ;;  %v18832_v2 = vadd.f32 %v29068_v28, %v18689_v44  ;;  %v29588_v16 = vpop.f32.mrb[93].mxu0  ;;  %v29590_v39 = vpop.f32.mrb[94].mxu1 }
 0x575   : > { %v20614_v11 = vsel %vm28716_vm9, %v20612_v8, %v20613_v24  ;;  %v20620_v7 = vsel %vm28716_vm9, %v20618_v4, %v20619_v57  ;;  %v20621_v49 = vrot.slane %v20619_v57, 4  ;;  %v18692_v62 = vmul.f32 %v29053_v43, %v24456_v3  ;;  %v29595_v35 = vpop.f32.mrb[94].mxu0  ;;  %v29597_v24 = vpop.f32.mrb[95].mxu1 }
 0x576   : > { %21010 = vst [vmem:[%s27220_s24 + $0x138] sm:$0xf] %v20614_v11  ;;  %21012 = vst [vmem:[%s27220_s24 + $0x140] sm:$0xf] %v20620_v7  ;;  %v20628_v55 = vrot.slane %v22249_v12, 6  ;;  %v22247_v23 = vpack.c.bf16 %v19917_v17, %v19917_v17  ;;  %v19922_v44 = vmul.f32 %v29168_v46, %v18970_v40  ;;  %v18968_v36 = vmax.f32 %v18832_v2, 0.0  ;;  %v29626_v11 = vpop.permute.xlu1 %19677 }
 0x577   : > { %v18835_v4 = vadd.f32 %v29068_v28, %v18692_v62  ;;  %v24457_v43 = vadd.f32 %v29454_v45, %v29449_v59  ;;  %v24458_v3 = vadd.f32 %v29481_v19, %v29475_v27  ;;  %v24459_v8 = vadd.f32 %v29489_v29, %v29483_v25  ;;  %v29606_v57 = vpop.f32.mrb[95].mxu0  ;;  %v29615_v59 = vld [vmem:[%s30298_s2] ss:$0 sm:$0xff]  ;;  %v29619_v19 = vpop.permute.xlu0 %19672 }
 0x578   : > { %v20629_v46 = vsel %vm28716_vm9, %v20627_v41, %v20628_v55  ;;  %v20630_v12 = vrot.slane %v20628_v55, 4  ;;  %v20622_v17 = vrot.slane %v22247_v23, 6  ;;  %v22252_v40 = vpack.c.bf16 %v19922_v44, %v19922_v44  ;;  %v29633_v55 = vld [vmem:[%s30299_s3] ss:$0 sm:$0xff] }
 0x579   : > { %21015 = vst [vmem:[%s27220_s24 + $0x14c] sm:$0xf] %v20629_v46  ;;  %v19920_v28 = vmul.f32 %v29136_v47, %v18968_v36  ;;  %v18971_v2 = vmax.f32 %v18835_v4, 0.0  ;;  %v18690_v45 = vmul.f32 %v29615_v59, %v24457_v43  ;;  %v18695_v27 = vmul.f32 %v29615_v59, %v24458_v3 }
 0x57a   : > { %v20623_v25 = vsel %vm28716_vm9, %v20621_v49, %v20622_v17  ;;  %v20624_v29 = vrot.slane %v20622_v17, 4  ;;  %v29623_v41 = vrot.slane %v22252_v40, 6  ;;  %v18693_v47 = vmul.f32 %v29615_v59, %v24459_v8  ;;  %v29637_v44 = vpop.f32.mrb[96].mxu1 }
 0x57b   : > { %21013 = vst [vmem:[%s27220_s24 + $0x144] sm:$0xf] %v20623_v25  ;;  %v22250_v7 = vpack.c.bf16 %v19920_v28, %v19920_v28  ;;  %v19923_v62 = vmul.f32 %v29175_v58, %v18971_v2  ;;  %v18833_v23 = vadd.f32 %v29633_v55, %v18690_v45  ;;  %v18838_v49 = vadd.f32 %v29633_v55, %v18695_v27  ;;  %v29646_v3 = vpop.f32.mrb[96].mxu0  ;;  %v29648_v8 = vpop.f32.mrb[97].mxu1 }
 0x57c   : > { %v20626_v36 = vsel %vm28716_vm9, %v20624_v29, %v29560_v6  ;;  %v20639_v4 = vrot.slane %v29623_v41, 4  ;;  %v18836_v43 = vadd.f32 %v29633_v55, %v18693_v47  ;;  %v24460_v58 = vadd.f32 %v29498_v15, %v29491_v33  ;;  %v29651_v2 = vpop.f32.mrb[97].mxu0  ;;  %v29653_v6 = vpop.f32.mrb[98].mxu1 }
 0x57d   : > { %21014 = vst [vmem:[%s27220_s24 + $0x148] sm:$0xf] %v20626_v36  ;;  %v20631_v46 = vrot.slane %v22250_v7, 6  ;;  %v22253_v17 = vpack.c.bf16 %v19923_v62, %v19923_v62  ;;  %v18969_v40 = vmax.f32 %v18833_v23, 0.0  ;;  %v18974_v28 = vmax.f32 %v18838_v49, 0.0  ;;  %v29660_v25 = vpop.f32.mrb[98].mxu0 }
 0x57e   : > { %v18972_v45 = vmax.f32 %v18836_v43, 0.0  ;;  %v18696_v27 = vmul.f32 %v29615_v59, %v24460_v58  ;;  %v24461_v33 = vadd.f32 %v29507_v56, %v29500_v54  ;;  %v24462_v15 = vadd.f32 %v29531_v10, %v29527_v50  ;;  %v29662_v29 = vpop.f32.mrb[99].mxu1  ;;  %v29667_v49 = vpop.f32.mrb[99].mxu0 }
 0x57f   : > { %v20632_v47 = vsel %vm28716_vm9, %v20630_v12, %v20631_v46  ;;  %v20633_v7 = vrot.slane %v20631_v46, 4  ;;  %v20640_v62 = vrot.slane %v22253_v17, 6  ;;  %v19921_v23 = vmul.f32 %v29141_v48, %v18969_v40  ;;  %v29677_v46 = vpop.permute.xlu0 %19682 }
 0x580   : > { %21016 = vst [vmem:[%s27220_s24 + $0x150] sm:$0xf] %v20632_v47  ;;  %v19926_v54 = vmul.f32 %v29225_v0, %v18974_v28  ;;  %v19924_v56 = vmul.f32 %v29200_v31, %v18972_v45  ;;  %v18839_v50 = vadd.f32 %v29633_v55, %v18696_v27  ;;  %v18694_v10 = vmul.f32 %v29615_v59, %v24461_v33  ;;  %v29681_v31 = vpop.permute.xlu1 %19687 }
 0x581   : > { %v20641_v36 = vsel %vm28716_vm9, %v20639_v4, %v20640_v62  ;;  %v20642_v43 = vrot.slane %v20640_v62, 4  ;;  %v22251_v12 = vpack.c.bf16 %v19921_v23, %v19921_v23  ;;  %v18699_v58 = vmul.f32 %v29615_v59, %v24462_v15  ;;  %30510 = vst [vmem:[#allocation95_spill] sm:$0xff] %v29681_v31 }
 0x582   : > { %21019 = vst [vmem:[%s27220_s24 + $0x15c] sm:$0xf] %v20641_v36  ;;  %v22256_v48 = vpack.c.bf16 %v19926_v54, %v19926_v54  ;;  %v22254_v17 = vpack.c.bf16 %v19924_v56, %v19924_v56  ;;  %v18975_v40 = vmax.f32 %v18839_v50, 0.0  ;;  %v18837_v0 = vadd.f32 %v29633_v55, %v18694_v10  ;;  %v29688_v33 = vpop.f32.mrb[100].mxu1 }
 0x583   : > { %v20634_v28 = vrot.slane %v22251_v12, 6  ;;  %v18842_v45 = vadd.f32 %v29633_v55, %v18699_v58  ;;  %v24463_v4 = vadd.f32 %v29539_v38, %v29533_v51  ;;  %v24464_v27 = vadd.f32 %v29548_v61, %v29541_v1  ;;  %v29693_v54 = vpop.f32.mrb[100].mxu0  ;;  %v29695_v56 = vpop.f32.mrb[101].mxu1 }
 0x584   : > { %v29690_v15 = vrot.slane %v22256_v48, 6  ;;  %v20643_v47 = vrot.slane %v22254_v17, 6  ;;  %v19927_v62 = vmul.f32 %v29233_v63, %v18975_v40  ;;  %v18973_v23 = vmax.f32 %v18837_v0, 0.0  ;;  %v29700_v61 = vpop.f32.mrb[101].mxu0  ;;  %v29702_v10 = vpop.f32.mrb[102].mxu1 }
 0x585   : > { %v20635_v50 = vsel %vm28716_vm9, %v20633_v7, %v20634_v28  ;;  %v20636_v51 = vrot.slane %v20634_v28, 4  ;;  %v18978_v38 = vmax.f32 %v18842_v45, 0.0  ;;  %v18697_v1 = vmul.f32 %v29615_v59, %v24463_v4  ;;  %v29708_v48 = vpop.f32.mrb[102].mxu0  ;;  %v29710_v7 = vpop.f32.mrb[103].mxu1 }
 0x586   : > { %21017 = vst [vmem:[%s27220_s24 + $0x154] sm:$0xf] %v20635_v50  ;;  %v20651_v63 = vrot.slane %v29690_v15, 4  ;;  %v20644_v36 = vsel %vm28716_vm9, %v20642_v43, %v20643_v47  ;;  %v20645_v12 = vrot.slane %v20643_v47, 4  ;;  %v22257_v58 = vpack.c.bf16 %v19927_v62, %v19927_v62  ;;  %v29719_v45 = vpop.f32.mrb[103].mxu0 }
 0x587   : > { %v20638_v17 = vsel %vm28716_vm9, %v20636_v51, %v29623_v41  ;;  %21020 = vst [vmem:[%s27220_s24 + $0x160] sm:$0xf] %v20644_v36  ;;  %v19925_v40 = vmul.f32 %v29206_v20, %v18973_v23  ;;  %v19930_v0 = vmul.f32 %v29311_v14, %v18978_v38  ;;  %v18840_v28 = vadd.f32 %v29633_v55, %v18697_v1  ;;  %v29729_v23 = vpop.permute.xlu0 %19692 }
 0x588   : > { %21018 = vst [vmem:[%s27220_s24 + $0x158] sm:$0xf] %v20638_v17  ;;  %v20652_v43 = vrot.slane %v22257_v58, 6  ;;  %v18700_v4 = vmul.f32 %v29615_v59, %v24464_v27  ;;  %v24465_v47 = vadd.f32 %v29553_v42, %v29550_v32  ;;  %v24466_v41 = vadd.f32 %v29579_v9, %v29574_v34  ;;  %v29735_v32 = vpop.permute.xlu1 %19697 }
 0x589   : > { %v22255_v62 = vpack.c.bf16 %v19925_v40, %v19925_v40  ;;  %v22260_v50 = vpack.c.bf16 %v19930_v0, %v19930_v0  ;;  %v18976_v20 = vmax.f32 %v18840_v28, 0.0  ;;  %v24467_v14 = vadd.f32 %v29588_v16, %v29581_v22 }
 0x58a   : > { %v20653_v51 = vsel %vm28716_vm9, %v20651_v63, %v20652_v43  ;;  %v20654_v38 = vrot.slane %v20652_v43, 4  ;;  %v18843_v27 = vadd.f32 %v29633_v55, %v18700_v4  ;;  %v18698_v1 = vmul.f32 %v29615_v59, %v24465_v47  ;;  %v29742_v16 = vpop.f32.mrb[104].mxu1 }
 0x58b   : > { %21023 = vst [vmem:[%s27220_s24 + $0x16c] sm:$0xf] %v20653_v51  ;;  %v20646_v42 = vrot.slane %v22255_v62, 6  ;;  %v29738_v34 = vrot.slane %v22260_v50, 6  ;;  %v19928_v9 = vmul.f32 %v29261_v18, %v18976_v20  ;;  %v18703_v22 = vmul.f32 %v29615_v59, %v24466_v41  ;;  %v29748_v40 = vpop.f32.mrb[104].mxu0  ;;  %v29750_v0 = vpop.f32.mrb[105].mxu1 }
 0x58c   : > { %v18979_v36 = vmax.f32 %v18843_v27, 0.0  ;;  %v18841_v63 = vadd.f32 %v29633_v55, %v18698_v1  ;;  %v18701_v58 = vmul.f32 %v29615_v59, %v24467_v14  ;;  %v24468_v17 = vadd.f32 %v29595_v35, %v29590_v39  ;;  %v29755_v47 = vpop.f32.mrb[105].mxu0  ;;  %v29757_v41 = vpop.f32.mrb[106].mxu1  ;;  %v30511_v62 = vld [vmem:[#allocation6_spill] sm:$0xff] }
 0x58d   : > { %v20647_v28 = vsel %vm28716_vm9, %v20645_v12, %v20646_v42  ;;  %v20648_v18 = vrot.slane %v20646_v42, 4  ;;  %v20663_v43 = vrot.slane %v29738_v34, 4  ;;  %v22258_v4 = vpack.c.bf16 %v19928_v9, %v19928_v9  ;;  %v29763_v14 = vpop.f32.mrb[106].mxu0  ;;  %v29765_v12 = vpop.f32.mrb[107].mxu1 }
 0x58e   : > { %21021 = vst [vmem:[%s27220_s24 + $0x164] sm:$0xf] %v20647_v28  ;;  %v19931_v50 = vmul.f32 %v30511_v62, %v18979_v36  ;;  %v18977_v35 = vmax.f32 %v18841_v63, 0.0  ;;  %v18846_v39 = vadd.f32 %v29633_v55, %v18703_v22  ;;  %v18844_v20 = vadd.f32 %v29633_v55, %v18701_v58  ;;  %v29773_v9 = vpop.f32.mrb[107].mxu0  ;;  %v30512_v36 = vld [vmem:[#allocation34_spill] sm:$0xff] }
 0x58f   : > { %v20650_v51 = vsel %vm28716_vm9, %v20648_v18, %v29690_v15  ;;  %v20655_v27 = vrot.slane %v22258_v4, 6  ;;  %v18704_v1 = vmul.f32 %v29615_v59, %v24468_v17  ;;  %v24469_v42 = vadd.f32 %v29606_v57, %v29597_v24  ;;  %v29781_v17 = vpop.permute.xlu0 %19702 }
 0x590   : > { %21022 = vst [vmem:[%s27220_s24 + $0x168] sm:$0xf] %v20650_v51  ;;  %v22261_v22 = vpack.c.bf16 %v19931_v50, %v19931_v50  ;;  %v19929_v63 = vmul.f32 %v30512_v36, %v18977_v35  ;;  %v18982_v58 = vmax.f32 %v18846_v39, 0.0  ;;  %v18980_v28 = vmax.f32 %v18844_v20, 0.0  ;;  %v29786_v35 = vpop.permute.xlu1 %19707 }
 0x591   : > { %v20656_v62 = vsel %vm28716_vm9, %v20654_v38, %v20655_v27  ;;  %v20657_v31 = vrot.slane %v20655_v27, 4  ;;  %v18847_v15 = vadd.f32 %v29633_v55, %v18704_v1  ;;  %v18702_v18 = vmul.f32 %v29615_v59, %v24469_v42 }
 0x592   : > { %21024 = vst [vmem:[%s27220_s24 + $0x170] sm:$0xf] %v20656_v62  ;;  %v20664_v24 = vrot.slane %v22261_v22, 6  ;;  %v22259_v57 = vpack.c.bf16 %v19929_v63, %v19929_v63  ;;  %v19934_v4 = vmul.f32 %v29417_v53, %v18982_v58  ;;  %v19932_v50 = vmul.f32 %v29363_v5, %v18980_v28  ;;  %v29793_v27 = vpop.f32.mrb[108].mxu1 }
 0x593   : > { %v18983_v39 = vmax.f32 %v18847_v15, 0.0  ;;  %v18845_v38 = vadd.f32 %v29633_v55, %v18702_v18  ;;  %v24470_v20 = vadd.f32 %v29646_v3, %v29637_v44  ;;  %v24471_v51 = vadd.f32 %v29651_v2, %v29648_v8  ;;  %v29797_v5 = vpop.f32.mrb[108].mxu0  ;;  %v29799_v36 = vpop.f32.mrb[109].mxu1 }
 0x594   : > { %v20665_v1 = vsel %vm28716_vm9, %v20663_v43, %v20664_v24  ;;  %v20666_v42 = vrot.slane %v20664_v24, 4  ;;  %v20658_v53 = vrot.slane %v22259_v57, 6  ;;  %v22264_v22 = vpack.c.bf16 %v19934_v4, %v19934_v4  ;;  %v29804_v2 = vpop.f32.mrb[109].mxu0  ;;  %v29806_v58 = vpop.f32.mrb[110].mxu1  ;;  %v30513_v4 = vld [vmem:[#allocation35_spill] sm:$0xff] }
 0x595   : > { %21027 = vst [vmem:[%s27220_s24 + $0x17c] sm:$0xf] %v20665_v1  ;;  %v22262_v63 = vpack.c.bf16 %v19932_v50, %v19932_v50  ;;  %v19935_v44 = vmul.f32 %v29421_v30, %v18983_v39  ;;  %v18981_v3 = vmax.f32 %v18845_v38, 0.0  ;;  %v18707_v8 = vmul.f32 %v29615_v59, %v24470_v20  ;;  %v29811_v18 = vpop.f32.mrb[110].mxu0  ;;  %v29813_v24 = vpop.f32.mrb[111].mxu1 }
 0x596   : > { %v20659_v43 = vsel %vm28716_vm9, %v20657_v31, %v20658_v53  ;;  %v20660_v28 = vrot.slane %v20658_v53, 4  ;;  %v20673_v62 = vrot.slane %v22264_v22, 6  ;;  %v18705_v15 = vmul.f32 %v29615_v59, %v24471_v51  ;;  %v29818_v38 = vpop.f32.mrb[111].mxu0 }
 0x597   : > { %21025 = vst [vmem:[%s27220_s24 + $0x174] sm:$0xf] %v20659_v43  ;;  %v20667_v30 = vrot.slane %v22262_v63, 6  ;;  %v22265_v57 = vpack.c.bf16 %v19935_v44, %v19935_v44  ;;  %v19933_v50 = vmul.f32 %v30513_v4, %v18981_v3  ;;  %v18850_v39 = vadd.f32 %v29633_v55, %v18707_v8  ;;  %v29829_v3 = vpop.permute.xlu0 %19712 }
 0x598   : > { %v20662_v31 = vsel %vm28716_vm9, %v20660_v28, %v29738_v34  ;;  %v20675_v20 = vrot.slane %v20673_v62, 4  ;;  %v18848_v51 = vadd.f32 %v29633_v55, %v18705_v15  ;;  %v24472_v1 = vadd.f32 %v29660_v25, %v29653_v6  ;;  %v29835_v15 = vpop.permute.xlu1 %19717 }
 0x599   : > { %21026 = vst [vmem:[%s27220_s24 + $0x178] sm:$0xf] %v20662_v31  ;;  %v20668_v53 = vsel %vm28716_vm9, %v20666_v42, %v20667_v30  ;;  %v20669_v22 = vrot.slane %v20667_v30, 4  ;;  %v20676_v63 = vrot.slane %v22265_v57, 6  ;;  %v22263_v44 = vpack.c.bf16 %v19933_v50, %v19933_v50 }
 0x59a   : > { %21028 = vst [vmem:[%s27220_s24 + $0x180] sm:$0xf] %v20668_v53  ;;  %v18986_v8 = vmax.f32 %v18850_v39, 0.0  ;;  %v18984_v43 = vmax.f32 %v18848_v51, 0.0  ;;  %v18708_v34 = vmul.f32 %v29615_v59, %v24472_v1  ;;  %v24473_v28 = vadd.f32 %v29667_v49, %v29662_v29  ;;  %v29841_v57 = vpop.f32.mrb[112].mxu1 }
 0x59b   : > { %v20677_v6 = vsel %vm28716_vm9, %v20675_v20, %v20676_v63  ;;  %v20678_v25 = vrot.slane %v20676_v63, 4  ;;  %v20670_v42 = vrot.slane %v22263_v44, 6  ;;  %v24474_v30 = vadd.f32 %v29693_v54, %v29688_v33  ;;  %v29848_v39 = vpop.f32.mrb[112].mxu0  ;;  %v29850_v31 = vpop.f32.mrb[113].mxu1 }
 0x59c   : > { %21031 = vst [vmem:[%s27220_s24 + $0x18c] sm:$0xf] %v20677_v6  ;;  %v19938_v4 = vmul.f32 %v29517_v52, %v18986_v8  ;;  %v19936_v50 = vmul.f32 %v29462_v13, %v18984_v43  ;;  %v18851_v29 = vadd.f32 %v29633_v55, %v18708_v34  ;;  %v18706_v49 = vmul.f32 %v29615_v59, %v24473_v28  ;;  %v29857_v54 = vpop.f32.mrb[113].mxu0  ;;  %v29859_v13 = vpop.f32.mrb[114].mxu1 }
 0x59d   : > { %v20671_v20 = vsel %vm28716_vm9, %v20669_v22, %v20670_v42  ;;  %v20672_v51 = vrot.slane %v20670_v42, 4  ;;  %v18711_v33 = vmul.f32 %v29615_v59, %v24474_v30  ;;  %v24475_v52 = vadd.f32 %v29700_v61, %v29695_v56  ;;  %v29863_v8 = vpop.f32.mrb[114].mxu0  ;;  %v29865_v22 = vpop.f32.mrb[115].mxu1 }
 0x59e   : > { %21029 = vst [vmem:[%s27220_s24 + $0x184] sm:$0xf] %v20671_v20  ;;  %v22268_v1 = vpack.c.bf16 %v19938_v4, %v19938_v4  ;;  %v22266_v53 = vpack.c.bf16 %v19936_v50, %v19936_v50  ;;  %v18987_v63 = vmax.f32 %v18851_v29, 0.0  ;;  %v18849_v44 = vadd.f32 %v29633_v55, %v18706_v49  ;;  %v29873_v28 = vpop.f32.mrb[115].mxu0  ;;  %v29881_v20 = vpop.permute.xlu0 %19722 }
 0x59f   : > { %v20674_v43 = vsel %vm28716_vm9, %v20672_v51, %v20673_v62  ;;  %v18854_v34 = vadd.f32 %v29633_v55, %v18711_v33  ;;  %v18709_v56 = vmul.f32 %v29615_v59, %v24475_v52  ;;  %v24476_v61 = vadd.f32 %v29708_v48, %v29702_v10  ;;  %v29885_v52 = vpop.permute.xlu1 %19727 }
 0x5a0   : > { %21030 = vst [vmem:[%s27220_s24 + $0x188] sm:$0xf] %v20674_v43  ;;  %v20685_v6 = vrot.slane %v22268_v1, 6  ;;  %v20679_v42 = vrot.slane %v22266_v53, 6  ;;  %v19939_v30 = vmul.f32 %v29521_v60, %v18987_v63  ;;  %v18985_v4 = vmax.f32 %v18849_v44, 0.0 }
 0x5a1   : > { %v18990_v50 = vmax.f32 %v18854_v34, 0.0  ;;  %v18852_v29 = vadd.f32 %v29633_v55, %v18709_v56  ;;  %v18712_v62 = vmul.f32 %v29615_v59, %v24476_v61  ;;  %v24477_v49 = vadd.f32 %v29719_v45, %v29710_v7 }
 0x5a2   : > { %v20687_v10 = vrot.slane %v20685_v6, 4  ;;  %v20680_v48 = vsel %vm28716_vm9, %v20678_v25, %v20679_v42  ;;  %v20681_v51 = vrot.slane %v20679_v42, 4  ;;  %v22269_v33 = vpack.c.bf16 %v19939_v30, %v19939_v30  ;;  %v29891_v44 = vpop.f32.mrb[116].mxu1 }
 0x5a3   : > { %21032 = vst [vmem:[%s27220_s24 + $0x190] sm:$0xf] %v20680_v48  ;;  %v19937_v60 = vmul.f32 %v29470_v26, %v18985_v4  ;;  %v19942_v1 = vmul.f32 %v29619_v19, %v18990_v50  ;;  %v18988_v53 = vmax.f32 %v18852_v29, 0.0  ;;  %v18855_v63 = vadd.f32 %v29633_v55, %v18712_v62  ;;  %v29898_v34 = vpop.f32.mrb[116].mxu0  ;;  %v29900_v26 = vpop.f32.mrb[117].mxu1 }
 0x5a4   : > { %v20688_v7 = vrot.slane %v22269_v33, 6  ;;  %v18710_v45 = vmul.f32 %v29615_v59, %v24477_v49  ;;  %v24478_v25 = vadd.f32 %v29748_v40, %v29742_v16  ;;  %v24479_v43 = vadd.f32 %v29755_v47, %v29750_v0  ;;  %v29903_v30 = vpop.f32.mrb[117].mxu0  ;;  %v29905_v4 = vpop.f32.mrb[118].mxu1 }
 0x5a5   : > { %v22267_v19 = vpack.c.bf16 %v19937_v60, %v19937_v60  ;;  %v22272_v56 = vpack.c.bf16 %v19942_v1, %v19942_v1  ;;  %v19940_v61 = vmul.f32 %v29563_v21, %v18988_v53  ;;  %v18991_v42 = vmax.f32 %v18855_v63, 0.0  ;;  %v29911_v47 = vpop.f32.mrb[118].mxu0  ;;  %v29913_v29 = vpop.f32.mrb[119].mxu1 }
 0x5a6   : > { %v20689_v16 = vsel %vm28716_vm9, %v20687_v10, %v20688_v7  ;;  %v20690_v40 = vrot.slane %v20688_v7, 4  ;;  %v18853_v50 = vadd.f32 %v29633_v55, %v18710_v45  ;;  %v18715_v0 = vmul.f32 %v29615_v59, %v24478_v25  ;;  %v29917_v33 = vpop.f32.mrb[119].mxu0 }
 0x5a7   : > { %21035 = vst [vmem:[%s27220_s24 + $0x19c] sm:$0xf] %v20689_v16  ;;  %v20682_v21 = vrot.slane %v22267_v19, 6  ;;  %v20697_v62 = vrot.slane %v22272_v56, 6  ;;  %v22270_v49 = vpack.c.bf16 %v19940_v61, %v19940_v61  ;;  %v19943_v48 = vmul.f32 %v29626_v11, %v18991_v42  ;;  %v29925_v19 = vpop.permute.xlu0 %19732  ;;  %v30514_v56 = vld [vmem:[#allocation36_spill] sm:$0xff]  ;;  %v29930_v16 = vpop.permute.xlu1 %19737 }
 0x5a8   : > { %v18989_v60 = vmax.f32 %v18853_v50, 0.0  ;;  %v18858_v10 = vadd.f32 %v29633_v55, %v18715_v0  ;;  %v18713_v1 = vmul.f32 %v29615_v59, %v24479_v43  ;;  %v24480_v53 = vadd.f32 %v29763_v14, %v29757_v41 }
 0x5a9   : > { %v20683_v63 = vsel %vm28716_vm9, %v20681_v51, %v20682_v21  ;;  %v20684_v7 = vrot.slane %v20682_v21, 4  ;;  %v20699_v45 = vrot.slane %v20697_v62, 4  ;;  %v20691_v25 = vrot.slane %v22270_v49, 6 }
 0x5aa   : > { %21033 = vst [vmem:[%s27220_s24 + $0x194] sm:$0xf] %v20683_v63  ;;  %v22273_v11 = vpack.c.bf16 %v19943_v48, %v19943_v48  ;;  %v19941_v61 = vmul.f32 %v30514_v56, %v18989_v60  ;;  %v18994_v42 = vmax.f32 %v18858_v10, 0.0  ;;  %v18856_v43 = vadd.f32 %v29633_v55, %v18713_v1  ;;  %v29937_v0 = vpop.f32.mrb[120].mxu1 }
 0x5ab   : > { %v20686_v41 = vsel %vm28716_vm9, %v20684_v7, %v20685_v6  ;;  %v20692_v14 = vsel %vm28716_vm9, %v20690_v40, %v20691_v25  ;;  %v20693_v51 = vrot.slane %v20691_v25, 4  ;;  %v18716_v50 = vmul.f32 %v29615_v59, %v24480_v53  ;;  %v29944_v1 = vpop.f32.mrb[121].mxu1 }
 0x5ac   : > { %21034 = vst [vmem:[%s27220_s24 + $0x198] sm:$0xf] %v20686_v41  ;;  %21036 = vst [vmem:[%s27220_s24 + $0x1a0] sm:$0xf] %v20692_v14  ;;  %v20700_v21 = vrot.slane %v22273_v11, 6  ;;  %v22271_v49 = vpack.c.bf16 %v19941_v61, %v19941_v61  ;;  %v19946_v48 = vmul.f32 %v29729_v23, %v18994_v42  ;;  %v18992_v60 = vmax.f32 %v18856_v43, 0.0 }
 0x5ad   : > { %v29942_v10 = vpop.f32.mrb[120].mxu0  ;;  %v18859_v6 = vadd.f32 %v29633_v55, %v18716_v50  ;;  %v24481_v40 = vadd.f32 %v29773_v9, %v29765_v12  ;;  %v24482_v53 = vadd.f32 %v29797_v5, %v29793_v27  ;;  %v24483_v63 = vadd.f32 %v29804_v2, %v29799_v36  ;;  %v29955_v23 = vpop.f32.mrb[122].mxu1 }
 0x5ae   : > { %v29953_v7 = vpop.f32.mrb[121].mxu0  ;;  %v20701_v25 = vsel %vm28716_vm9, %v20699_v45, %v20700_v21  ;;  %v20702_v11 = vrot.slane %v20700_v21, 4  ;;  %v20694_v56 = vrot.slane %v22271_v49, 6  ;;  %v22276_v61 = vpack.c.bf16 %v19946_v48, %v19946_v48  ;;  %v29961_v12 = vpop.f32.mrb[123].mxu1 }
 0x5af   : > { %v29959_v42 = vpop.f32.mrb[122].mxu0  ;;  %21039 = vst [vmem:[%s27220_s24 + $0x1ac] sm:$0xf] %v20701_v25  ;;  %v19944_v9 = vmul.f32 %v29677_v46, %v18992_v60  ;;  %v18995_v27 = vmax.f32 %v18859_v6, 0.0  ;;  %v18714_v5 = vmul.f32 %v29615_v59, %v24481_v40  ;;  %v18719_v36 = vmul.f32 %v29615_v59, %v24482_v53  ;;  %v29978_v48 = vpop.permute.xlu0 %19742 }
 0x5b0   : > { %v29967_v2 = vpop.f32.mrb[123].mxu0  ;;  %v20695_v45 = vsel %vm28716_vm9, %v20693_v51, %v20694_v56  ;;  %v20696_v43 = vrot.slane %v20694_v56, 4  ;;  %v29971_v41 = vrot.slane %v22276_v61, 6  ;;  %v18717_v14 = vmul.f32 %v29615_v59, %v24483_v63  ;;  %v29986_v53 = vpop.permute.xlu1 %19747 }
 0x5b1   : > { %21037 = vst [vmem:[%s27220_s24 + $0x1a4] sm:$0xf] %v20695_v45  ;;  %v22274_v50 = vpack.c.bf16 %v19944_v9, %v19944_v9  ;;  %v19947_v46 = vmul.f32 %v29735_v32, %v18995_v27  ;;  %v18857_v21 = vadd.f32 %v29633_v55, %v18714_v5  ;;  %v18862_v49 = vadd.f32 %v29633_v55, %v18719_v36 }
 0x5b2   : > { %v20698_v60 = vsel %vm28716_vm9, %v20696_v43, %v20697_v62  ;;  %v20711_v51 = vrot.slane %v29971_v41, 4  ;;  %v18860_v6 = vadd.f32 %v29633_v55, %v18717_v14  ;;  %v24484_v40 = vadd.f32 %v29811_v18, %v29806_v58  ;;  %v29989_v61 = vpop.f32.mrb[124].mxu1  ;;  %v30515_v14 = vld [vmem:[#allocation95_spill] sm:$0xff] }
 0x5b3   : > { %21038 = vst [vmem:[%s27220_s24 + $0x1a8] sm:$0xf] %v20698_v60  ;;  %v20703_v32 = vrot.slane %v22274_v50, 6  ;;  %v22277_v63 = vpack.c.bf16 %v19947_v46, %v19947_v46  ;;  %v18993_v25 = vmax.f32 %v18857_v21, 0.0  ;;  %v18998_v56 = vmax.f32 %v18862_v49, 0.0  ;;  %v29998_v18 = vpop.f32.mrb[125].mxu1 }
 0x5b4   : > { %v18996_v9 = vmax.f32 %v18860_v6, 0.0  ;;  %v18720_v62 = vmul.f32 %v29615_v59, %v24484_v40  ;;  %v24485_v27 = vadd.f32 %v29818_v38, %v29813_v24  ;;  %v24486_v5 = vadd.f32 %v29848_v39, %v29841_v57  ;;  %v29996_v58 = vpop.f32.mrb[124].mxu0  ;;  %v30005_v21 = vpop.f32.mrb[126].mxu1 }
 0x5b5   : > { %v20704_v36 = vsel %vm28716_vm9, %v20702_v11, %v20703_v32  ;;  %v20705_v45 = vrot.slane %v20703_v32, 4  ;;  %v20712_v43 = vrot.slane %v22277_v63, 6  ;;  %v19945_v50 = vmul.f32 %v30515_v14, %v18993_v25  ;;  %v30003_v46 = vpop.f32.mrb[125].mxu0  ;;  %v30014_v11 = vpop.f32.mrb[127].mxu1 }
 0x5b6   : > { %21040 = vst [vmem:[%s27220_s24 + $0x1b0] sm:$0xf] %v20704_v36  ;;  %v19950_v24 = vmul.f32 %v29829_v3, %v18998_v56  ;;  %v19948_v38 = vmul.f32 %v29781_v17, %v18996_v9  ;;  %v18863_v57 = vadd.f32 %v29633_v55, %v18720_v62  ;;  %v18718_v39 = vmul.f32 %v29615_v59, %v24485_v27  ;;  %v30012_v49 = vpop.f32.mrb[126].mxu0  ;;  %v30028_v36 = vpop.permute.xlu0 %19752 }
 0x5b7   : > { %v20713_v60 = vsel %vm28716_vm9, %v20711_v51, %v20712_v43  ;;  %v20714_v6 = vrot.slane %v20712_v43, 4  ;;  %v22275_v40 = vpack.c.bf16 %v19945_v50, %v19945_v50  ;;  %v18723_v32 = vmul.f32 %v29615_v59, %v24486_v5  ;;  %v30019_v63 = vpop.f32.mrb[127].mxu0 }
 0x5b8   : > { %21043 = vst [vmem:[%s27220_s24 + $0x1bc] sm:$0xf] %v20713_v60  ;;  %v22280_v3 = vpack.c.bf16 %v19950_v24, %v19950_v24  ;;  %v22278_v17 = vpack.c.bf16 %v19948_v38, %v19948_v38  ;;  %v18999_v25 = vmax.f32 %v18863_v57, 0.0  ;;  %v18861_v56 = vadd.f32 %v29633_v55, %v18718_v39  ;;  %v30033_v24 = vpop.permute.xlu1 %19757 }
 0x5b9   : > { %v20706_v9 = vrot.slane %v22275_v40, 6  ;;  %v18866_v62 = vadd.f32 %v29633_v55, %v18723_v32  ;;  %v24487_v27 = vadd.f32 %v29857_v54, %v29850_v31  ;;  %v24488_v51 = vadd.f32 %v29863_v8, %v29859_v13 }
 0x5ba   : > { %v30030_v5 = vrot.slane %v22280_v3, 6  ;;  %v20715_v43 = vrot.slane %v22278_v17, 6  ;;  %v19951_v14 = vmul.f32 %v29835_v15, %v18999_v25  ;;  %v18997_v50 = vmax.f32 %v18861_v56, 0.0  ;;  %v30038_v54 = vpop.f32.mrb[128].mxu1 }
 0x5bb   : > { %v20707_v38 = vsel %vm28716_vm9, %v20705_v45, %v20706_v9  ;;  %v20708_v57 = vrot.slane %v20706_v9, 4  ;;  %v19002_v39 = vmax.f32 %v18866_v62, 0.0  ;;  %v18721_v31 = vmul.f32 %v29615_v59, %v24487_v27  ;;  %v30046_v32 = vpop.f32.mrb[129].mxu1 }
 0x5bc   : > { %21041 = vst [vmem:[%s27220_s24 + $0x1b4] sm:$0xf] %v20707_v38  ;;  %v20723_v13 = vrot.slane %v30030_v5, 4  ;;  %v20716_v15 = vsel %vm28716_vm9, %v20714_v6, %v20715_v43  ;;  %v20717_v8 = vrot.slane %v20715_v43, 4  ;;  %v22281_v60 = vpack.c.bf16 %v19951_v14, %v19951_v14  ;;  %v30044_v40 = vpop.f32.mrb[128].mxu0  ;;  %v30057_v6 = vpop.f32.mrb[130].mxu1 }
 0x5bd   : > { %v20710_v45 = vsel %vm28716_vm9, %v20708_v57, %v29971_v41  ;;  %21044 = vst [vmem:[%s27220_s24 + $0x1c0] sm:$0xf] %v20716_v15  ;;  %v19949_v3 = vmul.f32 %v29786_v35, %v18997_v50  ;;  %v19954_v17 = vmul.f32 %v29925_v19, %v19002_v39  ;;  %v18864_v25 = vadd.f32 %v29633_v55, %v18721_v31  ;;  %v30055_v56 = vpop.f32.mrb[129].mxu0  ;;  %v30067_v19 = vpop.f32.mrb[131].mxu1 }
 0x5be   : > { %21042 = vst [vmem:[%s27220_s24 + $0x1b8] sm:$0xf] %v20710_v45  ;;  %v20724_v9 = vrot.slane %v22281_v60, 6  ;;  %v18724_v62 = vmul.f32 %v29615_v59, %v24488_v51  ;;  %v24489_v27 = vadd.f32 %v29873_v28, %v29865_v22  ;;  %v24490_v41 = vadd.f32 %v29898_v34, %v29891_v44  ;;  %v30065_v35 = vpop.f32.mrb[130].mxu0  ;;  %v30077_v44 = vpop.permute.xlu0 %19762 }
 0x5bf   : > { %v22279_v43 = vpack.c.bf16 %v19949_v3, %v19949_v3  ;;  %v22284_v14 = vpack.c.bf16 %v19954_v17, %v19954_v17  ;;  %v19000_v50 = vmax.f32 %v18864_v25, 0.0  ;;  %v24491_v38 = vadd.f32 %v29903_v30, %v29900_v26  ;;  %v30071_v57 = vpop.f32.mrb[131].mxu0  ;;  %v30088_v3 = vpop.permute.xlu1 %19767 }
 0x5c0   : > { %v20725_v51 = vsel %vm28716_vm9, %v20723_v13, %v20724_v9  ;;  %v20726_v39 = vrot.slane %v20724_v9, 4  ;;  %v18867_v22 = vadd.f32 %v29633_v55, %v18724_v62  ;;  %v18722_v28 = vmul.f32 %v29615_v59, %v24489_v27 }
 0x5c1   : > { %21047 = vst [vmem:[%s27220_s24 + $0x1cc] sm:$0xf] %v20725_v51  ;;  %v20718_v34 = vrot.slane %v22279_v43, 6  ;;  %v30080_v31 = vrot.slane %v22284_v14, 6  ;;  %v19952_v15 = vmul.f32 %v29881_v20, %v19000_v50  ;;  %v18727_v26 = vmul.f32 %v29615_v59, %v24490_v41 }
 0x5c2   : > { %v19003_v30 = vmax.f32 %v18867_v22, 0.0  ;;  %v18865_v60 = vadd.f32 %v29633_v55, %v18722_v28  ;;  %v18725_v13 = vmul.f32 %v29615_v59, %v24491_v38  ;;  %v24492_v45 = vadd.f32 %v29911_v47, %v29905_v4  ;;  %v30093_v62 = vpop.f32.mrb[132].mxu1 }
 0x5c3   : > { %v20719_v17 = vsel %vm28716_vm9, %v20717_v8, %v20718_v34  ;;  %v20720_v25 = vrot.slane %v20718_v34, 4  ;;  %v20735_v9 = vrot.slane %v30080_v31, 4  ;;  %v22282_v20 = vpack.c.bf16 %v19952_v15, %v19952_v15  ;;  %v30101_v14 = vpop.f32.mrb[133].mxu1 }
 0x5c4   : > { %21045 = vst [vmem:[%s27220_s24 + $0x1c4] sm:$0xf] %v20719_v17  ;;  %v19955_v27 = vmul.f32 %v29930_v16, %v19003_v30  ;;  %v19001_v41 = vmax.f32 %v18865_v60, 0.0  ;;  %v18870_v43 = vadd.f32 %v29633_v55, %v18727_v26  ;;  %v18868_v4 = vadd.f32 %v29633_v55, %v18725_v13  ;;  %v30099_v47 = vpop.f32.mrb[132].mxu0  ;;  %v30111_v22 = vpop.f32.mrb[134].mxu1 }
 0x5c5   : > { %v20722_v8 = vsel %vm28716_vm9, %v20720_v25, %v30030_v5  ;;  %v20727_v50 = vrot.slane %v22282_v20, 6  ;;  %v18728_v38 = vmul.f32 %v29615_v59, %v24492_v45  ;;  %v24493_v51 = vadd.f32 %v29917_v33, %v29913_v29  ;;  %v30109_v16 = vpop.f32.mrb[133].mxu0  ;;  %v30117_v5 = vpop.f32.mrb[135].mxu1 }
 0x5c6   : > { %21046 = vst [vmem:[%s27220_s24 + $0x1c8] sm:$0xf] %v20722_v8  ;;  %v22285_v28 = vpack.c.bf16 %v19955_v27, %v19955_v27  ;;  %v19953_v34 = vmul.f32 %v29885_v52, %v19001_v41  ;;  %v19006_v15 = vmax.f32 %v18870_v43, 0.0  ;;  %v19004_v26 = vmax.f32 %v18868_v4, 0.0  ;;  %v30115_v30 = vpop.f32.mrb[134].mxu0  ;;  %v19773_v60 = vpop.permute.xlu0 %19772 }
 0x5c7   : > { %v20728_v13 = vsel %vm28716_vm9, %v20726_v39, %v20727_v50  ;;  %v20729_v29 = vrot.slane %v20727_v50, 4  ;;  %v18871_v33 = vadd.f32 %v29633_v55, %v18728_v38  ;;  %v18726_v45 = vmul.f32 %v29615_v59, %v24493_v51  ;;  %v30123_v17 = vpop.f32.mrb[135].mxu0 }
 0x5c8   : > { %21048 = vst [vmem:[%s27220_s24 + $0x1d0] sm:$0xf] %v20728_v13  ;;  %v20736_v52 = vrot.slane %v22285_v28, 6  ;;  %v22283_v25 = vpack.c.bf16 %v19953_v34, %v19953_v34  ;;  %v19958_v20 = vmul.f32 %v30028_v36, %v19006_v15  ;;  %v19956_v27 = vmul.f32 %v29978_v48, %v19004_v26  ;;  %v19778_v28 = vpop.permute.xlu1 %19777 }
 0x5c9   : > { %v19007_v41 = vmax.f32 %v18871_v33, 0.0  ;;  %v18869_v43 = vadd.f32 %v29633_v55, %v18726_v45  ;;  %v24494_v39 = vadd.f32 %v29942_v10, %v29937_v0  ;;  %v24495_v4 = vadd.f32 %v29953_v7, %v29944_v1 }
 0x5ca   : > { %v20737_v8 = vsel %vm28716_vm9, %v20735_v9, %v20736_v52  ;;  %v20738_v50 = vrot.slane %v20736_v52, 4  ;;  %v20730_v38 = vrot.slane %v22283_v25, 6  ;;  %v22288_v51 = vpack.c.bf16 %v19958_v20, %v19958_v20  ;;  %v30141_v9 = vpop.permute.xlu0 %19782 }
 0x5cb   : > { %21051 = vst [vmem:[%s27220_s24 + $0x1dc] sm:$0xf] %v20737_v8  ;;  %v22286_v36 = vpack.c.bf16 %v19956_v27, %v19956_v27  ;;  %v19959_v48 = vmul.f32 %v30033_v24, %v19007_v41  ;;  %v19005_v34 = vmax.f32 %v18869_v43, 0.0  ;;  %v18731_v15 = vmul.f32 %v29615_v59, %v24494_v39 }
 0x5cc   : > { %v20731_v0 = vsel %vm28716_vm9, %v20729_v29, %v20730_v38  ;;  %v20732_v10 = vrot.slane %v20730_v38, 4  ;;  %v20745_v1 = vrot.slane %v22288_v51, 6  ;;  %v18729_v7 = vmul.f32 %v29615_v59, %v24495_v4  ;;  %v30159_v8 = vpop.permute.xlu1 %19787 }
 0x5cd   : > { %21049 = vst [vmem:[%s27220_s24 + $0x1d4] sm:$0xf] %v20731_v0  ;;  %v20739_v26 = vrot.slane %v22286_v36, 6  ;;  %v22289_v13 = vpack.c.bf16 %v19959_v48, %v19959_v48  ;;  %v19957_v33 = vmul.f32 %v29986_v53, %v19005_v34  ;;  %v18874_v24 = vadd.f32 %v29633_v55, %v18731_v15 }
 0x5ce   : > { %v20734_v45 = vsel %vm28716_vm9, %v20732_v10, %v30080_v31  ;;  %v20747_v52 = vrot.slane %v20745_v1, 4  ;;  %v18872_v29 = vadd.f32 %v29633_v55, %v18729_v7  ;;  %v24496_v25 = vadd.f32 %v29959_v42, %v29955_v23 }
 0x5cf   : > { %21050 = vst [vmem:[%s27220_s24 + $0x1d8] sm:$0xf] %v20734_v45  ;;  %v20740_v20 = vsel %vm28716_vm9, %v20738_v50, %v20739_v26  ;;  %v20741_v27 = vrot.slane %v20739_v26, 4  ;;  %v20748_v41 = vrot.slane %v22289_v13, 6  ;;  %v22287_v53 = vpack.c.bf16 %v19957_v33, %v19957_v33  ;;  %v30182_v13 = vld [vmem:[%s30298_s2] ss:$0 sm:$0xff] }
 0x5d0   : > { %21052 = vst [vmem:[%s27220_s24 + $0x1e0] sm:$0xf] %v20740_v20  ;;  %v19010_v43 = vmax.f32 %v18874_v24, 0.0  ;;  %v19008_v39 = vmax.f32 %v18872_v29, 0.0  ;;  %v18732_v4 = vmul.f32 %v29615_v59, %v24496_v25  ;;  %v24497_v31 = vadd.f32 %v29967_v2, %v29961_v12  ;;  %v19793_v12 = vpop.permute.xlu0 %19792 }
 0x5d1   : > { %v20749_v23 = vsel %vm28716_vm9, %v20747_v52, %v20748_v41  ;;  %v20750_v42 = vrot.slane %v20748_v41, 4  ;;  %v20742_v38 = vrot.slane %v22287_v53, 6  ;;  %v24498_v50 = vadd.f32 %v29996_v58, %v29989_v61  ;;  %v19798_v52 = vpop.permute.xlu1 %19797 }
 0x5d2   : > { %21055 = vst [vmem:[%s27220_s24 + $0x1ec] sm:$0xf] %v20749_v23  ;;  %v19962_v51 = vmul.f32 %v19773_v60, %v19010_v43  ;;  %v19960_v36 = vmul.f32 %v30077_v44, %v19008_v39  ;;  %v18875_v48 = vadd.f32 %v29633_v55, %v18732_v4  ;;  %v18730_v34 = vmul.f32 %v29615_v59, %v24497_v31 }
 0x5d3   : > { %v20743_v2 = vsel %vm28716_vm9, %v20741_v27, %v20742_v38  ;;  %v20744_v15 = vrot.slane %v20742_v38, 4  ;;  %v18735_v0 = vmul.f32 %v29615_v59, %v24498_v50  ;;  %v24499_v10 = vadd.f32 %v30003_v46, %v29998_v18 }
 0x5d4   : > { %21053 = vst [vmem:[%s27220_s24 + $0x1e4] sm:$0xf] %v20743_v2  ;;  %v22292_v61 = vpack.c.bf16 %v19962_v51, %v19962_v51  ;;  %v22290_v58 = vpack.c.bf16 %v19960_v36, %v19960_v36  ;;  %v19011_v60 = vmax.f32 %v18875_v48, 0.0  ;;  %v18873_v44 = vadd.f32 %v29633_v55, %v18730_v34  ;;  %v19803_v41 = vpop.permute.xlu0 %19802 }
 0x5d5   : > { %v20746_v7 = vsel %vm28716_vm9, %v20744_v15, %v20745_v1  ;;  %v18878_v26 = vadd.f32 %v29633_v55, %v18735_v0  ;;  %v18733_v59 = vmul.f32 %v30182_v13, %v24499_v10  ;;  %v24500_v18 = vadd.f32 %v30012_v49, %v30005_v21  ;;  %v30191_v55 = vld [vmem:[%s30299_s3] ss:$0 sm:$0xff] }
 0x5d6   : > { %21054 = vst [vmem:[%s27220_s24 + $0x1e8] sm:$0xf] %v20746_v7  ;;  %v20757_v46 = vrot.slane %v22292_v61, 6  ;;  %v20751_v33 = vrot.slane %v22290_v58, 6  ;;  %v19963_v24 = vmul.f32 %v19778_v28, %v19011_v60  ;;  %v19009_v45 = vmax.f32 %v18873_v44, 0.0 }
 0x5d7   : > { %v19014_v1 = vmax.f32 %v18878_v26, 0.0  ;;  %v18876_v29 = vadd.f32 %v30191_v55, %v18733_v59  ;;  %v18736_v25 = vmul.f32 %v30182_v13, %v24500_v18  ;;  %v24501_v21 = vadd.f32 %v30019_v63, %v30014_v11 }
 0x5d8   : > { %v20759_v49 = vrot.slane %v20757_v46, 4  ;;  %v20752_v20 = vsel %vm28716_vm9, %v20750_v42, %v20751_v33  ;;  %v20753_v28 = vrot.slane %v20751_v33, 4  ;;  %v22293_v27 = vpack.c.bf16 %v19963_v24, %v19963_v24  ;;  %v19813_v10 = vpop.permute.xlu0 %19812 }
 0x5d9   : > { %21056 = vst [vmem:[%s27220_s24 + $0x1f0] sm:$0xf] %v20752_v20  ;;  %v19961_v53 = vmul.f32 %v30088_v3, %v19009_v45  ;;  %v19966_v43 = vmul.f32 %v19793_v12, %v19014_v1  ;;  %v19012_v39 = vmax.f32 %v18876_v29, 0.0  ;;  %v18879_v4 = vadd.f32 %v30191_v55, %v18736_v25  ;;  %v30212_v12 = vpop.permute.xlu1 %19807 }
 0x5da   : > { %v20760_v31 = vrot.slane %v22293_v27, 6  ;;  %v18734_v23 = vmul.f32 %v30182_v13, %v24501_v21  ;;  %v24502_v11 = vadd.f32 %v30044_v40, %v30038_v54  ;;  %v24503_v63 = vadd.f32 %v30055_v56, %v30046_v32 }
 0x5db   : > { %v22291_v42 = vpack.c.bf16 %v19961_v53, %v19961_v53  ;;  %v22296_v38 = vpack.c.bf16 %v19966_v43, %v19966_v43  ;;  %v19964_v50 = vmul.f32 %v30141_v9, %v19012_v39  ;;  %v19015_v51 = vmax.f32 %v18879_v4, 0.0 }
 0x5dc   : > { %v20761_v3 = vsel %vm28716_vm9, %v20759_v49, %v20760_v31  ;;  %v20762_v36 = vrot.slane %v20760_v31, 4  ;;  %v18877_v48 = vadd.f32 %v30191_v55, %v18734_v23  ;;  %v18739_v34 = vmul.f32 %v30182_v13, %v24502_v11  ;;  %v19823_v43 = vpop.permute.xlu0 %19822 }
 0x5dd   : > { %21059 = vst [vmem:[%s27220_s24 + $0x1fc] sm:$0xf] %v20761_v3  ;;  %v20754_v54 = vrot.slane %v22291_v42, 6  ;;  %v20769_v40 = vrot.slane %v22296_v38, 6  ;;  %v22294_v32 = vpack.c.bf16 %v19964_v50, %v19964_v50  ;;  %v19967_v56 = vmul.f32 %v19798_v52, %v19015_v51 }
 0x5de   : > { %v19013_v2 = vmax.f32 %v18877_v48, 0.0  ;;  %v18882_v9 = vadd.f32 %v30191_v55, %v18739_v34  ;;  %v18737_v15 = vmul.f32 %v30182_v13, %v24503_v63  ;;  %v24504_v0 = vadd.f32 %v30065_v35, %v30057_v6 }
 0x5df   : > { %v20755_v61 = vsel %vm28716_vm9, %v20753_v28, %v20754_v54  ;;  %v20756_v58 = vrot.slane %v20754_v54, 4  ;;  %v20771_v60 = vrot.slane %v20769_v40, 4  ;;  %v20763_v44 = vrot.slane %v22294_v32, 6 }
 0x5e0   : > { %21057 = vst [vmem:[%s27220_s24 + $0x1f4] sm:$0xf] %v20755_v61  ;;  %v22297_v7 = vpack.c.bf16 %v19967_v56, %v19967_v56  ;;  %v19965_v26 = vmul.f32 %v30159_v8, %v19013_v2  ;;  %v19018_v59 = vmax.f32 %v18882_v9, 0.0  ;;  %v18880_v18 = vadd.f32 %v30191_v55, %v18737_v15  ;;  %v19818_v8 = vpop.permute.xlu1 %19817  ;;  %v19833_v56 = vpop.permute.xlu0 %19832 }
 0x5e1   : > { %v20758_v33 = vsel %vm28716_vm9, %v20756_v58, %v20757_v46  ;;  %v20764_v6 = vsel %vm28716_vm9, %v20762_v36, %v20763_v44  ;;  %v20765_v35 = vrot.slane %v20763_v44, 4  ;;  %v18740_v24 = vmul.f32 %v30182_v13, %v24504_v0 }
 0x5e2   : > { %21058 = vst [vmem:[%s27220_s24 + $0x1f8] sm:$0xf] %v20758_v33  ;;  %21060 = vst [vmem:[%s27220_s24 + $0x200] sm:$0xf] %v20764_v6  ;;  %v20772_v45 = vrot.slane %v22297_v7, 6  ;;  %v22295_v52 = vpack.c.bf16 %v19965_v26, %v19965_v26  ;;  %v19970_v1 = vmul.f32 %v19813_v10, %v19018_v59  ;;  %v19016_v29 = vmax.f32 %v18880_v18, 0.0 }
 0x5e3   : > { %v18883_v25 = vadd.f32 %v30191_v55, %v18740_v24  ;;  %v24505_v21 = vadd.f32 %v30071_v57, %v30067_v19  ;;  %v24506_v46 = vadd.f32 %v30099_v47, %v30093_v62  ;;  %v24507_v49 = vadd.f32 %v30109_v16, %v30101_v14 }
 0x5e4   : > { %v20773_v20 = vsel %vm28716_vm9, %v20771_v60, %v20772_v45  ;;  %v20774_v28 = vrot.slane %v20772_v45, 4  ;;  %v20766_v27 = vrot.slane %v22295_v52, 6  ;;  %v22300_v53 = vpack.c.bf16 %v19970_v1, %v19970_v1  ;;  %v19828_v51 = vpop.permute.xlu1 %19827 }
 0x5e5   : > { %21063 = vst [vmem:[%s27220_s24 + $0x20c] sm:$0xf] %v20773_v20  ;;  %v19968_v39 = vmul.f32 %v19803_v41, %v19016_v29  ;;  %v19019_v4 = vmax.f32 %v18883_v25, 0.0  ;;  %v18738_v31 = vmul.f32 %v30182_v13, %v24505_v21  ;;  %v18743_v19 = vmul.f32 %v30182_v13, %v24506_v46 }
 0x5e6   : > { %v20767_v57 = vsel %vm28716_vm9, %v20765_v35, %v20766_v27  ;;  %v20768_v62 = vrot.slane %v20766_v27, 4  ;;  %v20781_v47 = vrot.slane %v22300_v53, 6  ;;  %v18741_v14 = vmul.f32 %v30182_v13, %v24507_v49 }
 0x5e7   : > { %21061 = vst [vmem:[%s27220_s24 + $0x204] sm:$0xf] %v20767_v57  ;;  %v22298_v16 = vpack.c.bf16 %v19968_v39, %v19968_v39  ;;  %v19971_v23 = vmul.f32 %v19818_v8, %v19019_v4  ;;  %v18881_v11 = vadd.f32 %v30191_v55, %v18738_v31  ;;  %v18886_v41 = vadd.f32 %v30191_v55, %v18743_v19 }
 0x5e8   : > { %v20770_v63 = vsel %vm28716_vm9, %v20768_v62, %v20769_v40  ;;  %v20783_v42 = vrot.slane %v20781_v47, 4  ;;  %v18884_v38 = vadd.f32 %v30191_v55, %v18741_v14  ;;  %v24508_v50 = vadd.f32 %v30115_v30, %v30111_v22  ;;  %v19838_v7 = vpop.permute.xlu1 %19837 }
 0x5e9   : > { %21062 = vst [vmem:[%s27220_s24 + $0x208] sm:$0xf] %v20770_v63  ;;  %v20775_v3 = vrot.slane %v22298_v16, 6  ;;  %v22301_v36 = vpack.c.bf16 %v19971_v23, %v19971_v23  ;;  %v19017_v48 = vmax.f32 %v18881_v11, 0.0  ;;  %v19022_v34 = vmax.f32 %v18886_v41, 0.0 }
 0x5ea   : > { %v19020_v54 = vmax.f32 %v18884_v38, 0.0  ;;  %v18744_v32 = vmul.f32 %v30182_v13, %v24508_v50  ;;  %v24509_v40 = vadd.f32 %v30123_v17, %v30117_v5 }
 0x5eb   : > { %v20776_v2 = vsel %vm28716_vm9, %v20774_v28, %v20775_v3  ;;  %v20784_v9 = vrot.slane %v22301_v36, 6  ;;  %v19969_v22 = vmul.f32 %v30212_v12, %v19017_v48  ;;  %v19974_v30 = vmul.f32 %v19833_v56, %v19022_v34 }
 0x5ec   : > { %21064 = vst [vmem:[%s27220_s24 + $0x210] sm:$0xf] %v20776_v2  ;;  %v19972_v15 = vmul.f32 %v19823_v43, %v19020_v54  ;;  %v18887_v0 = vadd.f32 %v30191_v55, %v18744_v32  ;;  %v18742_v10 = vmul.f32 %v30182_v13, %v24509_v40  ;;  %v20777_v61 = vrot.slane %v20775_v3, 4 }
 0x5ed   : > { %v20785_v58 = vsel %vm28716_vm9, %v20783_v42, %v20784_v9  ;;  %v22299_v5 = vpack.c.bf16 %v19969_v22, %v19969_v22  ;;  %v22304_v17 = vpack.c.bf16 %v19974_v30, %v19974_v30  ;;  %v20786_v26 = vrot.slane %v20784_v9, 4 }
 0x5ee   : > { %21067 = vst [vmem:[%s27220_s24 + $0x21c] sm:$0xf] %v20785_v58  ;;  %v22302_v60 = vpack.c.bf16 %v19972_v15, %v19972_v15  ;;  %v19023_v44 = vmax.f32 %v18887_v0, 0.0  ;;  %v18885_v12 = vadd.f32 %v30191_v55, %v18742_v10 }
 0x5ef   : > { %v20778_v59 = vrot.slane %v22299_v5, 6  ;;  %v20793_v18 = vrot.slane %v22304_v17, 6 }
 0x5f0   : > { %v20787_v33 = vrot.slane %v22302_v60, 6  ;;  %v19975_v13 = vmul.f32 %v19838_v7, %v19023_v44  ;;  %v19021_v6 = vmax.f32 %v18885_v12, 0.0 }
 0x5f1   : > { %v20779_v35 = vsel %vm28716_vm9, %v20777_v61, %v20778_v59  ;;  %v20780_v24 = vrot.slane %v20778_v59, 4  ;;  %v20795_v45 = vrot.slane %v20793_v18, 4 }
 0x5f2   : > { %21065 = vst [vmem:[%s27220_s24 + $0x214] sm:$0xf] %v20779_v35  ;;  %v20788_v52 = vsel %vm28716_vm9, %v20786_v26, %v20787_v33  ;;  %v22305_v55 = vpack.c.bf16 %v19975_v13, %v19975_v13  ;;  %v19973_v29 = vmul.f32 %v19828_v51, %v19021_v6  ;;  %v20789_v25 = vrot.slane %v20787_v33, 4 }
 0x5f3   : > { %v20782_v1 = vsel %vm28716_vm9, %v20780_v24, %v20781_v47  ;;  %21068 = vst [vmem:[%s27220_s24 + $0x220] sm:$0xf] %v20788_v52 }
 0x5f4   : > { %21066 = vst [vmem:[%s27220_s24 + $0x218] sm:$0xf] %v20782_v1  ;;  %v20796_v8 = vrot.slane %v22305_v55, 6  ;;  %v22303_v21 = vpack.c.bf16 %v19973_v29, %v19973_v29 }
 0x5f6   : > { %v20797_v46 = vsel %vm28716_vm9, %v20795_v45, %v20796_v8  ;;  %v20798_v49 = vrot.slane %v20796_v8, 4  ;;  %v20790_v20 = vrot.slane %v22303_v21, 6 }
 0x5f7   : > { %21071 = vst [vmem:[%s27220_s24 + $0x22c] sm:$0xf] %v20797_v46 }
 0x5f8   : > { %21072 = vst [vmem:[%s27220_s24 + $0x230] sm:$0x3] %v20798_v49  ;;  %v20791_v28 = vsel %vm28716_vm9, %v20789_v25, %v20790_v20  ;;  %v20792_v27 = vrot.slane %v20790_v20, 4 }
 0x5f9   : > { %21069 = vst [vmem:[%s27220_s24 + $0x224] sm:$0xf] %v20791_v28 }
 0x5fa   : > { %v20794_v53 = vsel %vm28716_vm9, %v20792_v27, %v20793_v18 }
 0x5fb   : > { %21070 = vst [vmem:[%s27220_s24 + $0x228] sm:$0xf] %v20794_v53 }
 0x5fc PF: > { %s15_s20 = sadd.s32 1, %s26223_s20   ;;  %s30516_s18 = smov %s26219_s19 }
 0x5fd   : > { %p12_p5 = scmp.ge.s32.totalorder %s15_s20, 4   ;;  %s30517_s19 = smov %s30519_s21 }
 0x5ff   :  { %14 = sbr.rel (!%p12_p5) target bundleno = 2 (0x2), region = 87 }

</bundles_post_ra>
